<compile_context>
chip_gen: v6e
topology: v6e:2x2x1
jax: 0.10.0
libtpu: 0.0.40
codegen_flags: <defaults>
</compile_context>

<pallas_src>
import functools

import jax
import jax.numpy as jnp
from jax.experimental import pallas as pl
from jax.experimental.pallas import tpu as pltpu

LANE = 128


def _ceil_to(v, m):
    return (v + m - 1) // m * m


def _conv3x3_relu_kernel(x_ref, w_ref, b_ref, o_ref, patch_ref, *, dil):
    # x_ref    : (1, Hp, Wp, Cin_p)   bf16, spatially pre-padded by `dil`
    # w_ref    : (9*Cin_p, LANE)      bf16, rows ordered (kh, kw, cin)
    # b_ref    : (1, LANE)            f32
    # o_ref    : (1, Ho, Wo, LANE)    f32
    # patch_ref: (Ho*Wo, 9*Cin_p)     bf16 scratch -- im2col patch, built once
    #            per image (co == 0) and reused for every Cout tile.
    _, Hp, Wp, cin_p = x_ref.shape
    Ho, Wo = Hp - 2 * dil, Wp - 2 * dil
    M = Ho * Wo

    @pl.when(pl.program_id(1) == 0)
    def _build_patch():
        idx = 0
        for kh in range(3):
            r0 = kh * dil
            for kw in range(3):
                c0 = kw * dil
                # ref-view slice -> (Ho, Wo, Cin_p) -> (M, Cin_p), stored into
                # a lane-aligned column block of the scratch (no concat op).
                patch_ref[:, idx * cin_p:(idx + 1) * cin_p] = (
                    x_ref[0, r0:r0 + Ho, c0:c0 + Wo, :].reshape(M, cin_p))
                idx += 1

    # Single im2col matmul on the MXU: bf16 x bf16 -> f32 accumulation.
    acc = jnp.dot(patch_ref[...], w_ref[...],
                  preferred_element_type=jnp.float32)
    y = jnp.maximum(acc + b_ref[...], 0.0)          # bias + ReLU in f32
    o_ref[...] = y.reshape(1, Ho, Wo, LANE).astype(o_ref.dtype)


def conv3x3_bias_relu(x_nhwc, w_oihw, b, *, dilation):
    """3x3 'same' conv (stride 1, dilation 1 or 2) + bias + ReLU.

    x_nhwc : (N, H, W, Cin_p) float32, channels already zero-padded to a
             multiple of 128.
    returns: (N, H, W, Cout_p) float32, Cout padded to a multiple of 128;
             padded channels are exactly zero so stages can be chained.
    """
    N, H, W, cin_p = x_nhwc.shape
    cout, cin, kh, kw = w_oihw.shape
    assert kh == 3 and kw == 3 and cin <= cin_p
    d = dilation
    cout_p = _ceil_to(cout, LANE)
    K = 9 * cin_p

    # Weights: OIHW -> HWIO, zero-pad Cin/Cout, flatten to (9*Cin_p, Cout_p).
    # Row order of the flattened K axis is (kh, kw, cin) -- must match the
    # patch-build order in the kernel.
    w_hwio = jnp.transpose(w_oihw, (2, 3, 1, 0))
    w_hwio = jnp.pad(
        w_hwio, ((0, 0), (0, 0), (0, cin_p - cin), (0, cout_p - cout)))
    w_flat = w_hwio.reshape(K, cout_p).astype(jnp.bfloat16)
    b_row = jnp.pad(b, (0, cout_p - cout)).reshape(1, cout_p).astype(jnp.float32)

    # Spatial halo padding + bf16 cast for the MXU operands.
    xp = jnp.pad(x_nhwc, ((0, 0), (d, d), (d, d), (0, 0))).astype(jnp.bfloat16)
    Hp, Wp = H + 2 * d, W + 2 * d

    # VMEM budget: double-buffered blocks + patch/acc scratch, with headroom,
    # clamped to v7x's 64 MiB physical ceiling.
    x_blk = Hp * Wp * cin_p * 2                       # bf16 input block
    w_blk = K * LANE * 2                              # bf16 weight tile
    b_blk = LANE * 4
    o_blk = H * W * LANE * 4                          # f32 output tile
    patch_bytes = H * W * K * 2                       # bf16 im2col scratch
    acc_bytes = H * W * LANE * 4                      # f32 matmul result
    need = 2 * (x_blk + w_blk + b_blk + o_blk) + patch_bytes + acc_bytes
    vmem_limit = int(min(max(2 * need, 8 * 2**20), 64 * 2**20))

    n_co = cout_p // LANE
    kernel = functools.partial(_conv3x3_relu_kernel, dil=d)

    out = pl.pallas_call(
        kernel,
        out_shape=jax.ShapeDtypeStruct((N, H, W, cout_p), jnp.float32),
        grid_spec=pltpu.PrefetchScalarGridSpec(
            num_scalar_prefetch=0,
            grid=(N, n_co),
            in_specs=[
                # Constant block index along `co` -> no re-DMA of x per co.
                pl.BlockSpec((1, Hp, Wp, cin_p), lambda n, co: (n, 0, 0, 0)),
                pl.BlockSpec((K, LANE), lambda n, co: (0, co)),
                pl.BlockSpec((1, LANE), lambda n, co: (0, co)),
            ],
            out_specs=pl.BlockSpec((1, H, W, LANE), lambda n, co: (n, 0, 0, co)),
            scratch_shapes=[pltpu.VMEM((H * W, K), jnp.bfloat16)],
        ),
        compiler_params=pltpu.CompilerParams(
            dimension_semantics=("parallel", "arbitrary"),
            vmem_limit_bytes=vmem_limit,
        ),
    )(xp, w_flat, b_row)
    return out


def ssh_context_forward(x_nchw, params):
    """SSHContext.forward: 5 x (conv3x3 + ReLU) + channel concat."""
    n, c, h, w = x_nchw.shape
    cin_p = _ceil_to(c, LANE)
    x = jnp.transpose(x_nchw, (0, 2, 3, 1)).astype(jnp.float32)
    x = jnp.pad(x, ((0, 0), (0, 0), (0, 0), (0, cin_p - c)))

    x1 = conv3x3_bias_relu(x, params["w1"], params["b1"], dilation=1)
    x2 = conv3x3_bias_relu(x, params["w2"], params["b2"], dilation=2)
    x2_1 = conv3x3_bias_relu(x2, params["w2_1"], params["b2_1"], dilation=1)
    x2_2 = conv3x3_bias_relu(x2, params["w2_2"], params["b2_2"], dilation=2)
    x2_2 = conv3x3_bias_relu(x2_2, params["w2_2_1"], params["b2_2_1"], dilation=1)

    xc = params["w1"].shape[0]   # Xchannels
    xh = params["w2"].shape[0]   # Xchannels // 2
    out = jnp.concatenate(
        [x1[..., :xc], x2_1[..., :xh], x2_2[..., :xh]], axis=-1)
    return jnp.transpose(out, (0, 3, 1, 2))     # back to NCHW


def reference_forward(x_nchw, params):
    """Pure-JAX reference with the same bf16-operand / f32-accum contract."""
    def cbr(x, w, b, d):
        y = jax.lax.conv_general_dilated(
            x.astype(jnp.bfloat16), w.astype(jnp.bfloat16),
            window_strides=(1, 1),
            padding=[(d, d), (d, d)],
            rhs_dilation=(d, d),
            dimension_numbers=("NCHW", "OIHW", "NCHW"),
            preferred_element_type=jnp.float32)
        return jnp.maximum(y + b[None, :, None, None], 0.0)

    x1 = cbr(x_nchw, params["w1"], params["b1"], 1)
    x2 = cbr(x_nchw, params["w2"], params["b2"], 2)
    x2_1 = cbr(x2, params["w2_1"], params["b2_1"], 1)
    x2_2 = cbr(x2, params["w2_2"], params["b2_2"], 2)
    x2_2 = cbr(x2_2, params["w2_2_1"], params["b2_2_1"], 1)
    return jnp.concatenate([x1, x2_1, x2_2], axis=1)


def init_params(key, channels, xchannels):
    def conv_init(k, cout, cin):
        kw_, kb_ = jax.random.split(k)
        fan_in = cin * 9
        w = jax.random.normal(kw_, (cout, cin, 3, 3), jnp.float32) / jnp.sqrt(fan_in)
        b = 0.1 * jax.random.normal(kb_, (cout,), jnp.float32)
        return w, b

    ks = jax.random.split(key, 5)
    xh = xchannels // 2
    p = {}
    p["w1"], p["b1"] = conv_init(ks[0], xchannels, channels)
    p["w2"], p["b2"] = conv_init(ks[1], xh, channels)
    p["w2_1"], p["b2_1"] = conv_init(ks[2], xh, xh)
    p["w2_2"], p["b2_2"] = conv_init(ks[3], xh, xh)
    p["w2_2_1"], p["b2_2_1"] = conv_init(ks[4], xh, xh)
    return p


if __name__ == "__main__":
    # Small shapes consistent with SSHContext(channels=8, Xchannels=16).
    N, C, H, W = 2, 8, 16, 16
    XCH = 16

    key = jax.random.PRNGKey(0)
    kx, kp = jax.random.split(key)
    x = jax.random.normal(kx, (N, C, H, W), jnp.float32)
    params = init_params(kp, C, XCH)

    out = jax.block_until_ready(jax.jit(ssh_context_forward)(x, params))
    ref = jax.block_until_ready(reference_forward(x, params))

    assert out.shape == (N, 2 * XCH, H, W), out.shape
    max_err = float(jnp.max(jnp.abs(out - ref)))
    assert jnp.allclose(out, ref, atol=2e-2, rtol=2e-2), max_err

    print("KERNEL_OK")
</pallas_src>

<mosaic_0001>
module attributes {stable_mosaic.version = 11 : i64} {
  func.func @_conv3x3_relu_kernel(%arg0: i32, %arg1: i32, %arg2: memref<1x20x20x128xbf16, #tpu.memory_space<vmem>>, %arg3: memref<1152x128xbf16, #tpu.memory_space<vmem>>, %arg4: memref<1x128xf32, #tpu.memory_space<vmem>>, %arg5: memref<1x16x16x128xf32, #tpu.memory_space<vmem>>, %arg6: memref<256x1152xbf16, #tpu.memory_space<vmem>>) attributes {dimension_semantics = [#tpu.dimension_semantics<parallel>, #tpu.dimension_semantics<arbitrary>], iteration_bounds = array<i64: 2, 1>, scalar_prefetch = 0 : i64, scratch_operands = 1 : i64, tpu.core_type = #tpu.core_type<tc>, window_params = [{transform_indices = @transform_0, window_bounds = array<i64: 1, 20, 20, 128>}, {transform_indices = @transform_1, window_bounds = array<i64: 1152, 128>}, {transform_indices = @transform_2, window_bounds = array<i64: 1, 128>}, {transform_indices = @transform_3, window_bounds = array<i64: 1, 16, 16, 128>}]} {
    %c0_i32 = arith.constant 0 : i32
    %0 = arith.cmpi eq, %arg1, %c0_i32 : i32
    %1 = arith.extui %0 : i1 to i32
    %c0_i32_0 = arith.constant 0 : i32
    %2 = arith.cmpi ne, %1, %c0_i32_0 : i32
    scf.if %2 {
      %c0_11 = arith.constant 0 : index
      %c0_12 = arith.constant 0 : index
      %c0_13 = arith.constant 0 : index
      %c0_14 = arith.constant 0 : index
      %13 = vector.load %arg2[%c0_11, %c0_12, %c0_13, %c0_14] : memref<1x20x20x128xbf16, #tpu.memory_space<vmem>>, vector<1x16x16x128xbf16>
      %14 = vector.shape_cast %13 : vector<1x16x16x128xbf16> to vector<16x16x128xbf16>
      %15 = vector.shape_cast %14 : vector<16x16x128xbf16> to vector<256x128xbf16>
      %c0_15 = arith.constant 0 : index
      %c0_16 = arith.constant 0 : index
      %16 = vector.load %arg6[%c0_15, %c0_16] : memref<256x1152xbf16, #tpu.memory_space<vmem>>, vector<256x128xbf16>
      tpu.vector_store %arg6[%c0_15, %c0_16], %15 {strides = array<i32>} : memref<256x1152xbf16, #tpu.memory_space<vmem>>, vector<256x128xbf16>,
      %c0_17 = arith.constant 0 : index
      %c0_18 = arith.constant 0 : index
      %c2 = arith.constant 2 : index
      %c0_19 = arith.constant 0 : index
      %17 = vector.load %arg2[%c0_17, %c0_18, %c2, %c0_19] : memref<1x20x20x128xbf16, #tpu.memory_space<vmem>>, vector<1x16x16x128xbf16>
      %18 = vector.shape_cast %17 : vector<1x16x16x128xbf16> to vector<16x16x128xbf16>
      %19 = vector.shape_cast %18 : vector<16x16x128xbf16> to vector<256x128xbf16>
      %c0_20 = arith.constant 0 : index
      %c128 = arith.constant 128 : index
      %20 = vector.load %arg6[%c0_20, %c128] : memref<256x1152xbf16, #tpu.memory_space<vmem>>, vector<256x128xbf16>
      tpu.vector_store %arg6[%c0_20, %c128], %19 {strides = array<i32>} : memref<256x1152xbf16, #tpu.memory_space<vmem>>, vector<256x128xbf16>,
      %c0_21 = arith.constant 0 : index
      %c0_22 = arith.constant 0 : index
      %c4 = arith.constant 4 : index
      %c0_23 = arith.constant 0 : index
      %21 = vector.load %arg2[%c0_21, %c0_22, %c4, %c0_23] : memref<1x20x20x128xbf16, #tpu.memory_space<vmem>>, vector<1x16x16x128xbf16>
      %22 = vector.shape_cast %21 : vector<1x16x16x128xbf16> to vector<16x16x128xbf16>
      %23 = vector.shape_cast %22 : vector<16x16x128xbf16> to vector<256x128xbf16>
      %c0_24 = arith.constant 0 : index
      %c256 = arith.constant 256 : index
      %24 = vector.load %arg6[%c0_24, %c256] : memref<256x1152xbf16, #tpu.memory_space<vmem>>, vector<256x128xbf16>
      tpu.vector_store %arg6[%c0_24, %c256], %23 {strides = array<i32>} : memref<256x1152xbf16, #tpu.memory_space<vmem>>, vector<256x128xbf16>,
      %c0_25 = arith.constant 0 : index
      %c2_26 = arith.constant 2 : index
      %c0_27 = arith.constant 0 : index
      %c0_28 = arith.constant 0 : index
      %25 = vector.load %arg2[%c0_25, %c2_26, %c0_27, %c0_28] : memref<1x20x20x128xbf16, #tpu.memory_space<vmem>>, vector<1x16x16x128xbf16>
      %26 = vector.shape_cast %25 : vector<1x16x16x128xbf16> to vector<16x16x128xbf16>
      %27 = vector.shape_cast %26 : vector<16x16x128xbf16> to vector<256x128xbf16>
      %c0_29 = arith.constant 0 : index
      %c384 = arith.constant 384 : index
      %28 = vector.load %arg6[%c0_29, %c384] : memref<256x1152xbf16, #tpu.memory_space<vmem>>, vector<256x128xbf16>
      tpu.vector_store %arg6[%c0_29, %c384], %27 {strides = array<i32>} : memref<256x1152xbf16, #tpu.memory_space<vmem>>, vector<256x128xbf16>,
      %c0_30 = arith.constant 0 : index
      %c2_31 = arith.constant 2 : index
      %c2_32 = arith.constant 2 : index
      %c0_33 = arith.constant 0 : index
      %29 = vector.load %arg2[%c0_30, %c2_31, %c2_32, %c0_33] : memref<1x20x20x128xbf16, #tpu.memory_space<vmem>>, vector<1x16x16x128xbf16>
      %30 = vector.shape_cast %29 : vector<1x16x16x128xbf16> to vector<16x16x128xbf16>
      %31 = vector.shape_cast %30 : vector<16x16x128xbf16> to vector<256x128xbf16>
      %c0_34 = arith.constant 0 : index
      %c512 = arith.constant 512 : index
      %32 = vector.load %arg6[%c0_34, %c512] : memref<256x1152xbf16, #tpu.memory_space<vmem>>, vector<256x128xbf16>
      tpu.vector_store %arg6[%c0_34, %c512], %31 {strides = array<i32>} : memref<256x1152xbf16, #tpu.memory_space<vmem>>, vector<256x128xbf16>,
      %c0_35 = arith.constant 0 : index
      %c2_36 = arith.constant 2 : index
      %c4_37 = arith.constant 4 : index
      %c0_38 = arith.constant 0 : index
      %33 = vector.load %arg2[%c0_35, %c2_36, %c4_37, %c0_38] : memref<1x20x20x128xbf16, #tpu.memory_space<vmem>>, vector<1x16x16x128xbf16>
      %34 = vector.shape_cast %33 : vector<1x16x16x128xbf16> to vector<16x16x128xbf16>
      %35 = vector.shape_cast %34 : vector<16x16x128xbf16> to vector<256x128xbf16>
      %c0_39 = arith.constant 0 : index
      %c640 = arith.constant 640 : index
      %36 = vector.load %arg6[%c0_39, %c640] : memref<256x1152xbf16, #tpu.memory_space<vmem>>, vector<256x128xbf16>
      tpu.vector_store %arg6[%c0_39, %c640], %35 {strides = array<i32>} : memref<256x1152xbf16, #tpu.memory_space<vmem>>, vector<256x128xbf16>,
      %c0_40 = arith.constant 0 : index
      %c4_41 = arith.constant 4 : index
      %c0_42 = arith.constant 0 : index
      %c0_43 = arith.constant 0 : index
      %37 = vector.load %arg2[%c0_40, %c4_41, %c0_42, %c0_43] : memref<1x20x20x128xbf16, #tpu.memory_space<vmem>>, vector<1x16x16x128xbf16>
      %38 = vector.shape_cast %37 : vector<1x16x16x128xbf16> to vector<16x16x128xbf16>
      %39 = vector.shape_cast %38 : vector<16x16x128xbf16> to vector<256x128xbf16>
      %c0_44 = arith.constant 0 : index
      %c768 = arith.constant 768 : index
      %40 = vector.load %arg6[%c0_44, %c768] : memref<256x1152xbf16, #tpu.memory_space<vmem>>, vector<256x128xbf16>
      tpu.vector_store %arg6[%c0_44, %c768], %39 {strides = array<i32>} : memref<256x1152xbf16, #tpu.memory_space<vmem>>, vector<256x128xbf16>,
      %c0_45 = arith.constant 0 : index
      %c4_46 = arith.constant 4 : index
      %c2_47 = arith.constant 2 : index
      %c0_48 = arith.constant 0 : index
      %41 = vector.load %arg2[%c0_45, %c4_46, %c2_47, %c0_48] : memref<1x20x20x128xbf16, #tpu.memory_space<vmem>>, vector<1x16x16x128xbf16>
      %42 = vector.shape_cast %41 : vector<1x16x16x128xbf16> to vector<16x16x128xbf16>
      %43 = vector.shape_cast %42 : vector<16x16x128xbf16> to vector<256x128xbf16>
      %c0_49 = arith.constant 0 : index
      %c896 = arith.constant 896 : index
      %44 = vector.load %arg6[%c0_49, %c896] : memref<256x1152xbf16, #tpu.memory_space<vmem>>, vector<256x128xbf16>
      tpu.vector_store %arg6[%c0_49, %c896], %43 {strides = array<i32>} : memref<256x1152xbf16, #tpu.memory_space<vmem>>, vector<256x128xbf16>,
      %c0_50 = arith.constant 0 : index
      %c4_51 = arith.constant 4 : index
      %c4_52 = arith.constant 4 : index
      %c0_53 = arith.constant 0 : index
      %45 = vector.load %arg2[%c0_50, %c4_51, %c4_52, %c0_53] : memref<1x20x20x128xbf16, #tpu.memory_space<vmem>>, vector<1x16x16x128xbf16>
      %46 = vector.shape_cast %45 : vector<1x16x16x128xbf16> to vector<16x16x128xbf16>
      %47 = vector.shape_cast %46 : vector<16x16x128xbf16> to vector<256x128xbf16>
      %c0_54 = arith.constant 0 : index
      %c1024 = arith.constant 1024 : index
      %48 = vector.load %arg6[%c0_54, %c1024] : memref<256x1152xbf16, #tpu.memory_space<vmem>>, vector<256x128xbf16>
      tpu.vector_store %arg6[%c0_54, %c1024], %47 {strides = array<i32>} : memref<256x1152xbf16, #tpu.memory_space<vmem>>, vector<256x128xbf16>,
    } else {
    }
    %c0 = arith.constant 0 : index
    %c0_1 = arith.constant 0 : index
    %3 = vector.load %arg6[%c0, %c0_1] : memref<256x1152xbf16, #tpu.memory_space<vmem>>, vector<256x1152xbf16>
    %c0_2 = arith.constant 0 : index
    %c0_3 = arith.constant 0 : index
    %4 = vector.load %arg3[%c0_2, %c0_3] : memref<1152x128xbf16, #tpu.memory_space<vmem>>, vector<1152x128xbf16>
    %cst = arith.constant dense<0.000000e+00> : vector<256x128xf32>
    %5 = tpu.matmul %3, %4, %cst {dimension_numbers = #tpu.dot_dimension_numbers<[1], [0], [0], [1], [0, 0, 1, 1], [], []>} : vector<256x1152xbf16>, vector<1152x128xbf16>, vector<256x128xf32> -> vector<256x128xf32>
    %c0_4 = arith.constant 0 : index
    %c0_5 = arith.constant 0 : index
    %6 = vector.load %arg4[%c0_4, %c0_5] : memref<1x128xf32, #tpu.memory_space<vmem>>, vector<1x128xf32>
    %7 = vector.broadcast %6 : vector<1x128xf32> to vector<256x128xf32>
    %8 = arith.addf %5, %7 : vector<256x128xf32>
    %cst_6 = arith.constant 0.000000e+00 : f32
    %9 = vector.broadcast %cst_6 : f32 to vector<256x128xf32>
    %10 = arith.maximumf %8, %9 : vector<256x128xf32>
    %11 = vector.shape_cast %10 : vector<256x128xf32> to vector<1x16x16x128xf32>
    %c0_7 = arith.constant 0 : index
    %c0_8 = arith.constant 0 : index
    %c0_9 = arith.constant 0 : index
    %c0_10 = arith.constant 0 : index
    %12 = vector.load %arg5[%c0_7, %c0_8, %c0_9, %c0_10] : memref<1x16x16x128xf32, #tpu.memory_space<vmem>>, vector<1x16x16x128xf32>
    tpu.vector_store %arg5[%c0_7, %c0_8, %c0_9, %c0_10], %11 {strides = array<i32>} : memref<1x16x16x128xf32, #tpu.memory_space<vmem>>, vector<1x16x16x128xf32>,
    return
  }
  func.func @transform_0(%arg0: i32, %arg1: i32) -> (i32, i32, i32, i32) {
    %c0_i32 = arith.constant 0 : i32
    %c0_i32_0 = arith.constant 0 : i32
    %c0_i32_1 = arith.constant 0 : i32
    %c0_i32_2 = arith.constant 0 : i32
    return %arg0, %c0_i32, %c0_i32_0, %c0_i32_1 : i32, i32, i32, i32
  }
  func.func @transform_1(%arg0: i32, %arg1: i32) -> (i32, i32) {
    %c0_i32 = arith.constant 0 : i32
    %c0_i32_0 = arith.constant 0 : i32
    return %c0_i32, %arg1 : i32, i32
  }
  func.func @transform_2(%arg0: i32, %arg1: i32) -> (i32, i32) {
    %c0_i32 = arith.constant 0 : i32
    %c0_i32_0 = arith.constant 0 : i32
    return %c0_i32, %arg1 : i32, i32
  }
  func.func @transform_3(%arg0: i32, %arg1: i32) -> (i32, i32, i32, i32) {
    %c0_i32 = arith.constant 0 : i32
    %c0_i32_0 = arith.constant 0 : i32
    %c0_i32_1 = arith.constant 0 : i32
    return %arg0, %c0_i32, %c0_i32_0, %arg1 : i32, i32, i32, i32
  }
}

module attributes {stable_mosaic.version = 11 : i64} {
  func.func @_conv3x3_relu_kernel(%arg0: i32, %arg1: i32, %arg2: memref<1x18x18x128xbf16, #tpu.memory_space<vmem>>, %arg3: memref<1152x128xbf16, #tpu.memory_space<vmem>>, %arg4: memref<1x128xf32, #tpu.memory_space<vmem>>, %arg5: memref<1x16x16x128xf32, #tpu.memory_space<vmem>>, %arg6: memref<256x1152xbf16, #tpu.memory_space<vmem>>) attributes {dimension_semantics = [#tpu.dimension_semantics<parallel>, #tpu.dimension_semantics<arbitrary>], iteration_bounds = array<i64: 2, 1>, scalar_prefetch = 0 : i64, scratch_operands = 1 : i64, tpu.core_type = #tpu.core_type<tc>, window_params = [{transform_indices = @transform_0, window_bounds = array<i64: 1, 18, 18, 128>}, {transform_indices = @transform_1, window_bounds = array<i64: 1152, 128>}, {transform_indices = @transform_2, window_bounds = array<i64: 1, 128>}, {transform_indices = @transform_3, window_bounds = array<i64: 1, 16, 16, 128>}]} {
    %c0_i32 = arith.constant 0 : i32
    %0 = arith.cmpi eq, %arg1, %c0_i32 : i32
    %1 = arith.extui %0 : i1 to i32
    %c0_i32_0 = arith.constant 0 : i32
    %2 = arith.cmpi ne, %1, %c0_i32_0 : i32
    scf.if %2 {
      %c0_11 = arith.constant 0 : index
      %c0_12 = arith.constant 0 : index
      %c0_13 = arith.constant 0 : index
      %c0_14 = arith.constant 0 : index
      %13 = vector.load %arg2[%c0_11, %c0_12, %c0_13, %c0_14] : memref<1x18x18x128xbf16, #tpu.memory_space<vmem>>, vector<1x16x16x128xbf16>
      %14 = vector.shape_cast %13 : vector<1x16x16x128xbf16> to vector<16x16x128xbf16>
      %15 = vector.shape_cast %14 : vector<16x16x128xbf16> to vector<256x128xbf16>
      %c0_15 = arith.constant 0 : index
      %c0_16 = arith.constant 0 : index
      %16 = vector.load %arg6[%c0_15, %c0_16] : memref<256x1152xbf16, #tpu.memory_space<vmem>>, vector<256x128xbf16>
      tpu.vector_store %arg6[%c0_15, %c0_16], %15 {strides = array<i32>} : memref<256x1152xbf16, #tpu.memory_space<vmem>>, vector<256x128xbf16>,
      %c0_17 = arith.constant 0 : index
      %c0_18 = arith.constant 0 : index
      %c1 = arith.constant 1 : index
      %c0_19 = arith.constant 0 : index
      %17 = vector.load %arg2[%c0_17, %c0_18, %c1, %c0_19] : memref<1x18x18x128xbf16, #tpu.memory_space<vmem>>, vector<1x16x16x128xbf16>
      %18 = vector.shape_cast %17 : vector<1x16x16x128xbf16> to vector<16x16x128xbf16>
      %19 = vector.shape_cast %18 : vector<16x16x128xbf16> to vector<256x128xbf16>
      %c0_20 = arith.constant 0 : index
      %c128 = arith.constant 128 : index
      %20 = vector.load %arg6[%c0_20, %c128] : memref<256x1152xbf16, #tpu.memory_space<vmem>>, vector<256x128xbf16>
      tpu.vector_store %arg6[%c0_20, %c128], %19 {strides = array<i32>} : memref<256x1152xbf16, #tpu.memory_space<vmem>>, vector<256x128xbf16>,
      %c0_21 = arith.constant 0 : index
      %c0_22 = arith.constant 0 : index
      %c2 = arith.constant 2 : index
      %c0_23 = arith.constant 0 : index
      %21 = vector.load %arg2[%c0_21, %c0_22, %c2, %c0_23] : memref<1x18x18x128xbf16, #tpu.memory_space<vmem>>, vector<1x16x16x128xbf16>
      %22 = vector.shape_cast %21 : vector<1x16x16x128xbf16> to vector<16x16x128xbf16>
      %23 = vector.shape_cast %22 : vector<16x16x128xbf16> to vector<256x128xbf16>
      %c0_24 = arith.constant 0 : index
      %c256 = arith.constant 256 : index
      %24 = vector.load %arg6[%c0_24, %c256] : memref<256x1152xbf16, #tpu.memory_space<vmem>>, vector<256x128xbf16>
      tpu.vector_store %arg6[%c0_24, %c256], %23 {strides = array<i32>} : memref<256x1152xbf16, #tpu.memory_space<vmem>>, vector<256x128xbf16>,
      %c0_25 = arith.constant 0 : index
      %c1_26 = arith.constant 1 : index
      %c0_27 = arith.constant 0 : index
      %c0_28 = arith.constant 0 : index
      %25 = vector.load %arg2[%c0_25, %c1_26, %c0_27, %c0_28] : memref<1x18x18x128xbf16, #tpu.memory_space<vmem>>, vector<1x16x16x128xbf16>
      %26 = vector.shape_cast %25 : vector<1x16x16x128xbf16> to vector<16x16x128xbf16>
      %27 = vector.shape_cast %26 : vector<16x16x128xbf16> to vector<256x128xbf16>
      %c0_29 = arith.constant 0 : index
      %c384 = arith.constant 384 : index
      %28 = vector.load %arg6[%c0_29, %c384] : memref<256x1152xbf16, #tpu.memory_space<vmem>>, vector<256x128xbf16>
      tpu.vector_store %arg6[%c0_29, %c384], %27 {strides = array<i32>} : memref<256x1152xbf16, #tpu.memory_space<vmem>>, vector<256x128xbf16>,
      %c0_30 = arith.constant 0 : index
      %c1_31 = arith.constant 1 : index
      %c1_32 = arith.constant 1 : index
      %c0_33 = arith.constant 0 : index
      %29 = vector.load %arg2[%c0_30, %c1_31, %c1_32, %c0_33] : memref<1x18x18x128xbf16, #tpu.memory_space<vmem>>, vector<1x16x16x128xbf16>
      %30 = vector.shape_cast %29 : vector<1x16x16x128xbf16> to vector<16x16x128xbf16>
      %31 = vector.shape_cast %30 : vector<16x16x128xbf16> to vector<256x128xbf16>
      %c0_34 = arith.constant 0 : index
      %c512 = arith.constant 512 : index
      %32 = vector.load %arg6[%c0_34, %c512] : memref<256x1152xbf16, #tpu.memory_space<vmem>>, vector<256x128xbf16>
      tpu.vector_store %arg6[%c0_34, %c512], %31 {strides = array<i32>} : memref<256x1152xbf16, #tpu.memory_space<vmem>>, vector<256x128xbf16>,
      %c0_35 = arith.constant 0 : index
      %c1_36 = arith.constant 1 : index
      %c2_37 = arith.constant 2 : index
      %c0_38 = arith.constant 0 : index
      %33 = vector.load %arg2[%c0_35, %c1_36, %c2_37, %c0_38] : memref<1x18x18x128xbf16, #tpu.memory_space<vmem>>, vector<1x16x16x128xbf16>
      %34 = vector.shape_cast %33 : vector<1x16x16x128xbf16> to vector<16x16x128xbf16>
      %35 = vector.shape_cast %34 : vector<16x16x128xbf16> to vector<256x128xbf16>
      %c0_39 = arith.constant 0 : index
      %c640 = arith.constant 640 : index
      %36 = vector.load %arg6[%c0_39, %c640] : memref<256x1152xbf16, #tpu.memory_space<vmem>>, vector<256x128xbf16>
      tpu.vector_store %arg6[%c0_39, %c640], %35 {strides = array<i32>} : memref<256x1152xbf16, #tpu.memory_space<vmem>>, vector<256x128xbf16>,
      %c0_40 = arith.constant 0 : index
      %c2_41 = arith.constant 2 : index
      %c0_42 = arith.constant 0 : index
      %c0_43 = arith.constant 0 : index
      %37 = vector.load %arg2[%c0_40, %c2_41, %c0_42, %c0_43] : memref<1x18x18x128xbf16, #tpu.memory_space<vmem>>, vector<1x16x16x128xbf16>
      %38 = vector.shape_cast %37 : vector<1x16x16x128xbf16> to vector<16x16x128xbf16>
      %39 = vector.shape_cast %38 : vector<16x16x128xbf16> to vector<256x128xbf16>
      %c0_44 = arith.constant 0 : index
      %c768 = arith.constant 768 : index
      %40 = vector.load %arg6[%c0_44, %c768] : memref<256x1152xbf16, #tpu.memory_space<vmem>>, vector<256x128xbf16>
      tpu.vector_store %arg6[%c0_44, %c768], %39 {strides = array<i32>} : memref<256x1152xbf16, #tpu.memory_space<vmem>>, vector<256x128xbf16>,
      %c0_45 = arith.constant 0 : index
      %c2_46 = arith.constant 2 : index
      %c1_47 = arith.constant 1 : index
      %c0_48 = arith.constant 0 : index
      %41 = vector.load %arg2[%c0_45, %c2_46, %c1_47, %c0_48] : memref<1x18x18x128xbf16, #tpu.memory_space<vmem>>, vector<1x16x16x128xbf16>
      %42 = vector.shape_cast %41 : vector<1x16x16x128xbf16> to vector<16x16x128xbf16>
      %43 = vector.shape_cast %42 : vector<16x16x128xbf16> to vector<256x128xbf16>
      %c0_49 = arith.constant 0 : index
      %c896 = arith.constant 896 : index
      %44 = vector.load %arg6[%c0_49, %c896] : memref<256x1152xbf16, #tpu.memory_space<vmem>>, vector<256x128xbf16>
      tpu.vector_store %arg6[%c0_49, %c896], %43 {strides = array<i32>} : memref<256x1152xbf16, #tpu.memory_space<vmem>>, vector<256x128xbf16>,
      %c0_50 = arith.constant 0 : index
      %c2_51 = arith.constant 2 : index
      %c2_52 = arith.constant 2 : index
      %c0_53 = arith.constant 0 : index
      %45 = vector.load %arg2[%c0_50, %c2_51, %c2_52, %c0_53] : memref<1x18x18x128xbf16, #tpu.memory_space<vmem>>, vector<1x16x16x128xbf16>
      %46 = vector.shape_cast %45 : vector<1x16x16x128xbf16> to vector<16x16x128xbf16>
      %47 = vector.shape_cast %46 : vector<16x16x128xbf16> to vector<256x128xbf16>
      %c0_54 = arith.constant 0 : index
      %c1024 = arith.constant 1024 : index
      %48 = vector.load %arg6[%c0_54, %c1024] : memref<256x1152xbf16, #tpu.memory_space<vmem>>, vector<256x128xbf16>
      tpu.vector_store %arg6[%c0_54, %c1024], %47 {strides = array<i32>} : memref<256x1152xbf16, #tpu.memory_space<vmem>>, vector<256x128xbf16>,
    } else {
    }
    %c0 = arith.constant 0 : index
    %c0_1 = arith.constant 0 : index
    %3 = vector.load %arg6[%c0, %c0_1] : memref<256x1152xbf16, #tpu.memory_space<vmem>>, vector<256x1152xbf16>
    %c0_2 = arith.constant 0 : index
    %c0_3 = arith.constant 0 : index
    %4 = vector.load %arg3[%c0_2, %c0_3] : memref<1152x128xbf16, #tpu.memory_space<vmem>>, vector<1152x128xbf16>
    %cst = arith.constant dense<0.000000e+00> : vector<256x128xf32>
    %5 = tpu.matmul %3, %4, %cst {dimension_numbers = #tpu.dot_dimension_numbers<[1], [0], [0], [1], [0, 0, 1, 1], [], []>} : vector<256x1152xbf16>, vector<1152x128xbf16>, vector<256x128xf32> -> vector<256x128xf32>
    %c0_4 = arith.constant 0 : index
    %c0_5 = arith.constant 0 : index
    %6 = vector.load %arg4[%c0_4, %c0_5] : memref<1x128xf32, #tpu.memory_space<vmem>>, vector<1x128xf32>
    %7 = vector.broadcast %6 : vector<1x128xf32> to vector<256x128xf32>
    %8 = arith.addf %5, %7 : vector<256x128xf32>
    %cst_6 = arith.constant 0.000000e+00 : f32
    %9 = vector.broadcast %cst_6 : f32 to vector<256x128xf32>
    %10 = arith.maximumf %8, %9 : vector<256x128xf32>
    %11 = vector.shape_cast %10 : vector<256x128xf32> to vector<1x16x16x128xf32>
    %c0_7 = arith.constant 0 : index
    %c0_8 = arith.constant 0 : index
    %c0_9 = arith.constant 0 : index
    %c0_10 = arith.constant 0 : index
    %12 = vector.load %arg5[%c0_7, %c0_8, %c0_9, %c0_10] : memref<1x16x16x128xf32, #tpu.memory_space<vmem>>, vector<1x16x16x128xf32>
    tpu.vector_store %arg5[%c0_7, %c0_8, %c0_9, %c0_10], %11 {strides = array<i32>} : memref<1x16x16x128xf32, #tpu.memory_space<vmem>>, vector<1x16x16x128xf32>,
    return
  }
  func.func @transform_0(%arg0: i32, %arg1: i32) -> (i32, i32, i32, i32) {
    %c0_i32 = arith.constant 0 : i32
    %c0_i32_0 = arith.constant 0 : i32
    %c0_i32_1 = arith.constant 0 : i32
    %c0_i32_2 = arith.constant 0 : i32
    return %arg0, %c0_i32, %c0_i32_0, %c0_i32_1 : i32, i32, i32, i32
  }
  func.func @transform_1(%arg0: i32, %arg1: i32) -> (i32, i32) {
    %c0_i32 = arith.constant 0 : i32
    %c0_i32_0 = arith.constant 0 : i32
    return %c0_i32, %arg1 : i32, i32
  }
  func.func @transform_2(%arg0: i32, %arg1: i32) -> (i32, i32) {
    %c0_i32 = arith.constant 0 : i32
    %c0_i32_0 = arith.constant 0 : i32
    return %c0_i32, %arg1 : i32, i32
  }
  func.func @transform_3(%arg0: i32, %arg1: i32) -> (i32, i32, i32, i32) {
    %c0_i32 = arith.constant 0 : i32
    %c0_i32_0 = arith.constant 0 : i32
    %c0_i32_1 = arith.constant 0 : i32
    return %arg0, %c0_i32, %c0_i32_0, %arg1 : i32, i32, i32, i32
  }
}

</mosaic_0001>

<bundles_post_ra>
// kernel: ssh_context_forward.6
= control target key start
LH: loop header
LB: loop body
LE: loop exit
PB: predicated region body
PF: predicated region fallthrough
CT: control target
= control target key end

     0   :  { %s5980_s12 = smov 0   ;;  %s5982_s13 = smov 0   ;;  %s7514_s0 = inlined_call_operand.vmem [shape: bf16[2,20,20,128], index: 0, kind: input, shape index: {}]   ;;  %s7515_s1 = inlined_call_operand.vmem [shape: bf16[1152,128], index: 1, kind: input, shape index: {}]   ;;  %s7516_s2 = inlined_call_operand.vmem [shape: f32[1,128], index: 2, kind: input, shape index: {}]   ;;  %s7517_s3 = inlined_call_operand.vmem [shape: f32[2,16,16,128], index: 3, kind: output, shape index: {}]  }
   0x1   :  { %s5984_s14 = smov 0  }
   0x2 LB: > { %s25_s15 = sadd.s32 1, %s5954_s13  ;;  %p4518_p0 = scmp.ge.s32.totalorder %s5958_s14, 1  ;;  %s5958_s14 = sphi %s5984_s14, %s13_s14   ;;  %s5954_s13 = sphi %s5982_s13, %s7541_s13   ;;  %s5950_s12 = sphi %s5980_s12, %s7540_s12  }
   0x3   : > { %p27_p1 = scmp.ge.s32.totalorder %s25_s15, 2  ;;  %p168_p2 = scmp.lt.s32.totalorder %s5958_s14, 3 }
   0x5   : > { %s7543_s15 = smov (%p27_p1, %s25_s15), 0  ;;  %p169_p3 = pnand %p4518_p0, %p168_p2 }
   0x7   : > { %172 = sbr.rel (%p169_p3) target bundleno = 587 (0x24b), region = 32 }
   0xc   : > { %v5655_v0 = vld [vmem:[%s7515_s1 + $0x78] sm:$0xff]   ;;  %v5657_v2 = vld [vmem:[%s7515_s1 + $0x70] sm:$0xff]   ;;  %p202_p4 = scmp.lt.s32.totalorder %s5950_s12, 1  ;;  %v5659_v4 = vld [vmem:[%s7515_s1 + $0x68] sm:$0xff]   ;;  %vm387_vm0 = vcmask 1042432   ;;  %vm388_vm1 = vcmask 1046532  }
   0xd   : > { %v5656_v1 = vld [vmem:[%s7515_s1 + $0x38] sm:$0xff]   ;;  %5094 = vmatprep.subr.bf16.mxu0 %v5655_v0  ;;  %5614 = vmatprep.subr.bf16.mxu1 %v5655_v0  ;;  %v5658_v3 = vld [vmem:[%s7515_s1 + $0x30] sm:$0xff]   ;;  %v5660_v5 = vld [vmem:[%s7515_s1 + $0x28] sm:$0xff]   ;;  %vm662_vm3 = vcmask 1041408   ;;  %vm663_vm4 = vcmask 1045508  }
   0xe   : > { %5095 = vmatpush3.bf16.msra.mxu0 %v5656_v1  ;;  %5622 = vmatpush3.bf16.msra.mxu1 %v5656_v1  ;;  %s7545_s12 = smov (!%p202_p4, %s5950_s12), 1  ;;  %v5661_v6 = vld [vmem:[%s7515_s1 + $0x60] sm:$0xff]   ;;  %v5663_v8 = vld [vmem:[%s7515_s1 + $0x58] sm:$0xff]   ;;  %v5665_v10 = vld [vmem:[%s7515_s1 + $0x50] sm:$0xff]  }
   0xf   : > { %5096 = vmatprep.subr.bf16.mxu0 %v5657_v2  ;;  %5615 = vmatprep.subr.bf16.mxu1 %v5657_v2  ;;  %s5630_s30 = smul.u32 240, %s7545_s12  ;;  %v5662_v7 = vld [vmem:[%s7515_s1 + $0x20] sm:$0xff]   ;;  %v5664_v9 = vld [vmem:[%s7515_s1 + $0x18] sm:$0xff]   ;;  %v5666_v14 = vld [vmem:[%s7515_s1 + $0x10] sm:$0xff]  }
  0x10   : > { %vm6048_vm2 = vmor %vm387_vm0, %vm388_vm1  ;;  %v5667_v26 = vld [vmem:[%s7515_s1 + $0x48] sm:$0xff]   ;;  %v5669_v36 = vld [vmem:[%s7515_s1 + $0x40] sm:$0xff]  }
  0x11   : > { %s6034_s16 = scalar_lea.vmem %s7514_s0, %s5630_s30  ;;  %v5668_v32 = vld [vmem:[%s7515_s1 + $0x8] sm:$0xff]   ;;  %v5670_v38 = vld [vmem:[%s7515_s1] sm:$0xff]   ;;  %v5677_v39 = vld [vmem:[%s7515_s1 + $0xf8] sm:$0xff]  }
  0x12   : > { %5097 = vmatpush3.bf16.msra.mxu0 %v5658_v3  ;;  %5623 = vmatpush3.bf16.msra.mxu1 %v5658_v3  ;;  %v227_v11 = vld [vmem:[%s6034_s16] sm:$0xf]  ;;  %v228_v12 = vld [vmem:[%s6034_s16 + $0x4] sm:$0xf]  ;;  %v293_v16 = vld [vmem:[%s6034_s16 + $0x8] sm:$0x1] }
  0x13   : > { %5098 = vmatprep.subr.bf16.mxu0 %v5659_v4  ;;  %5616 = vmatprep.subr.bf16.mxu1 %v5659_v4  ;;  %v291_v13 = vld [vmem:[%s6034_s16] sm:$0xe]  ;;  %259 = vst [vmem:[#allocation2] sm:$0xf] %v227_v11  ;;  %260 = vst [vmem:[#allocation2 + $0x24] sm:$0xf] %v228_v12 }
  0x14   : > { %v292_v15 = vld [vmem:[%s6034_s16 + $0x4] sm:$0xf]  ;;  %v4522_v18 = vrot.slane %v291_v13, 9  ;;  %v395_v20 = vrot.slane %v293_v16, 5  ;;  %v251_v21 = vld [vmem:[%s6034_s16 + $0x90] sm:$0xf]  ;;  %vm6185_vm5 = vmor %vm662_vm3, %vm663_vm4 }
  0x15   : > { %v392_v19 = vrot.slane %v292_v15, 5  ;;  %v252_v22 = vld [vmem:[%s6034_s16 + $0x94] sm:$0xf]  ;;  %283 = vst [vmem:[#allocation2 + $0x360] sm:$0xf] %v251_v21  ;;  %v5680_v42 = vld [vmem:[%s7515_s1 + $0x178] sm:$0xff]  }
  0x16   : > { %5099 = vmatpush3.bf16.msra.mxu0 %v5660_v5  ;;  %5624 = vmatpush3.bf16.msra.mxu1 %v5660_v5  ;;  %284 = vst [vmem:[#allocation2 + $0x384] sm:$0xf] %v252_v22  ;;  %v327_v23 = vld [vmem:[%s6034_s16 + $0x90] sm:$0xe]  ;;  %v328_v24 = vld [vmem:[%s6034_s16 + $0x94] sm:$0xf] }
  0x17   : > { %5100 = vmatprep.subr.bf16.mxu0 %v5661_v6  ;;  %5617 = vmatprep.subr.bf16.mxu1 %v5661_v6  ;;  %v329_v25 = vld [vmem:[%s6034_s16 + $0x98] sm:$0x1]  ;;  %v393_v27 = vsel %vm6048_vm2, %v4522_v18, %v392_v19  ;;  %v394_v28 = vrot.slane %v392_v19, 4  ;;  %v4534_v29 = vrot.slane %v327_v23, 9  ;;  %v476_v30 = vrot.slane %v328_v24, 5  ;;  %v5679_v2 = vld [vmem:[%s7515_s1 + $0xf0] sm:$0xff]  }
  0x18   : > { %534 = vst [vmem:[#allocation2 + $0x4] sm:$0xf] %v393_v27  ;;  %v479_v31 = vrot.slane %v329_v25, 5  ;;  %v229_v40 = vld [vmem:[%s6034_s16 + $0xc] sm:$0xf]  ;;  %v5678_v55 = vld [vmem:[%s7515_s1 + $0xb8] sm:$0xff]  }
  0x19   : > { %v396_v33 = vsel %vm6048_vm2, %v394_v28, %v395_v20  ;;  %v477_v34 = vsel %vm6048_vm2, %v4534_v29, %v476_v30  ;;  %v478_v35 = vrot.slane %v476_v30, 4  ;;  %v230_v41 = vld [vmem:[%s6034_s16 + $0x10] sm:$0xf]  ;;  %261 = vst [vmem:[#allocation2 + $0x48] sm:$0xf] %v229_v40  ;;  %v5682_v58 = vld [vmem:[%s7515_s1 + $0x138] sm:$0xff]  }
  0x1a   : > { %5101 = vmatpush3.bf16.msra.mxu0 %v5662_v7  ;;  %5625 = vmatpush3.bf16.msra.mxu1 %v5662_v7  ;;  %535 = vst [vmem:[#allocation2 + $0x28] sm:$0xf] %v396_v33  ;;  %558 = vst [vmem:[#allocation2 + $0x364] sm:$0xf] %v477_v34  ;;  %v294_v43 = vld [vmem:[%s6034_s16 + $0xc] sm:$0xe] }
  0x1b   : > { %5102 = vmatprep.subr.bf16.mxu0 %v5663_v8  ;;  %5618 = vmatprep.subr.bf16.mxu1 %v5663_v8  ;;  %v480_v37 = vsel %vm6048_vm2, %v478_v35, %v479_v31  ;;  %262 = vst [vmem:[#allocation2 + $0x6c] sm:$0xf] %v230_v41  ;;  %v295_v44 = vld [vmem:[%s6034_s16 + $0x10] sm:$0xf]  ;;  %v296_v45 = vld [vmem:[%s6034_s16 + $0x14] sm:$0x1] }
  0x1c   : > { %559 = vst [vmem:[#allocation2 + $0x388] sm:$0xf] %v480_v37  ;;  %v4523_v46 = vrot.slane %v294_v43, 9  ;;  %v399_v47 = vrot.slane %v295_v44, 5  ;;  %v402_v48 = vrot.slane %v296_v45, 5  ;;  %v5681_v5 = vld [vmem:[%s7515_s1 + $0xb0] sm:$0xff]  }
  0x1d   : > { %v253_v49 = vld [vmem:[%s6034_s16 + $0x9c] sm:$0xf]  ;;  %v254_v50 = vld [vmem:[%s6034_s16 + $0xa0] sm:$0xf]  ;;  %v332_v59 = vld [vmem:[%s6034_s16 + $0xa4] sm:$0x1] }
  0x1e   : > { %5103 = vmatpush3.bf16.msra.mxu0 %v5664_v9  ;;  %5626 = vmatpush3.bf16.msra.mxu1 %v5664_v9  ;;  %285 = vst [vmem:[#allocation2 + $0x3a8] sm:$0xf] %v253_v49  ;;  %v330_v51 = vld [vmem:[%s6034_s16 + $0x9c] sm:$0xe]  ;;  %v331_v52 = vld [vmem:[%s6034_s16 + $0xa0] sm:$0xf]  ;;  %v400_v56 = vsel %vm6048_vm2, %v4523_v46, %v399_v47 }
  0x1f   : > { %5104 = vmatprep.subr.bf16.mxu0 %v5665_v10  ;;  %5619 = vmatprep.subr.bf16.mxu1 %v5665_v10  ;;  %v5671_v53 = vld [vmem:[#allocation2] ss:$36 sps:$4 sm:$0xff]   ;;  %v401_v57 = vrot.slane %v399_v47, 4  ;;  %286 = vst [vmem:[#allocation2 + $0x3cc] sm:$0xf] %v254_v50  ;;  %v4535_v60 = vrot.slane %v330_v51, 9 }
  0x20   : > { %536 = vst [vmem:[#allocation2 + $0x4c] sm:$0xf] %v400_v56  ;;  %v483_v61 = vrot.slane %v331_v52, 5  ;;  %v5674_v62 = vld [vmem:[#allocation2 + $0x360] ss:$36 sps:$4 sm:$0xff]   ;;  %v486_v1 = vrot.slane %v332_v59, 5 }
  0x21   : > { %v5673_v54 = vld [vmem:[#allocation2 + $0x4] ss:$36 sps:$4 sm:$0xff]   ;;  %v403_v0 = vsel %vm6048_vm2, %v401_v57, %v402_v48  ;;  %v231_v8 = vld [vmem:[%s6034_s16 + $0x18] sm:$0xf]  ;;  %v232_v9 = vld [vmem:[%s6034_s16 + $0x1c] sm:$0xf] }
  0x22   : > { %5105 = vmatpush3.bf16.msra.mxu0 %v5666_v14  ;;  %5627 = vmatpush3.bf16.msra.mxu1 %v5666_v14  ;;  %537 = vst [vmem:[#allocation2 + $0x70] sm:$0xf] %v403_v0  ;;  %v484_v3 = vsel %vm6048_vm2, %v4535_v60, %v483_v61  ;;  %v485_v4 = vrot.slane %v483_v61, 4  ;;  %v5689_v7 = vld [vmem:[%s7515_s1 + $0xe8] sm:$0xff]   ;;  %263 = vst [vmem:[#allocation2 + $0x90] sm:$0xf] %v231_v8 }
  0x23   : > { %5106 = vmatprep.subr.bf16.mxu0 %v5667_v26  ;;  %5620 = vmatprep.subr.bf16.mxu1 %v5667_v26  ;;  %v5676_v63 = vld [vmem:[#allocation2 + $0x364] ss:$36 sps:$4 sm:$0xff]   ;;  %560 = vst [vmem:[#allocation2 + $0x3ac] sm:$0xf] %v484_v3  ;;  %v297_v10 = vld [vmem:[%s6034_s16 + $0x18] sm:$0xe] }
  0x24   : > { %3570 = vmatprep.mubr.bf16.mxu0 %v5673_v54  ;;  %3666 = vmatprep.mubr.bf16.mxu1 %v5676_v63  ;;  %v487_v6 = vsel %vm6048_vm2, %v485_v4, %v486_v1  ;;  %v298_v11 = vld [vmem:[%s6034_s16 + $0x1c] sm:$0xf]  ;;  %v5690_v12 = vld [vmem:[%s7515_s1 + $0xa8] sm:$0xff]   ;;  %264 = vst [vmem:[#allocation2 + $0xb4] sm:$0xf] %v232_v9  ;;  %v4524_v14 = vrot.slane %v297_v10, 9 }
  0x25   : > { %561 = vst [vmem:[#allocation2 + $0x3d0] sm:$0xf] %v487_v6  ;;  %v299_v13 = vld [vmem:[%s6034_s16 + $0x20] sm:$0x1]  ;;  %v406_v15 = vrot.slane %v298_v11, 5  ;;  %v5700_v21 = vld [vmem:[%s7515_s1 + $0x170] sm:$0xff]  }
  0x26   : > { %5107 = vmatpush3.bf16.msra.mxu0 %v5668_v32  ;;  %5628 = vmatpush3.bf16.msra.mxu1 %v5668_v32  ;;  %v5691_v16 = vld [vmem:[%s7515_s1 + $0xe0] sm:$0xff]   ;;  %v409_v18 = vrot.slane %v299_v13, 5  ;;  %v255_v19 = vld [vmem:[%s6034_s16 + $0xa8] sm:$0xf]  ;;  %v256_v20 = vld [vmem:[%s6034_s16 + $0xac] sm:$0xf] }
  0x27   : > { %5108 = vmatprep.subr.bf16.mxu0 %v5669_v36  ;;  %5621 = vmatprep.subr.bf16.mxu1 %v5669_v36  ;;  %v5687_v23 = vld [vmem:[#allocation2 + $0x48] ss:$36 sps:$4 sm:$0xff]   ;;  %v407_v24 = vsel %vm6048_vm2, %v4524_v14, %v406_v15  ;;  %v408_v25 = vrot.slane %v406_v15, 4  ;;  %287 = vst [vmem:[#allocation2 + $0x3f0] sm:$0xf] %v255_v19  ;;  %v5692_v28 = vld [vmem:[%s7515_s1 + $0xa0] sm:$0xff]  }
  0x28   : > { %288 = vst [vmem:[#allocation2 + $0x414] sm:$0xf] %v256_v20  ;;  %538 = vst [vmem:[#allocation2 + $0x94] sm:$0xf] %v407_v24  ;;  %v333_v26 = vld [vmem:[%s6034_s16 + $0xa8] sm:$0xe] }
  0x29   : > { %v5683_v22 = vld [vmem:[#allocation2 + $0x4c] ss:$36 sps:$4 sm:$0xff]   ;;  %v410_v29 = vsel %vm6048_vm2, %v408_v25, %v409_v18  ;;  %v4536_v31 = vrot.slane %v333_v26, 9  ;;  %v5701_v41 = vld [vmem:[%s7515_s1 + $0x98] sm:$0xff]   ;;  %v233_v43 = vld [vmem:[%s6034_s16 + $0x24] sm:$0xf] }
  0x2a   : > { %5109 = vmatpush3.bf16.msra.mxu0 %v5670_v38  ;;  %5629 = vmatpush3.bf16.msra.mxu1 %v5670_v38  ;;  %v334_v27 = vld [vmem:[%s6034_s16 + $0xac] sm:$0xf]  ;;  %v335_v30 = vld [vmem:[%s6034_s16 + $0xb0] sm:$0x1]  ;;  %539 = vst [vmem:[#allocation2 + $0xb8] sm:$0xf] %v410_v29 }
  0x2b   : > { %5206 = vmatprep.subr.bf16.mxu1 %v5677_v39  ;;  %5318 = vmatprep.subr.bf16.mxu0 %v5680_v42  ;;  %v490_v32 = vrot.slane %v334_v27, 5  ;;  %v5688_v34 = vld [vmem:[#allocation2 + $0x3a8] ss:$36 sps:$4 sm:$0xff]   ;;  %v493_v35 = vrot.slane %v335_v30, 5  ;;  %v5699_v38 = vld [vmem:[%s7515_s1 + $0xd8] sm:$0xff]   ;;  %v5702_v40 = vld [vmem:[%s7515_s1 + $0x130] sm:$0xff]  }
  0x2c   : > { %v5685_v33 = vld [vmem:[#allocation2 + $0x3ac] ss:$36 sps:$4 sm:$0xff]   ;;  %v234_v44 = vld [vmem:[%s6034_s16 + $0x28] sm:$0xf]  ;;  %265 = vst [vmem:[#allocation2 + $0xd8] sm:$0xf] %v233_v43 }
  0x2d   : > { %3571 = vmatmul.mubr.bf16.vlgmr.msra.gmra.mxu0 %v5671_v53  ;;  %3667 = vmatmul.mubr.bf16.vlgmr.msra.gmra.mxu1 %v5674_v62  ;;  %v491_v36 = vsel %vm6048_vm2, %v4536_v31, %v490_v32  ;;  %v492_v37 = vrot.slane %v490_v32, 4  ;;  %v5703_v42 = vld [vmem:[%s7515_s1 + $0xd0] sm:$0xff]   ;;  %266 = vst [vmem:[#allocation2 + $0xfc] sm:$0xf] %v234_v44  ;;  %v300_v48 = vld [vmem:[%s6034_s16 + $0x24] sm:$0xe] }
  0x2e   : > { %5319 = vmatpush3.bf16.msra.mxu0 %v5682_v58  ;;  %5207 = vmatpush3.bf16.msra.mxu1 %v5678_v55  ;;  %562 = vst [vmem:[#allocation2 + $0x3f4] sm:$0xf] %v491_v36  ;;  %v5697_v46 = vld [vmem:[#allocation2 + $0x90] ss:$36 sps:$4 sm:$0xff]   ;;  %v301_v49 = vld [vmem:[%s6034_s16 + $0x28] sm:$0xf] }
  0x2f   : > { %5208 = vmatprep.subr.bf16.mxu1 %v5679_v2  ;;  %5320 = vmatprep.subr.bf16.mxu0 %v5700_v21  ;;  %v494_v39 = vsel %vm6048_vm2, %v492_v37, %v493_v35  ;;  %v5704_v47 = vld [vmem:[%s7515_s1 + $0x90] sm:$0xff]   ;;  %v302_v50 = vld [vmem:[%s6034_s16 + $0x2c] sm:$0x1]  ;;  %v4525_v51 = vrot.slane %v300_v48, 9  ;;  %v413_v52 = vrot.slane %v301_v49, 5  ;;  %v5713_v8 = vld [vmem:[%s7515_s1 + $0xc0] sm:$0xff]  }
  0x30   : > { %3578 = vmatprep.mubr.bf16.mxu0 %v5683_v22  ;;  %3674 = vmatprep.mubr.bf16.mxu1 %v5685_v33  ;;  %563 = vst [vmem:[#allocation2 + $0x418] sm:$0xf] %v494_v39  ;;  %v416_v53 = vrot.slane %v302_v50, 5  ;;  %v257_v54 = vld [vmem:[%s6034_s16 + $0xb4] sm:$0xf]  ;;  %v5711_v3 = vld [vmem:[%s7515_s1 + $0xc8] sm:$0xff]  }
  0x31   : > { %v5693_v45 = vld [vmem:[#allocation2 + $0x94] ss:$36 sps:$4 sm:$0xff]   ;;  %289 = vst [vmem:[#allocation2 + $0x438] sm:$0xf] %v257_v54  ;;  %v414_v60 = vsel %vm6048_vm2, %v4525_v51, %v413_v52  ;;  %v415_v61 = vrot.slane %v413_v52, 4  ;;  %v5712_v6 = vld [vmem:[%s7515_s1 + $0x88] sm:$0xff]  }
  0x32   : > { %5209 = vmatpush3.bf16.msra.mxu1 %v5681_v5  ;;  %5321 = vmatpush3.bf16.msra.mxu0 %v5702_v40  ;;  %v258_v55 = vld [vmem:[%s6034_s16 + $0xb8] sm:$0xf]  ;;  %v336_v56 = vld [vmem:[%s6034_s16 + $0xb4] sm:$0xe]  ;;  %540 = vst [vmem:[#allocation2 + $0xdc] sm:$0xf] %v414_v60 }
  0x33   : > { %5210 = vmatprep.subr.bf16.mxu1 %v5689_v7  ;;  %v337_v57 = vld [vmem:[%s6034_s16 + $0xb8] sm:$0xf]  ;;  %v5698_v59 = vld [vmem:[#allocation2 + $0x3f0] ss:$36 sps:$4 sm:$0xff]   ;;  %290 = vst [vmem:[#allocation2 + $0x45c] sm:$0xf] %v258_v55  ;;  %v417_v1 = vsel %vm6048_vm2, %v415_v61, %v416_v53 }
  0x34   : > { %v338_v62 = vld [vmem:[%s6034_s16 + $0xbc] sm:$0x1]  ;;  %v4537_v63 = vrot.slane %v336_v56, 9  ;;  %v497_v0 = vrot.slane %v337_v57, 5  ;;  %541 = vst [vmem:[#allocation2 + $0x100] sm:$0xf] %v417_v1 }
  0x35   : > { %3579 = vmatmul.mubr.bf16.gmra.mxu0 %v5687_v23  ;;  %3675 = vmatmul.mubr.bf16.gmra.mxu1 %v5688_v34  ;;  %v500_v2 = vrot.slane %v338_v62, 5  ;;  %v5714_v10 = vld [vmem:[%s7515_s1 + $0x168] sm:$0xff]   ;;  %v5715_v11 = vld [vmem:[%s7515_s1 + $0x80] sm:$0xff]   ;;  %v235_v13 = vld [vmem:[%s6034_s16 + $0x30] sm:$0xf] }
  0x36   : > { %5211 = vmatpush3.bf16.msra.mxu1 %v5690_v12  ;;  %3586 = vmatprep.mubr.bf16.mxu0 %v5693_v45  ;;  %v498_v4 = vsel %vm6048_vm2, %v4537_v63, %v497_v0  ;;  %v499_v5 = vrot.slane %v497_v0, 4  ;;  %v5716_v12 = vld [vmem:[%s7515_s1 + $0x128] sm:$0xff]   ;;  %v236_v14 = vld [vmem:[%s6034_s16 + $0x34] sm:$0xf]  ;;  %267 = vst [vmem:[#allocation2 + $0x120] sm:$0xf] %v235_v13 }
  0x37   : > { %5212 = vmatprep.subr.bf16.mxu1 %v5691_v16  ;;  %v5695_v58 = vld [vmem:[#allocation2 + $0x3f4] ss:$36 sps:$4 sm:$0xff]   ;;  %564 = vst [vmem:[#allocation2 + $0x43c] sm:$0xf] %v498_v4  ;;  %5322 = vmatprep.subr.bf16.mxu0 %v5714_v10  ;;  %v303_v15 = vld [vmem:[%s6034_s16 + $0x30] sm:$0xe] }
  0x38   : > { %3682 = vmatprep.mubr.bf16.mxu1 %v5695_v58  ;;  %v501_v9 = vsel %vm6048_vm2, %v499_v5, %v500_v2  ;;  %5323 = vmatpush3.bf16.msra.mxu0 %v5716_v12  ;;  %268 = vst [vmem:[#allocation2 + $0x144] sm:$0xf] %v236_v14  ;;  %v304_v16 = vld [vmem:[%s6034_s16 + $0x34] sm:$0xf]  ;;  %v305_v18 = vld [vmem:[%s6034_s16 + $0x38] sm:$0x1] }
  0x39   : > { %565 = vst [vmem:[#allocation2 + $0x460] sm:$0xf] %v501_v9  ;;  %v4526_v19 = vrot.slane %v303_v15, 9  ;;  %v5723_v20 = vld [vmem:[%s7515_s1 + $0x1f8] sm:$0xff]   ;;  %v420_v23 = vrot.slane %v304_v16, 5  ;;  %v423_v24 = vrot.slane %v305_v18, 5 }
  0x3a   : > { %5213 = vmatpush3.bf16.msra.mxu1 %v5692_v28  ;;  %v5709_v22 = vld [vmem:[#allocation2 + $0xd8] ss:$36 sps:$4 sm:$0xff]   ;;  %v566_v25 = vld [vmem:[%s6034_s16] sm:$0xc]  ;;  %v567_v26 = vld [vmem:[%s6034_s16 + $0x4] sm:$0xf] }
  0x3b   : > { %5214 = vmatprep.subr.bf16.mxu1 %v5699_v38  ;;  %v5705_v21 = vld [vmem:[#allocation2 + $0xdc] ss:$36 sps:$4 sm:$0xff]   ;;  %v421_v27 = vsel %vm6048_vm2, %v4526_v19, %v420_v23  ;;  %v422_v28 = vrot.slane %v420_v23, 4  ;;  %v568_v29 = vld [vmem:[%s6034_s16 + $0x8] sm:$0x3]  ;;  %v4538_v30 = vrot.slane %v566_v25, 10 }
  0x3c   : > { %v667_v31 = vrot.slane %v567_v26, 6  ;;  %v5710_v33 = vld [vmem:[#allocation2 + $0x438] ss:$36 sps:$4 sm:$0xff]   ;;  %542 = vst [vmem:[#allocation2 + $0x124] sm:$0xf] %v421_v27  ;;  %v670_v34 = vrot.slane %v568_v29, 6 }
  0x3d   : > { %3587 = vmatmul.mubr.bf16.gmra.mxu0 %v5697_v46  ;;  %3683 = vmatmul.mubr.bf16.gmra.mxu1 %v5698_v59  ;;  %v424_v35 = vsel %vm6048_vm2, %v422_v28, %v423_v24  ;;  %v4554_v38 = vld [vmem:[%s6034_s16 + $0x18] sm:$0xf]  ;;  %v4555_v39 = vld [vmem:[%s6034_s16 + $0x1c] sm:$0xf]  ;;  %v5731_v40 = vld [vmem:[%s7515_s1 + $0x160] sm:$0xff]  }
  0x3e   : > { %5215 = vmatpush3.bf16.msra.mxu1 %v5701_v41  ;;  %3594 = vmatprep.mubr.bf16.mxu0 %v5705_v21  ;;  %v668_v36 = vsel %vm6185_vm5, %v4538_v30, %v667_v31  ;;  %v669_v37 = vrot.slane %v667_v31, 4  ;;  %543 = vst [vmem:[#allocation2 + $0x148] sm:$0xf] %v424_v35  ;;  %874 = vst [vmem:[#allocation2 + $0xc] sm:$0xf] %v4554_v38  ;;  %v5732_v51 = vld [vmem:[%s7515_s1 + $0x120] sm:$0xff]  }
  0x3f   : > { %5216 = vmatprep.subr.bf16.mxu1 %v5703_v42  ;;  %809 = vst [vmem:[#allocation2 + $0x8] sm:$0xf] %v668_v36  ;;  %875 = vst [vmem:[#allocation2 + $0x30] sm:$0xf] %v4555_v39  ;;  %v237_v42 = vld [vmem:[%s6034_s16 + $0x3c] sm:$0xf]  ;;  %5324 = vmatprep.subr.bf16.mxu0 %v5731_v40 }
  0x40   : > { %v5707_v32 = vld [vmem:[#allocation2 + $0x43c] ss:$36 sps:$4 sm:$0xff]   ;;  %v671_v41 = vsel %vm6185_vm5, %v669_v37, %v670_v34  ;;  %269 = vst [vmem:[#allocation2 + $0x168] sm:$0xf] %v237_v42  ;;  %v308_v46 = vld [vmem:[%s6034_s16 + $0x44] sm:$0x1]  ;;  %5325 = vmatpush3.bf16.msra.mxu0 %v5732_v51 }
  0x41   : > { %3690 = vmatprep.mubr.bf16.mxu1 %v5707_v32  ;;  %v238_v43 = vld [vmem:[%s6034_s16 + $0x40] sm:$0xf]  ;;  %810 = vst [vmem:[#allocation2 + $0x2c] sm:$0xf] %v671_v41  ;;  %v306_v44 = vld [vmem:[%s6034_s16 + $0x3c] sm:$0xe] }
  0x42   : > { %5217 = vmatpush3.bf16.msra.mxu1 %v5704_v47  ;;  %270 = vst [vmem:[#allocation2 + $0x18c] sm:$0xf] %v238_v43  ;;  %v307_v45 = vld [vmem:[%s6034_s16 + $0x40] sm:$0xf]  ;;  %v4527_v47 = vrot.slane %v306_v44, 9  ;;  %v430_v49 = vrot.slane %v308_v46, 5 }
  0x43   : > { %5218 = vmatprep.subr.bf16.mxu1 %v5711_v3  ;;  %v427_v48 = vrot.slane %v307_v45, 5  ;;  %v569_v50 = vld [vmem:[%s6034_s16 + $0xc] sm:$0xc]  ;;  %v570_v52 = vld [vmem:[%s6034_s16 + $0x10] sm:$0xf]  ;;  %v5724_v62 = vld [vmem:[%s7515_s1 + $0x1b8] sm:$0xff]  }
  0x44   : > { %v571_v53 = vld [vmem:[%s6034_s16 + $0x14] sm:$0x3]  ;;  %v4539_v54 = vrot.slane %v569_v50, 10  ;;  %v674_v57 = vrot.slane %v570_v52, 6  ;;  %v4556_v59 = vld [vmem:[%s6034_s16 + $0x24] sm:$0xf] }
  0x45   : > { %3595 = vmatmul.mubr.bf16.gmra.mxu0 %v5709_v22  ;;  %3691 = vmatmul.mubr.bf16.gmra.mxu1 %v5710_v33  ;;  %v428_v55 = vsel %vm6048_vm2, %v4527_v47, %v427_v48  ;;  %v429_v56 = vrot.slane %v427_v48, 4  ;;  %v677_v58 = vrot.slane %v571_v53, 6  ;;  %v4557_v60 = vld [vmem:[%s6034_s16 + $0x28] sm:$0xf]  ;;  %876 = vst [vmem:[#allocation2 + $0x54] sm:$0xf] %v4556_v59 }
  0x46   : > { %5219 = vmatpush3.bf16.msra.mxu1 %v5712_v6  ;;  %544 = vst [vmem:[#allocation2 + $0x16c] sm:$0xf] %v428_v55  ;;  %v5717_v61 = vld [vmem:[#allocation2 + $0x124] ss:$36 sps:$4 sm:$0xff]   ;;  %v675_v0 = vsel %vm6185_vm5, %v4539_v54, %v674_v57  ;;  %v676_v1 = vrot.slane %v674_v57, 4  ;;  %v5739_v3 = vld [vmem:[%s7515_s1 + $0x1f0] sm:$0xff]  }
  0x47   : > { %5220 = vmatprep.subr.bf16.mxu1 %v5713_v8  ;;  %v431_v63 = vsel %vm6048_vm2, %v429_v56, %v430_v49  ;;  %877 = vst [vmem:[#allocation2 + $0x78] sm:$0xf] %v4557_v60  ;;  %v5722_v2 = vld [vmem:[#allocation2 + $0x120] ss:$36 sps:$4 sm:$0xff]   ;;  %811 = vst [vmem:[#allocation2 + $0x50] sm:$0xf] %v675_v0  ;;  %3602 = vmatprep.mubr.bf16.mxu0 %v5717_v61 }
  0x48   : > { %545 = vst [vmem:[#allocation2 + $0x190] sm:$0xf] %v431_v63  ;;  %v5719_v4 = vld [vmem:[#allocation2 + $0x8] ss:$36 sps:$4 sm:$0xff]   ;;  %v678_v6 = vsel %vm6185_vm5, %v676_v1, %v677_v58  ;;  %v311_v12 = vld [vmem:[%s6034_s16 + $0x50] sm:$0x1] }
  0x49   : > { %v5721_v5 = vld [vmem:[#allocation2 + $0xc] ss:$36 sps:$4 sm:$0xff]   ;;  %812 = vst [vmem:[#allocation2 + $0x74] sm:$0xf] %v678_v6  ;;  %v239_v8 = vld [vmem:[%s6034_s16 + $0x48] sm:$0xf] }
  0x4a   : > { %5221 = vmatpush3.bf16.msra.mxu1 %v5715_v11  ;;  %v240_v9 = vld [vmem:[%s6034_s16 + $0x4c] sm:$0xf]  ;;  %v309_v10 = vld [vmem:[%s6034_s16 + $0x48] sm:$0xe]  ;;  %3731 = vmatprep.mubr.bf16.mxu1 %v5721_v5  ;;  %271 = vst [vmem:[#allocation2 + $0x1b0] sm:$0xf] %v239_v8 }
  0x4b   : > { %5430 = vmatprep.subr.bf16.mxu1 %v5723_v20  ;;  %272 = vst [vmem:[#allocation2 + $0x1d4] sm:$0xf] %v240_v9  ;;  %v310_v11 = vld [vmem:[%s6034_s16 + $0x4c] sm:$0xf]  ;;  %v4528_v13 = vrot.slane %v309_v10, 9  ;;  %v5740_v14 = vld [vmem:[%s7515_s1 + $0x1b0] sm:$0xff]  }
  0x4c   : > { %v434_v15 = vrot.slane %v310_v11, 5  ;;  %v437_v16 = vrot.slane %v311_v12, 5  ;;  %v572_v18 = vld [vmem:[%s6034_s16 + $0x18] sm:$0xc]  ;;  %v573_v19 = vld [vmem:[%s6034_s16 + $0x1c] sm:$0xf] }
  0x4d   : > { %3603 = vmatmul.mubr.bf16.gmra.mxu0 %v5722_v2  ;;  %3732 = vmatmul.mubr.bf16.vlgmr.msra.gmra.mxu1 %v5719_v4  ;;  %v574_v20 = vld [vmem:[%s6034_s16 + $0x20] sm:$0x3]  ;;  %v4540_v21 = vrot.slane %v572_v18, 10  ;;  %v681_v22 = vrot.slane %v573_v19, 6  ;;  %v5741_v23 = vld [vmem:[%s7515_s1 + $0x158] sm:$0xff]   ;;  %v5755_v61 = vld [vmem:[%s7515_s1 + $0x150] sm:$0xff]  }
  0x4e   : > { %5431 = vmatpush3.bf16.msra.mxu1 %v5724_v62  ;;  %v435_v24 = vsel %vm6048_vm2, %v4528_v13, %v434_v15  ;;  %v436_v25 = vrot.slane %v434_v15, 4  ;;  %v684_v26 = vrot.slane %v574_v20, 6  ;;  %v4558_v27 = vld [vmem:[%s6034_s16 + $0x30] sm:$0xf]  ;;  %v4559_v28 = vld [vmem:[%s6034_s16 + $0x34] sm:$0xf]  ;;  %5326 = vmatprep.subr.bf16.mxu0 %v5741_v23 }
  0x4f   : > { %5432 = vmatprep.subr.bf16.mxu1 %v5739_v3  ;;  %v5725_v29 = vld [vmem:[#allocation2 + $0x16c] ss:$36 sps:$4 sm:$0xff]   ;;  %546 = vst [vmem:[#allocation2 + $0x1b4] sm:$0xf] %v435_v24  ;;  %v682_v30 = vsel %vm6185_vm5, %v4540_v21, %v681_v22  ;;  %v683_v31 = vrot.slane %v681_v22, 4  ;;  %v5742_v37 = vld [vmem:[%s7515_s1 + $0x118] sm:$0xff]  }
  0x50   : > { %878 = vst [vmem:[#allocation2 + $0x9c] sm:$0xf] %v4558_v27  ;;  %879 = vst [vmem:[#allocation2 + $0xc0] sm:$0xf] %v4559_v28  ;;  %v5729_v32 = vld [vmem:[#allocation2 + $0x168] ss:$36 sps:$4 sm:$0xff]   ;;  %v438_v33 = vsel %vm6048_vm2, %v436_v25, %v437_v16  ;;  %3610 = vmatprep.mubr.bf16.mxu0 %v5725_v29  ;;  %5327 = vmatpush3.bf16.msra.mxu0 %v5742_v37 }
  0x51   : > { %813 = vst [vmem:[#allocation2 + $0x98] sm:$0xf] %v682_v30  ;;  %v5727_v34 = vld [vmem:[#allocation2 + $0x54] ss:$36 sps:$4 sm:$0xff]   ;;  %547 = vst [vmem:[#allocation2 + $0x1d8] sm:$0xf] %v438_v33  ;;  %v685_v36 = vsel %vm6185_vm5, %v683_v31, %v684_v26  ;;  %5328 = vmatprep.subr.bf16.mxu0 %v5755_v61 }
  0x52   : > { %v5730_v35 = vld [vmem:[#allocation2 + $0x50] ss:$36 sps:$4 sm:$0xff]   ;;  %5433 = vmatpush3.bf16.msra.mxu1 %v5740_v14  ;;  %814 = vst [vmem:[#allocation2 + $0xbc] sm:$0xf] %v685_v36  ;;  %3739 = vmatprep.mubr.bf16.mxu1 %v5727_v34  ;;  %v242_v39 = vld [vmem:[%s6034_s16 + $0x58] sm:$0xf] }
  0x53   : > { %v241_v38 = vld [vmem:[%s6034_s16 + $0x54] sm:$0xf]  ;;  %274 = vst [vmem:[#allocation2 + $0x21c] sm:$0xf] %v242_v39  ;;  %v313_v41 = vld [vmem:[%s6034_s16 + $0x58] sm:$0xf] }
  0x54   : > { %273 = vst [vmem:[#allocation2 + $0x1f8] sm:$0xf] %v241_v38  ;;  %v312_v40 = vld [vmem:[%s6034_s16 + $0x54] sm:$0xe]  ;;  %v314_v42 = vld [vmem:[%s6034_s16 + $0x5c] sm:$0x1] }
  0x55   : > { %3611 = vmatmul.mubr.bf16.gmra.mxu0 %v5729_v32  ;;  %3740 = vmatmul.mubr.bf16.gmra.mxu1 %v5730_v35  ;;  %v4529_v43 = vrot.slane %v312_v40, 9  ;;  %v441_v44 = vrot.slane %v313_v41, 5  ;;  %v444_v45 = vrot.slane %v314_v42, 5  ;;  %v575_v46 = vld [vmem:[%s6034_s16 + $0x24] sm:$0xc]  ;;  %v5756_v2 = vld [vmem:[%s7515_s1 + $0x1e8] sm:$0xff]  }
  0x56   : > { %v576_v47 = vld [vmem:[%s6034_s16 + $0x28] sm:$0xf]  ;;  %v577_v48 = vld [vmem:[%s6034_s16 + $0x2c] sm:$0x3]  ;;  %v4541_v49 = vrot.slane %v575_v46, 10  ;;  %5434 = vmatprep.subr.bf16.mxu1 %v5756_v2  ;;  %v5757_v12 = vld [vmem:[%s7515_s1 + $0x110] sm:$0xff]  }
  0x57   : > { %v5737_v51 = vld [vmem:[#allocation2 + $0x1b0] ss:$36 sps:$4 sm:$0xff]   ;;  %v442_v52 = vsel %vm6048_vm2, %v4529_v43, %v441_v44  ;;  %v443_v53 = vrot.slane %v441_v44, 4  ;;  %v5735_v54 = vld [vmem:[#allocation2 + $0x9c] ss:$36 sps:$4 sm:$0xff]   ;;  %v688_v56 = vrot.slane %v576_v47, 6  ;;  %5329 = vmatpush3.bf16.msra.mxu0 %v5757_v12 }
  0x58   : > { %v5733_v50 = vld [vmem:[#allocation2 + $0x1b4] ss:$36 sps:$4 sm:$0xff]   ;;  %548 = vst [vmem:[#allocation2 + $0x1fc] sm:$0xf] %v442_v52  ;;  %v691_v58 = vrot.slane %v577_v48, 6  ;;  %3747 = vmatprep.mubr.bf16.mxu1 %v5735_v54  ;;  %v5758_v16 = vld [vmem:[%s7515_s1 + $0x1a8] sm:$0xff]  }
  0x59   : > { %v5738_v55 = vld [vmem:[#allocation2 + $0x98] ss:$36 sps:$4 sm:$0xff]   ;;  %3618 = vmatprep.mubr.bf16.mxu0 %v5733_v50  ;;  %v445_v57 = vsel %vm6048_vm2, %v443_v53, %v444_v45  ;;  %v4561_v60 = vld [vmem:[%s6034_s16 + $0x40] sm:$0xf]  ;;  %v689_v62 = vsel %vm6185_vm5, %v4541_v49, %v688_v56  ;;  %v690_v63 = vrot.slane %v688_v56, 4  ;;  %v5765_v23 = vld [vmem:[%s7515_s1 + $0x148] sm:$0xff]   ;;  %5435 = vmatpush3.bf16.msra.mxu1 %v5758_v16 }
  0x5a   : > { %v4560_v59 = vld [vmem:[%s6034_s16 + $0x3c] sm:$0xf]  ;;  %549 = vst [vmem:[#allocation2 + $0x220] sm:$0xf] %v445_v57  ;;  %881 = vst [vmem:[#allocation2 + $0x108] sm:$0xf] %v4561_v60  ;;  %5330 = vmatprep.subr.bf16.mxu0 %v5765_v23 }
  0x5b   : > { %880 = vst [vmem:[#allocation2 + $0xe4] sm:$0xf] %v4560_v59  ;;  %v243_v0 = vld [vmem:[%s6034_s16 + $0x60] sm:$0xf]  ;;  %v244_v1 = vld [vmem:[%s6034_s16 + $0x64] sm:$0xf]  ;;  %v692_v6 = vsel %vm6185_vm5, %v690_v63, %v691_v58 }
  0x5c   : > { %815 = vst [vmem:[#allocation2 + $0xe0] sm:$0xf] %v689_v62  ;;  %275 = vst [vmem:[#allocation2 + $0x240] sm:$0xf] %v243_v0  ;;  %v315_v3 = vld [vmem:[%s6034_s16 + $0x60] sm:$0xe] }
  0x5d   : > { %3619 = vmatmul.mubr.bf16.gmra.mxu0 %v5737_v51  ;;  %3748 = vmatmul.mubr.bf16.gmra.mxu1 %v5738_v55  ;;  %276 = vst [vmem:[#allocation2 + $0x264] sm:$0xf] %v244_v1  ;;  %v316_v4 = vld [vmem:[%s6034_s16 + $0x64] sm:$0xf]  ;;  %v317_v5 = vld [vmem:[%s6034_s16 + $0x68] sm:$0x1] }
  0x5e   : > { %v4530_v8 = vrot.slane %v315_v3, 9  ;;  %v448_v9 = vrot.slane %v316_v4, 5  ;;  %v451_v10 = vrot.slane %v317_v5, 5  ;;  %v578_v11 = vld [vmem:[%s6034_s16 + $0x30] sm:$0xc]  ;;  %v5766_v28 = vld [vmem:[%s7515_s1 + $0x108] sm:$0xff]  }
  0x5f   : > { %816 = vst [vmem:[#allocation2 + $0x104] sm:$0xf] %v692_v6  ;;  %v579_v13 = vld [vmem:[%s6034_s16 + $0x34] sm:$0xf]  ;;  %v580_v14 = vld [vmem:[%s6034_s16 + $0x38] sm:$0x3]  ;;  %5331 = vmatpush3.bf16.msra.mxu0 %v5766_v28 }
  0x60   : > { %v4542_v15 = vrot.slane %v578_v11, 10  ;;  %v449_v18 = vsel %vm6048_vm2, %v4530_v8, %v448_v9  ;;  %v450_v19 = vrot.slane %v448_v9, 4  ;;  %v695_v20 = vrot.slane %v579_v13, 6  ;;  %v4562_v22 = vld [vmem:[%s6034_s16 + $0x48] sm:$0xf]  ;;  %v5773_v51 = vld [vmem:[%s7515_s1 + $0x1e0] sm:$0xff]  }
  0x61   : > { %v698_v21 = vrot.slane %v580_v14, 6  ;;  %550 = vst [vmem:[#allocation2 + $0x244] sm:$0xf] %v449_v18  ;;  %v4563_v24 = vld [vmem:[%s6034_s16 + $0x4c] sm:$0xf]  ;;  %5436 = vmatprep.subr.bf16.mxu1 %v5773_v51  ;;  %v5774_v60 = vld [vmem:[%s7515_s1 + $0x1a0] sm:$0xff]  }
  0x62   : > { %882 = vst [vmem:[#allocation2 + $0x12c] sm:$0xf] %v4562_v22  ;;  %v452_v25 = vsel %vm6048_vm2, %v450_v19, %v451_v10  ;;  %v696_v26 = vsel %vm6185_vm5, %v4542_v15, %v695_v20  ;;  %v697_v27 = vrot.slane %v695_v20, 4  ;;  %883 = vst [vmem:[#allocation2 + $0x150] sm:$0xf] %v4563_v24  ;;  %5437 = vmatpush3.bf16.msra.mxu1 %v5774_v60  ;;  %v5781_v8 = vld [vmem:[%s7515_s1 + $0x140] sm:$0xff]  }
  0x63   : > { %v5743_v29 = vld [vmem:[#allocation2 + $0x1fc] ss:$36 sps:$4 sm:$0xff]   ;;  %551 = vst [vmem:[#allocation2 + $0x268] sm:$0xf] %v452_v25  ;;  %817 = vst [vmem:[#allocation2 + $0x128] sm:$0xf] %v696_v26  ;;  %5332 = vmatprep.subr.bf16.mxu0 %v5781_v8 }
  0x64   : > { %v5747_v30 = vld [vmem:[#allocation2 + $0x1f8] ss:$36 sps:$4 sm:$0xff]   ;;  %v699_v31 = vsel %vm6185_vm5, %v697_v27, %v698_v21  ;;  %3626 = vmatprep.mubr.bf16.mxu0 %v5743_v29  ;;  %v5745_v32 = vld [vmem:[#allocation2 + $0xe4] ss:$36 sps:$4 sm:$0xff]   ;;  %v245_v34 = vld [vmem:[%s6034_s16 + $0x6c] sm:$0xf] }
  0x65   : > { %818 = vst [vmem:[#allocation2 + $0x14c] sm:$0xf] %v699_v31  ;;  %3627 = vmatmul.mubr.bf16.gmra.mxu0 %v5747_v30  ;;  %v246_v35 = vld [vmem:[%s6034_s16 + $0x70] sm:$0xf]  ;;  %v318_v36 = vld [vmem:[%s6034_s16 + $0x6c] sm:$0xe]  ;;  %3755 = vmatprep.mubr.bf16.mxu1 %v5745_v32 }
  0x66   : > { %v5748_v33 = vld [vmem:[#allocation2 + $0xe0] ss:$36 sps:$4 sm:$0xff]   ;;  %277 = vst [vmem:[#allocation2 + $0x288] sm:$0xf] %v245_v34  ;;  %278 = vst [vmem:[#allocation2 + $0x2ac] sm:$0xf] %v246_v35 }
  0x67   : > { %v319_v37 = vld [vmem:[%s6034_s16 + $0x70] sm:$0xf]  ;;  %v320_v38 = vld [vmem:[%s6034_s16 + $0x74] sm:$0x1]  ;;  %v4531_v39 = vrot.slane %v318_v36, 9  ;;  %3756 = vmatmul.mubr.bf16.gmra.mxu1 %v5748_v33  ;;  %v5782_v12 = vld [vmem:[%s7515_s1 + $0x100] sm:$0xff]  }
  0x68   : > { %v455_v40 = vrot.slane %v319_v37, 5  ;;  %v458_v41 = vrot.slane %v320_v38, 5  ;;  %v581_v42 = vld [vmem:[%s6034_s16 + $0x3c] sm:$0xc]  ;;  %v582_v43 = vld [vmem:[%s6034_s16 + $0x40] sm:$0xf]  ;;  %5333 = vmatpush3.bf16.msra.mxu0 %v5782_v12 }
  0x69   : > { %v4543_v45 = vrot.slane %v581_v42, 10  ;;  %v702_v46 = vrot.slane %v582_v43, 6  ;;  %v5753_v47 = vld [vmem:[#allocation2 + $0x240] ss:$36 sps:$4 sm:$0xff]   ;;  %v5751_v52 = vld [vmem:[#allocation2 + $0x12c] ss:$36 sps:$4 sm:$0xff]  }
  0x6a   : > { %v5749_v44 = vld [vmem:[#allocation2 + $0x244] ss:$36 sps:$4 sm:$0xff]   ;;  %v456_v48 = vsel %vm6048_vm2, %v4531_v39, %v455_v40  ;;  %v457_v49 = vrot.slane %v455_v40, 4  ;;  %v4564_v58 = vld [vmem:[%s6034_s16 + $0x54] sm:$0xf]  ;;  %3763 = vmatprep.mubr.bf16.mxu1 %v5751_v52  ;;  %v5789_v34 = vld [vmem:[%s7515_s1 + $0x1d8] sm:$0xff]  }
  0x6b   : > { %v583_v50 = vld [vmem:[%s6034_s16 + $0x44] sm:$0x3]  ;;  %3634 = vmatprep.mubr.bf16.mxu0 %v5749_v44  ;;  %552 = vst [vmem:[#allocation2 + $0x28c] sm:$0xf] %v456_v48  ;;  %v703_v54 = vsel %vm6185_vm5, %v4543_v45, %v702_v46  ;;  %v704_v55 = vrot.slane %v702_v46, 4  ;;  %5438 = vmatprep.subr.bf16.mxu1 %v5789_v34  ;;  %v5790_v42 = vld [vmem:[%s7515_s1 + $0x198] sm:$0xff]  }
  0x6c   : > { %v5754_v53 = vld [vmem:[#allocation2 + $0x128] ss:$36 sps:$4 sm:$0xff]   ;;  %v459_v56 = vsel %vm6048_vm2, %v457_v49, %v458_v41  ;;  %v705_v57 = vrot.slane %v583_v50, 6  ;;  %819 = vst [vmem:[#allocation2 + $0x170] sm:$0xf] %v703_v54  ;;  %5439 = vmatpush3.bf16.msra.mxu1 %v5790_v42  ;;  %v6413_v60 = vld [vmem:[%s7515_s1 + $0x238] sm:$0xff]  }
  0x6d   : > { %v4565_v59 = vld [vmem:[%s6034_s16 + $0x58] sm:$0xf]  ;;  %3635 = vmatmul.mubr.bf16.gmra.mxu0 %v5753_v47  ;;  %553 = vst [vmem:[#allocation2 + $0x2b0] sm:$0xf] %v459_v56  ;;  %884 = vst [vmem:[#allocation2 + $0x174] sm:$0xf] %v4564_v58  ;;  %5566 = vmatprep.subr.bf16.mxu0 %v6413_v60 }
  0x6e   : > { %885 = vst [vmem:[#allocation2 + $0x198] sm:$0xf] %v4565_v59  ;;  %v706_v61 = vsel %vm6185_vm5, %v704_v55, %v705_v57  ;;  %v247_v62 = vld [vmem:[%s6034_s16 + $0x78] sm:$0xf]  ;;  %v248_v63 = vld [vmem:[%s6034_s16 + $0x7c] sm:$0xf] }
  0x6f   : > { %820 = vst [vmem:[#allocation2 + $0x194] sm:$0xf] %v706_v61  ;;  %279 = vst [vmem:[#allocation2 + $0x2d0] sm:$0xf] %v247_v62  ;;  %v321_v0 = vld [vmem:[%s6034_s16 + $0x78] sm:$0xe]  ;;  %3764 = vmatmul.mubr.bf16.gmra.mxu1 %v5754_v53 }
  0x70   : > { %280 = vst [vmem:[#allocation2 + $0x2f4] sm:$0xf] %v248_v63  ;;  %v322_v1 = vld [vmem:[%s6034_s16 + $0x7c] sm:$0xf]  ;;  %v323_v2 = vld [vmem:[%s6034_s16 + $0x80] sm:$0x1] }
  0x71   : > { %v4532_v3 = vrot.slane %v321_v0, 9  ;;  %v462_v4 = vrot.slane %v322_v1, 5  ;;  %v465_v5 = vrot.slane %v323_v2, 5  ;;  %v584_v6 = vld [vmem:[%s6034_s16 + $0x48] sm:$0xc] }
  0x72   : > { %v585_v9 = vld [vmem:[%s6034_s16 + $0x4c] sm:$0xf]  ;;  %v586_v10 = vld [vmem:[%s6034_s16 + $0x50] sm:$0x3]  ;;  %v4544_v11 = vrot.slane %v584_v6, 10 }
  0x73   : > { %v463_v13 = vsel %vm6048_vm2, %v4532_v3, %v462_v4  ;;  %v464_v14 = vrot.slane %v462_v4, 4  ;;  %v709_v15 = vrot.slane %v585_v9, 6  ;;  %v712_v16 = vrot.slane %v586_v10, 6  ;;  %v4566_v18 = vld [vmem:[%s6034_s16 + $0x60] sm:$0xf] }
  0x74   : > { %554 = vst [vmem:[#allocation2 + $0x2d4] sm:$0xf] %v463_v13  ;;  %v4567_v19 = vld [vmem:[%s6034_s16 + $0x64] sm:$0xf]  ;;  %886 = vst [vmem:[#allocation2 + $0x1bc] sm:$0xf] %v4566_v18 }
  0x75   : > { %v5759_v20 = vld [vmem:[#allocation2 + $0x28c] ss:$36 sps:$4 sm:$0xff]   ;;  %v466_v21 = vsel %vm6048_vm2, %v464_v14, %v465_v5  ;;  %v710_v22 = vsel %vm6185_vm5, %v4544_v11, %v709_v15  ;;  %v711_v23 = vrot.slane %v709_v15, 4  ;;  %887 = vst [vmem:[#allocation2 + $0x1e0] sm:$0xf] %v4567_v19 }
  0x76   : > { %v5763_v24 = vld [vmem:[#allocation2 + $0x288] ss:$36 sps:$4 sm:$0xff]   ;;  %555 = vst [vmem:[#allocation2 + $0x2f8] sm:$0xf] %v466_v21  ;;  %821 = vst [vmem:[#allocation2 + $0x1b8] sm:$0xf] %v710_v22  ;;  %3642 = vmatprep.mubr.bf16.mxu0 %v5759_v20 }
  0x77   : > { %v5761_v25 = vld [vmem:[#allocation2 + $0x174] ss:$36 sps:$4 sm:$0xff]   ;;  %v713_v27 = vsel %vm6185_vm5, %v711_v23, %v712_v16  ;;  %3643 = vmatmul.mubr.bf16.gmra.mxu0 %v5763_v24  ;;  %v249_v28 = vld [vmem:[%s6034_s16 + $0x84] sm:$0xf]  ;;  %v250_v29 = vld [vmem:[%s6034_s16 + $0x88] sm:$0xf] }
  0x78   : > { %v5764_v26 = vld [vmem:[#allocation2 + $0x170] ss:$36 sps:$4 sm:$0xff]   ;;  %822 = vst [vmem:[#allocation2 + $0x1dc] sm:$0xf] %v713_v27  ;;  %v324_v30 = vld [vmem:[%s6034_s16 + $0x84] sm:$0xe]  ;;  %3771 = vmatprep.mubr.bf16.mxu1 %v5761_v25 }
  0x79   : > { %281 = vst [vmem:[#allocation2 + $0x318] sm:$0xf] %v249_v28  ;;  %282 = vst [vmem:[#allocation2 + $0x33c] sm:$0xf] %v250_v29  ;;  %v325_v31 = vld [vmem:[%s6034_s16 + $0x88] sm:$0xf]  ;;  %3772 = vmatmul.mubr.bf16.gmra.mxu1 %v5764_v26 }
  0x7a   : > { %v326_v32 = vld [vmem:[%s6034_s16 + $0x8c] sm:$0x1]  ;;  %v4533_v33 = vrot.slane %v324_v30, 9  ;;  %v469_v35 = vrot.slane %v325_v31, 5  ;;  %v587_v37 = vld [vmem:[%s6034_s16 + $0x54] sm:$0xc] }
  0x7b   : > { %v472_v36 = vrot.slane %v326_v32, 5  ;;  %v588_v38 = vld [vmem:[%s6034_s16 + $0x58] sm:$0xf]  ;;  %v589_v39 = vld [vmem:[%s6034_s16 + $0x5c] sm:$0x3]  ;;  %v4545_v40 = vrot.slane %v587_v37, 10 }
  0x7c   : > { %v716_v41 = vrot.slane %v588_v38, 6  ;;  %v470_v43 = vsel %vm6048_vm2, %v4533_v33, %v469_v35  ;;  %v471_v44 = vrot.slane %v469_v35, 4  ;;  %v719_v45 = vrot.slane %v589_v39, 6  ;;  %v4568_v46 = vld [vmem:[%s6034_s16 + $0x6c] sm:$0xf]  ;;  %v5804_v28 = vld [vmem:[%s7515_s1 + $0x1d0] sm:$0xff]  }
  0x7d   : > { %v4569_v47 = vld [vmem:[%s6034_s16 + $0x70] sm:$0xf]  ;;  %v5767_v48 = vld [vmem:[#allocation2 + $0x2d4] ss:$36 sps:$4 sm:$0xff]   ;;  %556 = vst [vmem:[#allocation2 + $0x31c] sm:$0xf] %v470_v43  ;;  %5440 = vmatprep.subr.bf16.mxu1 %v5804_v28 }
  0x7e   : > { %v717_v49 = vsel %vm6185_vm5, %v4545_v40, %v716_v41  ;;  %v718_v50 = vrot.slane %v716_v41, 4  ;;  %888 = vst [vmem:[#allocation2 + $0x204] sm:$0xf] %v4568_v46  ;;  %889 = vst [vmem:[#allocation2 + $0x228] sm:$0xf] %v4569_v47  ;;  %v473_v52 = vsel %vm6048_vm2, %v471_v44, %v472_v36  ;;  %3650 = vmatprep.mubr.bf16.mxu0 %v5767_v48  ;;  %v5805_v32 = vld [vmem:[%s7515_s1 + $0x190] sm:$0xff]  }
  0x7f   : > { %v5771_v51 = vld [vmem:[#allocation2 + $0x2d0] ss:$36 sps:$4 sm:$0xff]   ;;  %823 = vst [vmem:[#allocation2 + $0x200] sm:$0xf] %v717_v49  ;;  %v5769_v53 = vld [vmem:[#allocation2 + $0x1bc] ss:$36 sps:$4 sm:$0xff]   ;;  %5441 = vmatpush3.bf16.msra.mxu1 %v5805_v32 }
  0x80   : > { %v5772_v54 = vld [vmem:[#allocation2 + $0x1b8] ss:$36 sps:$4 sm:$0xff]   ;;  %557 = vst [vmem:[#allocation2 + $0x340] sm:$0xf] %v473_v52  ;;  %v720_v55 = vsel %vm6185_vm5, %v718_v50, %v719_v45  ;;  %3651 = vmatmul.mubr.bf16.gmra.mxu0 %v5771_v51  ;;  %v590_v56 = vld [vmem:[%s6034_s16 + $0x60] sm:$0xc]  ;;  %3779 = vmatprep.mubr.bf16.mxu1 %v5769_v53 }
  0x81   : > { %824 = vst [vmem:[#allocation2 + $0x224] sm:$0xf] %v720_v55  ;;  %v591_v57 = vld [vmem:[%s6034_s16 + $0x64] sm:$0xf]  ;;  %v592_v58 = vld [vmem:[%s6034_s16 + $0x68] sm:$0x3]  ;;  %3780 = vmatmul.mubr.bf16.gmra.mxu1 %v5772_v54 }
  0x82   : > { %v4546_v59 = vrot.slane %v590_v56, 10  ;;  %v723_v61 = vrot.slane %v591_v57, 6  ;;  %v726_v62 = vrot.slane %v592_v58, 6  ;;  %v4570_v63 = vld [vmem:[%s6034_s16 + $0x78] sm:$0xf]  ;;  %v5819_v58 = vld [vmem:[%s7515_s1 + $0x1c8] sm:$0xff]  }
  0x83   : > { %v4571_v0 = vld [vmem:[%s6034_s16 + $0x7c] sm:$0xf]  ;;  %890 = vst [vmem:[#allocation2 + $0x24c] sm:$0xf] %v4570_v63  ;;  %v4586_v1 = vld [vmem:[%s6034_s16 + $0x18] sm:$0xe]  ;;  %5442 = vmatprep.subr.bf16.mxu1 %v5819_v58 }
  0x84   : > { %891 = vst [vmem:[#allocation2 + $0x270] sm:$0xf] %v4571_v0  ;;  %v4587_v2 = vld [vmem:[%s6034_s16 + $0x1c] sm:$0xf]  ;;  %v4588_v3 = vld [vmem:[%s6034_s16 + $0x20] sm:$0x1]  ;;  %v724_v4 = vsel %vm6185_vm5, %v4546_v59, %v723_v61 }
  0x85   : > { %v725_v5 = vrot.slane %v723_v61, 4  ;;  %v4634_v6 = vrot.slane %v4586_v1, 9  ;;  %v1004_v8 = vrot.slane %v4587_v2, 5  ;;  %v4650_v9 = vld [vmem:[%s6034_s16 + $0x18] sm:$0xc]  ;;  %v1007_v10 = vrot.slane %v4588_v3, 5 }
  0x86   : > { %825 = vst [vmem:[#allocation2 + $0x248] sm:$0xf] %v724_v4  ;;  %v4651_v11 = vld [vmem:[%s6034_s16 + $0x1c] sm:$0xf]  ;;  %v4652_v12 = vld [vmem:[%s6034_s16 + $0x20] sm:$0x3] }
  0x87   : > { %v5775_v13 = vld [vmem:[#allocation2 + $0x31c] ss:$36 sps:$4 sm:$0xff]   ;;  %v727_v15 = vsel %vm6185_vm5, %v725_v5, %v726_v62  ;;  %v1005_v16 = vsel %vm6048_vm2, %v4634_v6, %v1004_v8  ;;  %v1006_v18 = vrot.slane %v1004_v8, 4  ;;  %v5777_v19 = vld [vmem:[#allocation2 + $0x204] ss:$36 sps:$4 sm:$0xff]   ;;  %v4698_v21 = vrot.slane %v4650_v9, 10 }
  0x88   : > { %v5779_v14 = vld [vmem:[#allocation2 + $0x318] ss:$36 sps:$4 sm:$0xff]   ;;  %v5780_v20 = vld [vmem:[#allocation2 + $0x200] ss:$36 sps:$4 sm:$0xff]   ;;  %826 = vst [vmem:[#allocation2 + $0x26c] sm:$0xf] %v727_v15  ;;  %3658 = vmatprep.mubr.bf16.mxu0 %v5775_v13  ;;  %3787 = vmatprep.mubr.bf16.mxu1 %v5777_v19 }
  0x89   : > { %1146 = vst [vmem:[#allocation2 + $0x10] sm:$0xf] %v1005_v16  ;;  %v1008_v22 = vsel %vm6048_vm2, %v1006_v18, %v1007_v10  ;;  %v1276_v23 = vrot.slane %v4651_v11, 6  ;;  %v1279_v24 = vrot.slane %v4652_v12, 6  ;;  %3659 = vmatmul.mubr.bf16.gmra.mxu0 %v5779_v14  ;;  %3788 = vmatmul.mubr.bf16.gmra.mxu1 %v5780_v20  ;;  %v593_v27 = vld [vmem:[%s6034_s16 + $0x6c] sm:$0xc] }
  0x8a   : > { %1147 = vst [vmem:[#allocation2 + $0x34] sm:$0xf] %v1008_v22  ;;  %v594_v29 = vld [vmem:[%s6034_s16 + $0x70] sm:$0xf]  ;;  %v595_v30 = vld [vmem:[%s6034_s16 + $0x74] sm:$0x3] }
  0x8b   : > { %v1277_v25 = vsel %vm6185_vm5, %v4698_v21, %v1276_v23  ;;  %v1278_v26 = vrot.slane %v1276_v23, 4  ;;  %v4547_v31 = vrot.slane %v593_v27, 10  ;;  %v730_v34 = vrot.slane %v594_v29, 6  ;;  %v4572_v36 = vld [vmem:[%s6034_s16 + $0x84] sm:$0xf]  ;;  %v5806_v5 = vld [vmem:[%s7515_s1 + $0x230] sm:$0xff]  }
  0x8c   : > { %1418 = vst [vmem:[#allocation2 + $0x14] sm:$0xf] %v1277_v25  ;;  %v733_v35 = vrot.slane %v595_v30, 6  ;;  %v4573_v37 = vld [vmem:[%s6034_s16 + $0x88] sm:$0xf]  ;;  %v5834_v25 = vld [vmem:[%s7515_s1 + $0x1c0] sm:$0xff]  }
  0x8d   : > { %v1280_v33 = vsel %vm6185_vm5, %v1278_v26, %v1279_v24  ;;  %892 = vst [vmem:[#allocation2 + $0x294] sm:$0xf] %v4572_v36  ;;  %v4589_v38 = vld [vmem:[%s6034_s16 + $0x24] sm:$0xe]  ;;  %v4590_v39 = vld [vmem:[%s6034_s16 + $0x28] sm:$0xf]  ;;  %v731_v42 = vsel %vm6185_vm5, %v4547_v31, %v730_v34 }
  0x8e   : > { %1419 = vst [vmem:[#allocation2 + $0x38] sm:$0xf] %v1280_v33  ;;  %v5783_v40 = vld [vmem:[#allocation2 + $0x24c] ss:$36 sps:$4 sm:$0xff]   ;;  %v732_v43 = vrot.slane %v730_v34, 4  ;;  %v4635_v45 = vrot.slane %v4589_v38, 9 }
  0x8f   : > { %v5788_v41 = vld [vmem:[#allocation2 + $0x248] ss:$36 sps:$4 sm:$0xff]   ;;  %893 = vst [vmem:[#allocation2 + $0x2b8] sm:$0xf] %v4573_v37  ;;  %827 = vst [vmem:[#allocation2 + $0x290] sm:$0xf] %v731_v42  ;;  %3795 = vmatprep.mubr.bf16.mxu1 %v5783_v40 }
  0x90   : > { %v4591_v44 = vld [vmem:[%s6034_s16 + $0x2c] sm:$0x1]  ;;  %v1011_v46 = vrot.slane %v4590_v39, 5  ;;  %v4653_v47 = vld [vmem:[%s6034_s16 + $0x24] sm:$0xc]  ;;  %v734_v48 = vsel %vm6185_vm5, %v732_v43, %v733_v35 }
  0x91   : > { %v1014_v49 = vrot.slane %v4591_v44, 5  ;;  %v4654_v50 = vld [vmem:[%s6034_s16 + $0x28] sm:$0xf]  ;;  %v4655_v51 = vld [vmem:[%s6034_s16 + $0x2c] sm:$0x3]  ;;  %v4699_v52 = vrot.slane %v4653_v47, 10  ;;  %3796 = vmatmul.mubr.bf16.gmra.mxu1 %v5788_v41 }
  0x92   : > { %828 = vst [vmem:[#allocation2 + $0x2b4] sm:$0xf] %v734_v48  ;;  %v1012_v53 = vsel %vm6048_vm2, %v4635_v45, %v1011_v46  ;;  %v1013_v54 = vrot.slane %v1011_v46, 4  ;;  %v1283_v55 = vrot.slane %v4654_v50, 6  ;;  %v1286_v56 = vrot.slane %v4655_v51, 6  ;;  %v5820_v15 = vld [vmem:[%s7515_s1 + $0x188] sm:$0xff]  }
  0x93   : > { %v596_v57 = vld [vmem:[%s6034_s16 + $0x78] sm:$0xc]  ;;  %1148 = vst [vmem:[#allocation2 + $0x58] sm:$0xf] %v1012_v53  ;;  %v597_v59 = vld [vmem:[%s6034_s16 + $0x7c] sm:$0xf]  ;;  %5443 = vmatpush3.bf16.msra.mxu1 %v5820_v15 }
  0x94   : > { %v598_v61 = vld [vmem:[%s6034_s16 + $0x80] sm:$0x3]  ;;  %v4548_v62 = vrot.slane %v596_v57, 10  ;;  %v1015_v63 = vsel %vm6048_vm2, %v1013_v54, %v1014_v49  ;;  %v1284_v0 = vsel %vm6185_vm5, %v4699_v52, %v1283_v55  ;;  %v1285_v1 = vrot.slane %v1283_v55, 4  ;;  %v4574_v3 = vld [vmem:[%s6034_s16 + $0x90] sm:$0xf]  ;;  %5444 = vmatprep.subr.bf16.mxu1 %v5834_v25 }
  0x95   : > { %v737_v2 = vrot.slane %v597_v59, 6  ;;  %v4575_v4 = vld [vmem:[%s6034_s16 + $0x94] sm:$0xf]  ;;  %1149 = vst [vmem:[#allocation2 + $0x7c] sm:$0xf] %v1015_v63  ;;  %v740_v9 = vrot.slane %v598_v61, 6 }
  0x96   : > { %v5785_v6 = vld [vmem:[#allocation2 + $0x10] ss:$36 sps:$4 sm:$0xff]   ;;  %1420 = vst [vmem:[#allocation2 + $0x5c] sm:$0xf] %v1284_v0  ;;  %894 = vst [vmem:[#allocation2 + $0x2dc] sm:$0xf] %v4574_v3  ;;  %v1287_v10 = vsel %vm6185_vm5, %v1285_v1, %v1286_v56 }
  0x97   : > { %v5787_v8 = vld [vmem:[#allocation2 + $0x14] ss:$36 sps:$4 sm:$0xff]   ;;  %895 = vst [vmem:[#allocation2 + $0x300] sm:$0xf] %v4575_v4  ;;  %v738_v11 = vsel %vm6185_vm5, %v4548_v62, %v737_v2  ;;  %v739_v12 = vrot.slane %v737_v2, 4  ;;  %v5821_v24 = vld [vmem:[%s7515_s1 + $0x228] sm:$0xff]  }
  0x98   : > { %v4592_v13 = vld [vmem:[%s6034_s16 + $0x30] sm:$0xe]  ;;  %v4593_v14 = vld [vmem:[%s6034_s16 + $0x34] sm:$0xf]  ;;  %3892 = vmatprep.mubr.bf16.mxu0 %v5787_v8  ;;  %1421 = vst [vmem:[#allocation2 + $0x80] sm:$0xf] %v1287_v10 }
  0x99   : > { %829 = vst [vmem:[#allocation2 + $0x2d8] sm:$0xf] %v738_v11  ;;  %v4594_v16 = vld [vmem:[%s6034_s16 + $0x38] sm:$0x1]  ;;  %v4636_v18 = vrot.slane %v4592_v13, 9  ;;  %v1018_v19 = vrot.slane %v4593_v14, 5  ;;  %3893 = vmatmul.mubr.bf16.vlgmr.msra.gmra.mxu0 %v5785_v6  ;;  %v741_v20 = vsel %vm6185_vm5, %v739_v12, %v740_v9 }
  0x9a   : > { %v1021_v21 = vrot.slane %v4594_v16, 5  ;;  %v4656_v22 = vld [vmem:[%s6034_s16 + $0x30] sm:$0xc]  ;;  %v4657_v23 = vld [vmem:[%s6034_s16 + $0x34] sm:$0xf]  ;;  %5567 = vmatpush3.bf16.msra.mxu0 %v6413_v60  ;;  %v5835_v34 = vld [vmem:[%s7515_s1 + $0x180] sm:$0xff]  }
  0x9b   : > { %v5792_v26 = vld [vmem:[#allocation2 + $0x294] ss:$36 sps:$4 sm:$0xff]   ;;  %830 = vst [vmem:[#allocation2 + $0x2fc] sm:$0xf] %v741_v20  ;;  %v1019_v28 = vsel %vm6048_vm2, %v4636_v18, %v1018_v19  ;;  %v1020_v29 = vrot.slane %v1018_v19, 4  ;;  %v4700_v31 = vrot.slane %v4656_v22, 10  ;;  %5568 = vmatprep.subr.bf16.mxu0 %v5806_v5  ;;  %5445 = vmatpush3.bf16.msra.mxu1 %v5835_v34 }
  0x9c   : > { %v5796_v27 = vld [vmem:[#allocation2 + $0x290] ss:$36 sps:$4 sm:$0xff]   ;;  %1150 = vst [vmem:[#allocation2 + $0xa0] sm:$0xf] %v1019_v28  ;;  %v4658_v30 = vld [vmem:[%s6034_s16 + $0x38] sm:$0x3]  ;;  %3803 = vmatprep.mubr.bf16.mxu1 %v5792_v26 }
  0x9d   : > { %v1290_v32 = vrot.slane %v4657_v23, 6  ;;  %v1022_v33 = vsel %vm6048_vm2, %v1020_v29, %v1021_v21  ;;  %v1293_v60 = vrot.slane %v4658_v30, 6  ;;  %3804 = vmatmul.mubr.bf16.gmra.mxu1 %v5796_v27  ;;  %v599_v37 = vld [vmem:[%s6034_s16 + $0x84] sm:$0xc]  ;;  %v600_v38 = vld [vmem:[%s6034_s16 + $0x88] sm:$0xf] }
  0x9e   : > { %1151 = vst [vmem:[#allocation2 + $0xc4] sm:$0xf] %v1022_v33  ;;  %5569 = vmatpush3.bf16.msra.mxu0 %v5806_v5  ;;  %v5797_v40 = vld [vmem:[#allocation2 + $0x58] ss:$36 sps:$4 sm:$0xff]   ;;  %v4549_v42 = vrot.slane %v599_v37, 10  ;;  %v744_v44 = vrot.slane %v600_v38, 6 }
  0x9f   : > { %v1291_v35 = vsel %vm6185_vm5, %v4700_v31, %v1290_v32  ;;  %v1292_v36 = vrot.slane %v1290_v32, 4  ;;  %v5794_v39 = vld [vmem:[#allocation2 + $0x5c] ss:$36 sps:$4 sm:$0xff]   ;;  %5570 = vmatprep.subr.bf16.mxu0 %v5821_v24  ;;  %v601_v43 = vld [vmem:[%s6034_s16 + $0x8c] sm:$0x3]  ;;  %v5862_v9 = vld [vmem:[%s7515_s1 + $0x210] sm:$0xff]  }
  0xa0   : > { %1422 = vst [vmem:[#allocation2 + $0xa4] sm:$0xf] %v1291_v35  ;;  %v4576_v45 = vld [vmem:[%s6034_s16 + $0x9c] sm:$0xf]  ;;  %3900 = vmatprep.mubr.bf16.mxu0 %v5794_v39  ;;  %v747_v48 = vrot.slane %v601_v43, 6  ;;  %v745_v49 = vsel %vm6185_vm5, %v4549_v42, %v744_v44  ;;  %v746_v50 = vrot.slane %v744_v44, 4 }
  0xa1   : > { %v1294_v41 = vsel %vm6185_vm5, %v1292_v36, %v1293_v60  ;;  %v5798_v46 = vld [vmem:[#allocation2 + $0x2dc] ss:$36 sps:$4 sm:$0xff]   ;;  %896 = vst [vmem:[#allocation2 + $0x324] sm:$0xf] %v4576_v45  ;;  %3901 = vmatmul.mubr.bf16.gmra.mxu0 %v5797_v40  ;;  %831 = vst [vmem:[#allocation2 + $0x320] sm:$0xf] %v745_v49 }
  0xa2   : > { %1423 = vst [vmem:[#allocation2 + $0xc8] sm:$0xf] %v1294_v41  ;;  %v5802_v47 = vld [vmem:[#allocation2 + $0x2d8] ss:$36 sps:$4 sm:$0xff]   ;;  %v4577_v51 = vld [vmem:[%s6034_s16 + $0xa0] sm:$0xf]  ;;  %3811 = vmatprep.mubr.bf16.mxu1 %v5798_v46  ;;  %5571 = vmatpush3.bf16.msra.mxu0 %v5821_v24  ;;  %v748_v58 = vsel %vm6185_vm5, %v746_v50, %v747_v48 }
  0xa3   : > { %v4595_v52 = vld [vmem:[%s6034_s16 + $0x3c] sm:$0xe]  ;;  %v5836_v53 = vld [vmem:[%s7515_s1 + $0x220] sm:$0xff]   ;;  %897 = vst [vmem:[#allocation2 + $0x348] sm:$0xf] %v4577_v51  ;;  %v5875_v32 = vld [vmem:[%s7515_s1 + $0x208] sm:$0xff]  }
  0xa4   : > { %v4596_v54 = vld [vmem:[%s6034_s16 + $0x40] sm:$0xf]  ;;  %v4597_v55 = vld [vmem:[%s6034_s16 + $0x44] sm:$0x1]  ;;  %v4637_v56 = vrot.slane %v4595_v52, 9  ;;  %v5849_v57 = vld [vmem:[%s7515_s1 + $0x218] sm:$0xff]   ;;  %5572 = vmatprep.subr.bf16.mxu0 %v5836_v53 }
  0xa5   : > { %v1025_v59 = vrot.slane %v4596_v54, 5  ;;  %v1028_v61 = vrot.slane %v4597_v55, 5  ;;  %v4659_v62 = vld [vmem:[%s6034_s16 + $0x3c] sm:$0xc]  ;;  %v4660_v63 = vld [vmem:[%s6034_s16 + $0x40] sm:$0xf]  ;;  %3812 = vmatmul.mubr.bf16.gmra.mxu1 %v5802_v47 }
  0xa6   : > { %832 = vst [vmem:[#allocation2 + $0x344] sm:$0xf] %v748_v58  ;;  %v4661_v0 = vld [vmem:[%s6034_s16 + $0x44] sm:$0x3]  ;;  %v4701_v1 = vrot.slane %v4659_v62, 10  ;;  %v1297_v2 = vrot.slane %v4660_v63, 6  ;;  %5573 = vmatpush3.bf16.msra.mxu0 %v5836_v53 }
  0xa7   : > { %v1026_v3 = vsel %vm6048_vm2, %v4637_v56, %v1025_v59  ;;  %v1027_v4 = vrot.slane %v1025_v59, 4  ;;  %v1300_v5 = vrot.slane %v4661_v0, 6  ;;  %v602_v6 = vld [vmem:[%s6034_s16 + $0x90] sm:$0xc]  ;;  %v603_v8 = vld [vmem:[%s6034_s16 + $0x94] sm:$0xf]  ;;  %5574 = vmatprep.subr.bf16.mxu0 %v5849_v57 }
  0xa8   : > { %v5803_v11 = vld [vmem:[#allocation2 + $0xa0] ss:$36 sps:$4 sm:$0xff]   ;;  %1152 = vst [vmem:[#allocation2 + $0xe8] sm:$0xf] %v1026_v3  ;;  %v1298_v12 = vsel %vm6185_vm5, %v4701_v1, %v1297_v2  ;;  %v1299_v13 = vrot.slane %v1297_v2, 4  ;;  %v4550_v16 = vrot.slane %v602_v6, 10 }
  0xa9   : > { %v5800_v10 = vld [vmem:[#allocation2 + $0xa4] ss:$36 sps:$4 sm:$0xff]   ;;  %v1029_v14 = vsel %vm6048_vm2, %v1027_v4, %v1028_v61  ;;  %1424 = vst [vmem:[#allocation2 + $0xec] sm:$0xf] %v1298_v12  ;;  %v604_v15 = vld [vmem:[%s6034_s16 + $0x98] sm:$0x3] }
  0xaa   : > { %v751_v18 = vrot.slane %v603_v8, 6  ;;  %v4578_v19 = vld [vmem:[%s6034_s16 + $0xa8] sm:$0xf]  ;;  %3908 = vmatprep.mubr.bf16.mxu0 %v5800_v10  ;;  %1153 = vst [vmem:[#allocation2 + $0x10c] sm:$0xf] %v1029_v14  ;;  %v1301_v20 = vsel %vm6185_vm5, %v1299_v13, %v1300_v5  ;;  %v754_v21 = vrot.slane %v604_v15, 6  ;;  %5575 = vmatpush3.bf16.msra.mxu0 %v5849_v57 }
  0xab   : > { %v4579_v22 = vld [vmem:[%s6034_s16 + $0xac] sm:$0xf]  ;;  %898 = vst [vmem:[#allocation2 + $0x36c] sm:$0xf] %v4578_v19  ;;  %v4598_v23 = vld [vmem:[%s6034_s16 + $0x48] sm:$0xe]  ;;  %3909 = vmatmul.mubr.bf16.gmra.mxu0 %v5803_v11  ;;  %5576 = vmatprep.subr.bf16.mxu0 %v5862_v9 }
  0xac   : > { %1425 = vst [vmem:[#allocation2 + $0x110] sm:$0xf] %v1301_v20  ;;  %v752_v24 = vsel %vm6185_vm5, %v4550_v16, %v751_v18  ;;  %v753_v25 = vrot.slane %v751_v18, 4  ;;  %899 = vst [vmem:[#allocation2 + $0x390] sm:$0xf] %v4579_v22  ;;  %v4638_v28 = vrot.slane %v4598_v23, 9 }
  0xad   : > { %v4599_v26 = vld [vmem:[%s6034_s16 + $0x4c] sm:$0xf]  ;;  %v4600_v27 = vld [vmem:[%s6034_s16 + $0x50] sm:$0x1]  ;;  %833 = vst [vmem:[#allocation2 + $0x368] sm:$0xf] %v752_v24 }
  0xae   : > { %v1032_v29 = vrot.slane %v4599_v26, 5  ;;  %v1035_v30 = vrot.slane %v4600_v27, 5  ;;  %v4662_v31 = vld [vmem:[%s6034_s16 + $0x48] sm:$0xc]  ;;  %v5811_v60 = vld [vmem:[#allocation2 + $0x320] ss:$36 sps:$4 sm:$0xff]   ;;  %v755_v34 = vsel %vm6185_vm5, %v753_v25, %v754_v21  ;;  %5577 = vmatpush3.bf16.msra.mxu0 %v5862_v9 }
  0xaf   : > { %v5807_v33 = vld [vmem:[#allocation2 + $0x324] ss:$36 sps:$4 sm:$0xff]   ;;  %v4702_v35 = vrot.slane %v4662_v31, 10  ;;  %834 = vst [vmem:[#allocation2 + $0x38c] sm:$0xf] %v755_v34  ;;  %5578 = vmatprep.subr.bf16.mxu0 %v5875_v32 }
  0xb0   : > { %v1033_v36 = vsel %vm6048_vm2, %v4638_v28, %v1032_v29  ;;  %v1034_v37 = vrot.slane %v1032_v29, 4  ;;  %v4663_v38 = vld [vmem:[%s6034_s16 + $0x4c] sm:$0xf]  ;;  %v4664_v39 = vld [vmem:[%s6034_s16 + $0x50] sm:$0x3]  ;;  %3819 = vmatprep.mubr.bf16.mxu1 %v5807_v33  ;;  %v5888_v45 = vld [vmem:[%s7515_s1 + $0x200] sm:$0xff]  }
  0xb1   : > { %1154 = vst [vmem:[#allocation2 + $0x130] sm:$0xf] %v1033_v36  ;;  %v1304_v40 = vrot.slane %v4663_v38, 6  ;;  %v1307_v41 = vrot.slane %v4664_v39, 6  ;;  %3820 = vmatmul.mubr.bf16.gmra.mxu1 %v5811_v60  ;;  %v5812_v47 = vld [vmem:[#allocation2 + $0xe8] ss:$36 sps:$4 sm:$0xff]  }
  0xb2   : > { %v1036_v42 = vsel %vm6048_vm2, %v1034_v37, %v1035_v30  ;;  %v605_v49 = vld [vmem:[%s6034_s16 + $0x9c] sm:$0xc]  ;;  %v606_v50 = vld [vmem:[%s6034_s16 + $0xa0] sm:$0xf]  ;;  %v607_v51 = vld [vmem:[%s6034_s16 + $0xa4] sm:$0x3]  ;;  %5579 = vmatpush3.bf16.msra.mxu0 %v5875_v32 }
  0xb3   : > { %1155 = vst [vmem:[#allocation2 + $0x154] sm:$0xf] %v1036_v42  ;;  %v1305_v43 = vsel %vm6185_vm5, %v4702_v35, %v1304_v40  ;;  %v1306_v44 = vrot.slane %v1304_v40, 4  ;;  %v5809_v46 = vld [vmem:[#allocation2 + $0xec] ss:$36 sps:$4 sm:$0xff]   ;;  %v4551_v52 = vrot.slane %v605_v49, 10  ;;  %5580 = vmatprep.subr.bf16.mxu0 %v5888_v45 }
  0xb4   : > { %1426 = vst [vmem:[#allocation2 + $0x134] sm:$0xf] %v1305_v43  ;;  %3916 = vmatprep.mubr.bf16.mxu0 %v5809_v46  ;;  %v758_v53 = vrot.slane %v606_v50, 6  ;;  %v4580_v54 = vld [vmem:[%s6034_s16 + $0xb4] sm:$0xf]  ;;  %v761_v57 = vrot.slane %v607_v51, 6 }
  0xb5   : > { %v1308_v48 = vsel %vm6185_vm5, %v1306_v44, %v1307_v41  ;;  %3917 = vmatmul.mubr.bf16.gmra.mxu0 %v5812_v47  ;;  %v5813_v55 = vld [vmem:[#allocation2 + $0x36c] ss:$36 sps:$4 sm:$0xff]   ;;  %900 = vst [vmem:[#allocation2 + $0x3b4] sm:$0xf] %v4580_v54  ;;  %v4581_v61 = vld [vmem:[%s6034_s16 + $0xb8] sm:$0xf] }
  0xb6   : > { %1427 = vst [vmem:[#allocation2 + $0x158] sm:$0xf] %v1308_v48  ;;  %v5817_v56 = vld [vmem:[#allocation2 + $0x368] ss:$36 sps:$4 sm:$0xff]   ;;  %v759_v58 = vsel %vm6185_vm5, %v4551_v52, %v758_v53  ;;  %v760_v59 = vrot.slane %v758_v53, 4  ;;  %3827 = vmatprep.mubr.bf16.mxu1 %v5813_v55  ;;  %5581 = vmatpush3.bf16.msra.mxu0 %v5888_v45 }
  0xb7   : > { %v4601_v62 = vld [vmem:[%s6034_s16 + $0x54] sm:$0xe]  ;;  %835 = vst [vmem:[#allocation2 + $0x3b0] sm:$0xf] %v759_v58  ;;  %901 = vst [vmem:[#allocation2 + $0x3d8] sm:$0xf] %v4581_v61 }
  0xb8   : > { %v4602_v63 = vld [vmem:[%s6034_s16 + $0x58] sm:$0xf]  ;;  %v4603_v0 = vld [vmem:[%s6034_s16 + $0x5c] sm:$0x1]  ;;  %v4639_v1 = vrot.slane %v4601_v62, 9  ;;  %v762_v2 = vsel %vm6185_vm5, %v760_v59, %v761_v57 }
  0xb9   : > { %3828 = vmatmul.mubr.bf16.gmra.mxu1 %v5817_v56  ;;  %v1039_v3 = vrot.slane %v4602_v63, 5  ;;  %v1042_v4 = vrot.slane %v4603_v0, 5  ;;  %v4665_v5 = vld [vmem:[%s6034_s16 + $0x54] sm:$0xc]  ;;  %v4666_v6 = vld [vmem:[%s6034_s16 + $0x58] sm:$0xf] }
  0xba   : > { %836 = vst [vmem:[#allocation2 + $0x3d4] sm:$0xf] %v762_v2  ;;  %v4667_v8 = vld [vmem:[%s6034_s16 + $0x5c] sm:$0x3]  ;;  %v4703_v9 = vrot.slane %v4665_v5, 10  ;;  %v1311_v10 = vrot.slane %v4666_v6, 6 }
  0xbb   : > { %v1040_v11 = vsel %vm6048_vm2, %v4639_v1, %v1039_v3  ;;  %v1041_v12 = vrot.slane %v1039_v3, 4  ;;  %v1314_v13 = vrot.slane %v4667_v8, 6  ;;  %v608_v14 = vld [vmem:[%s6034_s16 + $0xa8] sm:$0xc]  ;;  %v609_v15 = vld [vmem:[%s6034_s16 + $0xac] sm:$0xf] }
  0xbc   : > { %v5818_v18 = vld [vmem:[#allocation2 + $0x130] ss:$36 sps:$4 sm:$0xff]   ;;  %1156 = vst [vmem:[#allocation2 + $0x178] sm:$0xf] %v1040_v11  ;;  %v1312_v19 = vsel %vm6185_vm5, %v4703_v9, %v1311_v10  ;;  %v1313_v20 = vrot.slane %v1311_v10, 4  ;;  %v4552_v23 = vrot.slane %v608_v14, 10 }
  0xbd   : > { %v5815_v16 = vld [vmem:[#allocation2 + $0x134] ss:$36 sps:$4 sm:$0xff]   ;;  %v1043_v21 = vsel %vm6048_vm2, %v1041_v12, %v1042_v4  ;;  %1428 = vst [vmem:[#allocation2 + $0x17c] sm:$0xf] %v1312_v19  ;;  %v610_v22 = vld [vmem:[%s6034_s16 + $0xb0] sm:$0x3] }
  0xbe   : > { %v765_v24 = vrot.slane %v609_v15, 6  ;;  %v4582_v25 = vld [vmem:[%s6034_s16 + $0xc0] sm:$0xf]  ;;  %3924 = vmatprep.mubr.bf16.mxu0 %v5815_v16  ;;  %1157 = vst [vmem:[#allocation2 + $0x19c] sm:$0xf] %v1043_v21  ;;  %v1315_v26 = vsel %vm6185_vm5, %v1313_v20, %v1314_v13  ;;  %v768_v27 = vrot.slane %v610_v22, 6 }
  0xbf   : > { %v4583_v28 = vld [vmem:[%s6034_s16 + $0xc4] sm:$0xf]  ;;  %902 = vst [vmem:[#allocation2 + $0x3fc] sm:$0xf] %v4582_v25  ;;  %v4604_v29 = vld [vmem:[%s6034_s16 + $0x60] sm:$0xe]  ;;  %3925 = vmatmul.mubr.bf16.gmra.mxu0 %v5818_v18 }
  0xc0   : > { %1429 = vst [vmem:[#allocation2 + $0x1a0] sm:$0xf] %v1315_v26  ;;  %v766_v30 = vsel %vm6185_vm5, %v4552_v23, %v765_v24  ;;  %v767_v31 = vrot.slane %v765_v24, 4  ;;  %903 = vst [vmem:[#allocation2 + $0x420] sm:$0xf] %v4583_v28  ;;  %v4640_v60 = vrot.slane %v4604_v29, 9 }
  0xc1   : > { %v4605_v32 = vld [vmem:[%s6034_s16 + $0x64] sm:$0xf]  ;;  %v4606_v33 = vld [vmem:[%s6034_s16 + $0x68] sm:$0x1]  ;;  %837 = vst [vmem:[#allocation2 + $0x3f8] sm:$0xf] %v766_v30 }
  0xc2   : > { %v1046_v34 = vrot.slane %v4605_v32, 5  ;;  %v1049_v35 = vrot.slane %v4606_v33, 5  ;;  %v4668_v36 = vld [vmem:[%s6034_s16 + $0x60] sm:$0xc]  ;;  %v5822_v37 = vld [vmem:[#allocation2 + $0x3b4] ss:$36 sps:$4 sm:$0xff]   ;;  %v769_v39 = vsel %vm6185_vm5, %v767_v31, %v768_v27 }
  0xc3   : > { %v5826_v38 = vld [vmem:[#allocation2 + $0x3b0] ss:$36 sps:$4 sm:$0xff]   ;;  %v4704_v40 = vrot.slane %v4668_v36, 10  ;;  %838 = vst [vmem:[#allocation2 + $0x41c] sm:$0xf] %v769_v39  ;;  %3835 = vmatprep.mubr.bf16.mxu1 %v5822_v37 }
  0xc4   : > { %v1047_v41 = vsel %vm6048_vm2, %v4640_v60, %v1046_v34  ;;  %v1048_v42 = vrot.slane %v1046_v34, 4  ;;  %v4669_v43 = vld [vmem:[%s6034_s16 + $0x64] sm:$0xf]  ;;  %v4670_v44 = vld [vmem:[%s6034_s16 + $0x68] sm:$0x3]  ;;  %3836 = vmatmul.mubr.bf16.gmra.mxu1 %v5826_v38 }
  0xc5   : > { %1158 = vst [vmem:[#allocation2 + $0x1c0] sm:$0xf] %v1047_v41  ;;  %v1318_v45 = vrot.slane %v4669_v43, 6  ;;  %v1321_v46 = vrot.slane %v4670_v44, 6  ;;  %v5827_v51 = vld [vmem:[#allocation2 + $0x178] ss:$36 sps:$4 sm:$0xff]  }
  0xc6   : > { %v1050_v47 = vsel %vm6048_vm2, %v1048_v42, %v1049_v35  ;;  %v611_v53 = vld [vmem:[%s6034_s16 + $0xb4] sm:$0xc]  ;;  %v612_v54 = vld [vmem:[%s6034_s16 + $0xb8] sm:$0xf]  ;;  %v613_v55 = vld [vmem:[%s6034_s16 + $0xbc] sm:$0x3] }
  0xc7   : > { %1159 = vst [vmem:[#allocation2 + $0x1e4] sm:$0xf] %v1050_v47  ;;  %v1319_v48 = vsel %vm6185_vm5, %v4704_v40, %v1318_v45  ;;  %v1320_v49 = vrot.slane %v1318_v45, 4  ;;  %v5824_v50 = vld [vmem:[#allocation2 + $0x17c] ss:$36 sps:$4 sm:$0xff]   ;;  %v4553_v56 = vrot.slane %v611_v53, 10 }
  0xc8   : > { %1430 = vst [vmem:[#allocation2 + $0x1c4] sm:$0xf] %v1319_v48  ;;  %3932 = vmatprep.mubr.bf16.mxu0 %v5824_v50  ;;  %v772_v57 = vrot.slane %v612_v54, 6  ;;  %v4584_v58 = vld [vmem:[%s6034_s16 + $0xcc] sm:$0xf]  ;;  %v775_v62 = vrot.slane %v613_v55, 6 }
  0xc9   : > { %v1322_v52 = vsel %vm6185_vm5, %v1320_v49, %v1321_v46  ;;  %3933 = vmatmul.mubr.bf16.gmra.mxu0 %v5827_v51  ;;  %v5828_v59 = vld [vmem:[#allocation2 + $0x3fc] ss:$36 sps:$4 sm:$0xff]   ;;  %904 = vst [vmem:[#allocation2 + $0x444] sm:$0xf] %v4584_v58  ;;  %v4585_v1 = vld [vmem:[%s6034_s16 + $0xd0] sm:$0xf] }
  0xca   : > { %1431 = vst [vmem:[#allocation2 + $0x1e8] sm:$0xf] %v1322_v52  ;;  %v5832_v61 = vld [vmem:[#allocation2 + $0x3f8] ss:$36 sps:$4 sm:$0xff]   ;;  %v773_v63 = vsel %vm6185_vm5, %v4553_v56, %v772_v57  ;;  %v774_v0 = vrot.slane %v772_v57, 4  ;;  %3843 = vmatprep.mubr.bf16.mxu1 %v5828_v59 }
  0xcb   : > { %v4607_v2 = vld [vmem:[%s6034_s16 + $0x6c] sm:$0xe]  ;;  %839 = vst [vmem:[#allocation2 + $0x440] sm:$0xf] %v773_v63  ;;  %905 = vst [vmem:[#allocation2 + $0x468] sm:$0xf] %v4585_v1 }
  0xcc   : > { %v4608_v3 = vld [vmem:[%s6034_s16 + $0x70] sm:$0xf]  ;;  %v4609_v4 = vld [vmem:[%s6034_s16 + $0x74] sm:$0x1]  ;;  %v4641_v5 = vrot.slane %v4607_v2, 9  ;;  %3844 = vmatmul.mubr.bf16.gmra.mxu1 %v5832_v61  ;;  %v776_v6 = vsel %vm6185_vm5, %v774_v0, %v775_v62 }
  0xcd   : > { %v1053_v8 = vrot.slane %v4608_v3, 5  ;;  %v1056_v9 = vrot.slane %v4609_v4, 5  ;;  %v4671_v10 = vld [vmem:[%s6034_s16 + $0x6c] sm:$0xc]  ;;  %v4672_v11 = vld [vmem:[%s6034_s16 + $0x70] sm:$0xf] }
  0xce   : > { %840 = vst [vmem:[#allocation2 + $0x464] sm:$0xf] %v776_v6  ;;  %v4673_v12 = vld [vmem:[%s6034_s16 + $0x74] sm:$0x3]  ;;  %v4705_v13 = vrot.slane %v4671_v10, 10  ;;  %v1325_v14 = vrot.slane %v4672_v11, 6 }
  0xcf   : > { %v1054_v15 = vsel %vm6048_vm2, %v4641_v5, %v1053_v8  ;;  %v1055_v16 = vrot.slane %v1053_v8, 4  ;;  %v1328_v18 = vrot.slane %v4673_v12, 6  ;;  %v4610_v19 = vld [vmem:[%s6034_s16 + $0x78] sm:$0xe]  ;;  %v4611_v20 = vld [vmem:[%s6034_s16 + $0x7c] sm:$0xf] }
  0xd0   : > { %v5833_v22 = vld [vmem:[#allocation2 + $0x1c0] ss:$36 sps:$4 sm:$0xff]   ;;  %1160 = vst [vmem:[#allocation2 + $0x208] sm:$0xf] %v1054_v15  ;;  %v1326_v23 = vsel %vm6185_vm5, %v4705_v13, %v1325_v14  ;;  %v1327_v24 = vrot.slane %v1325_v14, 4  ;;  %v4642_v27 = vrot.slane %v4610_v19, 9 }
  0xd1   : > { %v5830_v21 = vld [vmem:[#allocation2 + $0x1c4] ss:$36 sps:$4 sm:$0xff]   ;;  %v1057_v25 = vsel %vm6048_vm2, %v1055_v16, %v1056_v9  ;;  %1432 = vst [vmem:[#allocation2 + $0x20c] sm:$0xf] %v1326_v23  ;;  %v4612_v26 = vld [vmem:[%s6034_s16 + $0x80] sm:$0x1] }
  0xd2   : > { %v1060_v28 = vrot.slane %v4611_v20, 5  ;;  %v4674_v29 = vld [vmem:[%s6034_s16 + $0x78] sm:$0xc]  ;;  %3940 = vmatprep.mubr.bf16.mxu0 %v5830_v21  ;;  %1161 = vst [vmem:[#allocation2 + $0x22c] sm:$0xf] %v1057_v25  ;;  %v1329_v30 = vsel %vm6185_vm5, %v1327_v24, %v1328_v18  ;;  %v1063_v31 = vrot.slane %v4612_v26, 5 }
  0xd3   : > { %v4675_v32 = vld [vmem:[%s6034_s16 + $0x7c] sm:$0xf]  ;;  %v4676_v33 = vld [vmem:[%s6034_s16 + $0x80] sm:$0x3]  ;;  %v4706_v60 = vrot.slane %v4674_v29, 10  ;;  %3941 = vmatmul.mubr.bf16.gmra.mxu0 %v5833_v22 }
  0xd4   : > { %1433 = vst [vmem:[#allocation2 + $0x230] sm:$0xf] %v1329_v30  ;;  %v1061_v34 = vsel %vm6048_vm2, %v4642_v27, %v1060_v28  ;;  %v1062_v35 = vrot.slane %v1060_v28, 4  ;;  %v1332_v36 = vrot.slane %v4675_v32, 6  ;;  %v1335_v37 = vrot.slane %v4676_v33, 6 }
  0xd5   : > { %v4714_v38 = vld [vmem:[%s6034_s16 + $0x30] sm:$0xf]  ;;  %1162 = vst [vmem:[#allocation2 + $0x250] sm:$0xf] %v1061_v34  ;;  %v4715_v39 = vld [vmem:[%s6034_s16 + $0x34] sm:$0xf] }
  0xd6   : > { %1483 = vst [vmem:[#allocation2 + $0x18] sm:$0xf] %v4714_v38  ;;  %v4746_v40 = vld [vmem:[%s6034_s16 + $0x30] sm:$0xe]  ;;  %v4747_v41 = vld [vmem:[%s6034_s16 + $0x34] sm:$0xf]  ;;  %v1064_v44 = vsel %vm6048_vm2, %v1062_v35, %v1063_v31  ;;  %v1333_v45 = vsel %vm6185_vm5, %v4706_v60, %v1332_v36 }
  0xd7   : > { %v5837_v42 = vld [vmem:[#allocation2 + $0x444] ss:$36 sps:$4 sm:$0xff]   ;;  %v1334_v46 = vrot.slane %v1332_v36, 4  ;;  %1484 = vst [vmem:[#allocation2 + $0x3c] sm:$0xf] %v4715_v39  ;;  %v4794_v48 = vrot.slane %v4746_v40, 9 }
  0xd8   : > { %v5841_v43 = vld [vmem:[#allocation2 + $0x440] ss:$36 sps:$4 sm:$0xff]   ;;  %1163 = vst [vmem:[#allocation2 + $0x274] sm:$0xf] %v1064_v44  ;;  %1434 = vst [vmem:[#allocation2 + $0x254] sm:$0xf] %v1333_v45  ;;  %3851 = vmatprep.mubr.bf16.mxu1 %v5837_v42 }
  0xd9   : > { %v4748_v47 = vld [vmem:[%s6034_s16 + $0x38] sm:$0x1]  ;;  %v1613_v49 = vrot.slane %v4747_v41, 5  ;;  %v1336_v50 = vsel %vm6185_vm5, %v1334_v46, %v1335_v37  ;;  %v4613_v52 = vld [vmem:[%s6034_s16 + $0x84] sm:$0xe]  ;;  %3852 = vmatmul.mubr.bf16.gmra.mxu1 %v5841_v43 }
  0xda   : > { %v1616_v51 = vrot.slane %v4748_v47, 5  ;;  %1435 = vst [vmem:[#allocation2 + $0x278] sm:$0xf] %v1336_v50  ;;  %v4614_v55 = vld [vmem:[%s6034_s16 + $0x88] sm:$0xf]  ;;  %v4643_v57 = vrot.slane %v4613_v52, 9 }
  0xdb   : > { %v1614_v53 = vsel %vm6048_vm2, %v4794_v48, %v1613_v49  ;;  %v1615_v54 = vrot.slane %v1613_v49, 4  ;;  %v4615_v56 = vld [vmem:[%s6034_s16 + $0x8c] sm:$0x1]  ;;  %v1067_v58 = vrot.slane %v4614_v55, 5  ;;  %v4677_v61 = vld [vmem:[%s6034_s16 + $0x84] sm:$0xc] }
  0xdc   : > { %1755 = vst [vmem:[#allocation2 + $0x1c] sm:$0xf] %v1614_v53  ;;  %v1070_v59 = vrot.slane %v4615_v56, 5  ;;  %v5839_v62 = vld [vmem:[#allocation2 + $0x20c] ss:$36 sps:$4 sm:$0xff]   ;;  %v4707_v1 = vrot.slane %v4677_v61, 10 }
  0xdd   : > { %v5842_v63 = vld [vmem:[#allocation2 + $0x208] ss:$36 sps:$4 sm:$0xff]   ;;  %v1617_v0 = vsel %vm6048_vm2, %v1615_v54, %v1616_v51  ;;  %v1068_v2 = vsel %vm6048_vm2, %v4643_v57, %v1067_v58  ;;  %v1069_v3 = vrot.slane %v1067_v58, 4  ;;  %3948 = vmatprep.mubr.bf16.mxu0 %v5839_v62  ;;  %v4716_v9 = vld [vmem:[%s6034_s16 + $0x3c] sm:$0xf] }
  0xde   : > { %1756 = vst [vmem:[#allocation2 + $0x40] sm:$0xf] %v1617_v0  ;;  %v4678_v4 = vld [vmem:[%s6034_s16 + $0x88] sm:$0xf]  ;;  %v4679_v5 = vld [vmem:[%s6034_s16 + $0x8c] sm:$0x3]  ;;  %3949 = vmatmul.mubr.bf16.gmra.mxu0 %v5842_v63 }
  0xdf   : > { %1164 = vst [vmem:[#allocation2 + $0x298] sm:$0xf] %v1068_v2  ;;  %v1339_v6 = vrot.slane %v4678_v4, 6  ;;  %v1342_v8 = vrot.slane %v4679_v5, 6  ;;  %v4717_v10 = vld [vmem:[%s6034_s16 + $0x40] sm:$0xf]  ;;  %v1071_v11 = vsel %vm6048_vm2, %v1069_v3, %v1070_v59 }
  0xe0   : > { %1485 = vst [vmem:[#allocation2 + $0x60] sm:$0xf] %v4716_v9  ;;  %1486 = vst [vmem:[#allocation2 + $0x84] sm:$0xf] %v4717_v10  ;;  %v4749_v12 = vld [vmem:[%s6034_s16 + $0x3c] sm:$0xe] }
  0xe1   : > { %v4750_v13 = vld [vmem:[%s6034_s16 + $0x40] sm:$0xf]  ;;  %1165 = vst [vmem:[#allocation2 + $0x2bc] sm:$0xf] %v1071_v11  ;;  %v1340_v14 = vsel %vm6185_vm5, %v4707_v1, %v1339_v6  ;;  %v1341_v15 = vrot.slane %v1339_v6, 4  ;;  %v4795_v18 = vrot.slane %v4749_v12, 9 }
  0xe2   : > { %v4751_v16 = vld [vmem:[%s6034_s16 + $0x44] sm:$0x1]  ;;  %v1620_v19 = vrot.slane %v4750_v13, 5  ;;  %v5843_v20 = vld [vmem:[#allocation2 + $0x254] ss:$36 sps:$4 sm:$0xff]  }
  0xe3   : > { %v5848_v21 = vld [vmem:[#allocation2 + $0x250] ss:$36 sps:$4 sm:$0xff]   ;;  %1436 = vst [vmem:[#allocation2 + $0x29c] sm:$0xf] %v1340_v14  ;;  %v1623_v22 = vrot.slane %v4751_v16, 5  ;;  %v1343_v23 = vsel %vm6185_vm5, %v1341_v15, %v1342_v8  ;;  %3956 = vmatprep.mubr.bf16.mxu0 %v5843_v20 }
  0xe4   : > { %v1621_v24 = vsel %vm6048_vm2, %v4795_v18, %v1620_v19  ;;  %v1622_v25 = vrot.slane %v1620_v19, 4  ;;  %v4616_v26 = vld [vmem:[%s6034_s16 + $0x90] sm:$0xe]  ;;  %v4617_v27 = vld [vmem:[%s6034_s16 + $0x94] sm:$0xf] }
  0xe5   : > { %1437 = vst [vmem:[#allocation2 + $0x2c0] sm:$0xf] %v1343_v23  ;;  %1757 = vst [vmem:[#allocation2 + $0x64] sm:$0xf] %v1621_v24  ;;  %v4618_v28 = vld [vmem:[%s6034_s16 + $0x98] sm:$0x1] }
  0xe6   : > { %v4644_v29 = vrot.slane %v4616_v26, 9  ;;  %v1074_v30 = vrot.slane %v4617_v27, 5  ;;  %v4680_v31 = vld [vmem:[%s6034_s16 + $0x90] sm:$0xc]  ;;  %v5845_v32 = vld [vmem:[#allocation2 + $0x18] ss:$36 sps:$4 sm:$0xff]   ;;  %v1624_v60 = vsel %vm6048_vm2, %v1622_v25, %v1623_v22  ;;  %3957 = vmatmul.mubr.bf16.gmra.mxu0 %v5848_v21 }
  0xe7   : > { %v5847_v33 = vld [vmem:[#allocation2 + $0x1c] ss:$36 sps:$4 sm:$0xff]   ;;  %v1077_v34 = vrot.slane %v4618_v28, 5  ;;  %1758 = vst [vmem:[#allocation2 + $0x88] sm:$0xf] %v1624_v60  ;;  %v4708_v39 = vrot.slane %v4680_v31, 10 }
  0xe8   : > { %v1075_v35 = vsel %vm6048_vm2, %v4644_v29, %v1074_v30  ;;  %v1076_v36 = vrot.slane %v1074_v30, 4  ;;  %v4681_v37 = vld [vmem:[%s6034_s16 + $0x94] sm:$0xf]  ;;  %v4682_v38 = vld [vmem:[%s6034_s16 + $0x98] sm:$0x3]  ;;  %4053 = vmatprep.mubr.bf16.mxu1 %v5847_v33 }
  0xe9   : > { %1166 = vst [vmem:[#allocation2 + $0x2e0] sm:$0xf] %v1075_v35  ;;  %v1346_v41 = vrot.slane %v4681_v37, 6  ;;  %v1349_v42 = vrot.slane %v4682_v38, 6  ;;  %v4718_v43 = vld [vmem:[%s6034_s16 + $0x48] sm:$0xf]  ;;  %4054 = vmatmul.mubr.bf16.vlgmr.msra.gmra.mxu1 %v5845_v32 }
  0xea   : > { %v4719_v44 = vld [vmem:[%s6034_s16 + $0x4c] sm:$0xf]  ;;  %v1078_v46 = vsel %vm6048_vm2, %v1076_v36, %v1077_v34  ;;  %1487 = vst [vmem:[#allocation2 + $0xa8] sm:$0xf] %v4718_v43  ;;  %v4752_v47 = vld [vmem:[%s6034_s16 + $0x48] sm:$0xe] }
  0xeb   : > { %1488 = vst [vmem:[#allocation2 + $0xcc] sm:$0xf] %v4719_v44  ;;  %v4753_v48 = vld [vmem:[%s6034_s16 + $0x4c] sm:$0xf]  ;;  %v4754_v49 = vld [vmem:[%s6034_s16 + $0x50] sm:$0x1]  ;;  %v1347_v51 = vsel %vm6185_vm5, %v4708_v39, %v1346_v41 }
  0xec   : > { %1167 = vst [vmem:[#allocation2 + $0x304] sm:$0xf] %v1078_v46  ;;  %v1348_v52 = vrot.slane %v1346_v41, 4  ;;  %v4796_v53 = vrot.slane %v4752_v47, 9  ;;  %v1627_v54 = vrot.slane %v4753_v48, 5  ;;  %v1630_v56 = vrot.slane %v4754_v49, 5 }
  0xed   : > { %v5110_v40 = vpop.f32.mrf.mxu0  ;;  %v5182_v45 = vpop.f32.mrf.mxu1  ;;  %1438 = vst [vmem:[#allocation2 + $0x2e4] sm:$0xf] %v1347_v51  ;;  %v4619_v57 = vld [vmem:[%s6034_s16 + $0x9c] sm:$0xe]  ;;  %v4620_v5 = vld [vmem:[%s6034_s16 + $0xa0] sm:$0xf] }
  0xee   : > { %v5850_v62 = vld [vmem:[#allocation2 + $0x29c] ss:$36 sps:$4 sm:$0xff]   ;;  %v1350_v63 = vsel %vm6185_vm5, %v1348_v52, %v1349_v42  ;;  %v1628_v0 = vsel %vm6048_vm2, %v4796_v53, %v1627_v54  ;;  %v1629_v1 = vrot.slane %v1627_v54, 4  ;;  %v4645_v2 = vrot.slane %v4619_v57, 9  ;;  %v4621_v6 = vld [vmem:[%s6034_s16 + $0xa4] sm:$0x1] }
  0xef   : > { %v5111_v50 = vpop.f32.mrf.mxu0  ;;  %v5183_v55 = vpop.f32.mrf.mxu1  ;;  %v5854_v4 = vld [vmem:[#allocation2 + $0x298] ss:$36 sps:$4 sm:$0xff]   ;;  %1439 = vst [vmem:[#allocation2 + $0x308] sm:$0xf] %v1350_v63  ;;  %1759 = vst [vmem:[#allocation2 + $0xac] sm:$0xf] %v1628_v0  ;;  %3964 = vmatprep.mubr.bf16.mxu0 %v5850_v62 }
  0xf0   : > { %v6701_v58 = vadd.f32 %v5111_v50, %v5110_v40  ;;  %v6703_v59 = vadd.f32 %v5183_v55, %v5182_v45  ;;  %v5852_v9 = vld [vmem:[#allocation2 + $0x64] ss:$36 sps:$4 sm:$0xff]   ;;  %v1631_v11 = vsel %vm6048_vm2, %v1629_v1, %v1630_v56  ;;  %v1081_v12 = vrot.slane %v4620_v5, 5  ;;  %v4683_v16 = vld [vmem:[%s6034_s16 + $0x9c] sm:$0xc]  ;;  %3965 = vmatmul.mubr.bf16.gmra.mxu0 %v5854_v4 }
  0xf1   : > { %v5113_v61 = vpop.f32.mrf.mxu0  ;;  %v5185_v3 = vpop.f32.mrf.mxu1  ;;  %v5855_v10 = vld [vmem:[#allocation2 + $0x60] ss:$36 sps:$4 sm:$0xff]   ;;  %1760 = vst [vmem:[#allocation2 + $0xd0] sm:$0xf] %v1631_v11  ;;  %v1084_v15 = vrot.slane %v4621_v6, 5  ;;  %4061 = vmatprep.mubr.bf16.mxu1 %v5852_v9  ;;  %v4709_v23 = vrot.slane %v4683_v16, 10 }
  0xf2   : > { %v4684_v18 = vld [vmem:[%s6034_s16 + $0xa0] sm:$0xf]  ;;  %v1082_v20 = vsel %vm6048_vm2, %v4645_v2, %v1081_v12  ;;  %v1083_v21 = vrot.slane %v1081_v12, 4  ;;  %v4685_v22 = vld [vmem:[%s6034_s16 + $0xa4] sm:$0x3]  ;;  %4062 = vmatmul.mubr.bf16.gmra.mxu1 %v5855_v10 }
  0xf3   : > { %v5114_v8 = vpop.f32.mrf.mxu0  ;;  %v5186_v14 = vpop.f32.mrf.mxu1  ;;  %v1353_v24 = vrot.slane %v4684_v18, 6  ;;  %1168 = vst [vmem:[#allocation2 + $0x328] sm:$0xf] %v1082_v20  ;;  %v1356_v26 = vrot.slane %v4685_v22, 6  ;;  %v4720_v27 = vld [vmem:[%s6034_s16 + $0x54] sm:$0xf] }
  0xf4   : > { %v6713_v13 = vadd.f32 %v5114_v8, %v5113_v61  ;;  %v6717_v19 = vadd.f32 %v5186_v14, %v5185_v3  ;;  %v4721_v28 = vld [vmem:[%s6034_s16 + $0x58] sm:$0xf]  ;;  %v1085_v29 = vsel %vm6048_vm2, %v1083_v21, %v1084_v15  ;;  %1489 = vst [vmem:[#allocation2 + $0xf0] sm:$0xf] %v4720_v27  ;;  %v4755_v32 = vld [vmem:[%s6034_s16 + $0x54] sm:$0xe] }
  0xf5   : > { %v5116_v25 = vpop.f32.mrf.mxu0  ;;  %v1354_v30 = vsel %vm6185_vm5, %v4709_v23, %v1353_v24  ;;  %v1355_v31 = vrot.slane %v1353_v24, 4  ;;  %1490 = vst [vmem:[#allocation2 + $0x114] sm:$0xf] %v4721_v28  ;;  %v4756_v33 = vld [vmem:[%s6034_s16 + $0x58] sm:$0xf]  ;;  %v4797_v35 = vrot.slane %v4755_v32, 9  ;;  %v5188_v38 = vpop.f32.mrf.mxu1 }
  0xf6   : > { %1169 = vst [vmem:[#allocation2 + $0x34c] sm:$0xf] %v1085_v29  ;;  %1440 = vst [vmem:[#allocation2 + $0x32c] sm:$0xf] %v1354_v30  ;;  %v4757_v34 = vld [vmem:[%s6034_s16 + $0x5c] sm:$0x1] }
  0xf7   : > { %v5117_v60 = vpop.f32.mrf.mxu0  ;;  %v1634_v36 = vrot.slane %v4756_v33, 5  ;;  %v4622_v37 = vld [vmem:[%s6034_s16 + $0xa8] sm:$0xe]  ;;  %v1357_v41 = vsel %vm6185_vm5, %v1355_v31, %v1356_v26  ;;  %v1637_v42 = vrot.slane %v4757_v34, 5  ;;  %v5860_v45 = vld [vmem:[#allocation2 + $0x2e0] ss:$36 sps:$4 sm:$0xff]   ;;  %v5189_v49 = vpop.f32.mrf.mxu1 }
  0xf8   : > { %v6732_v39 = vadd.f32 %v5117_v60, %v5116_v25  ;;  %v5856_v40 = vld [vmem:[#allocation2 + $0x2e4] ss:$36 sps:$4 sm:$0xff]   ;;  %v4646_v43 = vrot.slane %v4622_v37, 9  ;;  %1441 = vst [vmem:[#allocation2 + $0x350] sm:$0xf] %v1357_v41  ;;  %v6739_v53 = vadd.f32 %v5189_v49, %v5188_v38 }
  0xf9   : > { %v5119_v44 = vpop.f32.mrf.mxu0  ;;  %v1635_v46 = vsel %vm6048_vm2, %v4797_v35, %v1634_v36  ;;  %v1636_v47 = vrot.slane %v1634_v36, 4  ;;  %v4623_v48 = vld [vmem:[%s6034_s16 + $0xac] sm:$0xf]  ;;  %3972 = vmatprep.mubr.bf16.mxu0 %v5856_v40  ;;  %v4624_v56 = vld [vmem:[%s6034_s16 + $0xb0] sm:$0x1]  ;;  %v5191_v62 = vpop.f32.mrf.mxu1 }
  0xfa   : > { %v5858_v50 = vld [vmem:[#allocation2 + $0xac] ss:$36 sps:$4 sm:$0xff]   ;;  %1761 = vst [vmem:[#allocation2 + $0xf4] sm:$0xf] %v1635_v46  ;;  %v1088_v52 = vrot.slane %v4623_v48, 5  ;;  %v1091_v2 = vrot.slane %v4624_v56, 5  ;;  %3973 = vmatmul.mubr.bf16.gmra.mxu0 %v5860_v45 }
  0xfb   : > { %v5861_v51 = vld [vmem:[#allocation2 + $0xa8] ss:$36 sps:$4 sm:$0xff]   ;;  %v5120_v54 = vpop.f32.mrf.mxu0  ;;  %v1638_v55 = vsel %vm6048_vm2, %v1636_v47, %v1637_v42  ;;  %4069 = vmatprep.mubr.bf16.mxu1 %v5858_v50  ;;  %v4688_v3 = vld [vmem:[%s6034_s16 + $0xb0] sm:$0x3]  ;;  %v4722_v8 = vld [vmem:[%s6034_s16 + $0x60] sm:$0xf]  ;;  %v5192_v10 = vpop.f32.mrf.mxu1 }
  0xfc   : > { %v4686_v57 = vld [vmem:[%s6034_s16 + $0xa8] sm:$0xc]  ;;  %v4687_v61 = vld [vmem:[%s6034_s16 + $0xac] sm:$0xf]  ;;  %v6746_v63 = vadd.f32 %v5120_v54, %v5119_v44  ;;  %1762 = vst [vmem:[#allocation2 + $0x118] sm:$0xf] %v1638_v55  ;;  %v1089_v0 = vsel %vm6048_vm2, %v4646_v43, %v1088_v52  ;;  %4070 = vmatmul.mubr.bf16.gmra.mxu1 %v5861_v51  ;;  %v6757_v15 = vadd.f32 %v5192_v10, %v5191_v62 }
  0xfd   : > { %v1090_v1 = vrot.slane %v1088_v52, 4  ;;  %v4710_v4 = vrot.slane %v4686_v57, 10  ;;  %1170 = vst [vmem:[#allocation2 + $0x370] sm:$0xf] %v1089_v0  ;;  %v1360_v5 = vrot.slane %v4687_v61, 6  ;;  %v1363_v6 = vrot.slane %v4688_v3, 6  ;;  %v5122_v16 = vpop.f32.mrf.mxu0  ;;  %v5194_v60 = vpop.f32.mrf.mxu1 }
  0xfe   : > { %v4723_v9 = vld [vmem:[%s6034_s16 + $0x64] sm:$0xf]  ;;  %1491 = vst [vmem:[#allocation2 + $0x138] sm:$0xf] %v4722_v8  ;;  %v4758_v12 = vld [vmem:[%s6034_s16 + $0x60] sm:$0xe] }
  0xff   : > { %v1092_v11 = vsel %vm6048_vm2, %v1090_v1, %v1091_v2  ;;  %1492 = vst [vmem:[#allocation2 + $0x15c] sm:$0xf] %v4723_v9  ;;  %v4759_v14 = vld [vmem:[%s6034_s16 + $0x64] sm:$0xf]  ;;  %v1361_v18 = vsel %vm6185_vm5, %v4710_v4, %v1360_v5  ;;  %v1362_v20 = vrot.slane %v1360_v5, 4  ;;  %v4798_v22 = vrot.slane %v4758_v12, 9  ;;  %v5123_v26 = vpop.f32.mrf.mxu0  ;;  %v5195_v43 = vpop.f32.mrf.mxu1 }
 0x100   : > { %1171 = vst [vmem:[#allocation2 + $0x394] sm:$0xf] %v1092_v11  ;;  %v4760_v21 = vld [vmem:[%s6034_s16 + $0x68] sm:$0x1]  ;;  %v1641_v23 = vrot.slane %v4759_v14, 5  ;;  %v6766_v31 = vadd.f32 %v5123_v26, %v5122_v16  ;;  %v6776_v49 = vadd.f32 %v5195_v43, %v5194_v60 }
 0x101   : > { %v5863_v24 = vld [vmem:[#allocation2 + $0x32c] ss:$36 sps:$4 sm:$0xff]   ;;  %1442 = vst [vmem:[#allocation2 + $0x374] sm:$0xf] %v1361_v18  ;;  %v1644_v25 = vrot.slane %v4760_v21, 5  ;;  %v1364_v28 = vsel %vm6185_vm5, %v1362_v20, %v1363_v6  ;;  %v5125_v34 = vpop.f32.mrf.mxu0  ;;  %v5197_v57 = vpop.f32.mrf.mxu1 }
 0x102   : > { %v5867_v27 = vld [vmem:[#allocation2 + $0x328] ss:$36 sps:$4 sm:$0xff]   ;;  %v1642_v29 = vsel %vm6048_vm2, %v4798_v22, %v1641_v23  ;;  %v1643_v30 = vrot.slane %v1641_v23, 4  ;;  %3980 = vmatprep.mubr.bf16.mxu0 %v5863_v24  ;;  %1443 = vst [vmem:[#allocation2 + $0x398] sm:$0xf] %v1364_v28 }
 0x103   : > { %1763 = vst [vmem:[#allocation2 + $0x13c] sm:$0xf] %v1642_v29  ;;  %v4625_v32 = vld [vmem:[%s6034_s16 + $0xb4] sm:$0xe]  ;;  %v4626_v33 = vld [vmem:[%s6034_s16 + $0xb8] sm:$0xf]  ;;  %v5126_v44 = vpop.f32.mrf.mxu0  ;;  %3981 = vmatmul.mubr.bf16.gmra.mxu0 %v5867_v27  ;;  %v5198_v6 = vpop.f32.mrf.mxu1 }
 0x104   : > { %v5865_v35 = vld [vmem:[#allocation2 + $0xf4] ss:$36 sps:$4 sm:$0xff]   ;;  %v1645_v37 = vsel %vm6048_vm2, %v1643_v30, %v1644_v25  ;;  %v4647_v38 = vrot.slane %v4625_v32, 9  ;;  %v4627_v40 = vld [vmem:[%s6034_s16 + $0xbc] sm:$0x1]  ;;  %v1095_v41 = vrot.slane %v4626_v33, 5  ;;  %v6778_v50 = vadd.f32 %v5126_v44, %v5125_v34 }
 0x105   : > { %v5868_v36 = vld [vmem:[#allocation2 + $0xf0] ss:$36 sps:$4 sm:$0xff]   ;;  %1764 = vst [vmem:[#allocation2 + $0x160] sm:$0xf] %v1645_v37  ;;  %4077 = vmatprep.mubr.bf16.mxu1 %v5865_v35  ;;  %v1098_v45 = vrot.slane %v4627_v40, 5  ;;  %v6791_v11 = vadd.f32 %v5198_v6, %v5197_v57  ;;  %v5128_v28 = vpop.f32.mrf.mxu0  ;;  %v5200_v44 = vpop.f32.mrf.mxu1 }
 0x106   : > { %v4689_v42 = vld [vmem:[%s6034_s16 + $0xb4] sm:$0xc]  ;;  %v4690_v46 = vld [vmem:[%s6034_s16 + $0xb8] sm:$0xf]  ;;  %v4691_v47 = vld [vmem:[%s6034_s16 + $0xbc] sm:$0x3]  ;;  %4078 = vmatmul.mubr.bf16.gmra.mxu1 %v5868_v36  ;;  %v1096_v51 = vsel %vm6048_vm2, %v4647_v38, %v1095_v41 }
 0x107   : > { %v4711_v48 = vrot.slane %v4689_v42, 10  ;;  %v1097_v52 = vrot.slane %v1095_v41, 4  ;;  %v1367_v54 = vrot.slane %v4690_v46, 6  ;;  %v1370_v55 = vrot.slane %v4691_v47, 6  ;;  %v4724_v56 = vld [vmem:[%s6034_s16 + $0x6c] sm:$0xf]  ;;  %v5129_v40 = vpop.f32.mrf.mxu0  ;;  %v5201_v57 = vpop.f32.mrf.mxu1 }
 0x108   : > { %1172 = vst [vmem:[#allocation2 + $0x3b8] sm:$0xf] %v1096_v51  ;;  %v4725_v61 = vld [vmem:[%s6034_s16 + $0x70] sm:$0xf]  ;;  %1493 = vst [vmem:[#allocation2 + $0x180] sm:$0xf] %v4724_v56 }
 0x109   : > { %v4761_v62 = vld [vmem:[%s6034_s16 + $0x6c] sm:$0xe]  ;;  %v1099_v0 = vsel %vm6048_vm2, %v1097_v52, %v1098_v45  ;;  %v1368_v1 = vsel %vm6185_vm5, %v4711_v48, %v1367_v54  ;;  %v1369_v2 = vrot.slane %v1367_v54, 4  ;;  %1494 = vst [vmem:[#allocation2 + $0x1a4] sm:$0xf] %v4725_v61  ;;  %v6811_v45 = vadd.f32 %v5129_v40, %v5128_v28  ;;  %v5131_v54 = vpop.f32.mrf.mxu0 }
 0x10a   : > { %v4762_v3 = vld [vmem:[%s6034_s16 + $0x70] sm:$0xf]  ;;  %v4763_v4 = vld [vmem:[%s6034_s16 + $0x74] sm:$0x1]  ;;  %v4799_v5 = vrot.slane %v4761_v62, 9 }
 0x10b   : > { %v5869_v8 = vld [vmem:[#allocation2 + $0x374] ss:$36 sps:$4 sm:$0xff]   ;;  %1173 = vst [vmem:[#allocation2 + $0x3dc] sm:$0xf] %v1099_v0  ;;  %1444 = vst [vmem:[#allocation2 + $0x3bc] sm:$0xf] %v1368_v1  ;;  %v1371_v14 = vsel %vm6185_vm5, %v1369_v2, %v1370_v55  ;;  %v6820_v1 = vadd.f32 %v5201_v57, %v5200_v44  ;;  %v5132_v2 = vpop.f32.mrf.mxu0 }
 0x10c   : > { %v1648_v9 = vrot.slane %v4762_v3, 5  ;;  %v1651_v10 = vrot.slane %v4763_v4, 5  ;;  %v5873_v12 = vld [vmem:[#allocation2 + $0x370] ss:$36 sps:$4 sm:$0xff]   ;;  %v4628_v16 = vld [vmem:[%s6034_s16 + $0xc0] sm:$0xe]  ;;  %3988 = vmatprep.mubr.bf16.mxu0 %v5869_v8  ;;  %v5203_v8 = vpop.f32.mrf.mxu1 }
 0x10d   : > { %v4629_v18 = vld [vmem:[%s6034_s16 + $0xc4] sm:$0xf]  ;;  %v5871_v20 = vld [vmem:[#allocation2 + $0x13c] ss:$36 sps:$4 sm:$0xff]   ;;  %1445 = vst [vmem:[#allocation2 + $0x3e0] sm:$0xf] %v1371_v14  ;;  %3989 = vmatmul.mubr.bf16.gmra.mxu0 %v5873_v12 }
 0x10e   : > { %v5874_v21 = vld [vmem:[#allocation2 + $0x138] ss:$36 sps:$4 sm:$0xff]   ;;  %v1649_v22 = vsel %vm6048_vm2, %v4799_v5, %v1648_v9  ;;  %v1650_v23 = vrot.slane %v1648_v9, 4  ;;  %v4630_v24 = vld [vmem:[%s6034_s16 + $0xc8] sm:$0x1]  ;;  %v4648_v25 = vrot.slane %v4628_v16, 9  ;;  %4085 = vmatprep.mubr.bf16.mxu1 %v5871_v20  ;;  %v6826_v9 = vadd.f32 %v5132_v2, %v5131_v54 }
 0x10f   : > { %1765 = vst [vmem:[#allocation2 + $0x184] sm:$0xf] %v1649_v22  ;;  %v1102_v26 = vrot.slane %v4629_v18, 5  ;;  %v4692_v27 = vld [vmem:[%s6034_s16 + $0xc0] sm:$0xc]  ;;  %v1105_v30 = vrot.slane %v4630_v24, 5  ;;  %4086 = vmatmul.mubr.bf16.gmra.mxu1 %v5874_v21 }
 0x110   : > { %v1652_v29 = vsel %vm6048_vm2, %v1650_v23, %v1651_v10  ;;  %v4693_v32 = vld [vmem:[%s6034_s16 + $0xc4] sm:$0xf]  ;;  %v4694_v33 = vld [vmem:[%s6034_s16 + $0xc8] sm:$0x3]  ;;  %v4712_v60 = vrot.slane %v4692_v27, 10  ;;  %v5204_v23 = vpop.f32.mrf.mxu1 }
 0x111   : > { %1766 = vst [vmem:[#allocation2 + $0x1a8] sm:$0xf] %v1652_v29  ;;  %v1103_v34 = vsel %vm6048_vm2, %v4648_v25, %v1102_v26  ;;  %v1104_v35 = vrot.slane %v1102_v26, 4  ;;  %v1374_v36 = vrot.slane %v4693_v32, 6  ;;  %v1377_v37 = vrot.slane %v4694_v33, 6 }
 0x112   : > { %v4726_v38 = vld [vmem:[%s6034_s16 + $0x78] sm:$0xf]  ;;  %1174 = vst [vmem:[#allocation2 + $0x400] sm:$0xf] %v1103_v34  ;;  %v4727_v41 = vld [vmem:[%s6034_s16 + $0x7c] sm:$0xf]  ;;  %v6836_v29 = vadd.f32 %v5204_v23, %v5203_v8 }
 0x113   : > { %1495 = vst [vmem:[#allocation2 + $0x1c8] sm:$0xf] %v4726_v38  ;;  %v4764_v42 = vld [vmem:[%s6034_s16 + $0x78] sm:$0xe]  ;;  %v4765_v43 = vld [vmem:[%s6034_s16 + $0x7c] sm:$0xf]  ;;  %v1106_v46 = vsel %vm6048_vm2, %v1104_v35, %v1105_v30  ;;  %v1375_v47 = vsel %vm6185_vm5, %v4712_v60, %v1374_v36 }
 0x114   : > { %v1376_v48 = vrot.slane %v1374_v36, 4  ;;  %1496 = vst [vmem:[#allocation2 + $0x1ec] sm:$0xf] %v4727_v41  ;;  %v4766_v51 = vld [vmem:[%s6034_s16 + $0x80] sm:$0x1]  ;;  %v4800_v52 = vrot.slane %v4764_v42, 9 }
 0x115   : > { %1175 = vst [vmem:[#allocation2 + $0x424] sm:$0xf] %v1106_v46  ;;  %1446 = vst [vmem:[#allocation2 + $0x404] sm:$0xf] %v1375_v47  ;;  %v1655_v55 = vrot.slane %v4765_v43, 5  ;;  %v1658_v56 = vrot.slane %v4766_v51, 5  ;;  %v5222_v51 = vpop.f32.mrf.mxu1 }
 0x116   : > { %v5876_v61 = vld [vmem:[#allocation2 + $0x3bc] ss:$36 sps:$4 sm:$0xff]   ;;  %v1378_v0 = vsel %vm6185_vm5, %v1376_v48, %v1377_v37  ;;  %v4631_v5 = vld [vmem:[%s6034_s16 + $0xcc] sm:$0xe]  ;;  %v4632_v6 = vld [vmem:[%s6034_s16 + $0xd0] sm:$0xf]  ;;  %v5134_v37 = vpop.f32.mrf.mxu0 }
 0x117   : > { %v5880_v62 = vld [vmem:[#allocation2 + $0x3b8] ss:$36 sps:$4 sm:$0xff]   ;;  %1447 = vst [vmem:[#allocation2 + $0x428] sm:$0xf] %v1378_v0  ;;  %v1656_v3 = vsel %vm6048_vm2, %v4800_v52, %v1655_v55  ;;  %v1657_v4 = vrot.slane %v1655_v55, 4  ;;  %3996 = vmatprep.mubr.bf16.mxu0 %v5876_v61  ;;  %v4649_v12 = vrot.slane %v4631_v5, 9 }
 0x118   : > { %1767 = vst [vmem:[#allocation2 + $0x1cc] sm:$0xf] %v1656_v3  ;;  %v4633_v10 = vld [vmem:[%s6034_s16 + $0xd4] sm:$0x1]  ;;  %v1109_v14 = vrot.slane %v4632_v6, 5  ;;  %3997 = vmatmul.mubr.bf16.gmra.mxu0 %v5880_v62  ;;  %v5135_v52 = vpop.f32.mrf.mxu0 }
 0x119   : > { %v4695_v16 = vld [vmem:[%s6034_s16 + $0xcc] sm:$0xc]  ;;  %v5878_v18 = vld [vmem:[#allocation2 + $0x184] ss:$36 sps:$4 sm:$0xff]   ;;  %v1659_v21 = vsel %vm6048_vm2, %v1657_v4, %v1658_v56  ;;  %v1112_v22 = vrot.slane %v4633_v10, 5  ;;  %v6858_v62 = vadd.f32 %v5135_v52, %v5134_v37  ;;  %v5223_v4 = vpop.f32.mrf.mxu1 }
 0x11a   : > { %v5881_v20 = vld [vmem:[#allocation2 + $0x180] ss:$36 sps:$4 sm:$0xff]   ;;  %1768 = vst [vmem:[#allocation2 + $0x1f0] sm:$0xf] %v1659_v21  ;;  %v1110_v24 = vsel %vm6048_vm2, %v4649_v12, %v1109_v14  ;;  %v1111_v25 = vrot.slane %v1109_v14, 4  ;;  %v4713_v28 = vrot.slane %v4695_v16, 10  ;;  %4093 = vmatprep.mubr.bf16.mxu1 %v5878_v18  ;;  %v5137_v5 = vpop.f32.mrf.mxu0  ;;  %v5224_v16 = vadd.f32 %v5223_v4, %v5222_v51 }
 0x11b   : > { %v4696_v26 = vld [vmem:[%s6034_s16 + $0xd0] sm:$0xf]  ;;  %v4697_v27 = vld [vmem:[%s6034_s16 + $0xd4] sm:$0x3]  ;;  %1176 = vst [vmem:[#allocation2 + $0x448] sm:$0xf] %v1110_v24  ;;  %4094 = vmatmul.mubr.bf16.gmra.mxu1 %v5881_v20  ;;  %v5225_v23 = vpop.f32.mrf.mxu1 }
 0x11c   : > { %v1381_v30 = vrot.slane %v4696_v26, 6  ;;  %v1384_v32 = vrot.slane %v4697_v27, 6  ;;  %v4728_v33 = vld [vmem:[%s6034_s16 + $0x84] sm:$0xf]  ;;  %v4729_v60 = vld [vmem:[%s6034_s16 + $0x88] sm:$0xf]  ;;  %v1113_v34 = vsel %vm6048_vm2, %v1111_v25, %v1112_v22  ;;  %v5138_v24 = vpop.f32.mrf.mxu0 }
 0x11d   : > { %1497 = vst [vmem:[#allocation2 + $0x210] sm:$0xf] %v4728_v33  ;;  %1498 = vst [vmem:[#allocation2 + $0x234] sm:$0xf] %v4729_v60  ;;  %v4767_v35 = vld [vmem:[%s6034_s16 + $0x84] sm:$0xe] }
 0x11e   : > { %v4768_v36 = vld [vmem:[%s6034_s16 + $0x88] sm:$0xf]  ;;  %1177 = vst [vmem:[#allocation2 + $0x46c] sm:$0xf] %v1113_v34  ;;  %v1382_v38 = vsel %vm6185_vm5, %v4713_v28, %v1381_v30  ;;  %v1383_v40 = vrot.slane %v1381_v30, 4  ;;  %v4801_v42 = vrot.slane %v4767_v35, 9  ;;  %v6873_v30 = vadd.f32 %v5138_v24, %v5137_v5  ;;  %v5140_v37 = vpop.f32.mrf.mxu0 }
 0x11f   : > { %v4769_v41 = vld [vmem:[%s6034_s16 + $0x8c] sm:$0x1]  ;;  %v1662_v43 = vrot.slane %v4768_v36, 5  ;;  %v6850_v44 = vld [vmem:[%s7516_s2] ss:$0 sm:$0xff]  ;;  %v5226_v36 = vpop.f32.mrf.mxu1 }
 0x120   : > { %v5882_v46 = vld [vmem:[#allocation2 + $0x404] ss:$36 sps:$4 sm:$0xff]   ;;  %1448 = vst [vmem:[#allocation2 + $0x44c] sm:$0xf] %v1382_v38  ;;  %v1665_v48 = vrot.slane %v4769_v41, 5  ;;  %v1385_v54 = vsel %vm6185_vm5, %v1383_v40, %v1384_v32  ;;  %v3573_v6 = vadd.f32 %v6701_v58, %v6850_v44  ;;  %v5227_v51 = vadd.f32 %v5226_v36, %v5225_v23 }
 0x121   : > { %v5886_v47 = vld [vmem:[#allocation2 + $0x400] ss:$36 sps:$4 sm:$0xff]   ;;  %v1663_v55 = vsel %vm6048_vm2, %v4801_v42, %v1662_v43  ;;  %v1664_v56 = vrot.slane %v1662_v43, 4  ;;  %v4730_v57 = vld [vmem:[%s6034_s16 + $0x90] sm:$0xf]  ;;  %4004 = vmatprep.mubr.bf16.mxu0 %v5882_v46  ;;  %v3576_v46 = vadd.f32 %v6713_v13, %v6850_v44 }
 0x122   : > { %v4731_v61 = vld [vmem:[%s6034_s16 + $0x94] sm:$0xf]  ;;  %1449 = vst [vmem:[#allocation2 + $0x470] sm:$0xf] %v1385_v54  ;;  %1769 = vst [vmem:[#allocation2 + $0x214] sm:$0xf] %v1663_v55  ;;  %4005 = vmatmul.mubr.bf16.gmra.mxu0 %v5886_v47  ;;  %v6871_v28 = vadd.f32 %v5224_v16, %v3573_v6  ;;  %v5228_v55 = vpop.f32.mrf.mxu1 }
 0x123   : > { %1499 = vst [vmem:[#allocation2 + $0x258] sm:$0xf] %v4730_v57  ;;  %1500 = vst [vmem:[#allocation2 + $0x27c] sm:$0xf] %v4731_v61  ;;  %v4770_v0 = vld [vmem:[%s6034_s16 + $0x90] sm:$0xe]  ;;  %v1666_v12 = vsel %vm6048_vm2, %v1664_v56, %v1665_v48  ;;  %v5141_v56 = vpop.f32.mrf.mxu0  ;;  %v6892_v4 = vadd.f32 %v5227_v51, %v3576_v46  ;;  %v3584_v51 = vadd.f32 %v6746_v63, %v6850_v44 }
 0x124   : > { %v4771_v2 = vld [vmem:[%s6034_s16 + $0x94] sm:$0xf]  ;;  %v4772_v3 = vld [vmem:[%s6034_s16 + $0x98] sm:$0x1]  ;;  %v5884_v8 = vld [vmem:[#allocation2 + $0x1cc] ss:$36 sps:$4 sm:$0xff]  }
 0x125   : > { %v5887_v10 = vld [vmem:[#allocation2 + $0x1c8] ss:$36 sps:$4 sm:$0xff]   ;;  %v4802_v14 = vrot.slane %v4770_v0, 9  ;;  %1770 = vst [vmem:[#allocation2 + $0x238] sm:$0xf] %v1666_v12  ;;  %v1669_v18 = vrot.slane %v4771_v2, 5  ;;  %4101 = vmatprep.mubr.bf16.mxu1 %v5884_v8  ;;  %v6896_v8 = vadd.f32 %v5141_v56, %v5140_v37  ;;  %v5143_v12 = vpop.f32.mrf.mxu0 }
 0x126   : > { %v1672_v20 = vrot.slane %v4772_v3, 5  ;;  %v4810_v21 = vld [vmem:[%s6034_s16 + $0x30] sm:$0xc]  ;;  %v4811_v22 = vld [vmem:[%s6034_s16 + $0x34] sm:$0xf]  ;;  %4102 = vmatmul.mubr.bf16.gmra.mxu1 %v5887_v10  ;;  %v5229_v10 = vpop.f32.mrf.mxu1 }
 0x127   : > { %v4812_v58 = vld [vmem:[%s6034_s16 + $0x38] sm:$0x3]  ;;  %v4858_v25 = vrot.slane %v4810_v21, 10  ;;  %v1885_v26 = vrot.slane %v4811_v22, 6  ;;  %v4813_v27 = vld [vmem:[%s6034_s16 + $0x3c] sm:$0xc]  ;;  %v1670_v32 = vsel %vm6048_vm2, %v4802_v14, %v1669_v18  ;;  %v5230_v21 = vadd.f32 %v5229_v10, %v5228_v55 }
 0x128   : > { %v1671_v33 = vrot.slane %v1669_v18, 4  ;;  %v1888_v60 = vrot.slane %v4812_v58, 6  ;;  %v4814_v34 = vld [vmem:[%s6034_s16 + $0x40] sm:$0xf]  ;;  %v4815_v35 = vld [vmem:[%s6034_s16 + $0x44] sm:$0x3]  ;;  %v3581_v22 = vadd.f32 %v6732_v39, %v6850_v44 }
 0x129   : > { %1771 = vst [vmem:[#allocation2 + $0x25c] sm:$0xf] %v1670_v32  ;;  %v1886_v38 = vsel %vm6185_vm5, %v4858_v25, %v1885_v26  ;;  %v1887_v40 = vrot.slane %v1885_v26, 4  ;;  %v4859_v41 = vrot.slane %v4813_v27, 10  ;;  %v1892_v42 = vrot.slane %v4814_v34, 6  ;;  %v5231_v25 = vpop.f32.mrf.mxu1  ;;  %v5144_v26 = vpop.f32.mrf.mxu0 }
 0x12a   : > { %v4732_v43 = vld [vmem:[%s6034_s16 + $0x9c] sm:$0xf]  ;;  %v1673_v47 = vsel %vm6048_vm2, %v1671_v33, %v1672_v20  ;;  %2027 = vst [vmem:[#allocation2 + $0x20] sm:$0xf] %v1886_v38  ;;  %v1895_v48 = vrot.slane %v4815_v35, 6  ;;  %v6909_v37 = vadd.f32 %v5230_v21, %v3581_v22  ;;  %v6911_v38 = vadd.f32 %v5144_v26, %v5143_v12 }
 0x12b   : > { %v4733_v52 = vld [vmem:[%s6034_s16 + $0xa0] sm:$0xf]  ;;  %1501 = vst [vmem:[#allocation2 + $0x2a0] sm:$0xf] %v4732_v43  ;;  %v4773_v54 = vld [vmem:[%s6034_s16 + $0x9c] sm:$0xe]  ;;  %v1889_v61 = vsel %vm6185_vm5, %v1887_v40, %v1888_v60  ;;  %v1893_v13 = vsel %vm6185_vm5, %v4859_v41, %v1892_v42  ;;  %v5232_v40 = vpop.f32.mrf.mxu1 }
 0x12c   : > { %v5889_v57 = vld [vmem:[#allocation2 + $0x44c] ss:$36 sps:$4 sm:$0xff]   ;;  %1772 = vst [vmem:[#allocation2 + $0x280] sm:$0xf] %v1673_v47  ;;  %v1894_v0 = vrot.slane %v1892_v42, 4  ;;  %v4803_v2 = vrot.slane %v4773_v54, 9  ;;  %v5233_v56 = vadd.f32 %v5232_v40, %v5231_v25 }
 0x12d   : > { %1502 = vst [vmem:[#allocation2 + $0x2c4] sm:$0xf] %v4733_v52  ;;  %v5893_v3 = vld [vmem:[#allocation2 + $0x448] ss:$36 sps:$4 sm:$0xff]   ;;  %2028 = vst [vmem:[#allocation2 + $0x44] sm:$0xf] %v1889_v61  ;;  %4012 = vmatprep.mubr.bf16.mxu0 %v5889_v57  ;;  %v5234_v57 = vpop.f32.mrf.mxu1 }
 0x12e   : > { %2029 = vst [vmem:[#allocation2 + $0x68] sm:$0xf] %v1893_v13  ;;  %v4774_v5 = vld [vmem:[%s6034_s16 + $0xa0] sm:$0xf]  ;;  %v4775_v6 = vld [vmem:[%s6034_s16 + $0xa4] sm:$0x1]  ;;  %v1896_v18 = vsel %vm6185_vm5, %v1894_v0, %v1895_v48  ;;  %4013 = vmatmul.mubr.bf16.gmra.mxu0 %v5893_v3  ;;  %v5146_v48 = vpop.f32.mrf.mxu0 }
 0x12f   : > { %v5891_v14 = vld [vmem:[#allocation2 + $0x214] ss:$36 sps:$4 sm:$0xff]   ;;  %v1676_v20 = vrot.slane %v4774_v5, 5  ;;  %2030 = vst [vmem:[#allocation2 + $0x8c] sm:$0xf] %v1896_v18  ;;  %v1679_v23 = vrot.slane %v4775_v6, 5  ;;  %v6924_v5 = vadd.f32 %v5233_v56, %v3584_v51  ;;  %v5235_v12 = vpop.f32.mrf.mxu1 }
 0x130   : > { %v5894_v16 = vld [vmem:[#allocation2 + $0x210] ss:$36 sps:$4 sm:$0xff]   ;;  %v4816_v24 = vld [vmem:[%s6034_s16 + $0x48] sm:$0xc]  ;;  %v4817_v58 = vld [vmem:[%s6034_s16 + $0x4c] sm:$0xf]  ;;  %4109 = vmatprep.mubr.bf16.mxu1 %v5891_v14  ;;  %v5147_v0 = vpop.f32.mrf.mxu0  ;;  %v3589_v14 = vadd.f32 %v6766_v31, %v6850_v44  ;;  %v5236_v21 = vadd.f32 %v5235_v12, %v5234_v57 }
 0x131   : > { %v1677_v27 = vsel %vm6048_vm2, %v4803_v2, %v1676_v20  ;;  %v1678_v32 = vrot.slane %v1676_v20, 4  ;;  %v4818_v33 = vld [vmem:[%s6034_s16 + $0x50] sm:$0x3]  ;;  %v4860_v60 = vrot.slane %v4816_v24, 10  ;;  %v1899_v34 = vrot.slane %v4817_v58, 6  ;;  %4110 = vmatmul.mubr.bf16.gmra.mxu1 %v5894_v16  ;;  %v5237_v31 = vpop.f32.mrf.mxu1 }
 0x132   : > { %1773 = vst [vmem:[#allocation2 + $0x2a4] sm:$0xf] %v1677_v27  ;;  %v1902_v39 = vrot.slane %v4818_v33, 6  ;;  %v4819_v35 = vld [vmem:[%s6034_s16 + $0x54] sm:$0xc]  ;;  %v6931_v20 = vadd.f32 %v5147_v0, %v5146_v48  ;;  %v5149_v22 = vpop.f32.mrf.mxu0  ;;  %v6938_v33 = vadd.f32 %v5236_v21, %v3589_v14 }
 0x133   : > { %v4820_v36 = vld [vmem:[%s6034_s16 + $0x58] sm:$0xf]  ;;  %v1680_v41 = vsel %vm6048_vm2, %v1678_v32, %v1679_v23  ;;  %v1900_v42 = vsel %vm6185_vm5, %v4860_v60, %v1899_v34  ;;  %v1901_v43 = vrot.slane %v1899_v34, 4  ;;  %v4821_v46 = vld [vmem:[%s6034_s16 + $0x5c] sm:$0x3]  ;;  %v4861_v47 = vrot.slane %v4819_v35, 10  ;;  %v5238_v40 = vpop.f32.mrf.mxu1 }
 0x134   : > { %v5895_v52 = vld [vmem:[#allocation2 + $0x258] ss:$36 sps:$4 sm:$0xff]   ;;  %1774 = vst [vmem:[#allocation2 + $0x2c8] sm:$0xf] %v1680_v41  ;;  %2031 = vst [vmem:[#allocation2 + $0xb0] sm:$0xf] %v1900_v42  ;;  %v5150_v60 = vpop.f32.mrf.mxu0  ;;  %v3592_v41 = vadd.f32 %v6778_v50, %v6850_v44 }
 0x135   : > { %v5897_v54 = vld [vmem:[#allocation2 + $0x25c] ss:$36 sps:$4 sm:$0xff]   ;;  %v1906_v55 = vrot.slane %v4820_v36, 6  ;;  %v1903_v13 = vsel %vm6185_vm5, %v1901_v43, %v1902_v39  ;;  %v1909_v3 = vrot.slane %v4821_v46, 6  ;;  %v4734_v6 = vld [vmem:[%s6034_s16 + $0xa8] sm:$0xf]  ;;  %v6942_v36 = vadd.f32 %v5150_v60, %v5149_v22  ;;  %v5240_v22 = vpop.f32.mrf.mxu1 }
 0x136   : > { %v5898_v61 = vld [vmem:[#allocation2 + $0x20] ss:$36 sps:$4 sm:$0xff]   ;;  %4117 = vmatprep.mubr.bf16.mxu1 %v5897_v54  ;;  %2032 = vst [vmem:[#allocation2 + $0xd4] sm:$0xf] %v1903_v13  ;;  %v4735_v10 = vld [vmem:[%s6034_s16 + $0xac] sm:$0xf] }
 0x137   : > { %v1907_v63 = vsel %vm6185_vm5, %v4861_v47, %v1906_v55  ;;  %v1908_v2 = vrot.slane %v1906_v55, 4  ;;  %5582 = vmatprep.mubr.bf16.mxu0 %v5898_v61  ;;  %v5899_v16 = vld [vmem:[#allocation2 + $0x68] ss:$36 sps:$4 sm:$0xff]   ;;  %1503 = vst [vmem:[#allocation2 + $0x2e8] sm:$0xf] %v4734_v6  ;;  %v5239_v47 = vadd.f32 %v5238_v40, %v5237_v31  ;;  %v5152_v61 = vpop.f32.mrf.mxu0  ;;  %v5241_v40 = vpop.f32.mrf.mxu1 }
 0x138   : > { %2033 = vst [vmem:[#allocation2 + $0xf8] sm:$0xf] %v1907_v63  ;;  %1504 = vst [vmem:[#allocation2 + $0x30c] sm:$0xf] %v4735_v10  ;;  %v4776_v18 = vld [vmem:[%s6034_s16 + $0xa8] sm:$0xe]  ;;  %5583 = vmatmul.mubr.bf16.vlgmr.msra.gmra.mxu0 %v5899_v16 }
 0x139   : > { %v1910_v23 = vsel %vm6185_vm5, %v1908_v2, %v1909_v3  ;;  %v4777_v24 = vld [vmem:[%s6034_s16 + $0xac] sm:$0xf]  ;;  %v4778_v58 = vld [vmem:[%s6034_s16 + $0xb0] sm:$0x1]  ;;  %v4804_v25 = vrot.slane %v4776_v18, 9  ;;  %4118 = vmatmul.mubr.bf16.gmra.mxu1 %v5895_v52  ;;  %v6952_v57 = vadd.f32 %v5239_v47, %v3592_v41  ;;  %v5153_v14 = vpop.f32.mrf.mxu0  ;;  %v5242_v47 = vadd.f32 %v5241_v40, %v5240_v22 }
 0x13a   : > { %2034 = vst [vmem:[#allocation2 + $0x11c] sm:$0xf] %v1910_v23  ;;  %v1683_v26 = vrot.slane %v4777_v24, 5  ;;  %v1686_v27 = vrot.slane %v4778_v58, 5  ;;  %v4822_v32 = vld [vmem:[%s6034_s16 + $0x60] sm:$0xc]  ;;  %v6962_v23 = vadd.f32 %v5153_v14, %v5152_v61 }
 0x13b   : > { %v4823_v34 = vld [vmem:[%s6034_s16 + $0x64] sm:$0xf]  ;;  %v4824_v39 = vld [vmem:[%s6034_s16 + $0x68] sm:$0x3]  ;;  %v4862_v35 = vrot.slane %v4822_v32, 10  ;;  %v3597_v32 = vadd.f32 %v6811_v45, %v6850_v44 }
 0x13c   : > { %v5902_v42 = vld [vmem:[#allocation2 + $0x2a4] ss:$36 sps:$4 sm:$0xff]   ;;  %v1684_v43 = vsel %vm6048_vm2, %v4804_v25, %v1683_v26  ;;  %v1685_v46 = vrot.slane %v1683_v26, 4  ;;  %v1913_v51 = vrot.slane %v4823_v34, 6  ;;  %v1916_v52 = vrot.slane %v4824_v39, 6 }
 0x13d   : > { %v5900_v48 = vld [vmem:[#allocation2 + $0x2a0] ss:$36 sps:$4 sm:$0xff]   ;;  %1775 = vst [vmem:[#allocation2 + $0x2ec] sm:$0xf] %v1684_v43  ;;  %v4825_v54 = vld [vmem:[%s6034_s16 + $0x6c] sm:$0xc]  ;;  %4125 = vmatprep.mubr.bf16.mxu1 %v5902_v42 }
 0x13e   : > { %v5903_v55 = vld [vmem:[#allocation2 + $0xb0] ss:$36 sps:$4 sm:$0xff]   ;;  %v1687_v56 = vsel %vm6048_vm2, %v1685_v46, %v1686_v27  ;;  %v1914_v13 = vsel %vm6185_vm5, %v4862_v35, %v1913_v51  ;;  %v1915_v0 = vrot.slane %v1913_v51, 4  ;;  %v4863_v2 = vrot.slane %v4825_v54, 10  ;;  %v4737_v12 = vld [vmem:[%s6034_s16 + $0xb8] sm:$0xf]  ;;  %v5155_v27 = vpop.f32.mrf.mxu0 }
 0x13f   : > { %v4826_v50 = vld [vmem:[%s6034_s16 + $0x70] sm:$0xf]  ;;  %1776 = vst [vmem:[#allocation2 + $0x310] sm:$0xf] %v1687_v56  ;;  %v4827_v63 = vld [vmem:[%s6034_s16 + $0x74] sm:$0x3]  ;;  %5586 = vmatprep.mubr.bf16.mxu0 %v5903_v55  ;;  %v5243_v56 = vpop.f32.mrf.mxu1 }
 0x140   : > { %2035 = vst [vmem:[#allocation2 + $0x140] sm:$0xf] %v1914_v13  ;;  %v1920_v3 = vrot.slane %v4826_v50, 6  ;;  %v1923_v6 = vrot.slane %v4827_v63, 6  ;;  %v4736_v10 = vld [vmem:[%s6034_s16 + $0xb4] sm:$0xf]  ;;  %v1917_v18 = vsel %vm6185_vm5, %v1915_v0, %v1916_v52  ;;  %v5156_v51 = vpop.f32.mrf.mxu0 }
 0x141   : > { %v5904_v16 = vld [vmem:[#allocation2 + $0xf8] ss:$36 sps:$4 sm:$0xff]   ;;  %1505 = vst [vmem:[#allocation2 + $0x330] sm:$0xf] %v4736_v10  ;;  %1506 = vst [vmem:[#allocation2 + $0x354] sm:$0xf] %v4737_v12  ;;  %4126 = vmatmul.mubr.bf16.gmra.mxu1 %v5900_v48  ;;  %v6979_v50 = vadd.f32 %v5156_v51, %v5155_v27 }
 0x142   : > { %v4779_v21 = vld [vmem:[%s6034_s16 + $0xb4] sm:$0xe]  ;;  %2036 = vst [vmem:[#allocation2 + $0x164] sm:$0xf] %v1917_v18  ;;  %v1921_v24 = vsel %vm6185_vm5, %v4863_v2, %v1920_v3  ;;  %v1922_v58 = vrot.slane %v1920_v3, 4  ;;  %5587 = vmatmul.mubr.bf16.gmra.mxu0 %v5904_v16  ;;  %v6983_v2 = vadd.f32 %v5242_v47, %v3597_v32  ;;  %v5158_v3 = vpop.f32.mrf.mxu0  ;;  %v5244_v16 = vpop.f32.mrf.mxu1  ;;  %v3600_v18 = vadd.f32 %v6826_v9, %v6850_v44 }
 0x143   : > { %v4780_v25 = vld [vmem:[%s6034_s16 + $0xb8] sm:$0xf]  ;;  %v4781_v31 = vld [vmem:[%s6034_s16 + $0xbc] sm:$0x1]  ;;  %v4805_v26 = vrot.slane %v4779_v21, 9 }
 0x144   : > { %2037 = vst [vmem:[#allocation2 + $0x188] sm:$0xf] %v1921_v24  ;;  %v1690_v60 = vrot.slane %v4780_v25, 5  ;;  %v1693_v34 = vrot.slane %v4781_v31, 5  ;;  %v4828_v39 = vld [vmem:[%s6034_s16 + $0x78] sm:$0xc]  ;;  %v1924_v41 = vsel %vm6185_vm5, %v1922_v58, %v1923_v6  ;;  %v5245_v24 = vadd.f32 %v5244_v16, %v5243_v56  ;;  %v5159_v31 = vpop.f32.mrf.mxu0  ;;  %v5246_v9 = vpop.f32.mrf.mxu1 }
 0x145   : > { %v4829_v35 = vld [vmem:[%s6034_s16 + $0x7c] sm:$0xf]  ;;  %v4830_v42 = vld [vmem:[%s6034_s16 + $0x80] sm:$0x3]  ;;  %v4864_v43 = vrot.slane %v4828_v39, 10  ;;  %v3608_v16 = vadd.f32 %v6873_v30, %v6850_v44 }
 0x146   : > { %v1927_v46 = vrot.slane %v4829_v35, 6  ;;  %2038 = vst [vmem:[#allocation2 + $0x1ac] sm:$0xf] %v1924_v41  ;;  %v1691_v45 = vsel %vm6048_vm2, %v4805_v26, %v1690_v60  ;;  %v1692_v48 = vrot.slane %v1690_v60, 4  ;;  %v1930_v52 = vrot.slane %v4830_v42, 6  ;;  %v5161_v40 = vpop.f32.mrf.mxu0  ;;  %v5247_v51 = vpop.f32.mrf.mxu1 }
 0x147   : > { %v4831_v54 = vld [vmem:[%s6034_s16 + $0x84] sm:$0xc]  ;;  %v4832_v55 = vld [vmem:[%s6034_s16 + $0x88] sm:$0xf]  ;;  %v5907_v13 = vld [vmem:[#allocation2 + $0x2ec] ss:$36 sps:$4 sm:$0xff]   ;;  %v6996_v60 = vadd.f32 %v5159_v31, %v5158_v3 }
 0x148   : > { %v5905_v61 = vld [vmem:[#allocation2 + $0x2e8] ss:$36 sps:$4 sm:$0xff]   ;;  %1777 = vst [vmem:[#allocation2 + $0x334] sm:$0xf] %v1691_v45  ;;  %v1928_v0 = vsel %vm6185_vm5, %v4864_v43, %v1927_v46  ;;  %v1929_v63 = vrot.slane %v1927_v46, 4  ;;  %v1694_v6 = vsel %vm6048_vm2, %v1692_v48, %v1693_v34  ;;  %v4865_v12 = vrot.slane %v4831_v54, 10  ;;  %4133 = vmatprep.mubr.bf16.mxu1 %v5907_v13  ;;  %v5162_v56 = vpop.f32.mrf.mxu0  ;;  %v5249_v3 = vpop.f32.mrf.mxu1 }
 0x149   : > { %2039 = vst [vmem:[#allocation2 + $0x1d0] sm:$0xf] %v1928_v0  ;;  %v4833_v10 = vld [vmem:[%s6034_s16 + $0x8c] sm:$0x3]  ;;  %v1934_v14 = vrot.slane %v4832_v55, 6  ;;  %v6998_v34 = vadd.f32 %v5245_v24, %v3600_v18  ;;  %4134 = vmatmul.mubr.bf16.gmra.mxu1 %v5905_v61  ;;  %v3605_v45 = vadd.f32 %v6858_v62, %v6850_v44  ;;  %v5248_v55 = vadd.f32 %v5247_v51, %v5246_v9 }
 0x14a   : > { %1778 = vst [vmem:[#allocation2 + $0x358] sm:$0xf] %v1694_v6  ;;  %v1931_v21 = vsel %vm6185_vm5, %v1929_v63, %v1930_v52  ;;  %v1937_v22 = vrot.slane %v4833_v10, 6  ;;  %v4738_v58 = vld [vmem:[%s6034_s16 + $0xc0] sm:$0xf]  ;;  %v7012_v6 = vadd.f32 %v5162_v56, %v5161_v40  ;;  %v5250_v24 = vpop.f32.mrf.mxu1 }
 0x14b   : > { %v4739_v25 = vld [vmem:[%s6034_s16 + $0xc4] sm:$0xf]  ;;  %2040 = vst [vmem:[#allocation2 + $0x1f4] sm:$0xf] %v1931_v21  ;;  %v1935_v27 = vsel %vm6185_vm5, %v4865_v12, %v1934_v14  ;;  %v1936_v32 = vrot.slane %v1934_v14, 4  ;;  %v7015_v14 = vadd.f32 %v5248_v55, %v3605_v45 }
 0x14c   : > { %v5908_v26 = vld [vmem:[#allocation2 + $0x140] ss:$36 sps:$4 sm:$0xff]   ;;  %1507 = vst [vmem:[#allocation2 + $0x378] sm:$0xf] %v4738_v58  ;;  %1508 = vst [vmem:[#allocation2 + $0x39c] sm:$0xf] %v4739_v25 }
 0x14d   : > { %2041 = vst [vmem:[#allocation2 + $0x218] sm:$0xf] %v1935_v27  ;;  %v4782_v39 = vld [vmem:[%s6034_s16 + $0xc0] sm:$0xe]  ;;  %v4783_v35 = vld [vmem:[%s6034_s16 + $0xc4] sm:$0xf]  ;;  %5590 = vmatprep.mubr.bf16.mxu0 %v5908_v26  ;;  %v1938_v41 = vsel %vm6185_vm5, %v1936_v32, %v1937_v22  ;;  %v5251_v27 = vadd.f32 %v5250_v24, %v5249_v3  ;;  %v5164_v32 = vpop.f32.mrf.mxu0 }
 0x14e   : > { %v4784_v42 = vld [vmem:[%s6034_s16 + $0xc8] sm:$0x1]  ;;  %v4806_v43 = vrot.slane %v4782_v39, 9  ;;  %v1697_v46 = vrot.slane %v4783_v35, 5  ;;  %v4834_v47 = vld [vmem:[%s6034_s16 + $0x90] sm:$0xc] }
 0x14f   : > { %v5909_v48 = vld [vmem:[#allocation2 + $0x188] ss:$36 sps:$4 sm:$0xff]   ;;  %2042 = vst [vmem:[#allocation2 + $0x23c] sm:$0xf] %v1938_v41  ;;  %v1700_v52 = vrot.slane %v4784_v42, 5  ;;  %v4866_v54 = vrot.slane %v4834_v47, 10  ;;  %v7027_v41 = vadd.f32 %v5251_v27, %v3608_v16  ;;  %v5165_v47 = vpop.f32.mrf.mxu0 }
 0x150   : > { %v1698_v61 = vsel %vm6048_vm2, %v4806_v43, %v1697_v46  ;;  %v1699_v13 = vrot.slane %v1697_v46, 4  ;;  %v4835_v0 = vld [vmem:[%s6034_s16 + $0x94] sm:$0xf]  ;;  %v4836_v63 = vld [vmem:[%s6034_s16 + $0x98] sm:$0x3]  ;;  %5591 = vmatmul.mubr.bf16.gmra.mxu0 %v5909_v48  ;;  %v5252_v46 = vpop.f32.mrf.mxu1  ;;  %v7032_v48 = vadd.f32 %v5165_v47, %v5164_v32 }
 0x151   : > { %1779 = vst [vmem:[#allocation2 + $0x37c] sm:$0xf] %v1698_v61  ;;  %v1941_v10 = vrot.slane %v4835_v0, 6  ;;  %v1944_v62 = vrot.slane %v4836_v63, 6  ;;  %v4837_v12 = vld [vmem:[%s6034_s16 + $0x9c] sm:$0xc]  ;;  %v5167_v0 = vpop.f32.mrf.mxu0  ;;  %v3613_v63 = vadd.f32 %v6896_v8, %v6850_v44 }
 0x152   : > { %v5910_v18 = vld [vmem:[#allocation2 + $0x330] ss:$36 sps:$4 sm:$0xff]   ;;  %v1701_v22 = vsel %vm6048_vm2, %v1699_v13, %v1700_v52  ;;  %v4867_v26 = vrot.slane %v4837_v12, 10  ;;  %v4838_v30 = vld [vmem:[%s6034_s16 + $0xa0] sm:$0xf]  ;;  %v5253_v13 = vpop.f32.mrf.mxu1 }
 0x153   : > { %v5912_v21 = vld [vmem:[#allocation2 + $0x334] ss:$36 sps:$4 sm:$0xff]   ;;  %1780 = vst [vmem:[#allocation2 + $0x3a0] sm:$0xf] %v1701_v22  ;;  %v1942_v25 = vsel %vm6185_vm5, %v4866_v54, %v1941_v10  ;;  %v1943_v31 = vrot.slane %v1941_v10, 4  ;;  %v1948_v35 = vrot.slane %v4838_v30, 6  ;;  %v5254_v12 = vadd.f32 %v5253_v13, %v5252_v46 }
 0x154   : > { %v5913_v58 = vld [vmem:[#allocation2 + $0x1d0] ss:$36 sps:$4 sm:$0xff]   ;;  %4141 = vmatprep.mubr.bf16.mxu1 %v5912_v21  ;;  %2043 = vst [vmem:[#allocation2 + $0x260] sm:$0xf] %v1942_v25  ;;  %v4839_v9 = vld [vmem:[%s6034_s16 + $0xa4] sm:$0x3]  ;;  %v5255_v24 = vpop.f32.mrf.mxu1 }
 0x155   : > { %5594 = vmatprep.mubr.bf16.mxu0 %v5913_v58  ;;  %v1945_v39 = vsel %vm6185_vm5, %v1943_v31, %v1944_v62  ;;  %v1951_v40 = vrot.slane %v4839_v9, 6  ;;  %v4740_v42 = vld [vmem:[%s6034_s16 + $0xcc] sm:$0xf]  ;;  %v4741_v43 = vld [vmem:[%s6034_s16 + $0xd0] sm:$0xf]  ;;  %4142 = vmatmul.mubr.bf16.gmra.mxu1 %v5910_v18  ;;  %v1949_v52 = vsel %vm6185_vm5, %v4867_v26, %v1948_v35  ;;  %v1950_v54 = vrot.slane %v1948_v35, 4  ;;  %v5168_v58 = vpop.f32.mrf.mxu0 }
 0x156   : > { %v5914_v51 = vld [vmem:[#allocation2 + $0x218] ss:$36 sps:$4 sm:$0xff]   ;;  %2044 = vst [vmem:[#allocation2 + $0x284] sm:$0xf] %v1945_v39  ;;  %1509 = vst [vmem:[#allocation2 + $0x3c0] sm:$0xf] %v4740_v42  ;;  %v7047_v27 = vadd.f32 %v5254_v12, %v3613_v63  ;;  %v7049_v32 = vadd.f32 %v5168_v58, %v5167_v0  ;;  %v5256_v35 = vpop.f32.mrf.mxu1  ;;  %v3616_v42 = vadd.f32 %v6911_v38, %v6850_v44 }
 0x157   : > { %1510 = vst [vmem:[#allocation2 + $0x3e4] sm:$0xf] %v4741_v43  ;;  %v4785_v45 = vld [vmem:[%s6034_s16 + $0xcc] sm:$0xe]  ;;  %v4786_v55 = vld [vmem:[%s6034_s16 + $0xd0] sm:$0xf]  ;;  %v1952_v16 = vsel %vm6185_vm5, %v1950_v54, %v1951_v40  ;;  %v5170_v40 = vpop.f32.mrf.mxu0 }
 0x158   : > { %v4787_v56 = vld [vmem:[%s6034_s16 + $0xd4] sm:$0x1]  ;;  %v4807_v61 = vrot.slane %v4785_v45, 9  ;;  %2045 = vst [vmem:[#allocation2 + $0x2a8] sm:$0xf] %v1949_v52  ;;  %v1704_v3 = vrot.slane %v4786_v55, 5  ;;  %5595 = vmatmul.mubr.bf16.gmra.mxu0 %v5914_v51  ;;  %v5257_v45 = vadd.f32 %v5256_v35, %v5255_v24  ;;  %v3621_v24 = vadd.f32 %v6931_v20, %v6850_v44 }
 0x159   : > { %v1707_v10 = vrot.slane %v4787_v56, 5  ;;  %v4840_v62 = vld [vmem:[%s6034_s16 + $0xa8] sm:$0xc]  ;;  %v4841_v18 = vld [vmem:[%s6034_s16 + $0xac] sm:$0xf]  ;;  %v5171_v38 = vpop.f32.mrf.mxu0 }
 0x15a   : > { %v4842_v21 = vld [vmem:[%s6034_s16 + $0xb0] sm:$0x3]  ;;  %v4868_v22 = vrot.slane %v4840_v62, 10  ;;  %v5915_v25 = vld [vmem:[#allocation2 + $0x378] ss:$36 sps:$4 sm:$0xff]   ;;  %v1705_v8 = vsel %vm6048_vm2, %v4807_v61, %v1704_v3  ;;  %v1706_v26 = vrot.slane %v1704_v3, 4  ;;  %v5258_v61 = vpop.f32.mrf.mxu1  ;;  %v7060_v0 = vadd.f32 %v5257_v45, %v3616_v42 }
 0x15b   : > { %v5917_v31 = vld [vmem:[#allocation2 + $0x37c] ss:$36 sps:$4 sm:$0xff]   ;;  %2046 = vst [vmem:[#allocation2 + $0x2cc] sm:$0xf] %v1952_v16  ;;  %1781 = vst [vmem:[#allocation2 + $0x3c4] sm:$0xf] %v1705_v8 }
 0x15c   : > { %v1955_v30 = vrot.slane %v4841_v18, 6  ;;  %v1958_v9 = vrot.slane %v4842_v21, 6  ;;  %v4843_v39 = vld [vmem:[%s6034_s16 + $0xb4] sm:$0xc]  ;;  %4149 = vmatprep.mubr.bf16.mxu1 %v5917_v31  ;;  %v1708_v43 = vsel %vm6048_vm2, %v1706_v26, %v1707_v10  ;;  %v4844_v46 = vld [vmem:[%s6034_s16 + $0xb8] sm:$0xf]  ;;  %v7064_v10 = vadd.f32 %v5171_v38, %v5170_v40  ;;  %v5259_v21 = vpop.f32.mrf.mxu1 }
 0x15d   : > { %v4845_v47 = vld [vmem:[%s6034_s16 + $0xbc] sm:$0x3]  ;;  %v4869_v51 = vrot.slane %v4843_v39, 10  ;;  %v5918_v52 = vld [vmem:[#allocation2 + $0x260] ss:$36 sps:$4 sm:$0xff]   ;;  %v1962_v56 = vrot.slane %v4844_v46, 6  ;;  %4150 = vmatmul.mubr.bf16.gmra.mxu1 %v5915_v25  ;;  %v5260_v8 = vadd.f32 %v5259_v21, %v5258_v61 }
 0x15e   : > { %1782 = vst [vmem:[#allocation2 + $0x3e8] sm:$0xf] %v1708_v43  ;;  %v1956_v54 = vsel %vm6185_vm5, %v4868_v22, %v1955_v30  ;;  %v1957_v55 = vrot.slane %v1955_v30, 4  ;;  %v1965_v13 = vrot.slane %v4845_v47, 6  ;;  %v4742_v63 = vld [vmem:[%s6034_s16 + $0xd8] sm:$0xf]  ;;  %5598 = vmatprep.mubr.bf16.mxu0 %v5918_v52  ;;  %v5173_v22 = vpop.f32.mrf.mxu0  ;;  %v5261_v35 = vpop.f32.mrf.mxu1 }
 0x15f   : > { %2047 = vst [vmem:[#allocation2 + $0x2f0] sm:$0xf] %v1956_v54  ;;  %v4743_v3 = vld [vmem:[%s6034_s16 + $0xdc] sm:$0xf]  ;;  %v1963_v12 = vsel %vm6185_vm5, %v4869_v51, %v1962_v56  ;;  %v1964_v16 = vrot.slane %v1962_v56, 4  ;;  %v7079_v46 = vadd.f32 %v5260_v8, %v3621_v24  ;;  %v3624_v56 = vadd.f32 %v6942_v36, %v6850_v44 }
 0x160   : > { %v1959_v62 = vsel %vm6185_vm5, %v1957_v55, %v1958_v9  ;;  %1511 = vst [vmem:[#allocation2 + $0x408] sm:$0xf] %v4742_v63  ;;  %1512 = vst [vmem:[#allocation2 + $0x42c] sm:$0xf] %v4743_v3  ;;  %v4788_v18 = vld [vmem:[%s6034_s16 + $0xd8] sm:$0xe]  ;;  %v5174_v40 = vpop.f32.mrf.mxu0  ;;  %v5262_v55 = vpop.f32.mrf.mxu1 }
 0x161   : > { %2048 = vst [vmem:[#allocation2 + $0x314] sm:$0xf] %v1959_v62  ;;  %2049 = vst [vmem:[#allocation2 + $0x338] sm:$0xf] %v1963_v12  ;;  %v4789_v58 = vld [vmem:[%s6034_s16 + $0xdc] sm:$0xf]  ;;  %v1966_v30 = vsel %vm6185_vm5, %v1964_v16, %v1965_v13  ;;  %v7081_v20 = vadd.f32 %v5174_v40, %v5173_v22  ;;  %v5263_v63 = vadd.f32 %v5262_v55, %v5261_v35 }
 0x162   : > { %v4790_v25 = vld [vmem:[%s6034_s16 + $0xe0] sm:$0x1]  ;;  %v4808_v31 = vrot.slane %v4788_v18, 9  ;;  %v5919_v26 = vld [vmem:[#allocation2 + $0x2a8] ss:$36 sps:$4 sm:$0xff]   ;;  %v1711_v9 = vrot.slane %v4789_v58, 5  ;;  %v5176_v3 = vpop.f32.mrf.mxu0  ;;  %v5264_v21 = vpop.f32.mrf.mxu1 }
 0x163   : > { %v1714_v39 = vrot.slane %v4790_v25, 5  ;;  %2050 = vst [vmem:[#allocation2 + $0x35c] sm:$0xf] %v1966_v30  ;;  %v4846_v42 = vld [vmem:[%s6034_s16 + $0xc0] sm:$0xc]  ;;  %5599 = vmatmul.mubr.bf16.gmra.mxu0 %v5919_v26  ;;  %v7095_v58 = vadd.f32 %v5263_v63, %v3624_v56 }
 0x164   : > { %v4847_v43 = vld [vmem:[%s6034_s16 + $0xc4] sm:$0xf]  ;;  %v1712_v47 = vsel %vm6048_vm2, %v4808_v31, %v1711_v9  ;;  %v1713_v51 = vrot.slane %v1711_v9, 4  ;;  %v4848_v45 = vld [vmem:[%s6034_s16 + $0xc8] sm:$0x3]  ;;  %v4870_v52 = vrot.slane %v4846_v42, 10  ;;  %v5177_v25 = vpop.f32.mrf.mxu0  ;;  %v5265_v30 = vpop.f32.mrf.mxu1  ;;  %v3629_v9 = vadd.f32 %v6962_v23, %v6850_v44 }
 0x165   : > { %v1969_v54 = vrot.slane %v4847_v43, 6  ;;  %v5920_v61 = vld [vmem:[#allocation2 + $0x3c0] ss:$36 sps:$4 sm:$0xff]   ;;  %1783 = vst [vmem:[#allocation2 + $0x40c] sm:$0xf] %v1712_v47  ;;  %v1972_v13 = vrot.slane %v4848_v45, 6  ;;  %v7099_v26 = vadd.f32 %v5177_v25, %v5176_v3  ;;  %v5266_v43 = vadd.f32 %v5265_v30, %v5264_v21 }
 0x166   : > { %v5922_v38 = vld [vmem:[#allocation2 + $0x3c4] ss:$36 sps:$4 sm:$0xff]   ;;  %v1715_v62 = vsel %vm6048_vm2, %v1713_v51, %v1714_v39  ;;  %v4849_v18 = vld [vmem:[%s6034_s16 + $0xcc] sm:$0xc]  ;;  %v4850_v36 = vld [vmem:[%s6034_s16 + $0xd0] sm:$0xf]  ;;  %v5179_v47 = vpop.f32.mrf.mxu0 }
 0x167   : > { %v1970_v12 = vsel %vm6185_vm5, %v4870_v52, %v1969_v54  ;;  %v1971_v16 = vrot.slane %v1969_v54, 4  ;;  %4157 = vmatprep.mubr.bf16.mxu1 %v5922_v38  ;;  %1784 = vst [vmem:[#allocation2 + $0x430] sm:$0xf] %v1715_v62  ;;  %v4851_v22 = vld [vmem:[%s6034_s16 + $0xd4] sm:$0x3]  ;;  %v4871_v24 = vrot.slane %v4849_v18, 10  ;;  %v5267_v52 = vpop.f32.mrf.mxu1  ;;  %v7110_v38 = vadd.f32 %v5266_v43, %v3629_v9 }
 0x168   : > { %2051 = vst [vmem:[#allocation2 + $0x380] sm:$0xf] %v1970_v12  ;;  %v5923_v31 = vld [vmem:[#allocation2 + $0x2f0] ss:$36 sps:$4 sm:$0xff]   ;;  %4158 = vmatmul.mubr.bf16.gmra.mxu1 %v5920_v61  ;;  %v1976_v39 = vrot.slane %v4850_v36, 6  ;;  %v1979_v35 = vrot.slane %v4851_v22, 6  ;;  %v3632_v18 = vadd.f32 %v6979_v50, %v6850_v44 }
 0x169   : > { %v1973_v8 = vsel %vm6185_vm5, %v1971_v16, %v1972_v13  ;;  %v4744_v40 = vld [vmem:[%s6034_s16 + $0xe4] sm:$0xf]  ;;  %v4745_v42 = vld [vmem:[%s6034_s16 + $0xe8] sm:$0xf]  ;;  %5602 = vmatprep.mubr.bf16.mxu0 %v5923_v31  ;;  %v4793_v56 = vld [vmem:[%s6034_s16 + $0xec] sm:$0x1]  ;;  %v5180_v13 = vpop.f32.mrf.mxu0  ;;  %v5268_v16 = vpop.f32.mrf.mxu1 }
 0x16a   : > { %2052 = vst [vmem:[#allocation2 + $0x3a4] sm:$0xf] %v1973_v8  ;;  %v5924_v51 = vld [vmem:[#allocation2 + $0x338] ss:$36 sps:$4 sm:$0xff]   ;;  %1513 = vst [vmem:[#allocation2 + $0x450] sm:$0xf] %v4744_v40  ;;  %v1977_v54 = vsel %vm6185_vm5, %v4871_v24, %v1976_v39  ;;  %v7113_v12 = vadd.f32 %v5180_v13, %v5179_v47  ;;  %v5269_v25 = vadd.f32 %v5268_v16, %v5267_v52 }
 0x16b   : > { %1514 = vst [vmem:[#allocation2 + $0x474] sm:$0xf] %v4745_v42  ;;  %v4791_v45 = vld [vmem:[%s6034_s16 + $0xe4] sm:$0xe]  ;;  %v1978_v23 = vrot.slane %v1976_v39, 4  ;;  %5603 = vmatmul.mubr.bf16.gmra.mxu0 %v5924_v51  ;;  %v1721_v3 = vrot.slane %v4793_v56, 5  ;;  %v5270_v39 = vpop.f32.mrf.mxu1 }
 0x16c   : > { %v4792_v55 = vld [vmem:[%s6034_s16 + $0xe8] sm:$0xf]  ;;  %v4809_v61 = vrot.slane %v4791_v45, 9  ;;  %2053 = vst [vmem:[#allocation2 + $0x3c8] sm:$0xf] %v1977_v54  ;;  %v7124_v42 = vadd.f32 %v5269_v25, %v3632_v18  ;;  %v5334_v18 = vpop.f32.mrf.mxu0 }
 0x16d   : > { %v1718_v63 = vrot.slane %v4792_v55, 5  ;;  %v4852_v62 = vld [vmem:[%s6034_s16 + $0xd8] sm:$0xc]  ;;  %v1980_v21 = vsel %vm6185_vm5, %v1978_v23, %v1979_v35  ;;  %v4853_v36 = vld [vmem:[%s6034_s16 + $0xdc] sm:$0xf]  ;;  %v5271_v51 = vpop.f32.mrf.mxu1 }
 0x16e   : > { %v4854_v22 = vld [vmem:[%s6034_s16 + $0xe0] sm:$0x3]  ;;  %v4872_v24 = vrot.slane %v4852_v62, 10  ;;  %v5925_v31 = vld [vmem:[#allocation2 + $0x408] ss:$36 sps:$4 sm:$0xff]   ;;  %v1983_v40 = vrot.slane %v4853_v36, 6  ;;  %v5272_v13 = vadd.f32 %v5271_v51, %v5270_v39  ;;  %v5335_v25 = vpop.f32.mrf.mxu0 }
 0x16f   : > { %v5927_v8 = vld [vmem:[#allocation2 + $0x40c] ss:$36 sps:$4 sm:$0xff]   ;;  %2054 = vst [vmem:[#allocation2 + $0x3ec] sm:$0xf] %v1980_v21  ;;  %v1719_v30 = vsel %vm6048_vm2, %v4809_v61, %v1718_v63  ;;  %v1720_v9 = vrot.slane %v1718_v63, 4  ;;  %v1986_v44 = vrot.slane %v4854_v22, 6  ;;  %v5273_v63 = vpop.f32.mrf.mxu1 }
 0x170   : > { %1785 = vst [vmem:[#allocation2 + $0x454] sm:$0xf] %v1719_v30  ;;  %v4855_v50 = vld [vmem:[%s6034_s16 + $0xe4] sm:$0xc]  ;;  %4165 = vmatprep.mubr.bf16.mxu1 %v5927_v8  ;;  %v4856_v47 = vld [vmem:[%s6034_s16 + $0xe8] sm:$0xf]  ;;  %v1984_v45 = vsel %vm6185_vm5, %v4872_v24, %v1983_v40  ;;  %v5336_v8 = vadd.f32 %v5335_v25, %v5334_v18  ;;  %v5337_v30 = vpop.f32.mrf.mxu0 }
 0x171   : > { %v5928_v35 = vld [vmem:[#allocation2 + $0x380] ss:$36 sps:$4 sm:$0xff]   ;;  %v1722_v43 = vsel %vm6048_vm2, %v1720_v9, %v1721_v3  ;;  %4166 = vmatmul.mubr.bf16.gmra.mxu1 %v5925_v31  ;;  %v1985_v52 = vrot.slane %v1983_v40, 4  ;;  %v4857_v54 = vld [vmem:[%s6034_s16 + $0xec] sm:$0x3]  ;;  %v4873_v23 = vrot.slane %v4855_v50, 10  ;;  %v5274_v36 = vpop.f32.mrf.mxu1 }
 0x172   : > { %1786 = vst [vmem:[#allocation2 + $0x478] sm:$0xf] %v1722_v43  ;;  %v1990_v55 = vrot.slane %v4856_v47, 6  ;;  %v7135_v56 = vld [vmem:[%s7516_s2] ss:$0 sm:$0xff]  ;;  %5606 = vmatprep.mubr.bf16.mxu0 %v5928_v35  ;;  %v1993_v61 = vrot.slane %v4857_v54, 6  ;;  %v5275_v31 = vadd.f32 %v5274_v36, %v5273_v63  ;;  %v7152_v50 = vadd.f32 %v5336_v8, %v6871_v28  ;;  %v5338_v35 = vpop.f32.mrf.mxu0 }
 0x173   : > { %v3637_v17 = vadd.f32 %v7135_v56, %v6996_v60  ;;  %2055 = vst [vmem:[#allocation2 + $0x410] sm:$0xf] %v1984_v45  ;;  %v1987_v3 = vsel %vm6185_vm5, %v1985_v52, %v1986_v44  ;;  %v3640_v60 = vadd.f32 %v7135_v56, %v7012_v6  ;;  %v5276_v39 = vpop.f32.mrf.mxu1  ;;  %v5930_v40 = vld [vmem:[#allocation2 + $0x450] ss:$36 sps:$4 sm:$0xff]   ;;  %v3645_v7 = vadd.f32 %v7135_v56, %v7032_v48  ;;  %s5093_s16 = sshll.u32 %s7545_s12, 8 }
 0x174   : > { %v1991_v62 = vsel %vm6185_vm5, %v4873_v23, %v1990_v55  ;;  %v1992_v16 = vrot.slane %v1990_v55, 4  ;;  %2056 = vst [vmem:[#allocation2 + $0x434] sm:$0xf] %v1987_v3  ;;  %v5339_v43 = vadd.f32 %v5338_v35, %v5337_v30  ;;  %v5340_v54 = vpop.f32.mrf.mxu0  ;;  %v3653_v18 = vadd.f32 %v7135_v56, %v7064_v10  ;;  %s7383_s10 = scalar_lea.vmem %s7517_s3, %s5093_s16 }
 0x175   : > { %2057 = vst [vmem:[#allocation2 + $0x458] sm:$0xf] %v1991_v62  ;;  %v7143_v21 = vadd.f32 %v5272_v13, %v3637_v17  ;;  %v7149_v9 = vadd.f32 %v5275_v31, %v3640_v60  ;;  %v5277_v6 = vpop.f32.mrf.mxu1  ;;  %v3648_v17 = vadd.f32 %v7135_v56, %v7049_v32  ;;  %v3656_v30 = vadd.f32 %v7135_v56, %v7081_v20 }
 0x176   : > { %v5929_v22 = vld [vmem:[#allocation2 + $0x3c8] ss:$36 sps:$4 sm:$0xff]   ;;  %v1994_v24 = vsel %vm6185_vm5, %v1992_v16, %v1993_v61  ;;  %v5278_v47 = vadd.f32 %v5277_v6, %v5276_v39  ;;  %v7157_v52 = vadd.f32 %v5339_v43, %v6892_v4  ;;  %v5341_v61 = vpop.f32.mrf.mxu0 }
 0x177   : > { %2058 = vst [vmem:[#allocation2 + $0x47c] sm:$0xf] %v1994_v24  ;;  %5607 = vmatmul.mubr.bf16.gmra.mxu0 %v5929_v22  ;;  %v5279_v45 = vpop.f32.mrf.mxu1  ;;  %v5342_v13 = vadd.f32 %v5341_v61, %v5340_v54 }
 0x178   : > { %v7159_v23 = vadd.f32 %v5278_v47, %v3645_v7  ;;  %v5343_v3 = vpop.f32.mrf.mxu0 }
 0x179   : > { %v5932_v44 = vld [vmem:[#allocation2 + $0x454] ss:$36 sps:$4 sm:$0xff]   ;;  %v5280_v55 = vpop.f32.mrf.mxu1  ;;  %v7166_v4 = vadd.f32 %v5342_v13, %v6909_v37 }
 0x17a   : > { %4173 = vmatprep.mubr.bf16.mxu1 %v5932_v44  ;;  %v5281_v48 = vadd.f32 %v5280_v55, %v5279_v45  ;;  %v5344_v36 = vpop.f32.mrf.mxu0 }
 0x17b   : > { %v5933_v51 = vld [vmem:[#allocation2 + $0x410] ss:$36 sps:$4 sm:$0xff]   ;;  %4174 = vmatmul.mubr.bf16.gmra.mxu1 %v5930_v40  ;;  %v5282_v63 = vpop.f32.mrf.mxu1  ;;  %v5345_v22 = vadd.f32 %v5344_v36, %v5343_v3 }
 0x17c   : > { %5610 = vmatprep.mubr.bf16.mxu0 %v5933_v51  ;;  %v7163_v62 = vadd.f32 %v5281_v48, %v3648_v17  ;;  %v5346_v32 = vpop.f32.mrf.mxu0 }
 0x17d   : > { %v5283_v16 = vpop.f32.mrf.mxu1  ;;  %v7173_v31 = vadd.f32 %v5345_v22, %v6924_v5  ;;  %v3661_v5 = vadd.f32 %v7135_v56, %v7099_v26 }
 0x17e   : > { %v5934_v28 = vld [vmem:[#allocation2 + $0x458] ss:$36 sps:$4 sm:$0xff]   ;;  %v5284_v60 = vadd.f32 %v5283_v16, %v5282_v63  ;;  %v5347_v37 = vpop.f32.mrf.mxu0  ;;  %v3669_v16 = vadd.f32 %v7135_v56, %v6703_v59 }
 0x17f   : > { %5611 = vmatmul.mubr.bf16.gmra.mxu0 %v5934_v28  ;;  %v5285_v24 = vpop.f32.mrf.mxu1  ;;  %v5348_v40 = vadd.f32 %v5347_v37, %v5346_v32 }
 0x180   : > { %v7170_v25 = vadd.f32 %v5284_v60, %v3653_v18  ;;  %v5349_v44 = vpop.f32.mrf.mxu0 }
 0x181   : > { %v5286_v8 = vpop.f32.mrf.mxu1  ;;  %v7180_v10 = vadd.f32 %v5348_v40, %v6938_v33  ;;  %v3664_v33 = vadd.f32 %v7135_v56, %v7113_v12 }
 0x182   : > { %v5287_v39 = vadd.f32 %v5286_v8, %v5285_v24  ;;  %v5350_v7 = vpop.f32.mrf.mxu0 }
 0x183   : > { %v5288_v6 = vpop.f32.mrf.mxu1  ;;  %v5351_v43 = vadd.f32 %v5350_v7, %v5349_v44 }
 0x184   : > { %v7177_v35 = vadd.f32 %v5287_v39, %v3656_v30  ;;  %v5352_v54 = vpop.f32.mrf.mxu0  ;;  %v3672_v30 = vadd.f32 %v7135_v56, %v6717_v19 }
 0x185   : > { %v5289_v47 = vpop.f32.mrf.mxu1  ;;  %v7185_v45 = vadd.f32 %v5351_v43, %v6952_v57 }
 0x186   : > { %v5290_v51 = vadd.f32 %v5289_v47, %v5288_v6  ;;  %v5353_v17 = vpop.f32.mrf.mxu0 }
 0x187   : > { %v5291_v20 = vpop.f32.mrf.mxu1  ;;  %v5354_v48 = vadd.f32 %v5353_v17, %v5352_v54 }
 0x188   : > { %v7187_v28 = vadd.f32 %v5290_v51, %v3661_v5  ;;  %v5355_v63 = vpop.f32.mrf.mxu0 }
 0x189   : > { %v5292_v55 = vpop.f32.mrf.mxu1  ;;  %v7194_v26 = vadd.f32 %v5354_v48, %v6983_v2 }
 0x18a   : > { %v5293_v61 = vadd.f32 %v5292_v55, %v5291_v20  ;;  %v5356_v18 = vpop.f32.mrf.mxu0 }
 0x18b   : > { %v5294_v13 = vpop.f32.mrf.mxu1  ;;  %v5357_v60 = vadd.f32 %v5356_v18, %v5355_v63 }
 0x18c   : > { %v7191_v3 = vadd.f32 %v5293_v61, %v3664_v33  ;;  %v5358_v32 = vpop.f32.mrf.mxu0 }
 0x18d   : > { %v5295_v57 = vpop.f32.mrf.mxu1  ;;  %v7201_v12 = vadd.f32 %v5357_v60, %v6998_v34  ;;  %v3677_v34 = vadd.f32 %v7135_v56, %v6739_v53 }
 0x18e   : > { %v5296_v36 = vadd.f32 %v5295_v57, %v5294_v13  ;;  %v5359_v37 = vpop.f32.mrf.mxu0  ;;  %v3685_v57 = vadd.f32 %v7135_v56, %v6776_v49 }
 0x18f   : > { %v5297_v22 = vpop.f32.mrf.mxu1  ;;  %v5360_v39 = vadd.f32 %v5359_v37, %v5358_v32 }
 0x190   : > { %v7198_v24 = vadd.f32 %v5296_v36, %v3669_v16  ;;  %v5361_v59 = vpop.f32.mrf.mxu0 }
 0x191   : > { %v5298_v8 = vpop.f32.mrf.mxu1  ;;  %v7208_v44 = vadd.f32 %v5360_v39, %v7015_v14  ;;  %v3680_v14 = vadd.f32 %v7135_v56, %v6757_v15 }
 0x192   : > { %v5299_v2 = vadd.f32 %v5298_v8, %v5297_v22  ;;  %v5362_v7 = vpop.f32.mrf.mxu0 }
 0x193   : > { %v5300_v6 = vpop.f32.mrf.mxu1  ;;  %v5363_v43 = vadd.f32 %v5362_v7, %v5361_v59 }
 0x194   : > { %v7205_v40 = vadd.f32 %v5299_v2, %v3672_v30  ;;  %v5364_v20 = vpop.f32.mrf.mxu0  ;;  %v3688_v30 = vadd.f32 %v7135_v56, %v6791_v11 }
 0x195   : > { %v5301_v47 = vpop.f32.mrf.mxu1  ;;  %v7213_v51 = vadd.f32 %v5363_v43, %v7027_v41 }
 0x196   : > { %v5302_v5 = vadd.f32 %v5301_v47, %v5300_v6  ;;  %v5365_v33 = vpop.f32.mrf.mxu0 }
 0x197   : > { %v5303_v19 = vpop.f32.mrf.mxu1  ;;  %v5366_v61 = vadd.f32 %v5365_v33, %v5364_v20 }
 0x198   : > { %v7215_v54 = vadd.f32 %v5302_v5, %v3677_v34  ;;  %v5367_v13 = vpop.f32.mrf.mxu0 }
 0x199   : > { %v5304_v55 = vpop.f32.mrf.mxu1  ;;  %v7222_v53 = vadd.f32 %v5366_v61, %v7047_v27 }
 0x19a   : > { %v5305_v17 = vadd.f32 %v5304_v55, %v5303_v19  ;;  %v5368_v16 = vpop.f32.mrf.mxu0 }
 0x19b   : > { %v5306_v48 = vpop.f32.mrf.mxu1  ;;  %v5369_v36 = vadd.f32 %v5368_v16, %v5367_v13 }
 0x19c   : > { %v7219_v63 = vadd.f32 %v5305_v17, %v3680_v14  ;;  %v5370_v32 = vpop.f32.mrf.mxu0 }
 0x19d   : > { %v5307_v41 = vpop.f32.mrf.mxu1  ;;  %v7229_v15 = vadd.f32 %v5369_v36, %v7060_v0  ;;  %v3693_v0 = vadd.f32 %v7135_v56, %v6820_v1 }
 0x19e   : > { %v5308_v18 = vadd.f32 %v5307_v41, %v5306_v48  ;;  %v5371_v2 = vpop.f32.mrf.mxu0 }
 0x19f   : > { %v5309_v60 = vpop.f32.mrf.mxu1  ;;  %v5372_v37 = vadd.f32 %v5371_v2, %v5370_v32 }
 0x1a0   : > { %v7226_v22 = vadd.f32 %v5308_v18, %v3685_v57  ;;  %v5373_v49 = vpop.f32.mrf.mxu0 }
 0x1a1   : > { %v5310_v8 = vpop.f32.mrf.mxu1  ;;  %v7236_v59 = vadd.f32 %v5372_v37, %v7079_v46  ;;  %v3696_v46 = vadd.f32 %v7135_v56, %v6836_v29 }
 0x1a2   : > { %v5311_v27 = vadd.f32 %v5310_v8, %v5309_v60  ;;  %v5374_v7 = vpop.f32.mrf.mxu0 }
 0x1a3   : > { %v5312_v6 = vpop.f32.mrf.mxu1  ;;  %v5375_v43 = vadd.f32 %v5374_v7, %v5373_v49 }
 0x1a4   : > { %v7233_v39 = vadd.f32 %v5311_v27, %v3688_v30  ;;  %v5376_v19 = vpop.f32.mrf.mxu0 }
 0x1a5   : > { %v5313_v47 = vpop.f32.mrf.mxu1  ;;  %v7241_v5 = vadd.f32 %v5375_v43, %v7095_v58 }
 0x1a6   : > { %v5314_v34 = vadd.f32 %v5313_v47, %v5312_v6  ;;  %v5377_v14 = vpop.f32.mrf.mxu0 }
 0x1a7   : > { %v5315_v11 = vpop.f32.mrf.mxu1  ;;  %v5378_v17 = vadd.f32 %v5377_v14, %v5376_v19 }
 0x1a8   : > { %v7243_v20 = vadd.f32 %v5314_v34, %v3693_v0  ;;  %v5379_v61 = vpop.f32.mrf.mxu0 }
 0x1a9   : > { %v5316_v55 = vpop.f32.mrf.mxu1  ;;  %v7250_v1 = vadd.f32 %v5378_v17, %v7110_v38 }
 0x1aa   : > { %v5317_v33 = vadd.f32 %v5316_v55, %v5315_v11  ;;  %v5380_v13 = vpop.f32.mrf.mxu0 }
 0x1ab   : > { %v5381_v58 = vadd.f32 %v5380_v13, %v5379_v61  ;;  %v7252_v57 = vpop.f32.mrf.mxu1 }
 0x1ac   : > { %v7247_v48 = vadd.f32 %v5317_v33, %v3696_v46  ;;  %v5382_v41 = vpop.f32.mrf.mxu0 }
 0x1ad   : > { %v7255_v16 = vadd.f32 %v5381_v58, %v7124_v42  ;;  %v7257_v36 = vpop.f32.mrf.mxu1 }
 0x1ae   : > { %v5383_v18 = vpop.f32.mrf.mxu0 }
 0x1af   : > { %v5384_v29 = vadd.f32 %v5383_v18, %v5382_v41  ;;  %v7259_v60 = vpop.f32.mrf.mxu1 }
 0x1b0   : > { %v5385_v56 = vpop.f32.mrf.mxu0 }
 0x1b1   : > { %v7262_v32 = vadd.f32 %v5384_v29, %v7143_v21  ;;  %v7264_v8 = vpop.f32.mrf.mxu1 }
 0x1b2   : > { %v5386_v38 = vpop.f32.mrf.mxu0 }
 0x1b3   : > { %v5387_v30 = vadd.f32 %v5386_v38, %v5385_v56  ;;  %v7266_v2 = vpop.f32.mrf.mxu1 }
 0x1b4   : > { %v5388_v27 = vpop.f32.mrf.mxu0 }
 0x1b5   : > { %v7269_v42 = vadd.f32 %v5387_v30, %v7149_v9  ;;  %v7271_v49 = vpop.f32.mrf.mxu1 }
 0x1b6   : > { %v5389_v37 = vpop.f32.mrf.mxu0 }
 0x1b7   : > { %v5390_v6 = vadd.f32 %v5389_v37, %v5388_v27  ;;  %v7273_v43 = vpop.f32.mrf.mxu1 }
 0x1b8   : > { %v5391_v7 = vpop.f32.mrf.mxu0 }
 0x1b9   : > { %v7276_v21 = vadd.f32 %v5390_v6, %v7159_v23  ;;  %v7278_v0 = vpop.f32.mrf.mxu1 }
 0x1ba   : > { %v5392_v47 = vpop.f32.mrf.mxu0 }
 0x1bb   : > { %v5393_v34 = vadd.f32 %v5392_v47, %v5391_v7 }
 0x1bc   : > { %v5394_v11 = vpop.f32.mrf.mxu0  ;;  %v7280_v19 = vpop.f32.mrf.mxu1 }
 0x1bd   : > { %v7283_v9 = vadd.f32 %v5393_v34, %v7163_v62 }
 0x1be   : > { %v5395_v55 = vpop.f32.mrf.mxu0  ;;  %v7285_v46 = vpop.f32.mrf.mxu1 }
 0x1bf   : > { %v5396_v14 = vadd.f32 %v5395_v55, %v5394_v11 }
 0x1c0   : > { %v5397_v33 = vpop.f32.mrf.mxu0  ;;  %v7287_v17 = vpop.f32.mrf.mxu1 }
 0x1c1   : > { %v7290_v23 = vadd.f32 %v5396_v14, %v7170_v25 }
 0x1c2   : > { %v5398_v61 = vpop.f32.mrf.mxu0  ;;  %v7292_v13 = vpop.f32.mrf.mxu1 }
 0x1c3   : > { %7522 = vst [vmem:[#allocation3_spill] sm:$0xff] %v7290_v23  ;;  %v5399_v58 = vadd.f32 %v5398_v61, %v5397_v33 }
 0x1c4   : > { %v5400_v41 = vpop.f32.mrf.mxu0 }
 0x1c5   : > { %v7295_v18 = vadd.f32 %v5399_v58, %v7177_v35 }
 0x1c6   : > { %v7297_v62 = vpop.f32.mrf.mxu1  ;;  %v5401_v29 = vpop.f32.mrf.mxu0 }
 0x1c7   : > { %7523 = vst [vmem:[#allocation4_spill] sm:$0xff] %v7295_v18  ;;  %v5402_v56 = vadd.f32 %v5401_v29, %v5400_v41 }
 0x1c8   : > { %v7299_v38 = vpop.f32.mrf.mxu1  ;;  %v5403_v30 = vpop.f32.mrf.mxu0 }
 0x1c9   : > { %v7302_v27 = vadd.f32 %v5402_v56, %v7187_v28 }
 0x1ca   : > { %v7304_v25 = vpop.f32.mrf.mxu1  ;;  %v5404_v37 = vpop.f32.mrf.mxu0 }
 0x1cb   : > { %v5405_v6 = vadd.f32 %v5404_v37, %v5403_v30 }
 0x1cc   : > { %v7306_v7 = vpop.f32.mrf.mxu1 }
 0x1cd   : > { %v5406_v47 = vpop.f32.mrf.mxu0  ;;  %v7309_v35 = vadd.f32 %v5405_v6, %v7191_v3 }
 0x1cf   : > { %7524 = vst [vmem:[#allocation5_spill] sm:$0xff] %v7309_v35  ;;  %v7311_v34 = vpop.f32.mrf.mxu1  ;;  %v5407_v11 = vpop.f32.mrf.mxu0 }
 0x1d0   : > { %v5408_v55 = vadd.f32 %v5407_v11, %v5406_v47 }
 0x1d1   : > { %v7313_v14 = vpop.f32.mrf.mxu1  ;;  %v5409_v33 = vpop.f32.mrf.mxu0 }
 0x1d2   : > { %v7316_v28 = vadd.f32 %v5408_v55, %v7198_v24 }
 0x1d3   : > { %v7318_v61 = vpop.f32.mrf.mxu1  ;;  %v5410_v58 = vpop.f32.mrf.mxu0 }
 0x1d4   : > { %7525 = vst [vmem:[#allocation6_spill] sm:$0xff] %v7316_v28  ;;  %v5411_v41 = vadd.f32 %v5410_v58, %v5409_v33 }
 0x1d5   : > { %v7320_v29 = vpop.f32.mrf.mxu1 }
 0x1d6   : > { %v7323_v3 = vadd.f32 %v5411_v41, %v7205_v40 }
 0x1d8   : > { %v5412_v56 = vpop.f32.mrf.mxu0  ;;  %7526 = vst [vmem:[#allocation7_spill] sm:$0xff] %v7323_v3 }
 0x1da   : > { %v5413_v30 = vpop.f32.mrf.mxu0 }
 0x1db   : > { %v7325_v37 = vpop.f32.mrf.mxu1  ;;  %v5414_v6 = vadd.f32 %v5413_v30, %v5412_v56 }
 0x1dc   : > { %v5415_v47 = vpop.f32.mrf.mxu0 }
 0x1dd   : > { %v7328_v11 = vadd.f32 %v5414_v6, %v7215_v54  ;;  %v7330_v24 = vpop.f32.mrf.mxu1 }
 0x1de   : > { %v5416_v55 = vpop.f32.mrf.mxu0 }
 0x1df   : > { %7527 = vst [vmem:[#allocation8_spill] sm:$0xff] %v7328_v11  ;;  %v7332_v28 = vpop.f32.mrf.mxu1  ;;  %v5417_v33 = vadd.f32 %v5416_v55, %v5415_v47 }
 0x1e1   : > { %v7335_v18 = vadd.f32 %v5417_v33, %v7219_v63  ;;  %v7337_v40 = vpop.f32.mrf.mxu1 }
 0x1e2   : > { %v5418_v58 = vpop.f32.mrf.mxu0 }
 0x1e3   : > { %7528 = vst [vmem:[#allocation9_spill] sm:$0xff] %v7335_v18 }
 0x1e4   : > { %v5419_v41 = vpop.f32.mrf.mxu0 }
 0x1e5   : > { %v5420_v56 = vadd.f32 %v5419_v41, %v5418_v58 }
 0x1e6   : > { %v7339_v3 = vpop.f32.mrf.mxu1  ;;  %v5421_v30 = vpop.f32.mrf.mxu0 }
 0x1e7   : > { %v7342_v54 = vadd.f32 %v5420_v56, %v7226_v22  ;;  %v5454_v22 = vadd.f32 %v7271_v49, %v7266_v2 }
 0x1e8   : > { %v7344_v6 = vpop.f32.mrf.mxu1  ;;  %v5422_v11 = vpop.f32.mrf.mxu0 }
 0x1e9   : > { %7529 = vst [vmem:[#allocation10_spill] sm:$0xff] %v7342_v54  ;;  %v5423_v47 = vadd.f32 %v5422_v11, %v5421_v30  ;;  %v4064_v2 = vadd.f32 %v5454_v22, %v7166_v4 }
 0x1ea   : > { %v7346_v35 = vpop.f32.mrf.mxu1 }
 0x1eb   : > { %v7349_v55 = vadd.f32 %v5423_v47, %v7233_v39  ;;  %v5448_v39 = vadd.f32 %v7257_v36, %v7252_v57 }
 0x1ec   : > { %v7351_v63 = vpop.f32.mrf.mxu1 }
 0x1ed   : > { %7530 = vst [vmem:[#allocation11_spill] sm:$0xff] %v7349_v55  ;;  %v5457_v55 = vadd.f32 %v7278_v0, %v7273_v43 }
 0x1ee   : > { %v5424_v33 = vpop.f32.mrf.mxu0 }
 0x1f0   : > { %v5425_v58 = vpop.f32.mrf.mxu0 }
 0x1f1   : > { %v7353_v18 = vpop.f32.mrf.mxu1  ;;  %v5426_v41 = vadd.f32 %v5425_v58, %v5424_v33  ;;  %v5451_v58 = vadd.f32 %v7264_v8, %v7259_v60  ;;  %v5466_v60 = vadd.f32 %v7299_v38, %v7297_v62  ;;  %v5469_v62 = vadd.f32 %v7306_v7, %v7304_v25 }
 0x1f2   : > { %v5427_v54 = vpop.f32.mrf.mxu0 }
 0x1f3   : > { %v7357_v56 = vpop.f32.mrf.mxu1  ;;  %v7360_v23 = vadd.f32 %v5426_v41, %v7243_v20  ;;  %v4067_v41 = vadd.f32 %v5457_v55, %v7173_v31  ;;  %v4080_v38 = vadd.f32 %v5466_v60, %v7194_v26  ;;  %v4083_v26 = vadd.f32 %v5469_v62, %v7201_v12 }
 0x1f4   : > { %v5428_v30 = vpop.f32.mrf.mxu0  ;;  %v5472_v12 = vadd.f32 %v7313_v14, %v7311_v34 }
 0x1f5   : > { %v7364_v11 = vpop.f32.mrf.mxu1  ;;  %v5429_v47 = vadd.f32 %v5428_v30, %v5427_v54  ;;  %v4056_v54 = vadd.f32 %v5448_v39, %v7152_v50  ;;  %v4059_v30 = vadd.f32 %v5451_v58, %v7157_v52 }
 0x1f6   : > { %v4088_v34 = vadd.f32 %v5472_v12, %v7208_v44 }
 0x1f7   : > { %v7368_v33 = vpop.f32.mrf.mxu1  ;;  %v7373_v49 = vadd.f32 %v5429_v47, %v7247_v48  ;;  %v5460_v47 = vadd.f32 %v7285_v46, %v7280_v19  ;;  %v5463_v19 = vadd.f32 %v7292_v13, %v7287_v17 }
 0x1f8   : > { %v5584_v20 = vpop.f32.mrf.mxu0 }
 0x1f9   : > { %v7377_v57 = vpop.f32.mrf.mxu1  ;;  %v4225_v36 = vadd.f32 %v5584_v20, %v4064_v2  ;;  %v4072_v58 = vadd.f32 %v5460_v47, %v7180_v10  ;;  %v4075_v13 = vadd.f32 %v5463_v19, %v7185_v45  ;;  %v5478_v10 = vadd.f32 %v7330_v24, %v7325_v37 }
 0x1fa   : > { %v4216_v4 = vpop.f32.mrf.mxu0 }
 0x1fb   : > { %v4345_v43 = vmax.f32 %v4225_v36, 0.0  ;;  %v7385_v48 = vpop.f32.mrf.mxu1  ;;  %v4217_v0 = vadd.f32 %v4216_v4, %v4056_v54  ;;  %v4096_v45 = vadd.f32 %v5478_v10, %v7222_v53 }
 0x1fc   : > { %v5585_v8 = vpop.f32.mrf.mxu0  ;;  %v5496_v12 = vadd.f32 %v7385_v48, %v7377_v57 }
 0x1fd   : > { %4377 = vst [vmem:[%s7383_s10 + $0x10] sm:$0xff] %v4345_v43  ;;  %v4343_v50 = vmax.f32 %v4217_v0, 0.0  ;;  %v7391_v22 = vpop.f32.mrf.mxu1  ;;  %v4228_v39 = vadd.f32 %v5585_v8, %v4067_v41 }
 0x1fe   : > { %v4219_v2 = vpop.f32.mrf.mxu0  ;;  %v4120_v57 = vadd.f32 %v5496_v12, %v7262_v32 }
 0x1ff   : > { %4375 = vst [vmem:[%s7383_s10] sm:$0xff] %v4343_v50  ;;  %v4346_v20 = vmax.f32 %v4228_v39, 0.0  ;;  %v7397_v31 = vpop.f32.mrf.mxu1  ;;  %v4220_v55 = vadd.f32 %v4219_v2, %v4059_v30 }
 0x201   : > { %4378 = vst [vmem:[%s7383_s10 + $0x18] sm:$0xff] %v4346_v20  ;;  %v4344_v36 = vmax.f32 %v4220_v55, 0.0  ;;  %v7403_v54 = vpop.f32.mrf.mxu1  ;;  %v5481_v20 = vadd.f32 %v7337_v40, %v7332_v28  ;;  %v5475_v55 = vadd.f32 %v7320_v29, %v7318_v61  ;;  %v5490_v28 = vadd.f32 %v7357_v56, %v7353_v18 }
 0x202   : > { %v5588_v52 = vpop.f32.mrf.mxu0  ;;  %v5484_v61 = vadd.f32 %v7344_v6, %v7339_v3  ;;  %v5493_v18 = vadd.f32 %v7368_v33, %v7364_v11  ;;  %v5487_v3 = vadd.f32 %v7351_v63, %v7346_v35 }
 0x203   : > { %v4241_v46 = vadd.f32 %v5588_v52, %v4080_v38  ;;  %4376 = vst [vmem:[%s7383_s10 + $0x8] sm:$0xff] %v4344_v36  ;;  %v7409_v4 = vpop.f32.mrf.mxu1  ;;  %v4099_v36 = vadd.f32 %v5481_v20, %v7229_v15 }
 0x204   : > { %v4232_v43 = vpop.f32.mrf.mxu0 }
 0x205   : > { %v4349_v25 = vmax.f32 %v4241_v46, 0.0  ;;  %v4233_v7 = vadd.f32 %v4232_v43, %v4072_v58  ;;  %v7412_v0 = vpop.f32.mrf.mxu1  ;;  %v4091_v46 = vadd.f32 %v5475_v55, %v7213_v51 }
 0x206   : > { %v5589_v41 = vpop.f32.mrf.mxu0 }
 0x207   : > { %4381 = vst [vmem:[%s7383_s10 + $0x30] sm:$0xff] %v4349_v25  ;;  %v4347_v60 = vmax.f32 %v4233_v7, 0.0  ;;  %v4244_v17 = vadd.f32 %v5589_v41, %v4083_v26  ;;  %v7418_v8 = vpop.f32.mrf.mxu1  ;;  %v4112_v25 = vadd.f32 %v5490_v28, %v7250_v1  ;;  %v4104_v41 = vadd.f32 %v5484_v61, %v7236_v59 }
 0x208   : > { %v4235_v50 = vpop.f32.mrf.mxu0  ;;  %v4107_v59 = vadd.f32 %v5487_v3, %v7241_v5  ;;  %v5499_v5 = vadd.f32 %v7397_v31, %v7391_v22 }
 0x209   : > { %4379 = vst [vmem:[%s7383_s10 + $0x20] sm:$0xff] %v4347_v60  ;;  %v4350_v39 = vmax.f32 %v4244_v17, 0.0  ;;  %v4236_v30 = vadd.f32 %v4235_v50, %v4075_v13  ;;  %v7423_v47 = vpop.f32.mrf.mxu1  ;;  %v4115_v13 = vadd.f32 %v5493_v18, %v7255_v16  ;;  %v5502_v50 = vadd.f32 %v7409_v4, %v7403_v54  ;;  %v7531_v18 = vld [vmem:[#allocation3_spill] sm:$0xff] }
 0x20b   : > { %4382 = vst [vmem:[%s7383_s10 + $0x38] sm:$0xff] %v4350_v39  ;;  %v4348_v2 = vmax.f32 %v4236_v30, 0.0  ;;  %v7429_v37 = vpop.f32.mrf.mxu1  ;;  %v4128_v4 = vadd.f32 %v5502_v50, %v7276_v21 }
 0x20d   : > { %4380 = vst [vmem:[%s7383_s10 + $0x28] sm:$0xff] %v4348_v2  ;;  %v7435_v14 = vpop.f32.mrf.mxu1 }
 0x20f   : > { %v7440_v52 = vpop.f32.mrf.mxu1 }
 0x210   : > { %v5592_v24 = vpop.f32.mrf.mxu0 }
 0x211   : > { %v4257_v62 = vadd.f32 %v5592_v24, %v4096_v45  ;;  %v5505_v45 = vadd.f32 %v7418_v8, %v7412_v0 }
 0x212   : > { %v4248_v38 = vpop.f32.mrf.mxu0 }
 0x213   : > { %v4353_v40 = vmax.f32 %v4257_v62, 0.0  ;;  %v4249_v53 = vadd.f32 %v4248_v38, %v4088_v34  ;;  %v4131_v8 = vadd.f32 %v5505_v45, %v7283_v9  ;;  %v7535_v45 = vld [vmem:[#allocation6_spill] sm:$0xff] }
 0x214   : > { %v5593_v19 = vpop.f32.mrf.mxu0 }
 0x215   : > { %4385 = vst [vmem:[%s7383_s10 + $0x50] sm:$0xff] %v4353_v40  ;;  %v4351_v44 = vmax.f32 %v4249_v53, 0.0  ;;  %v4260_v29 = vadd.f32 %v5593_v19, %v4099_v36  ;;  %v5512_v58 = vpop.f32.mrf.mxu1  ;;  %v5508_v53 = vadd.f32 %v7429_v37, %v7423_v47  ;;  %v4123_v36 = vadd.f32 %v5499_v5, %v7269_v42 }
 0x216   : > { %v4251_v43 = vpop.f32.mrf.mxu0  ;;  %v5511_v47 = vadd.f32 %v7440_v52, %v7435_v14  ;;  %v7533_v14 = vld [vmem:[#allocation4_spill] sm:$0xff] }
 0x217   : > { %4383 = vst [vmem:[%s7383_s10 + $0x40] sm:$0xff] %v4351_v44  ;;  %v4354_v15 = vmax.f32 %v4260_v29, 0.0  ;;  %v4252_v56 = vadd.f32 %v4251_v43, %v4091_v46  ;;  %v5513_v7 = vpop.f32.mrf.mxu1  ;;  %v4136_v42 = vadd.f32 %v5508_v53, %v7531_v18 }
 0x218   : > { %v5596_v26 = vpop.f32.mrf.mxu0  ;;  %v5514_v38 = vadd.f32 %v5513_v7, %v5512_v58  ;;  %v4139_v52 = vadd.f32 %v5511_v47, %v7533_v14 }
 0x219   : > { %4386 = vst [vmem:[%s7383_s10 + $0x58] sm:$0xff] %v4354_v15  ;;  %v4352_v6 = vmax.f32 %v4252_v56, 0.0  ;;  %v4273_v51 = vadd.f32 %v5596_v26, %v4112_v25  ;;  %v5515_v60 = vpop.f32.mrf.mxu1  ;;  %v7532_v26 = vld [vmem:[#allocation5_spill] sm:$0xff] }
 0x21a   : > { %v4264_v17 = vpop.f32.mrf.mxu0  ;;  %v4144_v9 = vadd.f32 %v5514_v38, %v7302_v27 }
 0x21b   : > { %4384 = vst [vmem:[%s7383_s10 + $0x48] sm:$0xff] %v4352_v6  ;;  %v4357_v11 = vmax.f32 %v4273_v51, 0.0  ;;  %v4265_v33 = vadd.f32 %v4264_v17, %v4104_v41  ;;  %v5516_v1 = vpop.f32.mrf.mxu1 }
 0x21c   : > { %v5597_v10 = vpop.f32.mrf.mxu0  ;;  %v5517_v61 = vadd.f32 %v5516_v1, %v5515_v60 }
 0x21d   : > { %4389 = vst [vmem:[%s7383_s10 + $0x70] sm:$0xff] %v4357_v11  ;;  %v4355_v35 = vmax.f32 %v4265_v33, 0.0  ;;  %v4276_v63 = vadd.f32 %v5597_v10, %v4115_v13  ;;  %v5518_v39 = vpop.f32.mrf.mxu1 }
 0x21e   : > { %v4267_v30 = vpop.f32.mrf.mxu0  ;;  %v4147_v3 = vadd.f32 %v5517_v61, %v7532_v26  ;;  %v7538_v61 = vld [vmem:[#allocation10_spill] sm:$0xff] }
 0x21f   : > { %4387 = vst [vmem:[%s7383_s10 + $0x60] sm:$0xff] %v4355_v35  ;;  %v4358_v2 = vmax.f32 %v4276_v63, 0.0  ;;  %v4268_v16 = vadd.f32 %v4267_v30, %v4107_v59  ;;  %v5519_v20 = vpop.f32.mrf.mxu1  ;;  %v7534_v63 = vld [vmem:[#allocation8_spill] sm:$0xff] }
 0x220   : > { %v5520_v1 = vadd.f32 %v5519_v20, %v5518_v39 }
 0x221   : > { %4390 = vst [vmem:[%s7383_s10 + $0x78] sm:$0xff] %v4358_v2  ;;  %v4356_v54 = vmax.f32 %v4268_v16, 0.0  ;;  %v5521_v24 = vpop.f32.mrf.mxu1 }
 0x223   : > { %v5600_v55 = vpop.f32.mrf.mxu0  ;;  %4388 = vst [vmem:[%s7383_s10 + $0x68] sm:$0xff] %v4356_v54  ;;  %v5522_v48 = vpop.f32.mrf.mxu1  ;;  %v4152_v54 = vadd.f32 %v5520_v1, %v7535_v45 }
 0x224   : > { %v4289_v62 = vadd.f32 %v5600_v55, %v4128_v4  ;;  %v5523_v2 = vadd.f32 %v5522_v48, %v5521_v24 }
 0x225   : > { %v4280_v34 = vpop.f32.mrf.mxu0 }
 0x226   : > { %v4361_v28 = vmax.f32 %v4289_v62, 0.0  ;;  %v4281_v0 = vadd.f32 %v4280_v34, %v4120_v57  ;;  %v7536_v62 = vld [vmem:[#allocation9_spill] sm:$0xff] }
 0x227   : > { %v5601_v40 = vpop.f32.mrf.mxu0 }
 0x228   : > { %v5524_v21 = vpop.f32.mrf.mxu1  ;;  %4393 = vst [vmem:[%s7383_s10 + $0x90] sm:$0xff] %v4361_v28  ;;  %v4359_v22 = vmax.f32 %v4281_v0, 0.0  ;;  %v4292_v31 = vadd.f32 %v5601_v40, %v4131_v8  ;;  %v7537_v0 = vld [vmem:[#allocation7_spill] sm:$0xff] }
 0x229   : > { %v4283_v32 = vpop.f32.mrf.mxu0  ;;  %v4155_v8 = vadd.f32 %v5523_v2, %v7537_v0 }
 0x22a   : > { %v5525_v19 = vpop.f32.mrf.mxu1  ;;  %4391 = vst [vmem:[%s7383_s10 + $0x80] sm:$0xff] %v4359_v22  ;;  %v4362_v44 = vmax.f32 %v4292_v31, 0.0  ;;  %v4284_v29 = vadd.f32 %v4283_v32, %v4123_v36 }
 0x22b   : > { %v5604_v46 = vpop.f32.mrf.mxu0  ;;  %v5526_v60 = vadd.f32 %v5525_v19, %v5524_v21 }
 0x22c   : > { %v5527_v58 = vpop.f32.mrf.mxu1  ;;  %4394 = vst [vmem:[%s7383_s10 + $0x98] sm:$0xff] %v4362_v44  ;;  %v4360_v37 = vmax.f32 %v4284_v29, 0.0  ;;  %v4305_v43 = vadd.f32 %v5604_v46, %v4144_v9 }
 0x22d   : > { %v4296_v15 = vpop.f32.mrf.mxu0  ;;  %v4160_v59 = vadd.f32 %v5526_v60, %v7534_v63 }
 0x22e   : > { %v5528_v56 = vpop.f32.mrf.mxu1  ;;  %4392 = vst [vmem:[%s7383_s10 + $0x88] sm:$0xff] %v4360_v37  ;;  %v4365_v25 = vmax.f32 %v4305_v43, 0.0  ;;  %v4297_v7 = vadd.f32 %v4296_v15, %v4136_v42  ;;  %v7539_v15 = vld [vmem:[#allocation11_spill] sm:$0xff] }
 0x22f   : > { %v5605_v27 = vpop.f32.mrf.mxu0  ;;  %v5529_v35 = vadd.f32 %v5528_v56, %v5527_v58 }
 0x230   : > { %4397 = vst [vmem:[%s7383_s10 + $0xb0] sm:$0xff] %v4365_v25  ;;  %v4363_v6 = vmax.f32 %v4297_v7, 0.0  ;;  %v4308_v51 = vadd.f32 %v5605_v27, %v4147_v3 }
 0x231   : > { %v5530_v41 = vpop.f32.mrf.mxu1  ;;  %v4299_v17 = vpop.f32.mrf.mxu0  ;;  %v4163_v39 = vadd.f32 %v5529_v35, %v7536_v62 }
 0x232   : > { %4395 = vst [vmem:[%s7383_s10 + $0xa0] sm:$0xff] %v4363_v6  ;;  %v4366_v11 = vmax.f32 %v4308_v51, 0.0  ;;  %v4300_v33 = vadd.f32 %v4299_v17, %v4139_v52 }
 0x233   : > { %v5531_v13 = vpop.f32.mrf.mxu1 }
 0x234   : > { %4398 = vst [vmem:[%s7383_s10 + $0xb8] sm:$0xff] %v4366_v11  ;;  %v4364_v10 = vmax.f32 %v4300_v33, 0.0  ;;  %v5532_v34 = vadd.f32 %v5531_v13, %v5530_v41 }
 0x235   : > { %v5533_v50 = vpop.f32.mrf.mxu1 }
 0x236   : > { %4396 = vst [vmem:[%s7383_s10 + $0xa8] sm:$0xff] %v4364_v10  ;;  %v4168_v44 = vadd.f32 %v5532_v34, %v7538_v61 }
 0x237   : > { %v5608_v30 = vpop.f32.mrf.mxu0  ;;  %v5534_v12 = vpop.f32.mrf.mxu1 }
 0x238   : > { %v4321_v16 = vadd.f32 %v5608_v30, %v4160_v59  ;;  %v5535_v36 = vadd.f32 %v5534_v12, %v5533_v50 }
 0x239   : > { %v4312_v4 = vpop.f32.mrf.mxu0 }
 0x23a   : > { %v4369_v55 = vmax.f32 %v4321_v16, 0.0  ;;  %v4313_v5 = vadd.f32 %v4312_v4, %v4152_v54  ;;  %v4171_v56 = vadd.f32 %v5535_v36, %v7539_v15 }
 0x23b   : > { %v5609_v20 = vpop.f32.mrf.mxu0  ;;  %v5536_v57 = vpop.f32.mrf.mxu1 }
 0x23c   : > { %4401 = vst [vmem:[%s7383_s10 + $0xd0] sm:$0xff] %v4369_v55  ;;  %v4367_v38 = vmax.f32 %v4313_v5, 0.0  ;;  %v4324_v28 = vadd.f32 %v5609_v20, %v4163_v39 }
 0x23d   : > { %v4315_v24 = vpop.f32.mrf.mxu0  ;;  %v5537_v48 = vpop.f32.mrf.mxu1 }
 0x23e   : > { %4399 = vst [vmem:[%s7383_s10 + $0xc0] sm:$0xff] %v4367_v38  ;;  %v4370_v40 = vmax.f32 %v4324_v28, 0.0  ;;  %v4316_v21 = vadd.f32 %v4315_v24, %v4155_v8  ;;  %v5538_v53 = vadd.f32 %v5537_v48, %v5536_v57 }
 0x23f   : > { %v5612_v22 = vpop.f32.mrf.mxu0  ;;  %v5539_v31 = vpop.f32.mrf.mxu1 }
 0x240   : > { %4402 = vst [vmem:[%s7383_s10 + $0xd8] sm:$0xff] %v4370_v40  ;;  %v4368_v32 = vmax.f32 %v4316_v21, 0.0  ;;  %v4176_v19 = vadd.f32 %v5538_v53, %v7360_v23 }
 0x241   : > { %v4328_v29 = vpop.f32.mrf.mxu0  ;;  %v5540_v9 = vpop.f32.mrf.mxu1 }
 0x242   : > { %4400 = vst [vmem:[%s7383_s10 + $0xc8] sm:$0xff] %v4368_v32  ;;  %v4337_v46 = vadd.f32 %v5612_v22, %v4176_v19  ;;  %v4329_v58 = vadd.f32 %v4328_v29, %v4168_v44  ;;  %v5541_v47 = vadd.f32 %v5540_v9, %v5539_v31 }
 0x243   : > { %v5613_v37 = vpop.f32.mrf.mxu0 }
 0x244   : > { %v4373_v43 = vmax.f32 %v4337_v46, 0.0  ;;  %v4371_v18 = vmax.f32 %v4329_v58, 0.0  ;;  %v4179_v42 = vadd.f32 %v5541_v47, %v7373_v49 }
 0x245   : > { %v4331_v25 = vpop.f32.mrf.mxu0 }
 0x246   : > { %4405 = vst [vmem:[%s7383_s10 + $0xf0] sm:$0xff] %v4373_v43  ;;  %4403 = vst [vmem:[%s7383_s10 + $0xe0] sm:$0xff] %v4371_v18  ;;  %v4340_v23 = vadd.f32 %v5613_v37, %v4179_v42  ;;  %v4332_v7 = vadd.f32 %v4331_v25, %v4171_v56 }
 0x248   : > { %v4374_v26 = vmax.f32 %v4340_v23, 0.0  ;;  %v4372_v3 = vmax.f32 %v4332_v7, 0.0 }
 0x24a   : > { %4406 = vst [vmem:[%s7383_s10 + $0xf8] sm:$0xff] %v4374_v26  ;;  %4404 = vst [vmem:[%s7383_s10 + $0xe8] sm:$0xff] %v4372_v3 }
 0x24b PF: > { %s13_s14 = sadd.s32 1, %s5958_s14   ;;  %s7540_s12 = smov %s5954_s13 }
 0x24c   : > { %p10_p5 = scmp.ge.s32.totalorder %s13_s14, 4   ;;  %s7541_s13 = smov %s7543_s15 }
 0x24e   :  { %12 = sbr.rel (!%p10_p5) target bundleno = 2 (0x2), region = 74 }

// kernel: ssh_context_forward.9
= control target key start
LH: loop header
LB: loop body
LE: loop exit
PB: predicated region body
PF: predicated region fallthrough
CT: control target
= control target key end

     0   :  { %s6604_s12 = smov 0   ;;  %s6606_s13 = smov 0   ;;  %s8385_s0 = inlined_call_operand.vmem [shape: bf16[2,18,18,128], index: 0, kind: input, shape index: {}]   ;;  %s8386_s1 = inlined_call_operand.vmem [shape: bf16[1152,128], index: 1, kind: input, shape index: {}]   ;;  %s8387_s2 = inlined_call_operand.vmem [shape: f32[1,128], index: 2, kind: input, shape index: {}]   ;;  %s8388_s3 = inlined_call_operand.vmem [shape: f32[2,16,16,128], index: 3, kind: output, shape index: {}]  }
   0x1   :  { %s6608_s14 = smov 0  }
   0x2 LB: > { %s25_s15 = sadd.s32 1, %s6578_s13  ;;  %p5190_p0 = scmp.ge.s32.totalorder %s6582_s14, 1  ;;  %s6582_s14 = sphi %s6608_s14, %s13_s14   ;;  %s6578_s13 = sphi %s6606_s13, %s8440_s13   ;;  %s6574_s12 = sphi %s6604_s12, %s8439_s12  }
   0x3   : > { %p27_p1 = scmp.ge.s32.totalorder %s25_s15, 2  ;;  %p168_p2 = scmp.lt.s32.totalorder %s6582_s14, 3 }
   0x5   : > { %s8442_s15 = smov (%p27_p1, %s25_s15), 0  ;;  %p169_p3 = pnand %p5190_p0, %p168_p2 }
   0x7   : > { %172 = sbr.rel (%p169_p3) target bundleno = 658 (0x292), region = 32 }
   0xc   : > { %v6279_v0 = vld [vmem:[%s8386_s1 + $0x78] sm:$0xff]   ;;  %p202_p4 = scmp.lt.s32.totalorder %s6574_s12, 1  ;;  %v6281_v2 = vld [vmem:[%s8386_s1 + $0x70] sm:$0xff]   ;;  %v6283_v4 = vld [vmem:[%s8386_s1 + $0x68] sm:$0xff]   ;;  %vm339_vm0 = vsmask.f32 3328 }
   0xd   : > { %v6280_v1 = vld [vmem:[%s8386_s1 + $0x38] sm:$0xff]   ;;  %5718 = vmatprep.subr.bf16.mxu0 %v6279_v0  ;;  %6238 = vmatprep.subr.bf16.mxu1 %v6279_v0  ;;  %v6282_v3 = vld [vmem:[%s8386_s1 + $0x30] sm:$0xff]   ;;  %v6284_v5 = vld [vmem:[%s8386_s1 + $0x28] sm:$0xff]   ;;  %vm340_vm1 = vsmask.f32 7440  ;;  %vm886_vm3 = vcmask 1042432  }
   0xe   : > { %5719 = vmatpush3.bf16.msra.mxu0 %v6280_v1  ;;  %6246 = vmatpush3.bf16.msra.mxu1 %v6280_v1  ;;  %s8444_s12 = smov (!%p202_p4, %s6574_s12), 1  ;;  %v6285_v6 = vld [vmem:[%s8386_s1 + $0x60] sm:$0xff]   ;;  %v6287_v8 = vld [vmem:[%s8386_s1 + $0x58] sm:$0xff]   ;;  %v6289_v10 = vld [vmem:[%s8386_s1 + $0x50] sm:$0xff]   ;;  %vm887_vm4 = vcmask 1046532  }
   0xf   : > { %5720 = vmatprep.subr.bf16.mxu0 %v6281_v2  ;;  %6239 = vmatprep.subr.bf16.mxu1 %v6281_v2  ;;  %s6254_s30 = smul.u32 216, %s8444_s12  ;;  %v6286_v7 = vld [vmem:[%s8386_s1 + $0x20] sm:$0xff]   ;;  %v6288_v9 = vld [vmem:[%s8386_s1 + $0x18] sm:$0xff]   ;;  %v6290_v16 = vld [vmem:[%s8386_s1 + $0x10] sm:$0xff]  }
  0x10   : > { %v6291_v24 = vld [vmem:[%s8386_s1 + $0x48] sm:$0xff]   ;;  %v6293_v34 = vld [vmem:[%s8386_s1 + $0x40] sm:$0xff]   ;;  %vm6687_vm2 = vmor %vm339_vm0, %vm340_vm1 }
  0x11   : > { %s6655_s10 = scalar_lea.vmem %s8385_s0, %s6254_s30  ;;  %v6292_v29 = vld [vmem:[%s8386_s1 + $0x8] sm:$0xff]   ;;  %v6294_v47 = vld [vmem:[%s8386_s1] sm:$0xff]   ;;  %v6301_v55 = vld [vmem:[%s8386_s1 + $0xf8] sm:$0xff]  }
  0x12   : > { %5721 = vmatpush3.bf16.msra.mxu0 %v6282_v3  ;;  %6247 = vmatpush3.bf16.msra.mxu1 %v6282_v3  ;;  %v227_v11 = vld [vmem:[%s6655_s10] sm:$0xf]  ;;  %v228_v12 = vld [vmem:[%s6655_s10 + $0x4] sm:$0xf]  ;;  %v293_v15 = vld [vmem:[%s6655_s10 + $0x8] sm:$0x1] }
  0x13   : > { %5722 = vmatprep.subr.bf16.mxu0 %v6283_v4  ;;  %6240 = vmatprep.subr.bf16.mxu1 %v6283_v4  ;;  %v291_v13 = vld [vmem:[%s6655_s10] sm:$0xf]  ;;  %259 = vst [vmem:[#allocation2] sm:$0xf] %v227_v11  ;;  %260 = vst [vmem:[#allocation2 + $0x24] sm:$0xf] %v228_v12 }
  0x14   : > { %v292_v14 = vld [vmem:[%s6655_s10 + $0x4] sm:$0xf]  ;;  %v343_v17 = vshrl.u32 %v291_v13, 16  ;;  %v346_v18 = vshll.u32 %v291_v13, 16  ;;  %v362_v21 = vshll.u32 %v293_v15, 16  ;;  %v6304_v57 = vld [vmem:[%s8386_s1 + $0x178] sm:$0xff]   ;;  %vm6832_vm5 = vmor %vm886_vm3, %vm887_vm4 }
  0x15   : > { %v352_v19 = vshll.u32 %v292_v14, 16  ;;  %v356_v20 = vshrl.u32 %v292_v14, 16  ;;  %v251_v22 = vld [vmem:[%s6655_s10 + $0x90] sm:$0xf]  ;;  %v252_v23 = vld [vmem:[%s6655_s10 + $0x94] sm:$0xf] }
  0x16   : > { %5723 = vmatpush3.bf16.msra.mxu0 %v6284_v5  ;;  %6248 = vmatpush3.bf16.msra.mxu1 %v6284_v5  ;;  %v345_v25 = vrot.slane %v343_v17, 4  ;;  %v348_v26 = vrot.slane %v346_v18, 5  ;;  %283 = vst [vmem:[#allocation2 + $0x360] sm:$0xf] %v251_v22  ;;  %284 = vst [vmem:[#allocation2 + $0x384] sm:$0xf] %v252_v23 }
  0x17   : > { %5724 = vmatprep.subr.bf16.mxu0 %v6285_v6  ;;  %6241 = vmatprep.subr.bf16.mxu1 %v6285_v6  ;;  %v354_v27 = vrot.slane %v352_v19, 5  ;;  %v327_v28 = vld [vmem:[%s6655_s10 + $0x90] sm:$0xf]  ;;  %v358_v30 = vrot.slane %v356_v20, 4  ;;  %v364_v31 = vrot.slane %v362_v21, 5 }
  0x18   : > { %v328_v32 = vld [vmem:[%s6655_s10 + $0x94] sm:$0xf]  ;;  %v329_v33 = vld [vmem:[%s6655_s10 + $0x98] sm:$0x1]  ;;  %v349_v35 = vor.u32 %v348_v26, %v345_v25  ;;  %v631_v36 = vshrl.u32 %v327_v28, 16  ;;  %v634_v37 = vshll.u32 %v327_v28, 16 }
  0x19   : > { %v640_v38 = vshll.u32 %v328_v32, 16  ;;  %v359_v40 = vor.u32 %v358_v30, %v354_v27  ;;  %v644_v41 = vshrl.u32 %v328_v32, 16  ;;  %v650_v42 = vshll.u32 %v329_v33, 16  ;;  %v229_v59 = vld [vmem:[%s6655_s10 + $0xc] sm:$0xf]  ;;  %v6302_v28 = vld [vmem:[%s8386_s1 + $0xb8] sm:$0xff]  }
  0x1a   : > { %5725 = vmatpush3.bf16.msra.mxu0 %v6286_v7  ;;  %6249 = vmatpush3.bf16.msra.mxu1 %v6286_v7  ;;  %v350_v43 = vrot.slane %v349_v35, 4  ;;  %v633_v44 = vrot.slane %v631_v36, 4  ;;  %v636_v45 = vrot.slane %v634_v37, 5  ;;  %v230_v60 = vld [vmem:[%s6655_s10 + $0x10] sm:$0xf] }
  0x1b   : > { %5726 = vmatprep.subr.bf16.mxu0 %v6287_v8  ;;  %6242 = vmatprep.subr.bf16.mxu1 %v6287_v8  ;;  %v642_v46 = vrot.slane %v640_v38, 5  ;;  %v360_v48 = vrot.slane %v359_v40, 4  ;;  %v646_v49 = vrot.slane %v644_v41, 4  ;;  %v652_v54 = vrot.slane %v650_v42, 5  ;;  %261 = vst [vmem:[#allocation2 + $0x48] sm:$0xf] %v229_v59 }
  0x1c   : > { %v355_v50 = vsel %vm6687_vm2, %v350_v43, %v354_v27  ;;  %v637_v51 = vor.u32 %v636_v45, %v633_v44  ;;  %262 = vst [vmem:[#allocation2 + $0x6c] sm:$0xf] %v230_v60  ;;  %v294_v62 = vld [vmem:[%s6655_s10 + $0xc] sm:$0xf]  ;;  %v295_v63 = vld [vmem:[%s6655_s10 + $0x10] sm:$0xf] }
  0x1d   : > { %v365_v52 = vsel %vm6687_vm2, %v360_v48, %v364_v31  ;;  %758 = vst [vmem:[#allocation2 + $0x4] sm:$0xf] %v355_v50  ;;  %v647_v53 = vor.u32 %v646_v49, %v642_v46  ;;  %v296_v0 = vld [vmem:[%s6655_s10 + $0x14] sm:$0x1]  ;;  %v367_v2 = vshrl.u32 %v294_v62, 16  ;;  %v370_v3 = vshll.u32 %v294_v62, 16 }
  0x1e   : > { %5727 = vmatpush3.bf16.msra.mxu0 %v6288_v9  ;;  %6250 = vmatpush3.bf16.msra.mxu1 %v6288_v9  ;;  %759 = vst [vmem:[#allocation2 + $0x28] sm:$0xf] %v365_v52  ;;  %v638_v56 = vrot.slane %v637_v51, 4  ;;  %v376_v4 = vshll.u32 %v295_v63, 16  ;;  %v253_v5 = vld [vmem:[%s6655_s10 + $0x9c] sm:$0xf] }
  0x1f   : > { %5728 = vmatprep.subr.bf16.mxu0 %v6289_v10  ;;  %6243 = vmatprep.subr.bf16.mxu1 %v6289_v10  ;;  %v648_v58 = vrot.slane %v647_v53, 4  ;;  %v380_v6 = vshrl.u32 %v295_v63, 16  ;;  %v386_v7 = vshll.u32 %v296_v0, 16  ;;  %v254_v8 = vld [vmem:[%s6655_s10 + $0xa0] sm:$0xf]  ;;  %v6306_v10 = vld [vmem:[%s8386_s1 + $0x138] sm:$0xff]  }
  0x20   : > { %v643_v61 = vsel %vm6687_vm2, %v638_v56, %v642_v46  ;;  %285 = vst [vmem:[#allocation2 + $0x3a8] sm:$0xf] %v253_v5  ;;  %v330_v9 = vld [vmem:[%s6655_s10 + $0x9c] sm:$0xf]  ;;  %v369_v11 = vrot.slane %v367_v2, 4  ;;  %v372_v12 = vrot.slane %v370_v3, 5 }
  0x21   : > { %v653_v1 = vsel %vm6687_vm2, %v648_v58, %v652_v54  ;;  %782 = vst [vmem:[#allocation2 + $0x364] sm:$0xf] %v643_v61  ;;  %v378_v13 = vrot.slane %v376_v4, 5  ;;  %286 = vst [vmem:[#allocation2 + $0x3cc] sm:$0xf] %v254_v8  ;;  %v655_v15 = vshrl.u32 %v330_v9, 16 }
  0x22   : > { %5729 = vmatpush3.bf16.msra.mxu0 %v6290_v16  ;;  %6251 = vmatpush3.bf16.msra.mxu1 %v6290_v16  ;;  %783 = vst [vmem:[#allocation2 + $0x388] sm:$0xf] %v653_v1  ;;  %v331_v14 = vld [vmem:[%s6655_s10 + $0xa0] sm:$0xf]  ;;  %v382_v16 = vrot.slane %v380_v6, 4  ;;  %v388_v17 = vrot.slane %v386_v7, 5  ;;  %v373_v22 = vor.u32 %v372_v12, %v369_v11 }
  0x23   : > { %5730 = vmatprep.subr.bf16.mxu0 %v6291_v24  ;;  %6244 = vmatprep.subr.bf16.mxu1 %v6291_v24  ;;  %v332_v18 = vld [vmem:[%s6655_s10 + $0xa4] sm:$0x1]  ;;  %v658_v19 = vshll.u32 %v330_v9, 16  ;;  %v657_v23 = vrot.slane %v655_v15, 4  ;;  %v664_v26 = vshll.u32 %v331_v14, 16  ;;  %v668_v27 = vshrl.u32 %v331_v14, 16 }
  0x24   : > { %v6295_v20 = vld [vmem:[#allocation2] ss:$36 sps:$4 sm:$0xff]   ;;  %v383_v24 = vor.u32 %v382_v16, %v378_v13  ;;  %v674_v30 = vshll.u32 %v332_v18, 16  ;;  %v6303_v31 = vld [vmem:[%s8386_s1 + $0xf0] sm:$0xff]   ;;  %v231_v45 = vld [vmem:[%s6655_s10 + $0x18] sm:$0xf] }
  0x25   : > { %v6297_v21 = vld [vmem:[#allocation2 + $0x4] ss:$36 sps:$4 sm:$0xff]   ;;  %v660_v25 = vrot.slane %v658_v19, 5  ;;  %v670_v35 = vrot.slane %v668_v27, 4  ;;  %v6305_v44 = vld [vmem:[%s8386_s1 + $0xb0] sm:$0xff]   ;;  %v6323_v27 = vld [vmem:[%s8386_s1 + $0xd8] sm:$0xff]  }
  0x26   : > { %5731 = vmatpush3.bf16.msra.mxu0 %v6292_v29  ;;  %6252 = vmatpush3.bf16.msra.mxu1 %v6292_v29  ;;  %v374_v29 = vrot.slane %v373_v22, 4  ;;  %v384_v32 = vrot.slane %v383_v24, 4  ;;  %v6298_v36 = vld [vmem:[#allocation2 + $0x360] ss:$36 sps:$4 sm:$0xff]   ;;  %v676_v43 = vrot.slane %v674_v30, 5  ;;  %v6313_v48 = vld [vmem:[%s8386_s1 + $0xe8] sm:$0xff]  }
  0x27   : > { %5732 = vmatprep.subr.bf16.mxu0 %v6293_v34  ;;  %6245 = vmatprep.subr.bf16.mxu1 %v6293_v34  ;;  %v661_v33 = vor.u32 %v660_v25, %v657_v23  ;;  %v666_v34 = vrot.slane %v664_v26, 5  ;;  %v232_v49 = vld [vmem:[%s6655_s10 + $0x1c] sm:$0xf]  ;;  %263 = vst [vmem:[#allocation2 + $0x90] sm:$0xf] %v231_v45  ;;  %v6324_v60 = vld [vmem:[%s8386_s1 + $0x170] sm:$0xff]  }
  0x28   : > { %4242 = vmatprep.mubr.bf16.mxu0 %v6297_v21  ;;  %v379_v38 = vsel %vm6687_vm2, %v374_v29, %v378_v13  ;;  %v389_v40 = vsel %vm6687_vm2, %v384_v32, %v388_v17  ;;  %v297_v50 = vld [vmem:[%s6655_s10 + $0x18] sm:$0xf]  ;;  %264 = vst [vmem:[#allocation2 + $0xb4] sm:$0xf] %v232_v49  ;;  %v298_v51 = vld [vmem:[%s6655_s10 + $0x1c] sm:$0xf] }
  0x29   : > { %v6300_v37 = vld [vmem:[#allocation2 + $0x364] ss:$36 sps:$4 sm:$0xff]   ;;  %760 = vst [vmem:[#allocation2 + $0x4c] sm:$0xf] %v379_v38  ;;  %v662_v41 = vrot.slane %v661_v33, 4  ;;  %v671_v42 = vor.u32 %v670_v35, %v666_v34  ;;  %v391_v53 = vshrl.u32 %v297_v50, 16 }
  0x2a   : > { %5733 = vmatpush3.bf16.msra.mxu0 %v6294_v47  ;;  %6253 = vmatpush3.bf16.msra.mxu1 %v6294_v47  ;;  %761 = vst [vmem:[#allocation2 + $0x70] sm:$0xf] %v389_v40  ;;  %v299_v52 = vld [vmem:[%s6655_s10 + $0x20] sm:$0x1]  ;;  %v394_v54 = vshll.u32 %v297_v50, 16  ;;  %v400_v56 = vshll.u32 %v298_v51, 16 }
  0x2b   : > { %5830 = vmatprep.subr.bf16.mxu1 %v6301_v55  ;;  %5942 = vmatprep.subr.bf16.mxu0 %v6304_v57  ;;  %v667_v46 = vsel %vm6687_vm2, %v662_v41, %v666_v34  ;;  %v672_v47 = vrot.slane %v671_v42, 4  ;;  %v404_v57 = vshrl.u32 %v298_v51, 16  ;;  %v410_v58 = vshll.u32 %v299_v52, 16  ;;  %v255_v59 = vld [vmem:[%s6655_s10 + $0xa8] sm:$0xf]  ;;  %v6315_v2 = vld [vmem:[%s8386_s1 + $0xe0] sm:$0xff]  }
  0x2c   : > { %4338 = vmatprep.mubr.bf16.mxu1 %v6300_v37  ;;  %784 = vst [vmem:[#allocation2 + $0x3ac] sm:$0xf] %v667_v46  ;;  %v6314_v61 = vld [vmem:[%s8386_s1 + $0xa8] sm:$0xff]   ;;  %v393_v62 = vrot.slane %v391_v53, 4  ;;  %v396_v63 = vrot.slane %v394_v54, 5  ;;  %v402_v3 = vrot.slane %v400_v56, 5 }
  0x2d   : > { %4243 = vmatmul.mubr.bf16.vlgmr.msra.gmra.mxu0 %v6295_v20  ;;  %4339 = vmatmul.mubr.bf16.vlgmr.msra.gmra.mxu1 %v6298_v36  ;;  %v677_v55 = vsel %vm6687_vm2, %v672_v47, %v676_v43  ;;  %v256_v0 = vld [vmem:[%s6655_s10 + $0xac] sm:$0xf]  ;;  %287 = vst [vmem:[#allocation2 + $0x3f0] sm:$0xf] %v255_v59  ;;  %v333_v1 = vld [vmem:[%s6655_s10 + $0xa8] sm:$0xf] }
  0x2e   : > { %5943 = vmatpush3.bf16.msra.mxu0 %v6306_v10  ;;  %5831 = vmatpush3.bf16.msra.mxu1 %v6302_v28  ;;  %785 = vst [vmem:[#allocation2 + $0x3d0] sm:$0xf] %v677_v55  ;;  %v406_v4 = vrot.slane %v404_v57, 4  ;;  %v412_v5 = vrot.slane %v410_v58, 5  ;;  %288 = vst [vmem:[#allocation2 + $0x414] sm:$0xf] %v256_v0  ;;  %v397_v8 = vor.u32 %v396_v63, %v393_v62 }
  0x2f   : > { %5832 = vmatprep.subr.bf16.mxu1 %v6303_v31  ;;  %v334_v6 = vld [vmem:[%s6655_s10 + $0xac] sm:$0xf]  ;;  %v679_v7 = vshrl.u32 %v333_v1, 16  ;;  %5944 = vmatprep.subr.bf16.mxu0 %v6324_v60  ;;  %v335_v9 = vld [vmem:[%s6655_s10 + $0xb0] sm:$0x1]  ;;  %v682_v10 = vshll.u32 %v333_v1, 16 }
  0x30   : > { %v688_v11 = vshll.u32 %v334_v6, 16  ;;  %v692_v12 = vshrl.u32 %v334_v6, 16  ;;  %v6311_v14 = vld [vmem:[#allocation2 + $0x48] ss:$36 sps:$4 sm:$0xff]   ;;  %v407_v15 = vor.u32 %v406_v4, %v402_v3  ;;  %v398_v17 = vrot.slane %v397_v8, 4  ;;  %v6316_v21 = vld [vmem:[%s8386_s1 + $0xa0] sm:$0xff]  }
  0x31   : > { %v6307_v13 = vld [vmem:[#allocation2 + $0x4c] ss:$36 sps:$4 sm:$0xff]   ;;  %v681_v16 = vrot.slane %v679_v7, 4  ;;  %v684_v18 = vrot.slane %v682_v10, 5  ;;  %v698_v23 = vshll.u32 %v335_v9, 16  ;;  %v6325_v37 = vld [vmem:[%s8386_s1 + $0x98] sm:$0xff]  }
  0x32   : > { %5833 = vmatpush3.bf16.msra.mxu1 %v6305_v44  ;;  %v690_v19 = vrot.slane %v688_v11, 5  ;;  %v694_v20 = vrot.slane %v692_v12, 4  ;;  %4250 = vmatprep.mubr.bf16.mxu0 %v6307_v13  ;;  %v408_v22 = vrot.slane %v407_v15, 4  ;;  %v403_v24 = vsel %vm6687_vm2, %v398_v17, %v402_v3  ;;  %v6312_v29 = vld [vmem:[#allocation2 + $0x3a8] ss:$36 sps:$4 sm:$0xff]   ;;  %v6326_v34 = vld [vmem:[%s8386_s1 + $0x130] sm:$0xff]  }
  0x33   : > { %5834 = vmatprep.subr.bf16.mxu1 %v6313_v48  ;;  %v685_v25 = vor.u32 %v684_v18, %v681_v16  ;;  %762 = vst [vmem:[#allocation2 + $0x94] sm:$0xf] %v403_v24  ;;  %v700_v31 = vrot.slane %v698_v23, 5  ;;  %5945 = vmatpush3.bf16.msra.mxu0 %v6326_v34  ;;  %v6327_v38 = vld [vmem:[%s8386_s1 + $0xd0] sm:$0xff]   ;;  %v233_v40 = vld [vmem:[%s6655_s10 + $0x24] sm:$0xf] }
  0x34   : > { %v695_v26 = vor.u32 %v694_v20, %v690_v19  ;;  %v413_v30 = vsel %vm6687_vm2, %v408_v22, %v412_v5  ;;  %v234_v41 = vld [vmem:[%s6655_s10 + $0x28] sm:$0xf]  ;;  %265 = vst [vmem:[#allocation2 + $0xd8] sm:$0xf] %v233_v40  ;;  %v300_v42 = vld [vmem:[%s6655_s10 + $0x24] sm:$0xf] }
  0x35   : > { %4251 = vmatmul.mubr.bf16.gmra.mxu0 %v6311_v14  ;;  %v6309_v28 = vld [vmem:[#allocation2 + $0x3ac] ss:$36 sps:$4 sm:$0xff]   ;;  %763 = vst [vmem:[#allocation2 + $0xb8] sm:$0xf] %v413_v30  ;;  %v686_v32 = vrot.slane %v685_v25, 4  ;;  %v415_v46 = vshrl.u32 %v300_v42, 16 }
  0x36   : > { %5835 = vmatpush3.bf16.msra.mxu1 %v6314_v61  ;;  %v696_v33 = vrot.slane %v695_v26, 4  ;;  %4346 = vmatprep.mubr.bf16.mxu1 %v6309_v28  ;;  %v301_v43 = vld [vmem:[%s6655_s10 + $0x28] sm:$0xf]  ;;  %v6328_v44 = vld [vmem:[%s8386_s1 + $0x90] sm:$0xff]   ;;  %266 = vst [vmem:[#allocation2 + $0xfc] sm:$0xf] %v234_v41 }
  0x37   : > { %5836 = vmatprep.subr.bf16.mxu1 %v6315_v2  ;;  %4347 = vmatmul.mubr.bf16.gmra.mxu1 %v6312_v29  ;;  %v691_v35 = vsel %vm6687_vm2, %v686_v32, %v690_v19  ;;  %v302_v45 = vld [vmem:[%s6655_s10 + $0x2c] sm:$0x1]  ;;  %v418_v47 = vshll.u32 %v300_v42, 16  ;;  %v424_v48 = vshll.u32 %v301_v43, 16  ;;  %v428_v49 = vshrl.u32 %v301_v43, 16  ;;  %v6337_v22 = vld [vmem:[%s8386_s1 + $0xc0] sm:$0xff]  }
  0x38   : > { %v701_v36 = vsel %vm6687_vm2, %v696_v33, %v700_v31  ;;  %786 = vst [vmem:[#allocation2 + $0x3f4] sm:$0xf] %v691_v35  ;;  %v434_v50 = vshll.u32 %v302_v45, 16  ;;  %v257_v51 = vld [vmem:[%s6655_s10 + $0xb4] sm:$0xf]  ;;  %v417_v55 = vrot.slane %v415_v46, 4 }
  0x39   : > { %787 = vst [vmem:[#allocation2 + $0x418] sm:$0xf] %v701_v36  ;;  %v258_v52 = vld [vmem:[%s6655_s10 + $0xb8] sm:$0xf]  ;;  %v6321_v54 = vld [vmem:[#allocation2 + $0x90] ss:$36 sps:$4 sm:$0xff]  }
  0x3a   : > { %5837 = vmatpush3.bf16.msra.mxu1 %v6316_v21  ;;  %289 = vst [vmem:[#allocation2 + $0x438] sm:$0xf] %v257_v51  ;;  %290 = vst [vmem:[#allocation2 + $0x45c] sm:$0xf] %v258_v52  ;;  %v420_v56 = vrot.slane %v418_v47, 5  ;;  %v426_v57 = vrot.slane %v424_v48, 5 }
  0x3b   : > { %5838 = vmatprep.subr.bf16.mxu1 %v6323_v27  ;;  %v430_v58 = vrot.slane %v428_v49, 4  ;;  %v436_v59 = vrot.slane %v434_v50, 5  ;;  %v336_v60 = vld [vmem:[%s6655_s10 + $0xb4] sm:$0xf]  ;;  %v337_v61 = vld [vmem:[%s6655_s10 + $0xb8] sm:$0xf] }
  0x3c   : > { %v6317_v53 = vld [vmem:[#allocation2 + $0x94] ss:$36 sps:$4 sm:$0xff]   ;;  %v338_v62 = vld [vmem:[%s6655_s10 + $0xbc] sm:$0x1]  ;;  %v703_v63 = vshrl.u32 %v336_v60, 16  ;;  %v706_v0 = vshll.u32 %v336_v60, 16  ;;  %v421_v2 = vor.u32 %v420_v56, %v417_v55 }
  0x3d   : > { %4258 = vmatprep.mubr.bf16.mxu0 %v6317_v53  ;;  %v431_v3 = vor.u32 %v430_v58, %v426_v57  ;;  %v712_v4 = vshll.u32 %v337_v61, 16  ;;  %v716_v5 = vshrl.u32 %v337_v61, 16  ;;  %v6322_v6 = vld [vmem:[#allocation2 + $0x3f0] ss:$36 sps:$4 sm:$0xff]   ;;  %v722_v9 = vshll.u32 %v338_v62, 16  ;;  %v6335_v10 = vld [vmem:[%s8386_s1 + $0xc8] sm:$0xff]  }
  0x3e   : > { %5839 = vmatpush3.bf16.msra.mxu1 %v6325_v37  ;;  %4259 = vmatmul.mubr.bf16.gmra.mxu0 %v6321_v54  ;;  %v705_v7 = vrot.slane %v703_v63, 4  ;;  %v708_v8 = vrot.slane %v706_v0, 5  ;;  %v422_v11 = vrot.slane %v421_v2, 4  ;;  %v6336_v17 = vld [vmem:[%s8386_s1 + $0x88] sm:$0xff]   ;;  %v6339_v26 = vld [vmem:[%s8386_s1 + $0x80] sm:$0xff]  }
  0x3f   : > { %5840 = vmatprep.subr.bf16.mxu1 %v6327_v38  ;;  %v432_v12 = vrot.slane %v431_v3, 4  ;;  %v714_v13 = vrot.slane %v712_v4, 5  ;;  %v718_v14 = vrot.slane %v716_v5, 4  ;;  %v724_v16 = vrot.slane %v722_v9, 5  ;;  %v6338_v24 = vld [vmem:[%s8386_s1 + $0x168] sm:$0xff]  }
  0x40   : > { %v6319_v1 = vld [vmem:[#allocation2 + $0x3f4] ss:$36 sps:$4 sm:$0xff]   ;;  %v709_v15 = vor.u32 %v708_v8, %v705_v7  ;;  %v427_v18 = vsel %vm6687_vm2, %v422_v11, %v426_v57  ;;  %5946 = vmatprep.subr.bf16.mxu0 %v6338_v24  ;;  %v6340_v28 = vld [vmem:[%s8386_s1 + $0x128] sm:$0xff]   ;;  %v235_v29 = vld [vmem:[%s6655_s10 + $0x30] sm:$0xf] }
  0x41   : > { %4354 = vmatprep.mubr.bf16.mxu1 %v6319_v1  ;;  %v437_v19 = vsel %vm6687_vm2, %v432_v12, %v436_v59  ;;  %v719_v20 = vor.u32 %v718_v14, %v714_v13  ;;  %764 = vst [vmem:[#allocation2 + $0xdc] sm:$0xf] %v427_v18  ;;  %v236_v30 = vld [vmem:[%s6655_s10 + $0x34] sm:$0xf]  ;;  %267 = vst [vmem:[#allocation2 + $0x120] sm:$0xf] %v235_v29  ;;  %5947 = vmatpush3.bf16.msra.mxu0 %v6340_v28 }
  0x42   : > { %5841 = vmatpush3.bf16.msra.mxu1 %v6328_v44  ;;  %765 = vst [vmem:[#allocation2 + $0x100] sm:$0xf] %v437_v19  ;;  %v710_v21 = vrot.slane %v709_v15, 4  ;;  %268 = vst [vmem:[#allocation2 + $0x144] sm:$0xf] %v236_v30  ;;  %v6347_v57 = vld [vmem:[%s8386_s1 + $0x1f8] sm:$0xff]  }
  0x43   : > { %4355 = vmatmul.mubr.bf16.gmra.mxu1 %v6322_v6  ;;  %5842 = vmatprep.subr.bf16.mxu1 %v6335_v10  ;;  %v720_v23 = vrot.slane %v719_v20, 4  ;;  %v303_v31 = vld [vmem:[%s6655_s10 + $0x30] sm:$0xf]  ;;  %v304_v32 = vld [vmem:[%s6655_s10 + $0x34] sm:$0xf]  ;;  %v6355_v15 = vld [vmem:[%s8386_s1 + $0x160] sm:$0xff]  }
  0x44   : > { %v715_v25 = vsel %vm6687_vm2, %v710_v21, %v714_v13  ;;  %v305_v33 = vld [vmem:[%s6655_s10 + $0x38] sm:$0x1]  ;;  %v439_v34 = vshrl.u32 %v303_v31, 16  ;;  %v442_v35 = vshll.u32 %v303_v31, 16  ;;  %v448_v36 = vshll.u32 %v304_v32, 16  ;;  %5948 = vmatprep.subr.bf16.mxu0 %v6355_v15  ;;  %v6356_v30 = vld [vmem:[%s8386_s1 + $0x120] sm:$0xff]  }
  0x45   : > { %v725_v27 = vsel %vm6687_vm2, %v720_v23, %v724_v16  ;;  %788 = vst [vmem:[#allocation2 + $0x43c] sm:$0xf] %v715_v25  ;;  %v452_v37 = vshrl.u32 %v304_v32, 16  ;;  %v790_v38 = vld [vmem:[%s6655_s10] sm:$0xe]  ;;  %v458_v40 = vshll.u32 %v305_v33, 16  ;;  %5949 = vmatpush3.bf16.msra.mxu0 %v6356_v30 }
  0x46   : > { %5843 = vmatpush3.bf16.msra.mxu1 %v6336_v17  ;;  %789 = vst [vmem:[#allocation2 + $0x460] sm:$0xf] %v725_v27  ;;  %v791_v41 = vld [vmem:[%s6655_s10 + $0x4] sm:$0xf]  ;;  %v792_v42 = vld [vmem:[%s6655_s10 + $0x8] sm:$0x1] }
  0x47   : > { %5844 = vmatprep.subr.bf16.mxu1 %v6337_v22  ;;  %v5194_v44 = vrot.slane %v790_v38, 9  ;;  %v441_v46 = vrot.slane %v439_v34, 4  ;;  %v444_v47 = vrot.slane %v442_v35, 5  ;;  %v6333_v48 = vld [vmem:[#allocation2 + $0xd8] ss:$36 sps:$4 sm:$0xff]   ;;  %v450_v49 = vrot.slane %v448_v36, 5 }
  0x48   : > { %v454_v50 = vrot.slane %v452_v37, 4  ;;  %v460_v51 = vrot.slane %v458_v40, 5  ;;  %v891_v52 = vrot.slane %v791_v41, 5  ;;  %v894_v54 = vrot.slane %v792_v42, 5  ;;  %v5210_v55 = vld [vmem:[%s6655_s10 + $0xc] sm:$0xf] }
  0x49   : > { %v6329_v45 = vld [vmem:[#allocation2 + $0xdc] ss:$36 sps:$4 sm:$0xff]   ;;  %v445_v53 = vor.u32 %v444_v47, %v441_v46  ;;  %v5211_v56 = vld [vmem:[%s6655_s10 + $0x10] sm:$0xf]  ;;  %1098 = vst [vmem:[#allocation2 + $0xc] sm:$0xf] %v5210_v55 }
  0x4a   : > { %5845 = vmatpush3.bf16.msra.mxu1 %v6339_v26  ;;  %4266 = vmatprep.mubr.bf16.mxu0 %v6329_v45  ;;  %v455_v58 = vor.u32 %v454_v50, %v450_v49  ;;  %v892_v59 = vsel %vm6832_vm5, %v5194_v44, %v891_v52  ;;  %v893_v60 = vrot.slane %v891_v52, 4  ;;  %1099 = vst [vmem:[#allocation2 + $0x30] sm:$0xf] %v5211_v56  ;;  %v6334_v62 = vld [vmem:[#allocation2 + $0x438] ss:$36 sps:$4 sm:$0xff]   ;;  %v6363_v38 = vld [vmem:[%s8386_s1 + $0x1f0] sm:$0xff]  }
  0x4b   : > { %4267 = vmatmul.mubr.bf16.gmra.mxu0 %v6333_v48  ;;  %v446_v63 = vrot.slane %v445_v53, 4  ;;  %1033 = vst [vmem:[#allocation2 + $0x8] sm:$0xf] %v892_v59  ;;  %6054 = vmatprep.subr.bf16.mxu1 %v6347_v57  ;;  %v237_v3 = vld [vmem:[%s6655_s10 + $0x3c] sm:$0xf]  ;;  %v6364_v57 = vld [vmem:[%s8386_s1 + $0x1b0] sm:$0xff]  }
  0x4c   : > { %v456_v0 = vrot.slane %v455_v58, 4  ;;  %v895_v1 = vsel %vm6832_vm5, %v893_v60, %v894_v54  ;;  %v238_v4 = vld [vmem:[%s6655_s10 + $0x40] sm:$0xf]  ;;  %v306_v5 = vld [vmem:[%s6655_s10 + $0x3c] sm:$0xf] }
  0x4d   : > { %v6331_v61 = vld [vmem:[#allocation2 + $0x43c] ss:$36 sps:$4 sm:$0xff]   ;;  %v451_v2 = vsel %vm6687_vm2, %v446_v63, %v450_v49  ;;  %1034 = vst [vmem:[#allocation2 + $0x2c] sm:$0xf] %v895_v1  ;;  %269 = vst [vmem:[#allocation2 + $0x168] sm:$0xf] %v237_v3 }
  0x4e   : > { %4362 = vmatprep.mubr.bf16.mxu1 %v6331_v61  ;;  %v461_v6 = vsel %vm6687_vm2, %v456_v0, %v460_v51  ;;  %766 = vst [vmem:[#allocation2 + $0x124] sm:$0xf] %v451_v2  ;;  %270 = vst [vmem:[#allocation2 + $0x18c] sm:$0xf] %v238_v4  ;;  %v307_v7 = vld [vmem:[%s6655_s10 + $0x40] sm:$0xf] }
  0x4f   : > { %4363 = vmatmul.mubr.bf16.gmra.mxu1 %v6334_v62  ;;  %v308_v8 = vld [vmem:[%s6655_s10 + $0x44] sm:$0x1]  ;;  %v463_v9 = vshrl.u32 %v306_v5, 16  ;;  %v466_v10 = vshll.u32 %v306_v5, 16  ;;  %767 = vst [vmem:[#allocation2 + $0x148] sm:$0xf] %v461_v6 }
  0x50   : > { %v472_v11 = vshll.u32 %v307_v7, 16  ;;  %v476_v12 = vshrl.u32 %v307_v7, 16  ;;  %v482_v13 = vshll.u32 %v308_v8, 16  ;;  %v793_v14 = vld [vmem:[%s6655_s10 + $0xc] sm:$0xe]  ;;  %v6348_v25 = vld [vmem:[%s8386_s1 + $0x1b8] sm:$0xff]  }
  0x51   : > { %v465_v16 = vrot.slane %v463_v9, 4  ;;  %v468_v17 = vrot.slane %v466_v10, 5  ;;  %v794_v18 = vld [vmem:[%s6655_s10 + $0x10] sm:$0xf]  ;;  %v795_v19 = vld [vmem:[%s6655_s10 + $0x14] sm:$0x1] }
  0x52   : > { %v474_v20 = vrot.slane %v472_v11, 5  ;;  %v478_v21 = vrot.slane %v476_v12, 4  ;;  %v484_v22 = vrot.slane %v482_v13, 5  ;;  %v5195_v23 = vrot.slane %v793_v14, 9  ;;  %v5212_v24 = vld [vmem:[%s6655_s10 + $0x18] sm:$0xf] }
  0x53   : > { %v469_v26 = vor.u32 %v468_v17, %v465_v16  ;;  %v898_v27 = vrot.slane %v794_v18, 5  ;;  %v901_v28 = vrot.slane %v795_v19, 5  ;;  %v5213_v29 = vld [vmem:[%s6655_s10 + $0x1c] sm:$0xf]  ;;  %1100 = vst [vmem:[#allocation2 + $0x54] sm:$0xf] %v5212_v24 }
  0x54   : > { %v479_v31 = vor.u32 %v478_v21, %v474_v20  ;;  %1101 = vst [vmem:[#allocation2 + $0x78] sm:$0xf] %v5213_v29  ;;  %v6343_v32 = vld [vmem:[#allocation2 + $0x8] ss:$36 sps:$4 sm:$0xff]   ;;  %v6346_v41 = vld [vmem:[#allocation2 + $0x120] ss:$36 sps:$4 sm:$0xff]  }
  0x55   : > { %v6345_v33 = vld [vmem:[#allocation2 + $0xc] ss:$36 sps:$4 sm:$0xff]   ;;  %v470_v34 = vrot.slane %v469_v26, 4  ;;  %v899_v35 = vsel %vm6832_vm5, %v5195_v23, %v898_v27  ;;  %v900_v37 = vrot.slane %v898_v27, 4  ;;  %v239_v46 = vld [vmem:[%s6655_s10 + $0x48] sm:$0xf] }
  0x56   : > { %v480_v36 = vrot.slane %v479_v31, 4  ;;  %1035 = vst [vmem:[#allocation2 + $0x50] sm:$0xf] %v899_v35  ;;  %v6341_v40 = vld [vmem:[#allocation2 + $0x124] ss:$36 sps:$4 sm:$0xff]   ;;  %4403 = vmatprep.mubr.bf16.mxu1 %v6345_v33  ;;  %v6365_v7 = vld [vmem:[%s8386_s1 + $0x158] sm:$0xff]  }
  0x57   : > { %v475_v42 = vsel %vm6687_vm2, %v470_v34, %v474_v20  ;;  %4404 = vmatmul.mubr.bf16.vlgmr.msra.gmra.mxu1 %v6343_v32  ;;  %v902_v45 = vsel %vm6832_vm5, %v900_v37, %v901_v28  ;;  %v240_v47 = vld [vmem:[%s6655_s10 + $0x4c] sm:$0xf]  ;;  %v309_v48 = vld [vmem:[%s6655_s10 + $0x48] sm:$0xf]  ;;  %4274 = vmatprep.mubr.bf16.mxu0 %v6341_v40  ;;  %271 = vst [vmem:[#allocation2 + $0x1b0] sm:$0xf] %v239_v46 }
  0x58   : > { %v485_v44 = vsel %vm6687_vm2, %v480_v36, %v484_v22  ;;  %768 = vst [vmem:[#allocation2 + $0x16c] sm:$0xf] %v475_v42  ;;  %6055 = vmatpush3.bf16.msra.mxu1 %v6348_v25  ;;  %1036 = vst [vmem:[#allocation2 + $0x74] sm:$0xf] %v902_v45  ;;  %v310_v49 = vld [vmem:[%s6655_s10 + $0x4c] sm:$0xf]  ;;  %4275 = vmatmul.mubr.bf16.gmra.mxu0 %v6346_v41 }
  0x59   : > { %769 = vst [vmem:[#allocation2 + $0x190] sm:$0xf] %v485_v44  ;;  %272 = vst [vmem:[#allocation2 + $0x1d4] sm:$0xf] %v240_v47  ;;  %v311_v50 = vld [vmem:[%s6655_s10 + $0x50] sm:$0x1]  ;;  %6056 = vmatprep.subr.bf16.mxu1 %v6363_v38  ;;  %5950 = vmatprep.subr.bf16.mxu0 %v6365_v7 }
  0x5a   : > { %v487_v51 = vshrl.u32 %v309_v48, 16  ;;  %v490_v52 = vshll.u32 %v309_v48, 16  ;;  %v496_v53 = vshll.u32 %v310_v49, 16  ;;  %v500_v54 = vshrl.u32 %v310_v49, 16  ;;  %v796_v56 = vld [vmem:[%s6655_s10 + $0x18] sm:$0xe] }
  0x5b   : > { %v506_v55 = vshll.u32 %v311_v50, 16  ;;  %v797_v60 = vld [vmem:[%s6655_s10 + $0x1c] sm:$0xf]  ;;  %v798_v61 = vld [vmem:[%s6655_s10 + $0x20] sm:$0x1]  ;;  %v5196_v1 = vrot.slane %v796_v56, 9 }
  0x5c   : > { %v489_v58 = vrot.slane %v487_v51, 4  ;;  %v492_v59 = vrot.slane %v490_v52, 5  ;;  %v498_v62 = vrot.slane %v496_v53, 5  ;;  %v502_v63 = vrot.slane %v500_v54, 4  ;;  %v5214_v2 = vld [vmem:[%s6655_s10 + $0x24] sm:$0xf]  ;;  %6057 = vmatpush3.bf16.msra.mxu1 %v6364_v57 }
  0x5d   : > { %v508_v0 = vrot.slane %v506_v55, 5  ;;  %v905_v4 = vrot.slane %v797_v60, 5  ;;  %v908_v5 = vrot.slane %v798_v61, 5  ;;  %v5215_v6 = vld [vmem:[%s6655_s10 + $0x28] sm:$0xf]  ;;  %v6366_v12 = vld [vmem:[%s8386_s1 + $0x118] sm:$0xff]  }
  0x5e   : > { %v493_v3 = vor.u32 %v492_v59, %v489_v58  ;;  %1102 = vst [vmem:[#allocation2 + $0x9c] sm:$0xf] %v5214_v2  ;;  %v503_v8 = vor.u32 %v502_v63, %v498_v62  ;;  %1103 = vst [vmem:[#allocation2 + $0xc0] sm:$0xf] %v5215_v6  ;;  %v6351_v15 = vld [vmem:[#allocation2 + $0x54] ss:$36 sps:$4 sm:$0xff]   ;;  %5951 = vmatpush3.bf16.msra.mxu0 %v6366_v12 }
  0x5f   : > { %v906_v10 = vsel %vm6832_vm5, %v5196_v1, %v905_v4  ;;  %v907_v11 = vrot.slane %v905_v4, 4  ;;  %v6353_v16 = vld [vmem:[#allocation2 + $0x168] ss:$36 sps:$4 sm:$0xff]   ;;  %v6354_v17 = vld [vmem:[#allocation2 + $0x50] ss:$36 sps:$4 sm:$0xff]   ;;  %4411 = vmatprep.mubr.bf16.mxu1 %v6351_v15 }
  0x60   : > { %v494_v9 = vrot.slane %v493_v3, 4  ;;  %v6349_v13 = vld [vmem:[#allocation2 + $0x16c] ss:$36 sps:$4 sm:$0xff]   ;;  %v504_v14 = vrot.slane %v503_v8, 4  ;;  %1037 = vst [vmem:[#allocation2 + $0x98] sm:$0xf] %v906_v10  ;;  %4412 = vmatmul.mubr.bf16.gmra.mxu1 %v6354_v17 }
  0x61   : > { %v909_v19 = vsel %vm6832_vm5, %v907_v11, %v908_v5  ;;  %4282 = vmatprep.mubr.bf16.mxu0 %v6349_v13  ;;  %v241_v21 = vld [vmem:[%s6655_s10 + $0x54] sm:$0xf]  ;;  %v242_v22 = vld [vmem:[%s6655_s10 + $0x58] sm:$0xf]  ;;  %v314_v25 = vld [vmem:[%s6655_s10 + $0x5c] sm:$0x1] }
  0x62   : > { %v499_v18 = vsel %vm6687_vm2, %v494_v9, %v498_v62  ;;  %v509_v20 = vsel %vm6687_vm2, %v504_v14, %v508_v0  ;;  %1038 = vst [vmem:[#allocation2 + $0xbc] sm:$0xf] %v909_v19  ;;  %4283 = vmatmul.mubr.bf16.gmra.mxu0 %v6353_v16  ;;  %273 = vst [vmem:[#allocation2 + $0x1f8] sm:$0xf] %v241_v21  ;;  %v312_v23 = vld [vmem:[%s6655_s10 + $0x54] sm:$0xf] }
  0x63   : > { %770 = vst [vmem:[#allocation2 + $0x1b4] sm:$0xf] %v499_v18  ;;  %771 = vst [vmem:[#allocation2 + $0x1d8] sm:$0xf] %v509_v20  ;;  %v313_v24 = vld [vmem:[%s6655_s10 + $0x58] sm:$0xf] }
  0x64   : > { %274 = vst [vmem:[#allocation2 + $0x21c] sm:$0xf] %v242_v22  ;;  %v511_v26 = vshrl.u32 %v312_v23, 16  ;;  %v514_v27 = vshll.u32 %v312_v23, 16  ;;  %v520_v28 = vshll.u32 %v313_v24, 16  ;;  %v524_v29 = vshrl.u32 %v313_v24, 16 }
  0x65   : > { %v799_v30 = vld [vmem:[%s6655_s10 + $0x24] sm:$0xe]  ;;  %v530_v31 = vshll.u32 %v314_v25, 16  ;;  %v800_v32 = vld [vmem:[%s6655_s10 + $0x28] sm:$0xf]  ;;  %v6379_v40 = vld [vmem:[%s8386_s1 + $0x150] sm:$0xff]  }
  0x66   : > { %v801_v33 = vld [vmem:[%s6655_s10 + $0x2c] sm:$0x1]  ;;  %v5197_v34 = vrot.slane %v799_v30, 9  ;;  %v513_v35 = vrot.slane %v511_v26, 4  ;;  %v516_v36 = vrot.slane %v514_v27, 5  ;;  %v522_v37 = vrot.slane %v520_v28, 5  ;;  %5952 = vmatprep.subr.bf16.mxu0 %v6379_v40 }
  0x67   : > { %v526_v38 = vrot.slane %v524_v29, 4  ;;  %v912_v41 = vrot.slane %v800_v32, 5  ;;  %v915_v42 = vrot.slane %v801_v33, 5  ;;  %v5216_v44 = vld [vmem:[%s6655_s10 + $0x30] sm:$0xf]  ;;  %v6380_v45 = vld [vmem:[%s8386_s1 + $0x1e8] sm:$0xff]  }
  0x68   : > { %v6359_v46 = vld [vmem:[#allocation2 + $0x9c] ss:$36 sps:$4 sm:$0xff]   ;;  %v517_v47 = vor.u32 %v516_v36, %v513_v35  ;;  %v532_v49 = vrot.slane %v530_v31, 5  ;;  %1104 = vst [vmem:[#allocation2 + $0xe4] sm:$0xf] %v5216_v44  ;;  %6058 = vmatprep.subr.bf16.mxu1 %v6380_v45  ;;  %v6381_v8 = vld [vmem:[%s8386_s1 + $0x110] sm:$0xff]  }
  0x69   : > { %v527_v48 = vor.u32 %v526_v38, %v522_v37  ;;  %v6361_v51 = vld [vmem:[#allocation2 + $0x1b0] ss:$36 sps:$4 sm:$0xff]   ;;  %v913_v52 = vsel %vm6832_vm5, %v5197_v34, %v912_v41  ;;  %v914_v53 = vrot.slane %v912_v41, 4  ;;  %4419 = vmatprep.mubr.bf16.mxu1 %v6359_v46  ;;  %v6362_v54 = vld [vmem:[#allocation2 + $0x98] ss:$36 sps:$4 sm:$0xff]   ;;  %5953 = vmatpush3.bf16.msra.mxu0 %v6381_v8  ;;  %v6382_v34 = vld [vmem:[%s8386_s1 + $0x1a8] sm:$0xff]  }
  0x6a   : > { %v6357_v50 = vld [vmem:[#allocation2 + $0x1b4] ss:$36 sps:$4 sm:$0xff]   ;;  %v518_v55 = vrot.slane %v517_v47, 4  ;;  %1039 = vst [vmem:[#allocation2 + $0xe0] sm:$0xf] %v913_v52  ;;  %4420 = vmatmul.mubr.bf16.gmra.mxu1 %v6362_v54  ;;  %v6390_v54 = vld [vmem:[%s8386_s1 + $0x108] sm:$0xff]  }
  0x6b   : > { %v528_v56 = vrot.slane %v527_v48, 4  ;;  %v5217_v57 = vld [vmem:[%s6655_s10 + $0x34] sm:$0xf]  ;;  %4290 = vmatprep.mubr.bf16.mxu0 %v6357_v50  ;;  %v916_v58 = vsel %vm6832_vm5, %v914_v53, %v915_v42  ;;  %v243_v59 = vld [vmem:[%s6655_s10 + $0x60] sm:$0xf]  ;;  %6059 = vmatpush3.bf16.msra.mxu1 %v6382_v34 }
  0x6c   : > { %1105 = vst [vmem:[#allocation2 + $0x108] sm:$0xf] %v5217_v57  ;;  %v244_v60 = vld [vmem:[%s6655_s10 + $0x64] sm:$0xf]  ;;  %v315_v61 = vld [vmem:[%s6655_s10 + $0x60] sm:$0xf]  ;;  %4291 = vmatmul.mubr.bf16.gmra.mxu0 %v6361_v51  ;;  %v523_v62 = vsel %vm6687_vm2, %v518_v55, %v522_v37 }
  0x6d   : > { %v533_v63 = vsel %vm6687_vm2, %v528_v56, %v532_v49  ;;  %1040 = vst [vmem:[#allocation2 + $0x104] sm:$0xf] %v916_v58  ;;  %275 = vst [vmem:[#allocation2 + $0x240] sm:$0xf] %v243_v59  ;;  %v316_v0 = vld [vmem:[%s6655_s10 + $0x64] sm:$0xf] }
  0x6e   : > { %276 = vst [vmem:[#allocation2 + $0x264] sm:$0xf] %v244_v60  ;;  %v317_v1 = vld [vmem:[%s6655_s10 + $0x68] sm:$0x1]  ;;  %v535_v2 = vshrl.u32 %v315_v61, 16  ;;  %v538_v3 = vshll.u32 %v315_v61, 16 }
  0x6f   : > { %772 = vst [vmem:[#allocation2 + $0x1fc] sm:$0xf] %v523_v62  ;;  %773 = vst [vmem:[#allocation2 + $0x220] sm:$0xf] %v533_v63  ;;  %v544_v4 = vshll.u32 %v316_v0, 16  ;;  %v548_v5 = vshrl.u32 %v316_v0, 16 }
  0x70   : > { %v554_v6 = vshll.u32 %v317_v1, 16  ;;  %v802_v7 = vld [vmem:[%s6655_s10 + $0x30] sm:$0xe]  ;;  %v537_v9 = vrot.slane %v535_v2, 4  ;;  %v540_v10 = vrot.slane %v538_v3, 5  ;;  %v6389_v49 = vld [vmem:[%s8386_s1 + $0x148] sm:$0xff]  }
  0x71   : > { %v803_v11 = vld [vmem:[%s6655_s10 + $0x34] sm:$0xf]  ;;  %v804_v12 = vld [vmem:[%s6655_s10 + $0x38] sm:$0x1]  ;;  %v546_v13 = vrot.slane %v544_v4, 5  ;;  %v550_v14 = vrot.slane %v548_v5, 4  ;;  %5954 = vmatprep.subr.bf16.mxu0 %v6389_v49 }
  0x72   : > { %v5198_v15 = vrot.slane %v802_v7, 9  ;;  %v5218_v16 = vld [vmem:[%s6655_s10 + $0x3c] sm:$0xf]  ;;  %v541_v17 = vor.u32 %v540_v10, %v537_v9  ;;  %v919_v18 = vrot.slane %v803_v11, 5  ;;  %v922_v19 = vrot.slane %v804_v12, 5  ;;  %v6397_v58 = vld [vmem:[%s8386_s1 + $0x1e0] sm:$0xff]   ;;  %5955 = vmatpush3.bf16.msra.mxu0 %v6390_v54 }
  0x73   : > { %v5219_v20 = vld [vmem:[%s6655_s10 + $0x40] sm:$0xf]  ;;  %1106 = vst [vmem:[#allocation2 + $0x12c] sm:$0xf] %v5218_v16  ;;  %v551_v21 = vor.u32 %v550_v14, %v546_v13  ;;  %v556_v22 = vrot.slane %v554_v6, 5  ;;  %6060 = vmatprep.subr.bf16.mxu1 %v6397_v58 }
  0x74   : > { %1107 = vst [vmem:[#allocation2 + $0x150] sm:$0xf] %v5219_v20  ;;  %v542_v23 = vrot.slane %v541_v17, 4  ;;  %v920_v24 = vsel %vm6832_vm5, %v5198_v15, %v919_v18  ;;  %v921_v25 = vrot.slane %v919_v18, 4  ;;  %v6369_v26 = vld [vmem:[#allocation2 + $0xe4] ss:$36 sps:$4 sm:$0xff]  }
  0x75   : > { %v6372_v27 = vld [vmem:[#allocation2 + $0xe0] ss:$36 sps:$4 sm:$0xff]   ;;  %v552_v28 = vrot.slane %v551_v21, 4  ;;  %1041 = vst [vmem:[#allocation2 + $0x128] sm:$0xf] %v920_v24  ;;  %4427 = vmatprep.mubr.bf16.mxu1 %v6369_v26 }
  0x76   : > { %v6367_v29 = vld [vmem:[#allocation2 + $0x1fc] ss:$36 sps:$4 sm:$0xff]   ;;  %v547_v30 = vsel %vm6687_vm2, %v542_v23, %v546_v13  ;;  %v923_v31 = vsel %vm6832_vm5, %v921_v25, %v922_v19  ;;  %4428 = vmatmul.mubr.bf16.gmra.mxu1 %v6372_v27  ;;  %v245_v35 = vld [vmem:[%s6655_s10 + $0x6c] sm:$0xf]  ;;  %v246_v36 = vld [vmem:[%s6655_s10 + $0x70] sm:$0xf] }
  0x77   : > { %v6371_v32 = vld [vmem:[#allocation2 + $0x1f8] ss:$36 sps:$4 sm:$0xff]   ;;  %v557_v33 = vsel %vm6687_vm2, %v552_v28, %v556_v22  ;;  %774 = vst [vmem:[#allocation2 + $0x244] sm:$0xf] %v547_v30  ;;  %1042 = vst [vmem:[#allocation2 + $0x14c] sm:$0xf] %v923_v31  ;;  %4298 = vmatprep.mubr.bf16.mxu0 %v6367_v29 }
  0x78   : > { %775 = vst [vmem:[#allocation2 + $0x268] sm:$0xf] %v557_v33  ;;  %4299 = vmatmul.mubr.bf16.gmra.mxu0 %v6371_v32  ;;  %277 = vst [vmem:[#allocation2 + $0x288] sm:$0xf] %v245_v35  ;;  %v318_v37 = vld [vmem:[%s6655_s10 + $0x6c] sm:$0xf] }
  0x79   : > { %v319_v38 = vld [vmem:[%s6655_s10 + $0x70] sm:$0xf]  ;;  %278 = vst [vmem:[#allocation2 + $0x2ac] sm:$0xf] %v246_v36  ;;  %v320_v40 = vld [vmem:[%s6655_s10 + $0x74] sm:$0x1] }
  0x7a   : > { %v559_v41 = vshrl.u32 %v318_v37, 16  ;;  %v562_v42 = vshll.u32 %v318_v37, 16  ;;  %v568_v44 = vshll.u32 %v319_v38, 16  ;;  %v572_v45 = vshrl.u32 %v319_v38, 16  ;;  %v805_v47 = vld [vmem:[%s6655_s10 + $0x3c] sm:$0xe] }
  0x7b   : > { %v578_v46 = vshll.u32 %v320_v40, 16  ;;  %v806_v48 = vld [vmem:[%s6655_s10 + $0x40] sm:$0xf]  ;;  %v807_v55 = vld [vmem:[%s6655_s10 + $0x44] sm:$0x1]  ;;  %v5199_v56 = vrot.slane %v805_v47, 9 }
  0x7c   : > { %v561_v50 = vrot.slane %v559_v41, 4  ;;  %v564_v51 = vrot.slane %v562_v42, 5  ;;  %v570_v52 = vrot.slane %v568_v44, 5  ;;  %v574_v53 = vrot.slane %v572_v45, 4  ;;  %v6375_v59 = vld [vmem:[#allocation2 + $0x12c] ss:$36 sps:$4 sm:$0xff]  }
  0x7d   : > { %v926_v57 = vrot.slane %v806_v48, 5  ;;  %v580_v62 = vrot.slane %v578_v46, 5  ;;  %v929_v63 = vrot.slane %v807_v55, 5  ;;  %v6377_v1 = vld [vmem:[#allocation2 + $0x240] ss:$36 sps:$4 sm:$0xff]   ;;  %4435 = vmatprep.mubr.bf16.mxu1 %v6375_v59 }
  0x7e   : > { %v565_v60 = vor.u32 %v564_v51, %v561_v50  ;;  %v575_v61 = vor.u32 %v574_v53, %v570_v52  ;;  %v6378_v4 = vld [vmem:[#allocation2 + $0x128] ss:$36 sps:$4 sm:$0xff]   ;;  %v247_v12 = vld [vmem:[%s6655_s10 + $0x78] sm:$0xf]  ;;  %v248_v13 = vld [vmem:[%s6655_s10 + $0x7c] sm:$0xf] }
  0x7f   : > { %v6373_v0 = vld [vmem:[#allocation2 + $0x244] ss:$36 sps:$4 sm:$0xff]   ;;  %v927_v2 = vsel %vm6832_vm5, %v5199_v56, %v926_v57  ;;  %v928_v3 = vrot.slane %v926_v57, 4  ;;  %v5221_v9 = vld [vmem:[%s6655_s10 + $0x4c] sm:$0xf]  ;;  %4436 = vmatmul.mubr.bf16.gmra.mxu1 %v6378_v4 }
  0x80   : > { %v566_v5 = vrot.slane %v565_v60, 4  ;;  %v576_v6 = vrot.slane %v575_v61, 4  ;;  %1043 = vst [vmem:[#allocation2 + $0x170] sm:$0xf] %v927_v2  ;;  %v5220_v7 = vld [vmem:[%s6655_s10 + $0x48] sm:$0xf]  ;;  %4306 = vmatprep.mubr.bf16.mxu0 %v6373_v0 }
  0x81   : > { %v930_v8 = vsel %vm6832_vm5, %v928_v3, %v929_v63  ;;  %1108 = vst [vmem:[#allocation2 + $0x174] sm:$0xf] %v5220_v7  ;;  %4307 = vmatmul.mubr.bf16.gmra.mxu0 %v6377_v1  ;;  %1109 = vst [vmem:[#allocation2 + $0x198] sm:$0xf] %v5221_v9  ;;  %v321_v14 = vld [vmem:[%s6655_s10 + $0x78] sm:$0xf] }
  0x82   : > { %v571_v10 = vsel %vm6687_vm2, %v566_v5, %v570_v52  ;;  %v581_v11 = vsel %vm6687_vm2, %v576_v6, %v580_v62  ;;  %1044 = vst [vmem:[#allocation2 + $0x194] sm:$0xf] %v930_v8  ;;  %279 = vst [vmem:[#allocation2 + $0x2d0] sm:$0xf] %v247_v12  ;;  %v322_v15 = vld [vmem:[%s6655_s10 + $0x7c] sm:$0xf] }
  0x83   : > { %776 = vst [vmem:[#allocation2 + $0x28c] sm:$0xf] %v571_v10  ;;  %777 = vst [vmem:[#allocation2 + $0x2b0] sm:$0xf] %v581_v11  ;;  %v323_v16 = vld [vmem:[%s6655_s10 + $0x80] sm:$0x1] }
  0x84   : > { %280 = vst [vmem:[#allocation2 + $0x2f4] sm:$0xf] %v248_v13  ;;  %v583_v17 = vshrl.u32 %v321_v14, 16  ;;  %v586_v18 = vshll.u32 %v321_v14, 16  ;;  %v592_v19 = vshll.u32 %v322_v15, 16  ;;  %v596_v20 = vshrl.u32 %v322_v15, 16 }
  0x85   : > { %v602_v21 = vshll.u32 %v323_v16, 16  ;;  %v808_v22 = vld [vmem:[%s6655_s10 + $0x48] sm:$0xe]  ;;  %v809_v23 = vld [vmem:[%s6655_s10 + $0x4c] sm:$0xf]  ;;  %v6398_v24 = vld [vmem:[%s8386_s1 + $0x1a0] sm:$0xff]  }
  0x86   : > { %v585_v25 = vrot.slane %v583_v17, 4  ;;  %v588_v26 = vrot.slane %v586_v18, 5  ;;  %v594_v27 = vrot.slane %v592_v19, 5  ;;  %v598_v28 = vrot.slane %v596_v20, 4  ;;  %v810_v29 = vld [vmem:[%s6655_s10 + $0x50] sm:$0x1]  ;;  %6061 = vmatpush3.bf16.msra.mxu1 %v6398_v24 }
  0x87   : > { %v5200_v30 = vrot.slane %v808_v22, 9  ;;  %v933_v31 = vrot.slane %v809_v23, 5  ;;  %v936_v32 = vrot.slane %v810_v29, 5  ;;  %v5222_v33 = vld [vmem:[%s6655_s10 + $0x54] sm:$0xf]  ;;  %v604_v36 = vrot.slane %v602_v21, 5 }
  0x88   : > { %v589_v34 = vor.u32 %v588_v26, %v585_v25  ;;  %v599_v35 = vor.u32 %v598_v28, %v594_v27  ;;  %v5223_v37 = vld [vmem:[%s6655_s10 + $0x58] sm:$0xf]  ;;  %1110 = vst [vmem:[#allocation2 + $0x1bc] sm:$0xf] %v5222_v33  ;;  %v6387_v47 = vld [vmem:[#allocation2 + $0x288] ss:$36 sps:$4 sm:$0xff]  }
  0x89   : > { %v6385_v38 = vld [vmem:[#allocation2 + $0x174] ss:$36 sps:$4 sm:$0xff]   ;;  %v934_v41 = vsel %vm6832_vm5, %v5200_v30, %v933_v31  ;;  %v935_v42 = vrot.slane %v933_v31, 4  ;;  %1111 = vst [vmem:[#allocation2 + $0x1e0] sm:$0xf] %v5223_v37  ;;  %v6405_v12 = vld [vmem:[%s8386_s1 + $0x140] sm:$0xff]  }
  0x8a   : > { %v6388_v40 = vld [vmem:[#allocation2 + $0x170] ss:$36 sps:$4 sm:$0xff]   ;;  %v590_v45 = vrot.slane %v589_v34, 4  ;;  %v600_v46 = vrot.slane %v599_v35, 4  ;;  %1045 = vst [vmem:[#allocation2 + $0x1b8] sm:$0xf] %v934_v41  ;;  %4443 = vmatprep.mubr.bf16.mxu1 %v6385_v38  ;;  %5956 = vmatprep.subr.bf16.mxu0 %v6405_v12 }
  0x8b   : > { %v6383_v44 = vld [vmem:[#allocation2 + $0x28c] ss:$36 sps:$4 sm:$0xff]   ;;  %v937_v48 = vsel %vm6832_vm5, %v935_v42, %v936_v32  ;;  %4444 = vmatmul.mubr.bf16.gmra.mxu1 %v6388_v40  ;;  %v249_v51 = vld [vmem:[%s6655_s10 + $0x84] sm:$0xf]  ;;  %v250_v52 = vld [vmem:[%s6655_s10 + $0x88] sm:$0xf] }
  0x8c   : > { %4314 = vmatprep.mubr.bf16.mxu0 %v6383_v44  ;;  %v595_v49 = vsel %vm6687_vm2, %v590_v45, %v594_v27  ;;  %v605_v50 = vsel %vm6687_vm2, %v600_v46, %v604_v36  ;;  %1046 = vst [vmem:[#allocation2 + $0x1dc] sm:$0xf] %v937_v48  ;;  %281 = vst [vmem:[#allocation2 + $0x318] sm:$0xf] %v249_v51  ;;  %v324_v53 = vld [vmem:[%s6655_s10 + $0x84] sm:$0xf] }
  0x8d   : > { %4315 = vmatmul.mubr.bf16.gmra.mxu0 %v6387_v47  ;;  %778 = vst [vmem:[#allocation2 + $0x2d4] sm:$0xf] %v595_v49  ;;  %779 = vst [vmem:[#allocation2 + $0x2f8] sm:$0xf] %v605_v50  ;;  %v325_v54 = vld [vmem:[%s6655_s10 + $0x88] sm:$0xf] }
  0x8e   : > { %282 = vst [vmem:[#allocation2 + $0x33c] sm:$0xf] %v250_v52  ;;  %v326_v55 = vld [vmem:[%s6655_s10 + $0x8c] sm:$0x1]  ;;  %v607_v56 = vshrl.u32 %v324_v53, 16  ;;  %v610_v57 = vshll.u32 %v324_v53, 16 }
  0x8f   : > { %v616_v58 = vshll.u32 %v325_v54, 16  ;;  %v620_v59 = vshrl.u32 %v325_v54, 16  ;;  %v811_v60 = vld [vmem:[%s6655_s10 + $0x54] sm:$0xe]  ;;  %v626_v61 = vshll.u32 %v326_v55, 16  ;;  %v6406_v24 = vld [vmem:[%s8386_s1 + $0x100] sm:$0xff]  }
  0x90   : > { %v812_v62 = vld [vmem:[%s6655_s10 + $0x58] sm:$0xf]  ;;  %v813_v63 = vld [vmem:[%s6655_s10 + $0x5c] sm:$0x1]  ;;  %v5201_v0 = vrot.slane %v811_v60, 9  ;;  %v609_v1 = vrot.slane %v607_v56, 4  ;;  %5957 = vmatpush3.bf16.msra.mxu0 %v6406_v24 }
  0x91   : > { %v612_v2 = vrot.slane %v610_v57, 5  ;;  %v618_v3 = vrot.slane %v616_v58, 5  ;;  %v622_v4 = vrot.slane %v620_v59, 4  ;;  %v5224_v5 = vld [vmem:[%s6655_s10 + $0x60] sm:$0xf]  ;;  %v940_v6 = vrot.slane %v812_v62, 5 }
  0x92   : > { %v943_v7 = vrot.slane %v813_v63, 5  ;;  %v5225_v8 = vld [vmem:[%s6655_s10 + $0x64] sm:$0xf]  ;;  %1112 = vst [vmem:[#allocation2 + $0x204] sm:$0xf] %v5224_v5  ;;  %v628_v11 = vrot.slane %v626_v61, 5 }
  0x93   : > { %v613_v9 = vor.u32 %v612_v2, %v609_v1  ;;  %v623_v10 = vor.u32 %v622_v4, %v618_v3  ;;  %1113 = vst [vmem:[#allocation2 + $0x228] sm:$0xf] %v5225_v8  ;;  %v6393_v13 = vld [vmem:[#allocation2 + $0x1bc] ss:$36 sps:$4 sm:$0xff]   ;;  %v941_v15 = vsel %vm6832_vm5, %v5201_v0, %v940_v6  ;;  %v942_v16 = vrot.slane %v940_v6, 4 }
  0x94   : > { %v6396_v14 = vld [vmem:[#allocation2 + $0x1b8] ss:$36 sps:$4 sm:$0xff]   ;;  %1047 = vst [vmem:[#allocation2 + $0x200] sm:$0xf] %v941_v15  ;;  %4451 = vmatprep.mubr.bf16.mxu1 %v6393_v13  ;;  %v6395_v20 = vld [vmem:[#allocation2 + $0x2d0] ss:$36 sps:$4 sm:$0xff]  }
  0x95   : > { %v6391_v17 = vld [vmem:[#allocation2 + $0x2d4] ss:$36 sps:$4 sm:$0xff]   ;;  %v614_v18 = vrot.slane %v613_v9, 4  ;;  %v624_v19 = vrot.slane %v623_v10, 4  ;;  %v944_v21 = vsel %vm6832_vm5, %v942_v16, %v943_v7  ;;  %4452 = vmatmul.mubr.bf16.gmra.mxu1 %v6396_v14  ;;  %v814_v25 = vld [vmem:[%s6655_s10 + $0x60] sm:$0xe] }
  0x96   : > { %4322 = vmatprep.mubr.bf16.mxu0 %v6391_v17  ;;  %1048 = vst [vmem:[#allocation2 + $0x224] sm:$0xf] %v944_v21  ;;  %v815_v26 = vld [vmem:[%s6655_s10 + $0x64] sm:$0xf]  ;;  %v816_v27 = vld [vmem:[%s6655_s10 + $0x68] sm:$0x1] }
  0x97   : > { %v619_v22 = vsel %vm6687_vm2, %v614_v18, %v618_v3  ;;  %v629_v23 = vsel %vm6687_vm2, %v624_v19, %v628_v11  ;;  %4323 = vmatmul.mubr.bf16.gmra.mxu0 %v6395_v20  ;;  %v5202_v28 = vrot.slane %v814_v25, 9  ;;  %v947_v29 = vrot.slane %v815_v26, 5  ;;  %v5226_v30 = vld [vmem:[%s6655_s10 + $0x6c] sm:$0xf]  ;;  %v5227_v32 = vld [vmem:[%s6655_s10 + $0x70] sm:$0xf] }
  0x98   : > { %780 = vst [vmem:[#allocation2 + $0x31c] sm:$0xf] %v619_v22  ;;  %781 = vst [vmem:[#allocation2 + $0x340] sm:$0xf] %v629_v23  ;;  %v950_v31 = vrot.slane %v816_v27, 5  ;;  %v6413_v34 = vld [vmem:[%s8386_s1 + $0x1d8] sm:$0xff]  }
  0x99   : > { %1114 = vst [vmem:[#allocation2 + $0x24c] sm:$0xf] %v5226_v30  ;;  %v5242_v33 = vld [vmem:[%s6655_s10 + $0xc] sm:$0xf]  ;;  %v948_v35 = vsel %vm6832_vm5, %v5202_v28, %v947_v29  ;;  %v949_v36 = vrot.slane %v947_v29, 4  ;;  %6062 = vmatprep.subr.bf16.mxu1 %v6413_v34  ;;  %v6414_v4 = vld [vmem:[%s8386_s1 + $0x198] sm:$0xff]  }
  0x9a   : > { %1115 = vst [vmem:[#allocation2 + $0x270] sm:$0xf] %v5227_v32  ;;  %v5243_v37 = vld [vmem:[%s6655_s10 + $0x10] sm:$0xf]  ;;  %v5244_v38 = vld [vmem:[%s6655_s10 + $0x14] sm:$0x1]  ;;  %6063 = vmatpush3.bf16.msra.mxu1 %v6414_v4 }
  0x9b   : > { %v1179_v40 = vshrl.u32 %v5242_v33, 16  ;;  %1049 = vst [vmem:[#allocation2 + $0x248] sm:$0xf] %v948_v35  ;;  %v1182_v41 = vshll.u32 %v5242_v33, 16  ;;  %v1188_v42 = vshll.u32 %v5243_v37, 16  ;;  %v1192_v44 = vshrl.u32 %v5243_v37, 16 }
  0x9c   : > { %v1198_v45 = vshll.u32 %v5244_v38, 16  ;;  %v5290_v46 = vld [vmem:[%s6655_s10 + $0xc] sm:$0xe]  ;;  %v951_v47 = vsel %vm6832_vm5, %v949_v36, %v950_v31  ;;  %v5291_v49 = vld [vmem:[%s6655_s10 + $0x10] sm:$0xf]  ;;  %v7058_v8 = vld [vmem:[%s8386_s1 + $0x238] sm:$0xff]  }
  0x9d   : > { %v1181_v48 = vrot.slane %v1179_v40, 4  ;;  %v5292_v50 = vld [vmem:[%s6655_s10 + $0x14] sm:$0x1]  ;;  %1050 = vst [vmem:[#allocation2 + $0x26c] sm:$0xf] %v951_v47  ;;  %v1184_v51 = vrot.slane %v1182_v41, 5  ;;  %6190 = vmatprep.subr.bf16.mxu0 %v7058_v8 }
  0x9e   : > { %v1190_v52 = vrot.slane %v1188_v42, 5  ;;  %v1194_v53 = vrot.slane %v1192_v44, 4  ;;  %v1200_v54 = vrot.slane %v1198_v45, 5  ;;  %v6401_v55 = vld [vmem:[#allocation2 + $0x204] ss:$36 sps:$4 sm:$0xff]   ;;  %v5338_v57 = vrot.slane %v5290_v46, 9 }
  0x9f   : > { %v6404_v56 = vld [vmem:[#allocation2 + $0x200] ss:$36 sps:$4 sm:$0xff]   ;;  %v1185_v59 = vor.u32 %v1184_v51, %v1181_v48  ;;  %v1724_v61 = vrot.slane %v5291_v49, 5  ;;  %v1727_v62 = vrot.slane %v5292_v50, 5  ;;  %4459 = vmatprep.mubr.bf16.mxu1 %v6401_v55  ;;  %v6403_v63 = vld [vmem:[#allocation2 + $0x318] ss:$36 sps:$4 sm:$0xff]  }
  0xa0   : > { %v6399_v58 = vld [vmem:[#allocation2 + $0x31c] ss:$36 sps:$4 sm:$0xff]   ;;  %v1195_v60 = vor.u32 %v1194_v53, %v1190_v52  ;;  %4460 = vmatmul.mubr.bf16.gmra.mxu1 %v6404_v56  ;;  %v817_v9 = vld [vmem:[%s6655_s10 + $0x6c] sm:$0xe]  ;;  %v818_v10 = vld [vmem:[%s6655_s10 + $0x70] sm:$0xf] }
  0xa1   : > { %4330 = vmatprep.mubr.bf16.mxu0 %v6399_v58  ;;  %v1186_v0 = vrot.slane %v1185_v59, 4  ;;  %v1725_v2 = vsel %vm6832_vm5, %v5338_v57, %v1724_v61  ;;  %v1726_v3 = vrot.slane %v1724_v61, 4  ;;  %v6407_v11 = vld [vmem:[#allocation2 + $0x24c] ss:$36 sps:$4 sm:$0xff]   ;;  %v5203_v13 = vrot.slane %v817_v9, 9 }
  0xa2   : > { %v1196_v1 = vrot.slane %v1195_v60, 4  ;;  %4331 = vmatmul.mubr.bf16.gmra.mxu0 %v6403_v63  ;;  %1866 = vst [vmem:[#allocation2 + $0x14] sm:$0xf] %v1725_v2  ;;  %v819_v14 = vld [vmem:[%s6655_s10 + $0x74] sm:$0x1]  ;;  %v954_v15 = vrot.slane %v818_v10, 5  ;;  %4467 = vmatprep.mubr.bf16.mxu1 %v6407_v11 }
  0xa3   : > { %v1191_v5 = vsel %vm6687_vm2, %v1186_v0, %v1190_v52  ;;  %v1728_v7 = vsel %vm6832_vm5, %v1726_v3, %v1727_v62  ;;  %v5228_v16 = vld [vmem:[%s6655_s10 + $0x78] sm:$0xf]  ;;  %v6428_v17 = vld [vmem:[%s8386_s1 + $0x1d0] sm:$0xff]   ;;  %v957_v18 = vrot.slane %v819_v14, 5  ;;  %v5229_v19 = vld [vmem:[%s6655_s10 + $0x7c] sm:$0xf] }
  0xa4   : > { %v1201_v6 = vsel %vm6687_vm2, %v1196_v1, %v1200_v54  ;;  %1594 = vst [vmem:[#allocation2 + $0x10] sm:$0xf] %v1191_v5  ;;  %1867 = vst [vmem:[#allocation2 + $0x38] sm:$0xf] %v1728_v7  ;;  %v6412_v12 = vld [vmem:[#allocation2 + $0x248] ss:$36 sps:$4 sm:$0xff]   ;;  %v955_v22 = vsel %vm6832_vm5, %v5203_v13, %v954_v15  ;;  %6064 = vmatprep.subr.bf16.mxu1 %v6428_v17 }
  0xa5   : > { %1595 = vst [vmem:[#allocation2 + $0x34] sm:$0xf] %v1201_v6  ;;  %1116 = vst [vmem:[#allocation2 + $0x294] sm:$0xf] %v5228_v16  ;;  %v5245_v20 = vld [vmem:[%s6655_s10 + $0x18] sm:$0xf] }
  0xa6   : > { %v6429_v21 = vld [vmem:[%s8386_s1 + $0x190] sm:$0xff]   ;;  %v956_v23 = vrot.slane %v954_v15, 4  ;;  %1117 = vst [vmem:[#allocation2 + $0x2b8] sm:$0xf] %v5229_v19  ;;  %v5246_v24 = vld [vmem:[%s6655_s10 + $0x1c] sm:$0xf] }
  0xa7   : > { %v5247_v25 = vld [vmem:[%s6655_s10 + $0x20] sm:$0x1]  ;;  %v1203_v26 = vshrl.u32 %v5245_v20, 16  ;;  %1051 = vst [vmem:[#allocation2 + $0x290] sm:$0xf] %v955_v22  ;;  %v1206_v27 = vshll.u32 %v5245_v20, 16  ;;  %6065 = vmatpush3.bf16.msra.mxu1 %v6429_v21 }
  0xa8   : > { %v1212_v28 = vshll.u32 %v5246_v24, 16  ;;  %v1216_v29 = vshrl.u32 %v5246_v24, 16  ;;  %v1222_v30 = vshll.u32 %v5247_v25, 16  ;;  %v5293_v31 = vld [vmem:[%s6655_s10 + $0x18] sm:$0xe]  ;;  %4468 = vmatmul.mubr.bf16.gmra.mxu1 %v6412_v12  ;;  %v958_v32 = vsel %vm6832_vm5, %v956_v23, %v957_v18  ;;  %v6430_v57 = vld [vmem:[%s8386_s1 + $0x230] sm:$0xff]  }
  0xa9   : > { %v1205_v33 = vrot.slane %v1203_v26, 4  ;;  %v5294_v34 = vld [vmem:[%s6655_s10 + $0x1c] sm:$0xf]  ;;  %v5295_v35 = vld [vmem:[%s6655_s10 + $0x20] sm:$0x1]  ;;  %v5339_v36 = vrot.slane %v5293_v31, 9 }
  0xaa   : > { %1052 = vst [vmem:[#allocation2 + $0x2b4] sm:$0xf] %v958_v32  ;;  %v1208_v37 = vrot.slane %v1206_v27, 5  ;;  %v1214_v38 = vrot.slane %v1212_v28, 5  ;;  %v1218_v40 = vrot.slane %v1216_v29, 4  ;;  %v1224_v41 = vrot.slane %v1222_v30, 5 }
  0xab   : > { %v820_v42 = vld [vmem:[%s6655_s10 + $0x78] sm:$0xe]  ;;  %v1731_v45 = vrot.slane %v5294_v34, 5  ;;  %v1734_v46 = vrot.slane %v5295_v35, 5  ;;  %v821_v50 = vld [vmem:[%s6655_s10 + $0x7c] sm:$0xf] }
  0xac   : > { %v6409_v44 = vld [vmem:[#allocation2 + $0x10] ss:$36 sps:$4 sm:$0xff]   ;;  %v1209_v48 = vor.u32 %v1208_v37, %v1205_v33  ;;  %v1219_v49 = vor.u32 %v1218_v40, %v1214_v38  ;;  %v822_v51 = vld [vmem:[%s6655_s10 + $0x80] sm:$0x1]  ;;  %v5204_v54 = vrot.slane %v820_v42, 9  ;;  %v961_v55 = vrot.slane %v821_v50, 5 }
  0xad   : > { %v6411_v47 = vld [vmem:[#allocation2 + $0x14] ss:$36 sps:$4 sm:$0xff]   ;;  %v1732_v52 = vsel %vm6832_vm5, %v5339_v36, %v1731_v45  ;;  %v1733_v53 = vrot.slane %v1731_v45, 4  ;;  %v5230_v56 = vld [vmem:[%s6655_s10 + $0x84] sm:$0xf]  ;;  %v964_v60 = vrot.slane %v822_v51, 5 }
  0xae   : > { %4564 = vmatprep.mubr.bf16.mxu0 %v6411_v47  ;;  %v1210_v58 = vrot.slane %v1209_v48, 4  ;;  %v1220_v59 = vrot.slane %v1219_v49, 4  ;;  %1868 = vst [vmem:[#allocation2 + $0x5c] sm:$0xf] %v1732_v52  ;;  %v5231_v61 = vld [vmem:[%s6655_s10 + $0x88] sm:$0xf]  ;;  %v962_v0 = vsel %vm6832_vm5, %v5204_v54, %v961_v55 }
  0xaf   : > { %1118 = vst [vmem:[#allocation2 + $0x2dc] sm:$0xf] %v5230_v56  ;;  %v6443_v62 = vld [vmem:[%s8386_s1 + $0x1c8] sm:$0xff]   ;;  %4565 = vmatmul.mubr.bf16.vlgmr.msra.gmra.mxu0 %v6409_v44  ;;  %v1735_v63 = vsel %vm6832_vm5, %v1733_v53, %v1734_v46  ;;  %v963_v1 = vrot.slane %v961_v55, 4  ;;  %1119 = vst [vmem:[#allocation2 + $0x300] sm:$0xf] %v5231_v61 }
  0xb0   : > { %v5248_v2 = vld [vmem:[%s6655_s10 + $0x24] sm:$0xf]  ;;  %v5249_v3 = vld [vmem:[%s6655_s10 + $0x28] sm:$0xf]  ;;  %6191 = vmatpush3.bf16.msra.mxu0 %v7058_v8  ;;  %v1215_v4 = vsel %vm6687_vm2, %v1210_v58, %v1214_v38  ;;  %v1225_v5 = vsel %vm6687_vm2, %v1220_v59, %v1224_v41  ;;  %1869 = vst [vmem:[#allocation2 + $0x80] sm:$0xf] %v1735_v63  ;;  %6066 = vmatprep.subr.bf16.mxu1 %v6443_v62 }
  0xb1   : > { %1053 = vst [vmem:[#allocation2 + $0x2d8] sm:$0xf] %v962_v0  ;;  %v5250_v6 = vld [vmem:[%s6655_s10 + $0x2c] sm:$0x1]  ;;  %v1227_v7 = vshrl.u32 %v5248_v2, 16  ;;  %v1230_v9 = vshll.u32 %v5248_v2, 16  ;;  %v965_v8 = vsel %vm6832_vm5, %v963_v1, %v964_v60  ;;  %6192 = vmatprep.subr.bf16.mxu0 %v6430_v57 }
  0xb2   : > { %v5296_v10 = vld [vmem:[%s6655_s10 + $0x24] sm:$0xe]  ;;  %v6416_v11 = vld [vmem:[#allocation2 + $0x294] ss:$36 sps:$4 sm:$0xff]   ;;  %1596 = vst [vmem:[#allocation2 + $0x58] sm:$0xf] %v1215_v4 }
  0xb3   : > { %1597 = vst [vmem:[#allocation2 + $0x7c] sm:$0xf] %v1225_v5  ;;  %v6420_v12 = vld [vmem:[#allocation2 + $0x290] ss:$36 sps:$4 sm:$0xff]   ;;  %v1236_v13 = vshll.u32 %v5249_v3, 16  ;;  %v1229_v14 = vrot.slane %v1227_v7, 4  ;;  %4475 = vmatprep.mubr.bf16.mxu1 %v6416_v11 }
  0xb4   : > { %1054 = vst [vmem:[#allocation2 + $0x2fc] sm:$0xf] %v965_v8  ;;  %v1232_v15 = vrot.slane %v1230_v9, 5  ;;  %v1240_v16 = vshrl.u32 %v5249_v3, 16  ;;  %v1246_v17 = vshll.u32 %v5250_v6, 16  ;;  %v5340_v21 = vrot.slane %v5296_v10, 9  ;;  %4476 = vmatmul.mubr.bf16.gmra.mxu1 %v6420_v12  ;;  %6193 = vmatpush3.bf16.msra.mxu0 %v6430_v57 }
  0xb5   : > { %v5297_v18 = vld [vmem:[%s6655_s10 + $0x28] sm:$0xf]  ;;  %v1238_v19 = vrot.slane %v1236_v13, 5  ;;  %v5298_v20 = vld [vmem:[%s6655_s10 + $0x2c] sm:$0x1]  ;;  %v6458_v31 = vld [vmem:[%s8386_s1 + $0x1c0] sm:$0xff]  }
  0xb6   : > { %v1738_v22 = vrot.slane %v5297_v18, 5  ;;  %v6444_v23 = vld [vmem:[%s8386_s1 + $0x188] sm:$0xff]   ;;  %v1233_v24 = vor.u32 %v1232_v15, %v1229_v14  ;;  %v1242_v25 = vrot.slane %v1240_v16, 4  ;;  %v1248_v26 = vrot.slane %v1246_v17, 5  ;;  %v6459_v34 = vld [vmem:[%s8386_s1 + $0x180] sm:$0xff]   ;;  %v6473_v9 = vld [vmem:[%s8386_s1 + $0x218] sm:$0xff]  }
  0xb7   : > { %v1741_v27 = vrot.slane %v5298_v20, 5  ;;  %v6445_v28 = vld [vmem:[%s8386_s1 + $0x228] sm:$0xff]   ;;  %6067 = vmatpush3.bf16.msra.mxu1 %v6444_v23  ;;  %v823_v36 = vld [vmem:[%s6655_s10 + $0x84] sm:$0xe]  ;;  %v6418_v37 = vld [vmem:[#allocation2 + $0x5c] ss:$36 sps:$4 sm:$0xff]  }
  0xb8   : > { %v1739_v29 = vsel %vm6832_vm5, %v5340_v21, %v1738_v22  ;;  %v1740_v30 = vrot.slane %v1738_v22, 4  ;;  %v1234_v32 = vrot.slane %v1233_v24, 4  ;;  %v1243_v33 = vor.u32 %v1242_v25, %v1238_v19  ;;  %6194 = vmatprep.subr.bf16.mxu0 %v6445_v28  ;;  %6068 = vmatprep.subr.bf16.mxu1 %v6458_v31  ;;  %v6422_v42 = vld [vmem:[#allocation2 + $0x2dc] ss:$36 sps:$4 sm:$0xff]   ;;  %v824_v47 = vld [vmem:[%s6655_s10 + $0x88] sm:$0xf] }
  0xb9   : > { %1870 = vst [vmem:[#allocation2 + $0xa4] sm:$0xf] %v1739_v29  ;;  %6195 = vmatpush3.bf16.msra.mxu0 %v6445_v28  ;;  %v5205_v44 = vrot.slane %v823_v36, 9  ;;  %4572 = vmatprep.mubr.bf16.mxu0 %v6418_v37  ;;  %v825_v48 = vld [vmem:[%s6655_s10 + $0x8c] sm:$0x1]  ;;  %v968_v49 = vrot.slane %v824_v47, 5 }
  0xba   : > { %v1742_v35 = vsel %vm6832_vm5, %v1740_v30, %v1741_v27  ;;  %v1239_v38 = vsel %vm6687_vm2, %v1234_v32, %v1238_v19  ;;  %v1244_v40 = vrot.slane %v1243_v33, 4  ;;  %v6421_v41 = vld [vmem:[#allocation2 + $0x58] ss:$36 sps:$4 sm:$0xff]   ;;  %4483 = vmatprep.mubr.bf16.mxu1 %v6422_v42  ;;  %v971_v50 = vrot.slane %v825_v48, 5  ;;  %v5232_v51 = vld [vmem:[%s6655_s10 + $0x90] sm:$0xf] }
  0xbb   : > { %1871 = vst [vmem:[#allocation2 + $0xc8] sm:$0xf] %v1742_v35  ;;  %1598 = vst [vmem:[#allocation2 + $0xa0] sm:$0xf] %v1239_v38  ;;  %6069 = vmatpush3.bf16.msra.mxu1 %v6459_v34  ;;  %v6426_v46 = vld [vmem:[#allocation2 + $0x2d8] ss:$36 sps:$4 sm:$0xff]   ;;  %4573 = vmatmul.mubr.bf16.gmra.mxu0 %v6421_v41  ;;  %v969_v56 = vsel %vm6832_vm5, %v5205_v44, %v968_v49 }
  0xbc   : > { %v1249_v45 = vsel %vm6687_vm2, %v1244_v40, %v1248_v26  ;;  %v5233_v52 = vld [vmem:[%s6655_s10 + $0x94] sm:$0xf]  ;;  %4484 = vmatmul.mubr.bf16.gmra.mxu1 %v6426_v46  ;;  %1120 = vst [vmem:[#allocation2 + $0x324] sm:$0xf] %v5232_v51  ;;  %v5251_v53 = vld [vmem:[%s6655_s10 + $0x30] sm:$0xf] }
  0xbd   : > { %1599 = vst [vmem:[#allocation2 + $0xc4] sm:$0xf] %v1249_v45  ;;  %1121 = vst [vmem:[#allocation2 + $0x348] sm:$0xf] %v5233_v52  ;;  %v5252_v54 = vld [vmem:[%s6655_s10 + $0x34] sm:$0xf] }
  0xbe   : > { %v5253_v55 = vld [vmem:[%s6655_s10 + $0x38] sm:$0x1]  ;;  %v970_v57 = vrot.slane %v968_v49, 4  ;;  %v1251_v58 = vshrl.u32 %v5251_v53, 16  ;;  %v1254_v59 = vshll.u32 %v5251_v53, 16  ;;  %v6460_v61 = vld [vmem:[%s8386_s1 + $0x220] sm:$0xff]  }
  0xbf   : > { %v5299_v60 = vld [vmem:[%s6655_s10 + $0x30] sm:$0xe]  ;;  %1055 = vst [vmem:[#allocation2 + $0x320] sm:$0xf] %v969_v56  ;;  %v1260_v62 = vshll.u32 %v5252_v54, 16  ;;  %v1264_v63 = vshrl.u32 %v5252_v54, 16  ;;  %6196 = vmatprep.subr.bf16.mxu0 %v6460_v61 }
  0xc0   : > { %v1270_v0 = vshll.u32 %v5253_v55, 16  ;;  %v5300_v1 = vld [vmem:[%s6655_s10 + $0x34] sm:$0xf]  ;;  %v5341_v2 = vrot.slane %v5299_v60, 9  ;;  %v972_v3 = vsel %vm6832_vm5, %v970_v57, %v971_v50  ;;  %v1253_v4 = vrot.slane %v1251_v58, 4  ;;  %6197 = vmatpush3.bf16.msra.mxu0 %v6460_v61  ;;  %v6499_v28 = vld [vmem:[%s8386_s1 + $0x208] sm:$0xff]  }
  0xc1   : > { %v1256_v5 = vrot.slane %v1254_v59, 5  ;;  %v5301_v6 = vld [vmem:[%s6655_s10 + $0x38] sm:$0x1]  ;;  %v1745_v7 = vrot.slane %v5300_v1, 5  ;;  %1056 = vst [vmem:[#allocation2 + $0x344] sm:$0xf] %v972_v3  ;;  %6198 = vmatprep.subr.bf16.mxu0 %v6473_v9 }
  0xc2   : > { %v1262_v10 = vrot.slane %v1260_v62, 5  ;;  %v1266_v11 = vrot.slane %v1264_v63, 4  ;;  %v1272_v12 = vrot.slane %v1270_v0, 5  ;;  %v1748_v8 = vrot.slane %v5301_v6, 5  ;;  %v826_v16 = vld [vmem:[%s6655_s10 + $0x90] sm:$0xe] }
  0xc3   : > { %v1257_v13 = vor.u32 %v1256_v5, %v1253_v4  ;;  %v1746_v14 = vsel %vm6832_vm5, %v5341_v2, %v1745_v7  ;;  %v1747_v15 = vrot.slane %v1745_v7, 4  ;;  %v827_v17 = vld [vmem:[%s6655_s10 + $0x94] sm:$0xf]  ;;  %v6424_v19 = vld [vmem:[#allocation2 + $0xa4] ss:$36 sps:$4 sm:$0xff]   ;;  %v5206_v22 = vrot.slane %v826_v16, 9 }
  0xc4   : > { %v6486_v18 = vld [vmem:[%s8386_s1 + $0x210] sm:$0xff]   ;;  %v6427_v20 = vld [vmem:[#allocation2 + $0xa0] ss:$36 sps:$4 sm:$0xff]   ;;  %v1267_v21 = vor.u32 %v1266_v11, %v1262_v10  ;;  %1872 = vst [vmem:[#allocation2 + $0xec] sm:$0xf] %v1746_v14  ;;  %v975_v26 = vrot.slane %v827_v17, 5  ;;  %4580 = vmatprep.mubr.bf16.mxu0 %v6424_v19  ;;  %6199 = vmatpush3.bf16.msra.mxu0 %v6473_v9 }
  0xc5   : > { %v1258_v23 = vrot.slane %v1257_v13, 4  ;;  %v1749_v24 = vsel %vm6832_vm5, %v1747_v15, %v1748_v8  ;;  %v828_v25 = vld [vmem:[%s6655_s10 + $0x98] sm:$0x1]  ;;  %v5234_v27 = vld [vmem:[%s6655_s10 + $0x9c] sm:$0xf]  ;;  %4581 = vmatmul.mubr.bf16.gmra.mxu0 %v6427_v20  ;;  %6200 = vmatprep.subr.bf16.mxu0 %v6486_v18 }
  0xc6   : > { %v1268_v29 = vrot.slane %v1267_v21, 4  ;;  %1873 = vst [vmem:[#allocation2 + $0x110] sm:$0xf] %v1749_v24  ;;  %v978_v30 = vrot.slane %v828_v25, 5  ;;  %v5235_v31 = vld [vmem:[%s6655_s10 + $0xa0] sm:$0xf]  ;;  %v976_v34 = vsel %vm6832_vm5, %v5206_v22, %v975_v26 }
  0xc7   : > { %1122 = vst [vmem:[#allocation2 + $0x36c] sm:$0xf] %v5234_v27  ;;  %v5254_v32 = vld [vmem:[%s6655_s10 + $0x3c] sm:$0xf]  ;;  %v1263_v33 = vsel %vm6687_vm2, %v1258_v23, %v1262_v10  ;;  %v977_v35 = vrot.slane %v975_v26, 4  ;;  %v6512_v27 = vld [vmem:[%s8386_s1 + $0x200] sm:$0xff]  }
  0xc8   : > { %1123 = vst [vmem:[#allocation2 + $0x390] sm:$0xf] %v5235_v31  ;;  %v5255_v36 = vld [vmem:[%s6655_s10 + $0x40] sm:$0xf]  ;;  %v5256_v37 = vld [vmem:[%s6655_s10 + $0x44] sm:$0x1]  ;;  %v1273_v38 = vsel %vm6687_vm2, %v1268_v29, %v1272_v12  ;;  %6201 = vmatpush3.bf16.msra.mxu0 %v6486_v18 }
  0xc9   : > { %1600 = vst [vmem:[#allocation2 + $0xe8] sm:$0xf] %v1263_v33  ;;  %1057 = vst [vmem:[#allocation2 + $0x368] sm:$0xf] %v976_v34  ;;  %v1275_v40 = vshrl.u32 %v5254_v32, 16  ;;  %v1278_v41 = vshll.u32 %v5254_v32, 16  ;;  %v979_v47 = vsel %vm6832_vm5, %v977_v35, %v978_v30  ;;  %6202 = vmatprep.subr.bf16.mxu0 %v6499_v28 }
  0xca   : > { %v1284_v42 = vshll.u32 %v5255_v36, 16  ;;  %v5302_v44 = vld [vmem:[%s6655_s10 + $0x3c] sm:$0xe]  ;;  %v6431_v45 = vld [vmem:[#allocation2 + $0x324] ss:$36 sps:$4 sm:$0xff]   ;;  %v1288_v48 = vshrl.u32 %v5255_v36, 16 }
  0xcb   : > { %1601 = vst [vmem:[#allocation2 + $0x10c] sm:$0xf] %v1273_v38  ;;  %v6435_v46 = vld [vmem:[#allocation2 + $0x320] ss:$36 sps:$4 sm:$0xff]   ;;  %1058 = vst [vmem:[#allocation2 + $0x38c] sm:$0xf] %v979_v47  ;;  %4491 = vmatprep.mubr.bf16.mxu1 %v6431_v45 }
  0xcc   : > { %v1277_v49 = vrot.slane %v1275_v40, 4  ;;  %v1280_v50 = vrot.slane %v1278_v41, 5  ;;  %v1286_v51 = vrot.slane %v1284_v42, 5  ;;  %v1294_v52 = vshll.u32 %v5256_v37, 16  ;;  %v5303_v53 = vld [vmem:[%s6655_s10 + $0x40] sm:$0xf]  ;;  %4492 = vmatmul.mubr.bf16.gmra.mxu1 %v6435_v46  ;;  %6203 = vmatpush3.bf16.msra.mxu0 %v6499_v28 }
  0xcd   : > { %v1290_v54 = vrot.slane %v1288_v48, 4  ;;  %v5304_v55 = vld [vmem:[%s6655_s10 + $0x44] sm:$0x1]  ;;  %v5342_v56 = vrot.slane %v5302_v44, 9  ;;  %v1752_v57 = vrot.slane %v5303_v53, 5  ;;  %6204 = vmatprep.subr.bf16.mxu0 %v6512_v27 }
  0xce   : > { %v1281_v58 = vor.u32 %v1280_v50, %v1277_v49  ;;  %v1755_v59 = vrot.slane %v5304_v55, 5  ;;  %v1296_v61 = vrot.slane %v1294_v52, 5  ;;  %v829_v3 = vld [vmem:[%s6655_s10 + $0x9c] sm:$0xe]  ;;  %v6433_v4 = vld [vmem:[#allocation2 + $0xec] ss:$36 sps:$4 sm:$0xff]  }
  0xcf   : > { %v1291_v60 = vor.u32 %v1290_v54, %v1286_v51  ;;  %v1753_v62 = vsel %vm6832_vm5, %v5342_v56, %v1752_v57  ;;  %v1754_v63 = vrot.slane %v1752_v57, 4  ;;  %v6437_v7 = vld [vmem:[#allocation2 + $0x36c] ss:$36 sps:$4 sm:$0xff]   ;;  %v5207_v11 = vrot.slane %v829_v3, 9  ;;  %4588 = vmatprep.mubr.bf16.mxu0 %v6433_v4  ;;  %v830_v12 = vld [vmem:[%s6655_s10 + $0xa0] sm:$0xf] }
  0xd0   : > { %v1282_v0 = vrot.slane %v1281_v58, 4  ;;  %1874 = vst [vmem:[#allocation2 + $0x134] sm:$0xf] %v1753_v62  ;;  %v831_v8 = vld [vmem:[%s6655_s10 + $0xa4] sm:$0x1]  ;;  %4499 = vmatprep.mubr.bf16.mxu1 %v6437_v7  ;;  %v982_v14 = vrot.slane %v830_v12, 5  ;;  %6205 = vmatpush3.bf16.msra.mxu0 %v6512_v27 }
  0xd1   : > { %v1292_v1 = vrot.slane %v1291_v60, 4  ;;  %v1756_v2 = vsel %vm6832_vm5, %v1754_v63, %v1755_v59  ;;  %v5236_v13 = vld [vmem:[%s6655_s10 + $0xa8] sm:$0xf]  ;;  %v985_v15 = vrot.slane %v831_v8, 5  ;;  %v5237_v16 = vld [vmem:[%s6655_s10 + $0xac] sm:$0xf] }
  0xd2   : > { %v6436_v5 = vld [vmem:[#allocation2 + $0xe8] ss:$36 sps:$4 sm:$0xff]   ;;  %v1287_v6 = vsel %vm6687_vm2, %v1282_v0, %v1286_v51  ;;  %1875 = vst [vmem:[#allocation2 + $0x158] sm:$0xf] %v1756_v2  ;;  %1124 = vst [vmem:[#allocation2 + $0x3b4] sm:$0xf] %v5236_v13  ;;  %v983_v22 = vsel %vm6832_vm5, %v5207_v11, %v982_v14 }
  0xd3   : > { %v1297_v9 = vsel %vm6687_vm2, %v1292_v1, %v1296_v61  ;;  %1602 = vst [vmem:[#allocation2 + $0x130] sm:$0xf] %v1287_v6  ;;  %v6441_v10 = vld [vmem:[#allocation2 + $0x368] ss:$36 sps:$4 sm:$0xff]   ;;  %4589 = vmatmul.mubr.bf16.gmra.mxu0 %v6436_v5  ;;  %1125 = vst [vmem:[#allocation2 + $0x3d8] sm:$0xf] %v5237_v16 }
  0xd4   : > { %1603 = vst [vmem:[#allocation2 + $0x154] sm:$0xf] %v1297_v9  ;;  %v5257_v17 = vld [vmem:[%s6655_s10 + $0x48] sm:$0xf]  ;;  %4500 = vmatmul.mubr.bf16.gmra.mxu1 %v6441_v10  ;;  %v5258_v18 = vld [vmem:[%s6655_s10 + $0x4c] sm:$0xf] }
  0xd5   : > { %v5259_v19 = vld [vmem:[%s6655_s10 + $0x50] sm:$0x1]  ;;  %v1299_v20 = vshrl.u32 %v5257_v17, 16  ;;  %v1302_v21 = vshll.u32 %v5257_v17, 16  ;;  %v984_v23 = vrot.slane %v982_v14, 4  ;;  %v1308_v24 = vshll.u32 %v5258_v18, 16 }
  0xd6   : > { %v1312_v25 = vshrl.u32 %v5258_v18, 16  ;;  %v5305_v26 = vld [vmem:[%s6655_s10 + $0x48] sm:$0xe]  ;;  %1059 = vst [vmem:[#allocation2 + $0x3b0] sm:$0xf] %v983_v22  ;;  %v1318_v30 = vshll.u32 %v5259_v19, 16 }
  0xd7   : > { %v1301_v28 = vrot.slane %v1299_v20, 4  ;;  %v1304_v29 = vrot.slane %v1302_v21, 5  ;;  %v5306_v31 = vld [vmem:[%s6655_s10 + $0x4c] sm:$0xf]  ;;  %v5343_v32 = vrot.slane %v5305_v26, 9  ;;  %v986_v33 = vsel %vm6832_vm5, %v984_v23, %v985_v15 }
  0xd8   : > { %v1310_v34 = vrot.slane %v1308_v24, 5  ;;  %v1314_v35 = vrot.slane %v1312_v25, 4  ;;  %v5307_v36 = vld [vmem:[%s6655_s10 + $0x50] sm:$0x1]  ;;  %v1759_v37 = vrot.slane %v5306_v31, 5  ;;  %v1320_v40 = vrot.slane %v1318_v30, 5 }
  0xd9   : > { %1060 = vst [vmem:[#allocation2 + $0x3d4] sm:$0xf] %v986_v33  ;;  %v1305_v38 = vor.u32 %v1304_v29, %v1301_v28  ;;  %v1762_v41 = vrot.slane %v5307_v36, 5  ;;  %v832_v42 = vld [vmem:[%s6655_s10 + $0xa8] sm:$0xe] }
  0xda   : > { %v6439_v44 = vld [vmem:[#allocation2 + $0x134] ss:$36 sps:$4 sm:$0xff]   ;;  %v1315_v46 = vor.u32 %v1314_v35, %v1310_v34  ;;  %v1760_v47 = vsel %vm6832_vm5, %v5343_v32, %v1759_v37  ;;  %v1761_v48 = vrot.slane %v1759_v37, 4  ;;  %v833_v50 = vld [vmem:[%s6655_s10 + $0xac] sm:$0xf]  ;;  %v5208_v52 = vrot.slane %v832_v42, 9 }
  0xdb   : > { %v6442_v45 = vld [vmem:[#allocation2 + $0x130] ss:$36 sps:$4 sm:$0xff]   ;;  %v1306_v49 = vrot.slane %v1305_v38, 4  ;;  %1876 = vst [vmem:[#allocation2 + $0x17c] sm:$0xf] %v1760_v47  ;;  %4596 = vmatprep.mubr.bf16.mxu0 %v6439_v44  ;;  %v989_v55 = vrot.slane %v833_v50, 5 }
  0xdc   : > { %v834_v51 = vld [vmem:[%s6655_s10 + $0xb0] sm:$0x1]  ;;  %v1316_v53 = vrot.slane %v1315_v46, 4  ;;  %v1763_v54 = vsel %vm6832_vm5, %v1761_v48, %v1762_v41  ;;  %v5238_v57 = vld [vmem:[%s6655_s10 + $0xb4] sm:$0xf]  ;;  %4597 = vmatmul.mubr.bf16.gmra.mxu0 %v6442_v45 }
  0xdd   : > { %v992_v56 = vrot.slane %v834_v51, 5  ;;  %v1311_v58 = vsel %vm6687_vm2, %v1306_v49, %v1310_v34  ;;  %1877 = vst [vmem:[#allocation2 + $0x1a0] sm:$0xf] %v1763_v54  ;;  %v5239_v59 = vld [vmem:[%s6655_s10 + $0xb8] sm:$0xf]  ;;  %v990_v63 = vsel %vm6832_vm5, %v5208_v52, %v989_v55  ;;  %v991_v0 = vrot.slane %v989_v55, 4 }
  0xde   : > { %1126 = vst [vmem:[#allocation2 + $0x3fc] sm:$0xf] %v5238_v57  ;;  %v5260_v60 = vld [vmem:[%s6655_s10 + $0x54] sm:$0xf]  ;;  %v5261_v61 = vld [vmem:[%s6655_s10 + $0x58] sm:$0xf]  ;;  %v1321_v62 = vsel %vm6687_vm2, %v1316_v53, %v1320_v40 }
  0xdf   : > { %1604 = vst [vmem:[#allocation2 + $0x178] sm:$0xf] %v1311_v58  ;;  %1127 = vst [vmem:[#allocation2 + $0x420] sm:$0xf] %v5239_v59  ;;  %v5262_v1 = vld [vmem:[%s6655_s10 + $0x5c] sm:$0x1]  ;;  %v993_v11 = vsel %vm6832_vm5, %v991_v0, %v992_v56 }
  0xe0   : > { %v1323_v2 = vshrl.u32 %v5260_v60, 16  ;;  %1605 = vst [vmem:[#allocation2 + $0x19c] sm:$0xf] %v1321_v62  ;;  %1061 = vst [vmem:[#allocation2 + $0x3f8] sm:$0xf] %v990_v63  ;;  %v1326_v3 = vshll.u32 %v5260_v60, 16 }
  0xe1   : > { %v1332_v4 = vshll.u32 %v5261_v61, 16  ;;  %v1336_v5 = vshrl.u32 %v5261_v61, 16  ;;  %v1342_v6 = vshll.u32 %v5262_v1, 16  ;;  %v5308_v7 = vld [vmem:[%s6655_s10 + $0x54] sm:$0xe] }
  0xe2   : > { %v6446_v9 = vld [vmem:[#allocation2 + $0x3b4] ss:$36 sps:$4 sm:$0xff]   ;;  %v1325_v12 = vrot.slane %v1323_v2, 4  ;;  %1062 = vst [vmem:[#allocation2 + $0x41c] sm:$0xf] %v993_v11  ;;  %v1328_v8 = vrot.slane %v1326_v3, 5 }
  0xe3   : > { %v6450_v10 = vld [vmem:[#allocation2 + $0x3b0] ss:$36 sps:$4 sm:$0xff]   ;;  %v1334_v13 = vrot.slane %v1332_v4, 5  ;;  %v1338_v14 = vrot.slane %v1336_v5, 4  ;;  %v5309_v15 = vld [vmem:[%s6655_s10 + $0x58] sm:$0xf]  ;;  %4507 = vmatprep.mubr.bf16.mxu1 %v6446_v9 }
  0xe4   : > { %v5310_v16 = vld [vmem:[%s6655_s10 + $0x5c] sm:$0x1]  ;;  %v5344_v17 = vrot.slane %v5308_v7, 9  ;;  %v1766_v18 = vrot.slane %v5309_v15, 5  ;;  %4508 = vmatmul.mubr.bf16.gmra.mxu1 %v6450_v10  ;;  %v1329_v19 = vor.u32 %v1328_v8, %v1325_v12  ;;  %v1344_v21 = vrot.slane %v1342_v6, 5 }
  0xe5   : > { %v1339_v20 = vor.u32 %v1338_v14, %v1334_v13  ;;  %v1769_v22 = vrot.slane %v5310_v16, 5  ;;  %v6448_v27 = vld [vmem:[#allocation2 + $0x17c] ss:$36 sps:$4 sm:$0xff]   ;;  %v835_v32 = vld [vmem:[%s6655_s10 + $0xb4] sm:$0xe] }
  0xe6   : > { %v1767_v23 = vsel %vm6832_vm5, %v5344_v17, %v1766_v18  ;;  %v1768_v24 = vrot.slane %v1766_v18, 4  ;;  %v1330_v25 = vrot.slane %v1329_v19, 4  ;;  %v836_v33 = vld [vmem:[%s6655_s10 + $0xb8] sm:$0xf]  ;;  %4604 = vmatprep.mubr.bf16.mxu0 %v6448_v27  ;;  %v6452_v34 = vld [vmem:[#allocation2 + $0x3fc] ss:$36 sps:$4 sm:$0xff]  }
  0xe7   : > { %v1340_v26 = vrot.slane %v1339_v20, 4  ;;  %1878 = vst [vmem:[#allocation2 + $0x1c4] sm:$0xf] %v1767_v23  ;;  %v6451_v28 = vld [vmem:[#allocation2 + $0x178] ss:$36 sps:$4 sm:$0xff]   ;;  %v5209_v36 = vrot.slane %v835_v32, 9  ;;  %4515 = vmatprep.mubr.bf16.mxu1 %v6452_v34 }
  0xe8   : > { %v1770_v29 = vsel %vm6832_vm5, %v1768_v24, %v1769_v22  ;;  %v1335_v30 = vsel %vm6687_vm2, %v1330_v25, %v1334_v13  ;;  %4605 = vmatmul.mubr.bf16.gmra.mxu0 %v6451_v28  ;;  %v837_v38 = vld [vmem:[%s6655_s10 + $0xbc] sm:$0x1]  ;;  %v996_v40 = vrot.slane %v836_v33, 5  ;;  %v5240_v41 = vld [vmem:[%s6655_s10 + $0xc0] sm:$0xf] }
  0xe9   : > { %v1345_v31 = vsel %vm6687_vm2, %v1340_v26, %v1344_v21  ;;  %1879 = vst [vmem:[#allocation2 + $0x1e8] sm:$0xf] %v1770_v29  ;;  %1606 = vst [vmem:[#allocation2 + $0x1c0] sm:$0xf] %v1335_v30  ;;  %v6456_v35 = vld [vmem:[#allocation2 + $0x3f8] ss:$36 sps:$4 sm:$0xff]  }
  0xea   : > { %1607 = vst [vmem:[#allocation2 + $0x1e4] sm:$0xf] %v1345_v31  ;;  %v999_v42 = vrot.slane %v837_v38, 5  ;;  %v5241_v44 = vld [vmem:[%s6655_s10 + $0xc4] sm:$0xf]  ;;  %v997_v47 = vsel %vm6832_vm5, %v5209_v36, %v996_v40  ;;  %v998_v48 = vrot.slane %v996_v40, 4 }
  0xeb   : > { %1128 = vst [vmem:[#allocation2 + $0x444] sm:$0xf] %v5240_v41  ;;  %v5263_v45 = vld [vmem:[%s6655_s10 + $0x60] sm:$0xf]  ;;  %1129 = vst [vmem:[#allocation2 + $0x468] sm:$0xf] %v5241_v44 }
  0xec   : > { %4516 = vmatmul.mubr.bf16.gmra.mxu1 %v6456_v35  ;;  %v5264_v49 = vld [vmem:[%s6655_s10 + $0x64] sm:$0xf]  ;;  %v5265_v50 = vld [vmem:[%s6655_s10 + $0x68] sm:$0x1]  ;;  %v1347_v51 = vshrl.u32 %v5263_v45, 16  ;;  %v1350_v53 = vshll.u32 %v5263_v45, 16  ;;  %v1000_v59 = vsel %vm6832_vm5, %v998_v48, %v999_v42 }
  0xed   : > { %v5734_v37 = vpop.f32.mrf.mxu0  ;;  %1063 = vst [vmem:[#allocation2 + $0x440] sm:$0xf] %v997_v47  ;;  %v1356_v54 = vshll.u32 %v5264_v49, 16  ;;  %v1360_v55 = vshrl.u32 %v5264_v49, 16  ;;  %v1366_v56 = vshll.u32 %v5265_v50, 16  ;;  %v5806_v58 = vpop.f32.mrf.mxu1 }
  0xee   : > { %v5311_v57 = vld [vmem:[%s6655_s10 + $0x60] sm:$0xe]  ;;  %v1349_v60 = vrot.slane %v1347_v51, 4  ;;  %v5312_v61 = vld [vmem:[%s6655_s10 + $0x64] sm:$0xf]  ;;  %v1352_v1 = vrot.slane %v1350_v53, 5 }
  0xef   : > { %v5735_v46 = vpop.f32.mrf.mxu0  ;;  %v5313_v62 = vld [vmem:[%s6655_s10 + $0x68] sm:$0x1]  ;;  %v5345_v63 = vrot.slane %v5311_v57, 9  ;;  %1064 = vst [vmem:[#allocation2 + $0x464] sm:$0xf] %v1000_v59  ;;  %v1358_v2 = vrot.slane %v1356_v54, 5  ;;  %v5807_v6 = vpop.f32.mrf.mxu1 }
  0xf0   : > { %v7249_v52 = vadd.f32 %v5735_v46, %v5734_v37  ;;  %v1362_v3 = vrot.slane %v1360_v55, 4  ;;  %v1368_v4 = vrot.slane %v1366_v56, 5  ;;  %v5266_v5 = vld [vmem:[%s6655_s10 + $0x6c] sm:$0xf]  ;;  %v6454_v7 = vld [vmem:[#allocation2 + $0x1c4] ss:$36 sps:$4 sm:$0xff]   ;;  %v7259_v11 = vadd.f32 %v5807_v6, %v5806_v58 }
  0xf1   : > { %v7256_v0 = vpop.f32.mrf.mxu0  ;;  %v1773_v9 = vrot.slane %v5312_v61, 5  ;;  %v1776_v10 = vrot.slane %v5313_v62, 5  ;;  %v6457_v12 = vld [vmem:[#allocation2 + $0x1c0] ss:$36 sps:$4 sm:$0xff]   ;;  %v1353_v8 = vor.u32 %v1352_v1, %v1349_v60  ;;  %v5267_v14 = vld [vmem:[%s6655_s10 + $0x70] sm:$0xf]  ;;  %4612 = vmatprep.mubr.bf16.mxu0 %v6454_v7  ;;  %v7266_v21 = vpop.f32.mrf.mxu1 }
  0xf2   : > { %8393 = vst [vmem:[#allocation3_spill] sm:$0xff] %v7259_v11  ;;  %v1363_v13 = vor.u32 %v1362_v3, %v1358_v2  ;;  %v5268_v15 = vld [vmem:[%s6655_s10 + $0x74] sm:$0x1]  ;;  %v1371_v18 = vshrl.u32 %v5266_v5, 16  ;;  %v1374_v19 = vshll.u32 %v5266_v5, 16  ;;  %8394 = vst [vmem:[#allocation4_spill] sm:$0xff] %v7266_v21  ;;  %4613 = vmatmul.mubr.bf16.gmra.mxu0 %v6457_v12 }
  0xf3   : > { %v1774_v16 = vsel %vm6832_vm5, %v5345_v63, %v1773_v9  ;;  %v1775_v17 = vrot.slane %v1773_v9, 4  ;;  %v5314_v20 = vld [vmem:[%s6655_s10 + $0x6c] sm:$0xe]  ;;  %v7268_v22 = vpop.f32.mrf.mxu0  ;;  %v1354_v23 = vrot.slane %v1353_v8, 4  ;;  %v1380_v25 = vshll.u32 %v5267_v14, 16  ;;  %v7280_v45 = vpop.f32.mrf.mxu1 }
  0xf4   : > { %v1364_v24 = vrot.slane %v1363_v13, 4  ;;  %1880 = vst [vmem:[#allocation2 + $0x20c] sm:$0xf] %v1774_v16  ;;  %v1384_v26 = vshrl.u32 %v5267_v14, 16  ;;  %v5315_v27 = vld [vmem:[%s6655_s10 + $0x70] sm:$0xf] }
  0xf5   : > { %v1777_v28 = vsel %vm6832_vm5, %v1775_v17, %v1776_v10  ;;  %v1373_v29 = vrot.slane %v1371_v18, 4  ;;  %v1376_v30 = vrot.slane %v1374_v19, 5  ;;  %v1390_v31 = vshll.u32 %v5268_v15, 16  ;;  %v5316_v32 = vld [vmem:[%s6655_s10 + $0x74] sm:$0x1]  ;;  %8395 = vst [vmem:[#allocation5_spill] sm:$0xff] %v7280_v45  ;;  %v5740_v46 = vpop.f32.mrf.mxu0 }
  0xf6   : > { %v1359_v33 = vsel %vm6687_vm2, %v1354_v23, %v1358_v2  ;;  %v1369_v34 = vsel %vm6687_vm2, %v1364_v24, %v1368_v4  ;;  %1881 = vst [vmem:[#allocation2 + $0x230] sm:$0xf] %v1777_v28  ;;  %v1382_v35 = vrot.slane %v1380_v25, 5  ;;  %v1386_v36 = vrot.slane %v1384_v26, 4  ;;  %v5354_v37 = vld [vmem:[%s6655_s10 + $0x18] sm:$0xf] }
  0xf7   : > { %v5355_v38 = vld [vmem:[%s6655_s10 + $0x1c] sm:$0xf]  ;;  %v6461_v40 = vld [vmem:[#allocation2 + $0x444] ss:$36 sps:$4 sm:$0xff]   ;;  %1608 = vst [vmem:[#allocation2 + $0x208] sm:$0xf] %v1359_v33  ;;  %v1377_v42 = vor.u32 %v1376_v30, %v1373_v29  ;;  %v5741_v57 = vpop.f32.mrf.mxu0  ;;  %v5812_v3 = vpop.f32.mrf.mxu1 }
  0xf8   : > { %1609 = vst [vmem:[#allocation2 + $0x22c] sm:$0xf] %v1369_v34  ;;  %v6465_v41 = vld [vmem:[#allocation2 + $0x440] ss:$36 sps:$4 sm:$0xff]   ;;  %v1392_v44 = vrot.slane %v1390_v31, 5  ;;  %v1387_v47 = vor.u32 %v1386_v36, %v1382_v35  ;;  %v5346_v48 = vrot.slane %v5314_v20, 9  ;;  %4523 = vmatprep.mubr.bf16.mxu1 %v6461_v40  ;;  %v7298_v24 = vadd.f32 %v5741_v57, %v5740_v46 }
  0xf9   : > { %1931 = vst [vmem:[#allocation2 + $0x18] sm:$0xf] %v5354_v37  ;;  %1932 = vst [vmem:[#allocation2 + $0x3c] sm:$0xf] %v5355_v38  ;;  %v1780_v49 = vrot.slane %v5315_v27, 5  ;;  %v1783_v50 = vrot.slane %v5316_v32, 5  ;;  %4524 = vmatmul.mubr.bf16.gmra.mxu1 %v6465_v41  ;;  %v7289_v4 = vpop.f32.mrf.mxu0  ;;  %v5813_v17 = vpop.f32.mrf.mxu1 }
  0xfa   : > { %v5386_v51 = vld [vmem:[%s6655_s10 + $0x18] sm:$0xf]  ;;  %v1378_v53 = vrot.slane %v1377_v42, 4  ;;  %v5387_v54 = vld [vmem:[%s6655_s10 + $0x1c] sm:$0xf]  ;;  %v1388_v58 = vrot.slane %v1387_v47, 4  ;;  %v7305_v36 = vadd.f32 %v5813_v17, %v5812_v3 }
  0xfb   : > { %v5388_v55 = vld [vmem:[%s6655_s10 + $0x20] sm:$0x1]  ;;  %v2012_v56 = vshrl.u32 %v5386_v51, 16  ;;  %v1781_v59 = vsel %vm6832_vm5, %v5346_v48, %v1780_v49  ;;  %v1782_v60 = vrot.slane %v1780_v49, 4  ;;  %v2015_v61 = vshll.u32 %v5386_v51, 16  ;;  %v7300_v30 = vpop.f32.mrf.mxu1  ;;  %v7302_v31 = vpop.f32.mrf.mxu0 }
  0xfc   : > { %v1383_v62 = vsel %vm6687_vm2, %v1378_v53, %v1382_v35  ;;  %1882 = vst [vmem:[#allocation2 + $0x254] sm:$0xf] %v1781_v59  ;;  %v2021_v1 = vshll.u32 %v5387_v54, 16  ;;  %v2025_v2 = vshrl.u32 %v5387_v54, 16  ;;  %v1393_v5 = vsel %vm6687_vm2, %v1388_v58, %v1392_v44  ;;  %v5269_v10 = vld [vmem:[%s6655_s10 + $0x78] sm:$0xf] }
  0xfd   : > { %v2014_v63 = vrot.slane %v2012_v56, 4  ;;  %1610 = vst [vmem:[#allocation2 + $0x250] sm:$0xf] %v1383_v62  ;;  %v1784_v6 = vsel %vm6832_vm5, %v1782_v60, %v1783_v50  ;;  %v2017_v7 = vrot.slane %v2015_v61, 5  ;;  %v2031_v9 = vshll.u32 %v5388_v55, 16  ;;  %8396 = vst [vmem:[#allocation6_spill] sm:$0xff] %v7300_v30  ;;  %v7312_v50 = vpop.f32.mrf.mxu1 }
  0xfe   : > { %v5270_v12 = vld [vmem:[%s6655_s10 + $0x7c] sm:$0xf]  ;;  %1611 = vst [vmem:[#allocation2 + $0x274] sm:$0xf] %v1393_v5  ;;  %1883 = vst [vmem:[#allocation2 + $0x278] sm:$0xf] %v1784_v6  ;;  %v5746_v57 = vpop.f32.mrf.mxu0 }
  0xff   : > { %v2023_v8 = vrot.slane %v2021_v1, 5  ;;  %v2027_v13 = vrot.slane %v2025_v2, 4  ;;  %v5271_v14 = vld [vmem:[%s6655_s10 + $0x80] sm:$0x1]  ;;  %v1395_v15 = vshrl.u32 %v5269_v10, 16  ;;  %v1398_v16 = vshll.u32 %v5269_v10, 16 }
 0x100   : > { %v6463_v18 = vld [vmem:[#allocation2 + $0x20c] ss:$36 sps:$4 sm:$0xff]   ;;  %v2018_v19 = vor.u32 %v2017_v7, %v2014_v63  ;;  %v2033_v20 = vrot.slane %v2031_v9, 5  ;;  %v1404_v23 = vshll.u32 %v5270_v12, 16  ;;  %v1408_v29 = vshrl.u32 %v5270_v12, 16  ;;  %8397 = vst [vmem:[#allocation7_spill] sm:$0xff] %v7305_v36  ;;  %v5747_v12 = vpop.f32.mrf.mxu0 }
 0x101   : > { %v6466_v25 = vld [vmem:[#allocation2 + $0x208] ss:$36 sps:$4 sm:$0xff]   ;;  %v2028_v26 = vor.u32 %v2027_v13, %v2023_v8  ;;  %v1397_v27 = vrot.slane %v1395_v15, 4  ;;  %v1400_v28 = vrot.slane %v1398_v16, 5  ;;  %4620 = vmatprep.mubr.bf16.mxu0 %v6463_v18  ;;  %v1414_v34 = vshll.u32 %v5271_v14, 16  ;;  %8398 = vst [vmem:[#allocation8_spill] sm:$0xff] %v7312_v50 }
 0x102   : > { %v2019_v32 = vrot.slane %v2018_v19, 4  ;;  %v1406_v33 = vrot.slane %v1404_v23, 5  ;;  %v5317_v35 = vld [vmem:[%s6655_s10 + $0x78] sm:$0xe]  ;;  %4621 = vmatmul.mubr.bf16.gmra.mxu0 %v6466_v25  ;;  %v1410_v40 = vrot.slane %v1408_v29, 4  ;;  %v7330_v17 = vadd.f32 %v5747_v12, %v5746_v57 }
 0x103   : > { %v2029_v37 = vrot.slane %v2028_v26, 4  ;;  %v1401_v38 = vor.u32 %v1400_v28, %v1397_v27  ;;  %v5318_v41 = vld [vmem:[%s6655_s10 + $0x7c] sm:$0xf]  ;;  %v5319_v42 = vld [vmem:[%s6655_s10 + $0x80] sm:$0x1]  ;;  %v1416_v46 = vrot.slane %v1414_v34, 5  ;;  %v5818_v10 = vpop.f32.mrf.mxu1 }
 0x104   : > { %v2024_v44 = vsel %vm6687_vm2, %v2019_v32, %v2023_v8  ;;  %v5347_v47 = vrot.slane %v5317_v35, 9  ;;  %v1787_v48 = vrot.slane %v5318_v41, 5  ;;  %v5356_v49 = vld [vmem:[%s6655_s10 + $0x24] sm:$0xf]  ;;  %v1411_v54 = vor.u32 %v1410_v40, %v1406_v33  ;;  %v5357_v56 = vld [vmem:[%s6655_s10 + $0x28] sm:$0xf]  ;;  %v7335_v41 = vpop.f32.mrf.mxu0 }
 0x105   : > { %v2034_v51 = vsel %vm6687_vm2, %v2029_v37, %v2033_v20  ;;  %2427 = vst [vmem:[#allocation2 + $0x1c] sm:$0xf] %v2024_v44  ;;  %v1402_v53 = vrot.slane %v1401_v38, 4  ;;  %v1790_v55 = vrot.slane %v5319_v42, 5  ;;  %1933 = vst [vmem:[#allocation2 + $0x60] sm:$0xf] %v5356_v49  ;;  %v5819_v26 = vpop.f32.mrf.mxu1 }
 0x106   : > { %v6467_v58 = vld [vmem:[#allocation2 + $0x254] ss:$36 sps:$4 sm:$0xff]   ;;  %2428 = vst [vmem:[#allocation2 + $0x40] sm:$0xf] %v2034_v51  ;;  %v1788_v60 = vsel %vm6832_vm5, %v5347_v47, %v1787_v48  ;;  %v1789_v61 = vrot.slane %v1787_v48, 4  ;;  %v1412_v63 = vrot.slane %v1411_v54, 4  ;;  %v7337_v48 = vadd.f32 %v5819_v26, %v5818_v10 }
 0x107   : > { %v6472_v59 = vld [vmem:[#allocation2 + $0x250] ss:$36 sps:$4 sm:$0xff]   ;;  %1934 = vst [vmem:[#allocation2 + $0x84] sm:$0xf] %v5357_v56  ;;  %v1407_v62 = vsel %vm6687_vm2, %v1402_v53, %v1406_v33  ;;  %1884 = vst [vmem:[#allocation2 + $0x29c] sm:$0xf] %v1788_v60  ;;  %4628 = vmatprep.mubr.bf16.mxu0 %v6467_v58 }
 0x108   : > { %v5389_v1 = vld [vmem:[%s6655_s10 + $0x24] sm:$0xf]  ;;  %v5390_v2 = vld [vmem:[%s6655_s10 + $0x28] sm:$0xf]  ;;  %1612 = vst [vmem:[#allocation2 + $0x298] sm:$0xf] %v1407_v62  ;;  %v1791_v3 = vsel %vm6832_vm5, %v1789_v61, %v1790_v55  ;;  %v1417_v8 = vsel %vm6687_vm2, %v1412_v63, %v1416_v46 }
 0x109   : > { %v5391_v5 = vld [vmem:[%s6655_s10 + $0x2c] sm:$0x1]  ;;  %v2036_v6 = vshrl.u32 %v5389_v1, 16  ;;  %v2039_v7 = vshll.u32 %v5389_v1, 16  ;;  %v2045_v9 = vshll.u32 %v5390_v2, 16  ;;  %v2049_v13 = vshrl.u32 %v5390_v2, 16 }
 0x10a   : > { %1885 = vst [vmem:[#allocation2 + $0x2c0] sm:$0xf] %v1791_v3  ;;  %v2055_v14 = vshll.u32 %v5391_v5, 16  ;;  %v5272_v15 = vld [vmem:[%s6655_s10 + $0x84] sm:$0xf]  ;;  %4629 = vmatmul.mubr.bf16.gmra.mxu0 %v6472_v59  ;;  %8399 = vst [vmem:[#allocation9_spill] sm:$0xff] %v7337_v48  ;;  %v7345_v3 = vpop.f32.mrf.mxu1  ;;  %v7347_v5 = vpop.f32.mrf.mxu0 }
 0x10b   : > { %v5273_v16 = vld [vmem:[%s6655_s10 + $0x88] sm:$0xf]  ;;  %1613 = vst [vmem:[#allocation2 + $0x2bc] sm:$0xf] %v1417_v8  ;;  %v2038_v18 = vrot.slane %v2036_v6, 4  ;;  %v2041_v19 = vrot.slane %v2039_v7, 5 }
 0x10c   : > { %v2047_v20 = vrot.slane %v2045_v9, 5  ;;  %v5274_v23 = vld [vmem:[%s6655_s10 + $0x8c] sm:$0x1]  ;;  %v1419_v25 = vshrl.u32 %v5272_v15, 16  ;;  %v2051_v27 = vrot.slane %v2049_v13, 4  ;;  %v2057_v28 = vrot.slane %v2055_v14, 5 }
 0x10d   : > { %v1422_v29 = vshll.u32 %v5272_v15, 16  ;;  %v1428_v32 = vshll.u32 %v5273_v16, 16  ;;  %v5320_v33 = vld [vmem:[%s6655_s10 + $0x84] sm:$0xe]  ;;  %v2042_v34 = vor.u32 %v2041_v19, %v2038_v18  ;;  %v1432_v37 = vshrl.u32 %v5273_v16, 16  ;;  %8400 = vst [vmem:[#allocation10_spill] sm:$0xff] %v7345_v3 }
 0x10e   : > { %v1421_v35 = vrot.slane %v1419_v25, 4  ;;  %v1438_v38 = vshll.u32 %v5274_v23, 16  ;;  %v5321_v40 = vld [vmem:[%s6655_s10 + $0x88] sm:$0xf]  ;;  %v6469_v42 = vld [vmem:[#allocation2 + $0x18] ss:$36 sps:$4 sm:$0xff]   ;;  %v2052_v46 = vor.u32 %v2051_v27, %v2047_v20 }
 0x10f   : > { %v6471_v44 = vld [vmem:[#allocation2 + $0x1c] ss:$36 sps:$4 sm:$0xff]   ;;  %v1424_v47 = vrot.slane %v1422_v29, 5  ;;  %v2043_v49 = vrot.slane %v2042_v34, 4  ;;  %v1430_v51 = vrot.slane %v1428_v32, 5  ;;  %v1434_v53 = vrot.slane %v1432_v37, 4  ;;  %v7362_v29 = vpop.f32.mrf.mxu1  ;;  %v5752_v32 = vpop.f32.mrf.mxu0 }
 0x110   : > { %v5322_v54 = vld [vmem:[%s6655_s10 + $0x8c] sm:$0x1]  ;;  %4725 = vmatprep.mubr.bf16.mxu1 %v6471_v44  ;;  %v2053_v55 = vrot.slane %v2052_v46, 4  ;;  %v5348_v57 = vrot.slane %v5320_v33, 9  ;;  %v1794_v58 = vrot.slane %v5321_v40, 5  ;;  %v1440_v62 = vrot.slane %v1438_v38, 5 }
 0x111   : > { %v1425_v56 = vor.u32 %v1424_v47, %v1421_v35  ;;  %v5358_v59 = vld [vmem:[%s6655_s10 + $0x30] sm:$0xf]  ;;  %4726 = vmatmul.mubr.bf16.vlgmr.msra.gmra.mxu1 %v6469_v42  ;;  %v2048_v60 = vsel %vm6687_vm2, %v2043_v49, %v2047_v20  ;;  %v1435_v61 = vor.u32 %v1434_v53, %v1430_v51  ;;  %v1797_v63 = vrot.slane %v5322_v54, 5  ;;  %v5359_v1 = vld [vmem:[%s6655_s10 + $0x34] sm:$0xf]  ;;  %8401 = vst [vmem:[#allocation11_spill] sm:$0xff] %v7362_v29 }
 0x112   : > { %1935 = vst [vmem:[#allocation2 + $0xa8] sm:$0xf] %v5358_v59  ;;  %v5392_v2 = vld [vmem:[%s6655_s10 + $0x30] sm:$0xf]  ;;  %v6474_v6 = vld [vmem:[#allocation2 + $0x29c] ss:$36 sps:$4 sm:$0xff]   ;;  %v2058_v7 = vsel %vm6687_vm2, %v2053_v55, %v2057_v28  ;;  %v1795_v12 = vsel %vm6832_vm5, %v5348_v57, %v1794_v58 }
 0x113   : > { %2429 = vst [vmem:[#allocation2 + $0x64] sm:$0xf] %v2048_v60  ;;  %v6478_v9 = vld [vmem:[#allocation2 + $0x298] ss:$36 sps:$4 sm:$0xff]   ;;  %v1426_v10 = vrot.slane %v1425_v56, 4  ;;  %v1436_v8 = vrot.slane %v1435_v61, 4  ;;  %4636 = vmatprep.mubr.bf16.mxu0 %v6474_v6  ;;  %v5753_v56 = vpop.f32.mrf.mxu0 }
 0x114   : > { %1936 = vst [vmem:[#allocation2 + $0xcc] sm:$0xf] %v5359_v1  ;;  %2430 = vst [vmem:[#allocation2 + $0x88] sm:$0xf] %v2058_v7  ;;  %v1796_v13 = vrot.slane %v1794_v58, 4  ;;  %v2060_v18 = vshrl.u32 %v5392_v2, 16  ;;  %4637 = vmatmul.mubr.bf16.gmra.mxu0 %v6478_v9  ;;  %v7368_v6 = vadd.f32 %v5753_v56, %v5752_v32 }
 0x115   : > { %1886 = vst [vmem:[#allocation2 + $0x2e4] sm:$0xf] %v1795_v12  ;;  %v5393_v14 = vld [vmem:[%s6655_s10 + $0x34] sm:$0xf]  ;;  %v5394_v15 = vld [vmem:[%s6655_s10 + $0x38] sm:$0x1]  ;;  %v1431_v16 = vsel %vm6687_vm2, %v1426_v10, %v1430_v51  ;;  %v1441_v23 = vsel %vm6687_vm2, %v1436_v8, %v1440_v62  ;;  %v5824_v62 = vpop.f32.mrf.mxu1 }
 0x116   : > { %v2063_v19 = vshll.u32 %v5392_v2, 16  ;;  %v2069_v20 = vshll.u32 %v5393_v14, 16  ;;  %1614 = vst [vmem:[#allocation2 + $0x2e0] sm:$0xf] %v1431_v16  ;;  %v1798_v25 = vsel %vm6832_vm5, %v1796_v13, %v1797_v63  ;;  %v2073_v26 = vshrl.u32 %v5393_v14, 16  ;;  %v8418_v43 = vld [vmem:[#allocation8_spill] sm:$0xff] }
 0x117   : > { %v2079_v27 = vshll.u32 %v5394_v15, 16  ;;  %v5275_v28 = vld [vmem:[%s6655_s10 + $0x90] sm:$0xf]  ;;  %1615 = vst [vmem:[#allocation2 + $0x304] sm:$0xf] %v1441_v23  ;;  %v2062_v33 = vrot.slane %v2060_v18, 4  ;;  %v5825_v13 = vpop.f32.mrf.mxu1 }
 0x118   : > { %1887 = vst [vmem:[#allocation2 + $0x308] sm:$0xf] %v1798_v25  ;;  %v2065_v34 = vrot.slane %v2063_v19, 5  ;;  %v2071_v35 = vrot.slane %v2069_v20, 5  ;;  %v5276_v37 = vld [vmem:[%s6655_s10 + $0x94] sm:$0xf]  ;;  %v7374_v19 = vadd.f32 %v5825_v13, %v5824_v62  ;;  %v7376_v20 = vpop.f32.mrf.mxu0 }
 0x119   : > { %v1443_v38 = vshrl.u32 %v5275_v28, 16  ;;  %v2075_v40 = vrot.slane %v2073_v26, 4  ;;  %v2081_v42 = vrot.slane %v2079_v27, 5  ;;  %v5277_v44 = vld [vmem:[%s6655_s10 + $0x98] sm:$0x1]  ;;  %v1446_v46 = vshll.u32 %v5275_v28, 16  ;;  %v7380_v32 = vpop.f32.mrf.mxu1 }
 0x11a   : > { %v1452_v47 = vshll.u32 %v5276_v37, 16  ;;  %v2066_v49 = vor.u32 %v2065_v34, %v2062_v33  ;;  %v1456_v53 = vshrl.u32 %v5276_v37, 16  ;;  %v1462_v54 = vshll.u32 %v5277_v44, 16  ;;  %v5323_v55 = vld [vmem:[%s6655_s10 + $0x90] sm:$0xe]  ;;  %8402 = vst [vmem:[#allocation12_spill] sm:$0xff] %v7374_v19  ;;  %v7395_v56 = vpop.f32.mrf.mxu0 }
 0x11b   : > { %v1445_v51 = vrot.slane %v1443_v38, 4  ;;  %v2076_v57 = vor.u32 %v2075_v40, %v2071_v35  ;;  %v1448_v58 = vrot.slane %v1446_v46, 5  ;;  %v5324_v60 = vld [vmem:[%s6655_s10 + $0x94] sm:$0xf]  ;;  %v5349_v61 = vrot.slane %v5323_v55, 9  ;;  %8403 = vst [vmem:[#allocation13_spill] sm:$0xff] %v7380_v32 }
 0x11c   : > { %v1454_v59 = vrot.slane %v1452_v47, 5  ;;  %v6476_v63 = vld [vmem:[#allocation2 + $0x64] ss:$36 sps:$4 sm:$0xff]   ;;  %v2067_v2 = vrot.slane %v2066_v49, 4  ;;  %v1458_v10 = vrot.slane %v1456_v53, 4  ;;  %v1464_v12 = vrot.slane %v1462_v54, 5  ;;  %v7390_v47 = vpop.f32.mrf.mxu1 }
 0x11d   : > { %v6479_v1 = vld [vmem:[#allocation2 + $0x60] ss:$36 sps:$4 sm:$0xff]   ;;  %v2077_v7 = vrot.slane %v2076_v57, 4  ;;  %v1449_v9 = vor.u32 %v1448_v58, %v1445_v51  ;;  %v5325_v8 = vld [vmem:[%s6655_s10 + $0x98] sm:$0x1]  ;;  %4733 = vmatprep.mubr.bf16.mxu1 %v6476_v63  ;;  %v1801_v15 = vrot.slane %v5324_v60, 5 }
 0x11e   : > { %v2072_v14 = vsel %vm6687_vm2, %v2067_v2, %v2071_v35  ;;  %v1804_v16 = vrot.slane %v5325_v8, 5  ;;  %v5360_v18 = vld [vmem:[%s6655_s10 + $0x3c] sm:$0xf]  ;;  %4734 = vmatmul.mubr.bf16.gmra.mxu1 %v6479_v1  ;;  %v6484_v26 = vld [vmem:[#allocation2 + $0x2e0] ss:$36 sps:$4 sm:$0xff]   ;;  %v1459_v28 = vor.u32 %v1458_v10, %v1454_v59  ;;  %8404 = vst [vmem:[#allocation14_spill] sm:$0xff] %v7390_v47 }
 0x11f   : > { %v6480_v23 = vld [vmem:[#allocation2 + $0x2e4] ss:$36 sps:$4 sm:$0xff]   ;;  %v2082_v25 = vsel %vm6687_vm2, %v2077_v7, %v2081_v42  ;;  %2431 = vst [vmem:[#allocation2 + $0xac] sm:$0xf] %v2072_v14  ;;  %v1450_v27 = vrot.slane %v1449_v9, 4  ;;  %v1802_v33 = vsel %vm6832_vm5, %v5349_v61, %v1801_v15  ;;  %v1803_v34 = vrot.slane %v1801_v15, 4  ;;  %v5846_v9 = vpop.f32.mrf.mxu1 }
 0x120   : > { %1937 = vst [vmem:[#allocation2 + $0xf0] sm:$0xf] %v5360_v18  ;;  %2432 = vst [vmem:[#allocation2 + $0xd0] sm:$0xf] %v2082_v25  ;;  %v5361_v35 = vld [vmem:[%s6655_s10 + $0x40] sm:$0xf]  ;;  %4644 = vmatprep.mubr.bf16.mxu0 %v6480_v23 }
 0x121   : > { %v5395_v37 = vld [vmem:[%s6655_s10 + $0x3c] sm:$0xf]  ;;  %v1455_v38 = vsel %vm6687_vm2, %v1450_v27, %v1454_v59  ;;  %v1460_v40 = vrot.slane %v1459_v28, 4  ;;  %1888 = vst [vmem:[#allocation2 + $0x32c] sm:$0xf] %v1802_v33  ;;  %4645 = vmatmul.mubr.bf16.gmra.mxu0 %v6484_v26  ;;  %v1805_v49 = vsel %vm6832_vm5, %v1803_v34, %v1804_v16  ;;  %v5758_v26 = vpop.f32.mrf.mxu0  ;;  %v5847_v27 = vpop.f32.mrf.mxu1 }
 0x122   : > { %1938 = vst [vmem:[#allocation2 + $0x114] sm:$0xf] %v5361_v35  ;;  %v5396_v42 = vld [vmem:[%s6655_s10 + $0x40] sm:$0xf]  ;;  %v5397_v44 = vld [vmem:[%s6655_s10 + $0x44] sm:$0x1]  ;;  %v7404_v35 = vadd.f32 %v5847_v27, %v5846_v9 }
 0x123   : > { %v2084_v46 = vshrl.u32 %v5395_v37, 16  ;;  %1616 = vst [vmem:[#allocation2 + $0x328] sm:$0xf] %v1455_v38  ;;  %v2087_v51 = vshll.u32 %v5395_v37, 16  ;;  %v2093_v53 = vshll.u32 %v5396_v42, 16  ;;  %v2097_v54 = vshrl.u32 %v5396_v42, 16 }
 0x124   : > { %v5278_v55 = vld [vmem:[%s6655_s10 + $0x9c] sm:$0xf]  ;;  %v1465_v57 = vsel %vm6687_vm2, %v1460_v40, %v1464_v12  ;;  %1889 = vst [vmem:[#allocation2 + $0x350] sm:$0xf] %v1805_v49  ;;  %v2103_v59 = vshll.u32 %v5397_v44, 16  ;;  %v7407_v49 = vpop.f32.mrf.mxu1 }
 0x125   : > { %v2086_v58 = vrot.slane %v2084_v46, 4  ;;  %v5279_v60 = vld [vmem:[%s6655_s10 + $0xa0] sm:$0xf]  ;;  %v5280_v61 = vld [vmem:[%s6655_s10 + $0xa4] sm:$0x1]  ;;  %v2089_v62 = vrot.slane %v2087_v51, 5  ;;  %v5759_v46 = vpop.f32.mrf.mxu0 }
 0x126   : > { %1617 = vst [vmem:[#allocation2 + $0x34c] sm:$0xf] %v1465_v57  ;;  %v2095_v63 = vrot.slane %v2093_v53, 5  ;;  %v2099_v1 = vrot.slane %v2097_v54, 4  ;;  %v1467_v2 = vshrl.u32 %v5278_v55, 16  ;;  %v2105_v10 = vrot.slane %v2103_v59, 5 }
 0x127   : > { %v5326_v7 = vld [vmem:[%s6655_s10 + $0x9c] sm:$0xe]  ;;  %v1470_v8 = vshll.u32 %v5278_v55, 16  ;;  %v1476_v13 = vshll.u32 %v5279_v60, 16  ;;  %v1480_v14 = vshrl.u32 %v5279_v60, 16  ;;  %v2090_v12 = vor.u32 %v2089_v62, %v2086_v58 }
 0x128   : > { %v5327_v15 = vld [vmem:[%s6655_s10 + $0xa0] sm:$0xf]  ;;  %v2100_v16 = vor.u32 %v2099_v1, %v2095_v63  ;;  %v1469_v18 = vrot.slane %v1467_v2, 4  ;;  %v1486_v23 = vshll.u32 %v5280_v61, 16  ;;  %v5328_v25 = vld [vmem:[%s6655_s10 + $0xa4] sm:$0x1]  ;;  %v7416_v2 = vpop.f32.mrf.mxu0 }
 0x129   : > { %v6482_v28 = vld [vmem:[#allocation2 + $0xac] ss:$36 sps:$4 sm:$0xff]   ;;  %v1472_v34 = vrot.slane %v1470_v8, 5  ;;  %v2091_v37 = vrot.slane %v2090_v12, 4  ;;  %v1478_v40 = vrot.slane %v1476_v13, 5  ;;  %v1482_v42 = vrot.slane %v1480_v14, 4 }
 0x12a   : > { %v6485_v33 = vld [vmem:[#allocation2 + $0xa8] ss:$36 sps:$4 sm:$0xff]   ;;  %v2101_v38 = vrot.slane %v2100_v16, 4  ;;  %4741 = vmatprep.mubr.bf16.mxu1 %v6482_v28  ;;  %v1488_v53 = vrot.slane %v1486_v23, 5  ;;  %v5350_v54 = vrot.slane %v5326_v7, 9  ;;  %v1808_v55 = vrot.slane %v5327_v15, 5  ;;  %v7425_v23 = vpop.f32.mrf.mxu1 }
 0x12b   : > { %v5362_v44 = vld [vmem:[%s6655_s10 + $0x48] sm:$0xf]  ;;  %v1473_v51 = vor.u32 %v1472_v34, %v1469_v18  ;;  %v5363_v57 = vld [vmem:[%s6655_s10 + $0x4c] sm:$0xf]  ;;  %4742 = vmatmul.mubr.bf16.gmra.mxu1 %v6485_v33  ;;  %v2096_v58 = vsel %vm6687_vm2, %v2091_v37, %v2095_v63  ;;  %v1483_v60 = vor.u32 %v1482_v42, %v1478_v40  ;;  %v1811_v61 = vrot.slane %v5328_v25, 5  ;;  %v7423_v18 = vpop.f32.mrf.mxu0 }
 0x12c   : > { %1939 = vst [vmem:[#allocation2 + $0x138] sm:$0xf] %v5362_v44  ;;  %v2106_v59 = vsel %vm6687_vm2, %v2101_v38, %v2105_v10  ;;  %1940 = vst [vmem:[#allocation2 + $0x15c] sm:$0xf] %v5363_v57  ;;  %v5398_v62 = vld [vmem:[%s6655_s10 + $0x48] sm:$0xf]  ;;  %v1809_v13 = vsel %vm6832_vm5, %v5350_v54, %v1808_v55  ;;  %v7420_v63 = vadd.f32 %v5759_v46, %v5758_v26 }
 0x12d   : > { %v5399_v1 = vld [vmem:[%s6655_s10 + $0x4c] sm:$0xf]  ;;  %2433 = vst [vmem:[#allocation2 + $0xf4] sm:$0xf] %v2096_v58  ;;  %2434 = vst [vmem:[#allocation2 + $0x118] sm:$0xf] %v2106_v59 }
 0x12e   : > { %v6487_v9 = vld [vmem:[#allocation2 + $0x32c] ss:$36 sps:$4 sm:$0xff]   ;;  %v1474_v8 = vrot.slane %v1473_v51, 4  ;;  %v1484_v14 = vrot.slane %v1483_v60, 4  ;;  %v1810_v10 = vrot.slane %v1808_v55, 4  ;;  %v2108_v12 = vshrl.u32 %v5398_v62, 16  ;;  %v7434_v51 = vpop.f32.mrf.mxu0 }
 0x12f   : > { %v6491_v7 = vld [vmem:[#allocation2 + $0x328] ss:$36 sps:$4 sm:$0xff]   ;;  %1890 = vst [vmem:[#allocation2 + $0x374] sm:$0xf] %v1809_v13  ;;  %v5400_v15 = vld [vmem:[%s6655_s10 + $0x50] sm:$0x1]  ;;  %4652 = vmatprep.mubr.bf16.mxu0 %v6487_v9 }
 0x130   : > { %v2111_v16 = vshll.u32 %v5398_v62, 16  ;;  %v1479_v25 = vsel %vm6687_vm2, %v1474_v8, %v1478_v40  ;;  %v2117_v27 = vshll.u32 %v5399_v1, 16  ;;  %v2121_v28 = vshrl.u32 %v5399_v1, 16  ;;  %4653 = vmatmul.mubr.bf16.gmra.mxu0 %v6491_v7  ;;  %v5281_v46 = vld [vmem:[%s6655_s10 + $0xa8] sm:$0xf]  ;;  %v7442_v9 = vpop.f32.mrf.mxu0 }
 0x131   : > { %v2127_v26 = vshll.u32 %v5400_v15, 16  ;;  %v1489_v33 = vsel %vm6687_vm2, %v1484_v14, %v1488_v53  ;;  %1618 = vst [vmem:[#allocation2 + $0x370] sm:$0xf] %v1479_v25  ;;  %v1812_v34 = vsel %vm6832_vm5, %v1810_v10, %v1811_v61  ;;  %v2110_v37 = vrot.slane %v2108_v12, 4  ;;  %v5282_v55 = vld [vmem:[%s6655_s10 + $0xac] sm:$0xf]  ;;  %v7439_v53 = vpop.f32.mrf.mxu1 }
 0x132   : > { %v2113_v38 = vrot.slane %v2111_v16, 5  ;;  %1619 = vst [vmem:[#allocation2 + $0x394] sm:$0xf] %v1489_v33  ;;  %1891 = vst [vmem:[#allocation2 + $0x398] sm:$0xf] %v1812_v34  ;;  %v2119_v40 = vrot.slane %v2117_v27, 5  ;;  %v7446_v27 = vpop.f32.mrf.mxu0 }
 0x133   : > { %v2123_v42 = vrot.slane %v2121_v28, 4  ;;  %v2129_v44 = vrot.slane %v2127_v26, 5  ;;  %v5283_v57 = vld [vmem:[%s6655_s10 + $0xb0] sm:$0x1]  ;;  %v5329_v58 = vld [vmem:[%s6655_s10 + $0xa8] sm:$0xe]  ;;  %v7444_v14 = vpop.f32.mrf.mxu1 }
 0x134   : > { %v2114_v54 = vor.u32 %v2113_v38, %v2110_v37  ;;  %v1491_v60 = vshrl.u32 %v5281_v46, 16  ;;  %v1494_v61 = vshll.u32 %v5281_v46, 16  ;;  %v1500_v62 = vshll.u32 %v5282_v55, 16  ;;  %v5330_v1 = vld [vmem:[%s6655_s10 + $0xac] sm:$0xf] }
 0x135   : > { %v2124_v59 = vor.u32 %v2123_v42, %v2119_v40  ;;  %v6489_v7 = vld [vmem:[#allocation2 + $0xf4] ss:$36 sps:$4 sm:$0xff]   ;;  %v1504_v13 = vshrl.u32 %v5282_v55, 16  ;;  %v1510_v33 = vshll.u32 %v5283_v57, 16  ;;  %v5331_v34 = vld [vmem:[%s6655_s10 + $0xb0] sm:$0x1]  ;;  %v7451_v38 = vpop.f32.mrf.mxu1 }
 0x136   : > { %v2115_v8 = vrot.slane %v2114_v54, 4  ;;  %v6492_v10 = vld [vmem:[#allocation2 + $0xf0] ss:$36 sps:$4 sm:$0xff]   ;;  %v1493_v12 = vrot.slane %v1491_v60, 4  ;;  %v1496_v16 = vrot.slane %v1494_v61, 5  ;;  %v1502_v25 = vrot.slane %v1500_v62, 5  ;;  %4749 = vmatprep.mubr.bf16.mxu1 %v6489_v7  ;;  %v7456_v60 = vpop.f32.mrf.mxu0 }
 0x137   : > { %v2125_v15 = vrot.slane %v2124_v59, 4  ;;  %v1506_v26 = vrot.slane %v1504_v13, 4  ;;  %v5351_v37 = vrot.slane %v5329_v58, 9  ;;  %4750 = vmatmul.mubr.bf16.gmra.mxu1 %v6492_v10  ;;  %v1815_v54 = vrot.slane %v5330_v1, 5  ;;  %v5364_v59 = vld [vmem:[%s6655_s10 + $0x54] sm:$0xf]  ;;  %v7458_v62 = vpop.f32.mrf.mxu1 }
 0x138   : > { %v2120_v28 = vsel %vm6687_vm2, %v2115_v8, %v2119_v40  ;;  %v1497_v46 = vor.u32 %v1496_v16, %v1493_v12  ;;  %v1818_v55 = vrot.slane %v5331_v34, 5  ;;  %v1512_v61 = vrot.slane %v1510_v33, 5  ;;  %1941 = vst [vmem:[#allocation2 + $0x180] sm:$0xf] %v5364_v59  ;;  %v5365_v1 = vld [vmem:[%s6655_s10 + $0x58] sm:$0xf] }
 0x139   : > { %v2130_v42 = vsel %vm6687_vm2, %v2125_v15, %v2129_v44  ;;  %2435 = vst [vmem:[#allocation2 + $0x13c] sm:$0xf] %v2120_v28  ;;  %v6493_v40 = vld [vmem:[#allocation2 + $0x374] ss:$36 sps:$4 sm:$0xff]   ;;  %v1507_v58 = vor.u32 %v1506_v26, %v1502_v25  ;;  %v1816_v7 = vsel %vm6832_vm5, %v5351_v37, %v1815_v54  ;;  %v1817_v8 = vrot.slane %v1815_v54, 4  ;;  %v7482_v54 = vpop.f32.mrf.mxu1 }
 0x13a   : > { %2436 = vst [vmem:[#allocation2 + $0x160] sm:$0xf] %v2130_v42  ;;  %v6497_v57 = vld [vmem:[#allocation2 + $0x370] ss:$36 sps:$4 sm:$0xff]   ;;  %v1498_v44 = vrot.slane %v1497_v46, 4  ;;  %4660 = vmatprep.mubr.bf16.mxu0 %v6493_v40  ;;  %v7466_v10 = vadd.f32 %v7268_v22, %v7256_v0  ;;  %v7472_v26 = vadd.f32 %v7302_v31, %v7289_v4  ;;  %v7480_v46 = vpop.f32.mrf.mxu0 }
 0x13b   : > { %v5401_v13 = vld [vmem:[%s6655_s10 + $0x54] sm:$0xf]  ;;  %v1508_v15 = vrot.slane %v1507_v58, 4  ;;  %1892 = vst [vmem:[#allocation2 + $0x3bc] sm:$0xf] %v1816_v7  ;;  %4661 = vmatmul.mubr.bf16.gmra.mxu0 %v6497_v57  ;;  %v1819_v34 = vsel %vm6832_vm5, %v1817_v8, %v1818_v55 }
 0x13c   : > { %1942 = vst [vmem:[#allocation2 + $0x1a4] sm:$0xf] %v5365_v1  ;;  %v5402_v12 = vld [vmem:[%s6655_s10 + $0x58] sm:$0xf]  ;;  %v5403_v16 = vld [vmem:[%s6655_s10 + $0x5c] sm:$0x1]  ;;  %v1503_v33 = vsel %vm6687_vm2, %v1498_v44, %v1502_v25  ;;  %v7488_v8 = vpop.f32.mrf.mxu0  ;;  %v7490_v1 = vpop.f32.mrf.mxu1 }
 0x13d   : > { %v2132_v28 = vshrl.u32 %v5401_v13, 16  ;;  %v2135_v0 = vshll.u32 %v5401_v13, 16  ;;  %v2141_v22 = vshll.u32 %v5402_v12, 16  ;;  %v5284_v37 = vld [vmem:[%s6655_s10 + $0xb4] sm:$0xf]  ;;  %v1513_v4 = vsel %vm6687_vm2, %v1508_v15, %v1512_v61 }
 0x13e   : > { %v5285_v42 = vld [vmem:[%s6655_s10 + $0xb8] sm:$0xf]  ;;  %1620 = vst [vmem:[#allocation2 + $0x3b8] sm:$0xf] %v1503_v33  ;;  %1893 = vst [vmem:[#allocation2 + $0x3e0] sm:$0xf] %v1819_v34  ;;  %v7494_v34 = vadd.f32 %v7347_v5, %v7335_v41 }
 0x13f   : > { %v2134_v31 = vrot.slane %v2132_v28, 4  ;;  %v2145_v59 = vshrl.u32 %v5402_v12, 16  ;;  %v2151_v25 = vshll.u32 %v5403_v16, 16  ;;  %v5286_v40 = vld [vmem:[%s6655_s10 + $0xbc] sm:$0x1]  ;;  %v2137_v55 = vrot.slane %v2135_v0, 5 }
 0x140   : > { %1621 = vst [vmem:[#allocation2 + $0x3dc] sm:$0xf] %v1513_v4  ;;  %v2143_v57 = vrot.slane %v2141_v22, 5  ;;  %v1515_v58 = vshrl.u32 %v5284_v37, 16  ;;  %v1518_v44 = vshll.u32 %v5284_v37, 16  ;;  %v1524_v61 = vshll.u32 %v5285_v42, 16  ;;  %v7500_v22 = vpop.f32.mrf.mxu0  ;;  %v7502_v37 = vpop.f32.mrf.mxu1 }
 0x141   : > { %v5332_v7 = vld [vmem:[%s6655_s10 + $0xb4] sm:$0xe]  ;;  %v2147_v13 = vrot.slane %v2145_v59, 4  ;;  %v2153_v47 = vrot.slane %v2151_v25, 5  ;;  %v1528_v15 = vshrl.u32 %v5285_v42, 16  ;;  %v2138_v12 = vor.u32 %v2137_v55, %v2134_v31 }
 0x142   : > { %v6495_v33 = vld [vmem:[#allocation2 + $0x13c] ss:$36 sps:$4 sm:$0xff]   ;;  %v1517_v16 = vrot.slane %v1515_v58, 4  ;;  %v7498_v0 = vadd.f32 %v7395_v56, %v7376_v20  ;;  %v1520_v59 = vrot.slane %v1518_v44, 5  ;;  %v1526_v42 = vrot.slane %v1524_v61, 5  ;;  %v7511_v32 = vpop.f32.mrf.mxu1  ;;  %v7515_v29 = vpop.f32.mrf.mxu0 }
 0x143   : > { %v6498_v28 = vld [vmem:[#allocation2 + $0x138] ss:$36 sps:$4 sm:$0xff]   ;;  %v2148_v4 = vor.u32 %v2147_v13, %v2143_v57  ;;  %v1530_v25 = vrot.slane %v1528_v15, 4  ;;  %4757 = vmatprep.mubr.bf16.mxu1 %v6495_v33  ;;  %v7508_v41 = vld [vmem:[%s8387_s2] ss:$0 sm:$0xff]  ;;  %v2139_v5 = vrot.slane %v2138_v12, 4 }
 0x144   : > { %v5333_v31 = vld [vmem:[%s6655_s10 + $0xb8] sm:$0xf]  ;;  %v1534_v20 = vshll.u32 %v5286_v40, 16  ;;  %v5334_v56 = vld [vmem:[%s6655_s10 + $0xbc] sm:$0x1]  ;;  %v5352_v55 = vrot.slane %v5332_v7, 9  ;;  %4758 = vmatmul.mubr.bf16.gmra.mxu1 %v6498_v28  ;;  %v1521_v13 = vor.u32 %v1520_v59, %v1517_v16  ;;  %v4245_v16 = vadd.f32 %v7249_v52, %v7508_v41 }
 0x145   : > { %v1822_v58 = vrot.slane %v5333_v31, 5  ;;  %v2149_v44 = vrot.slane %v2148_v4, 4  ;;  %v1531_v61 = vor.u32 %v1530_v25, %v1526_v42  ;;  %v1825_v15 = vrot.slane %v5334_v56, 5  ;;  %v5366_v19 = vld [vmem:[%s6655_s10 + $0x60] sm:$0xf] }
 0x146   : > { %v5367_v33 = vld [vmem:[%s6655_s10 + $0x64] sm:$0xf]  ;;  %v2144_v3 = vsel %vm6687_vm2, %v2139_v5, %v2143_v57  ;;  %v1536_v12 = vrot.slane %v1534_v20, 5  ;;  %1943 = vst [vmem:[#allocation2 + $0x1c8] sm:$0xf] %v5366_v19  ;;  %v1522_v57 = vrot.slane %v1521_v13, 4  ;;  %v5851_v31 = vadd.f32 %v7425_v23, %v7407_v49 }
 0x147   : > { %v1823_v40 = vsel %vm6832_vm5, %v5352_v55, %v1822_v58  ;;  %v1824_v7 = vrot.slane %v1822_v58, 4  ;;  %1944 = vst [vmem:[#allocation2 + $0x1ec] sm:$0xf] %v5367_v33  ;;  %v5404_v28 = vld [vmem:[%s6655_s10 + $0x60] sm:$0xf]  ;;  %v2154_v59 = vsel %vm6687_vm2, %v2149_v44, %v2153_v47  ;;  %v4248_v19 = vadd.f32 %v7466_v10, %v7508_v41  ;;  %v7534_v47 = vpop.f32.mrf.mxu1  ;;  %v7538_v58 = vpop.f32.mrf.mxu0 }
 0x148   : > { %v6500_v4 = vld [vmem:[#allocation2 + $0x3bc] ss:$36 sps:$4 sm:$0xff]   ;;  %2437 = vst [vmem:[#allocation2 + $0x184] sm:$0xf] %v2144_v3  ;;  %1894 = vst [vmem:[#allocation2 + $0x404] sm:$0xf] %v1823_v40  ;;  %v1527_v3 = vsel %vm6687_vm2, %v1522_v57, %v1526_v42  ;;  %v7542_v44 = vadd.f32 %v7298_v24, %v7508_v41 }
 0x149   : > { %v6504_v25 = vld [vmem:[#allocation2 + $0x3b8] ss:$36 sps:$4 sm:$0xff]   ;;  %2438 = vst [vmem:[#allocation2 + $0x1a8] sm:$0xf] %v2154_v59  ;;  %v1532_v5 = vrot.slane %v1531_v61, 4  ;;  %v1826_v20 = vsel %vm6832_vm5, %v1824_v7, %v1825_v15  ;;  %v2156_v55 = vshrl.u32 %v5404_v28, 16  ;;  %4668 = vmatprep.mubr.bf16.mxu0 %v6500_v4  ;;  %v7547_v33 = vpop.f32.mrf.mxu1 }
 0x14a   : > { %v5405_v52 = vld [vmem:[%s6655_s10 + $0x64] sm:$0xf]  ;;  %v5406_v56 = vld [vmem:[%s6655_s10 + $0x68] sm:$0x1]  ;;  %1895 = vst [vmem:[#allocation2 + $0x428] sm:$0xf] %v1826_v20  ;;  %4669 = vmatmul.mubr.bf16.gmra.mxu0 %v6504_v25  ;;  %v7550_v25 = vpop.f32.mrf.mxu0 }
 0x14b   : > { %v2159_v49 = vshll.u32 %v5404_v28, 16  ;;  %v2165_v23 = vshll.u32 %v5405_v52, 16  ;;  %v2169_v10 = vshrl.u32 %v5405_v52, 16  ;;  %v1537_v13 = vsel %vm6687_vm2, %v1532_v5, %v1536_v12  ;;  %1622 = vst [vmem:[#allocation2 + $0x400] sm:$0xf] %v1527_v3  ;;  %v7553_v52 = vpop.f32.mrf.mxu1 }
 0x14c   : > { %v2158_v61 = vrot.slane %v2156_v55, 4  ;;  %v2175_v15 = vshll.u32 %v5406_v56, 16  ;;  %v5287_v42 = vld [vmem:[%s6655_s10 + $0xc0] sm:$0xf]  ;;  %1623 = vst [vmem:[#allocation2 + $0x424] sm:$0xf] %v1537_v13  ;;  %v7557_v48 = vpop.f32.mrf.mxu0 }
 0x14d   : > { %v2161_v40 = vrot.slane %v2159_v49, 5  ;;  %v2167_v7 = vrot.slane %v2165_v23, 5  ;;  %v2171_v28 = vrot.slane %v2169_v10, 4  ;;  %v5288_v4 = vld [vmem:[%s6655_s10 + $0xc4] sm:$0xf]  ;;  %v1539_v59 = vshrl.u32 %v5287_v42, 16 }
 0x14e   : > { %v2177_v24 = vrot.slane %v2175_v15, 5  ;;  %v5289_v57 = vld [vmem:[%s6655_s10 + $0xc8] sm:$0x1]  ;;  %v1542_v12 = vshll.u32 %v5287_v42, 16  ;;  %v1548_v5 = vshll.u32 %v5288_v4, 16  ;;  %v1552_v20 = vshrl.u32 %v5288_v4, 16  ;;  %v7563_v4 = vpop.f32.mrf.mxu1 }
 0x14f   : > { %v2162_v56 = vor.u32 %v2161_v40, %v2158_v61  ;;  %v2172_v55 = vor.u32 %v2171_v28, %v2167_v7  ;;  %v1541_v3 = vrot.slane %v1539_v59, 4  ;;  %v1558_v49 = vshll.u32 %v5289_v57, 16  ;;  %v5335_v13 = vld [vmem:[%s6655_s10 + $0xc0] sm:$0xe]  ;;  %v5336_v23 = vld [vmem:[%s6655_s10 + $0xc4] sm:$0xf] }
 0x150   : > { %v1544_v10 = vrot.slane %v1542_v12, 5  ;;  %v1550_v50 = vrot.slane %v1548_v5, 5  ;;  %v1554_v30 = vrot.slane %v1552_v20, 4  ;;  %v5337_v15 = vld [vmem:[%s6655_s10 + $0xc8] sm:$0x1]  ;;  %v7561_v42 = vadd.f32 %v7404_v35, %v4245_v16  ;;  %v7575_v12 = vpop.f32.mrf.mxu0 }
 0x151   : > { %v6502_v36 = vld [vmem:[#allocation2 + $0x184] ss:$36 sps:$4 sm:$0xff]   ;;  %v7567_v40 = vadd.f32 %v7472_v26, %v7508_v41  ;;  %v2163_v28 = vrot.slane %v2162_v56, 4  ;;  %v7569_v59 = vadd.f32 %v5851_v31, %v4248_v19  ;;  %v7573_v57 = vadd.f32 %v7442_v9, %v7434_v51  ;;  %8407 = vst [vmem:[#allocation17_spill] sm:$0xff] %v7575_v12  ;;  %v5368_v11 = vld [vmem:[%s6655_s10 + $0x6c] sm:$0xf] }
 0x152   : > { %8405 = vst [vmem:[#allocation15_spill] sm:$0xff] %v7561_v42  ;;  %v6505_v61 = vld [vmem:[#allocation2 + $0x180] ss:$36 sps:$4 sm:$0xff]   ;;  %v2173_v35 = vrot.slane %v2172_v55, 4  ;;  %v1545_v16 = vor.u32 %v1544_v10, %v1541_v3  ;;  %v1555_v5 = vor.u32 %v1554_v30, %v1550_v50  ;;  %v1560_v20 = vrot.slane %v1558_v49, 5  ;;  %4765 = vmatprep.mubr.bf16.mxu1 %v6502_v36  ;;  %v7594_v3 = vpop.f32.mrf.mxu1 }
 0x153   : > { %8406 = vst [vmem:[#allocation16_spill] sm:$0xff] %v7569_v59  ;;  %v5369_v45 = vld [vmem:[%s6655_s10 + $0x70] sm:$0xf]  ;;  %v2168_v26 = vsel %vm6687_vm2, %v2163_v28, %v2167_v7  ;;  %v5353_v56 = vrot.slane %v5335_v13, 9  ;;  %v1829_v31 = vrot.slane %v5336_v23, 5  ;;  %v1832_v19 = vrot.slane %v5337_v15, 5  ;;  %4766 = vmatmul.mubr.bf16.gmra.mxu1 %v6505_v61 }
 0x154   : > { %1945 = vst [vmem:[#allocation2 + $0x210] sm:$0xf] %v5368_v11  ;;  %1946 = vst [vmem:[#allocation2 + $0x234] sm:$0xf] %v5369_v45  ;;  %v5407_v51 = vld [vmem:[%s6655_s10 + $0x6c] sm:$0xf]  ;;  %v2178_v30 = vsel %vm6687_vm2, %v2173_v35, %v2177_v24  ;;  %v7586_v36 = vadd.f32 %v7330_v17, %v7508_v41  ;;  %v7590_v7 = vadd.f32 %v7494_v34, %v7508_v41  ;;  %v7592_v45 = vpop.f32.mrf.mxu0 }
 0x155   : > { %v6506_v9 = vld [vmem:[#allocation2 + $0x404] ss:$36 sps:$4 sm:$0xff]   ;;  %2439 = vst [vmem:[#allocation2 + $0x1cc] sm:$0xf] %v2168_v26  ;;  %v1546_v11 = vrot.slane %v1545_v16, 4  ;;  %v1556_v49 = vrot.slane %v1555_v5, 4  ;;  %v1830_v24 = vsel %vm6832_vm5, %v5353_v56, %v1829_v31  ;;  %v5854_v17 = vadd.f32 %v7444_v14, %v7439_v53  ;;  %v7607_v5 = vpop.f32.mrf.mxu1 }
 0x156   : > { %v6510_v55 = vld [vmem:[#allocation2 + $0x400] ss:$36 sps:$4 sm:$0xff]   ;;  %2440 = vst [vmem:[#allocation2 + $0x1f0] sm:$0xf] %v2178_v30  ;;  %v1831_v13 = vrot.slane %v1829_v31, 4  ;;  %4676 = vmatprep.mubr.bf16.mxu0 %v6506_v9  ;;  %v2180_v15 = vshrl.u32 %v5407_v51, 16  ;;  %v7605_v16 = vpop.f32.mrf.mxu0 }
 0x157   : > { %v5408_v23 = vld [vmem:[%s6655_s10 + $0x70] sm:$0xf]  ;;  %v5409_v10 = vld [vmem:[%s6655_s10 + $0x74] sm:$0x1]  ;;  %v1551_v34 = vsel %vm6687_vm2, %v1546_v11, %v1550_v50  ;;  %1896 = vst [vmem:[#allocation2 + $0x44c] sm:$0xf] %v1830_v24  ;;  %4677 = vmatmul.mubr.bf16.gmra.mxu0 %v6510_v55  ;;  %v1561_v53 = vsel %vm6687_vm2, %v1556_v49, %v1560_v20  ;;  %v7618_v49 = vpop.f32.mrf.mxu1 }
 0x158   : > { %v2183_v61 = vshll.u32 %v5407_v51, 16  ;;  %v2189_v28 = vshll.u32 %v5408_v23, 16  ;;  %v5370_v35 = vld [vmem:[%s6655_s10 + $0x78] sm:$0xf]  ;;  %1624 = vst [vmem:[#allocation2 + $0x448] sm:$0xf] %v1551_v34  ;;  %v1833_v14 = vsel %vm6832_vm5, %v1831_v13, %v1832_v19  ;;  %v7616_v20 = vpop.f32.mrf.mxu0 }
 0x159   : > { %v2193_v50 = vshrl.u32 %v5408_v23, 16  ;;  %v2199_v26 = vshll.u32 %v5409_v10, 16  ;;  %v5371_v56 = vld [vmem:[%s6655_s10 + $0x7c] sm:$0xf]  ;;  %1947 = vst [vmem:[#allocation2 + $0x258] sm:$0xf] %v5370_v35 }
 0x15a   : > { %v5410_v31 = vld [vmem:[%s6655_s10 + $0x78] sm:$0xf]  ;;  %1625 = vst [vmem:[#allocation2 + $0x46c] sm:$0xf] %v1561_v53  ;;  %1897 = vst [vmem:[#allocation2 + $0x470] sm:$0xf] %v1833_v14  ;;  %v7622_v14 = vpop.f32.mrf.mxu1  ;;  %v7625_v12 = vpop.f32.mrf.mxu0 }
 0x15b   : > { %v2182_v51 = vrot.slane %v2180_v15, 4  ;;  %v2185_v9 = vrot.slane %v2183_v61, 5  ;;  %v2191_v30 = vrot.slane %v2189_v28, 5  ;;  %1948 = vst [vmem:[#allocation2 + $0x27c] sm:$0xf] %v5371_v56  ;;  %v2204_v11 = vshrl.u32 %v5410_v31, 16 }
 0x15c   : > { %v5411_v55 = vld [vmem:[%s6655_s10 + $0x7c] sm:$0xf]  ;;  %v2195_v19 = vrot.slane %v2193_v50, 4  ;;  %v2201_v24 = vrot.slane %v2199_v26, 5  ;;  %v5412_v13 = vld [vmem:[%s6655_s10 + $0x80] sm:$0x1] }
 0x15d   : > { %v2207_v23 = vshll.u32 %v5410_v31, 16  ;;  %v2213_v10 = vshll.u32 %v5411_v55, 16  ;;  %v2186_v34 = vor.u32 %v2185_v9, %v2182_v51  ;;  %v2206_v35 = vrot.slane %v2204_v11, 4  ;;  %v5434_v61 = vld [vmem:[%s6655_s10 + $0x18] sm:$0xe] }
 0x15e   : > { %v2217_v53 = vshrl.u32 %v5411_v55, 16  ;;  %v2223_v15 = vshll.u32 %v5412_v13, 16  ;;  %v2196_v28 = vor.u32 %v2195_v19, %v2191_v30  ;;  %v5435_v59 = vld [vmem:[%s6655_s10 + $0x1c] sm:$0xf]  ;;  %v5482_v42 = vrot.slane %v5434_v61, 9 }
 0x15f   : > { %v2209_v56 = vrot.slane %v2207_v23, 5  ;;  %v2215_v21 = vrot.slane %v2213_v10, 5  ;;  %v6508_v50 = vld [vmem:[#allocation2 + $0x1cc] ss:$36 sps:$4 sm:$0xff]   ;;  %v2187_v31 = vrot.slane %v2186_v34, 4  ;;  %v7629_v51 = vadd.f32 %v7368_v6, %v7508_v41 }
 0x160   : > { %v6511_v26 = vld [vmem:[#allocation2 + $0x1c8] ss:$36 sps:$4 sm:$0xff]   ;;  %v7632_v9 = vadd.f32 %v5854_v17, %v7542_v44  ;;  %v5857_v55 = vadd.f32 %v7458_v62, %v7451_v38  ;;  %v2197_v11 = vrot.slane %v2196_v28, 4  ;;  %v7638_v19 = vadd.f32 %v7498_v0, %v7508_v41  ;;  %v5436_v10 = vld [vmem:[%s6655_s10 + $0x20] sm:$0x1]  ;;  %4773 = vmatprep.mubr.bf16.mxu1 %v6508_v50 }
 0x161   : > { %v2210_v13 = vor.u32 %v2209_v56, %v2206_v35  ;;  %v2219_v23 = vrot.slane %v2217_v53, 4  ;;  %v2192_v34 = vsel %vm6687_vm2, %v2187_v31, %v2191_v30  ;;  %v2225_v6 = vrot.slane %v2223_v15, 5  ;;  %v5437_v17 = vld [vmem:[%s6655_s10 + $0x24] sm:$0xe]  ;;  %4774 = vmatmul.mubr.bf16.gmra.mxu1 %v6511_v26  ;;  %v6513_v38 = vld [vmem:[#allocation2 + $0x44c] ss:$36 sps:$4 sm:$0xff]  }
 0x162   : > { %8408 = vst [vmem:[#allocation18_spill] sm:$0xff] %v7632_v9  ;;  %v2557_v61 = vrot.slane %v5435_v59, 5  ;;  %v2560_v44 = vrot.slane %v5436_v10, 5  ;;  %v7644_v9 = vpop.f32.mrf.mxu1  ;;  %v2202_v62 = vsel %vm6687_vm2, %v2197_v11, %v2201_v24  ;;  %2441 = vst [vmem:[#allocation2 + $0x214] sm:$0xf] %v2192_v34  ;;  %v7649_v28 = vadd.f32 %v5857_v55, %v7567_v40  ;;  %v7651_v59 = vpop.f32.mrf.mxu0  ;;  %4684 = vmatprep.mubr.bf16.mxu0 %v6513_v38 }
 0x163   : > { %v6517_v0 = vld [vmem:[#allocation2 + $0x448] ss:$36 sps:$4 sm:$0xff]   ;;  %v2211_v35 = vrot.slane %v2210_v13, 4  ;;  %v2220_v53 = vor.u32 %v2219_v23, %v2215_v21  ;;  %2442 = vst [vmem:[#allocation2 + $0x238] sm:$0xf] %v2202_v62  ;;  %v5483_v26 = vrot.slane %v5437_v17, 9  ;;  %v7659_v24 = vadd.f32 %v7488_v8, %v7480_v46 }
 0x164   : > { %v2558_v30 = vsel %vm6832_vm5, %v5482_v42, %v2557_v61  ;;  %v2559_v15 = vrot.slane %v2557_v61, 4  ;;  %v5438_v56 = vld [vmem:[%s6655_s10 + $0x28] sm:$0xf]  ;;  %v5439_v50 = vld [vmem:[%s6655_s10 + $0x2c] sm:$0x1]  ;;  %v7661_v31 = vpop.f32.mrf.mxu1  ;;  %v7666_v23 = vpop.f32.mrf.mxu0  ;;  %4685 = vmatmul.mubr.bf16.gmra.mxu0 %v6517_v0  ;;  %v7672_v8 = vadd.f32 %v7420_v63, %v7508_v41  ;;  %v5860_v17 = vadd.f32 %v7490_v1, %v7482_v54 }
 0x165   : > { %v2216_v40 = vsel %vm6687_vm2, %v2211_v35, %v2215_v21  ;;  %v2221_v55 = vrot.slane %v2220_v53, 4  ;;  %2699 = vst [vmem:[#allocation2 + $0x20] sm:$0xf] %v2558_v30  ;;  %v2564_v42 = vrot.slane %v5438_v56, 5  ;;  %v2567_v11 = vrot.slane %v5439_v50, 5 }
 0x166   : > { %v5372_v13 = vld [vmem:[%s6655_s10 + $0x84] sm:$0xf]  ;;  %2443 = vst [vmem:[#allocation2 + $0x25c] sm:$0xf] %v2216_v40  ;;  %v2561_v46 = vsel %vm6832_vm5, %v2559_v15, %v2560_v44  ;;  %v5763_v21 = vadd.f32 %v7423_v18, %v7416_v2  ;;  %v5373_v10 = vld [vmem:[%s6655_s10 + $0x88] sm:$0xf]  ;;  %v7681_v38 = vpop.f32.mrf.mxu1  ;;  %v7689_v35 = vpop.f32.mrf.mxu0 }
 0x167   : > { %1949 = vst [vmem:[#allocation2 + $0x2a0] sm:$0xf] %v5372_v13  ;;  %v5413_v34 = vld [vmem:[%s6655_s10 + $0x84] sm:$0xf]  ;;  %v5414_v61 = vld [vmem:[%s6655_s10 + $0x88] sm:$0xf]  ;;  %v2226_v44 = vsel %vm6687_vm2, %v2221_v55, %v2225_v6  ;;  %v2565_v63 = vsel %vm6832_vm5, %v5483_v26, %v2564_v42 }
 0x168   : > { %2700 = vst [vmem:[#allocation2 + $0x44] sm:$0xf] %v2561_v46  ;;  %v2566_v62 = vrot.slane %v2564_v42, 4  ;;  %1950 = vst [vmem:[#allocation2 + $0x2c4] sm:$0xf] %v5373_v10  ;;  %v2228_v18 = vshrl.u32 %v5413_v34, 16  ;;  %v7692_v6 = vpop.f32.mrf.mxu1  ;;  %v7697_v42 = vpop.f32.mrf.mxu0 }
 0x169   : > { %v5415_v2 = vld [vmem:[%s6655_s10 + $0x8c] sm:$0x1]  ;;  %v5440_v0 = vld [vmem:[%s6655_s10 + $0x30] sm:$0xe]  ;;  %2444 = vst [vmem:[#allocation2 + $0x280] sm:$0xf] %v2226_v44 }
 0x16a   : > { %2701 = vst [vmem:[#allocation2 + $0x68] sm:$0xf] %v2565_v63  ;;  %v2231_v54 = vshll.u32 %v5413_v34, 16  ;;  %v2237_v1 = vshll.u32 %v5414_v61, 16  ;;  %v2241_v53 = vshrl.u32 %v5414_v61, 16  ;;  %v2247_v30 = vshll.u32 %v5415_v2, 16 }
 0x16b   : > { %v5441_v15 = vld [vmem:[%s6655_s10 + $0x34] sm:$0xf]  ;;  %v2568_v56 = vsel %vm6832_vm5, %v2566_v62, %v2567_v11  ;;  %v2230_v50 = vrot.slane %v2228_v18, 4  ;;  %v5442_v26 = vld [vmem:[%s6655_s10 + $0x38] sm:$0x1]  ;;  %v5484_v40 = vrot.slane %v5440_v0, 9  ;;  %v7700_v63 = vadd.f32 %v5763_v21, %v7508_v41 }
 0x16c   : > { %v2571_v55 = vrot.slane %v5441_v15, 5  ;;  %2702 = vst [vmem:[#allocation2 + $0x8c] sm:$0xf] %v2568_v56  ;;  %v2233_v13 = vrot.slane %v2231_v54, 5  ;;  %v2239_v46 = vrot.slane %v2237_v1, 5  ;;  %v2243_v10 = vrot.slane %v2241_v53, 4 }
 0x16d   : > { %v2249_v34 = vrot.slane %v2247_v30, 5  ;;  %v6515_v61 = vld [vmem:[#allocation2 + $0x214] ss:$36 sps:$4 sm:$0xff]   ;;  %v7705_v2 = vadd.f32 %v5860_v17, %v7586_v36  ;;  %v2574_v54 = vrot.slane %v5442_v26, 5  ;;  %v5443_v1 = vld [vmem:[%s6655_s10 + $0x3c] sm:$0xe]  ;;  %v5863_v53 = vadd.f32 %v7511_v32, %v7502_v37  ;;  %v7710_v30 = vpop.f32.mrf.mxu1 }
 0x16e   : > { %v6518_v44 = vld [vmem:[#allocation2 + $0x210] ss:$36 sps:$4 sm:$0xff]   ;;  %v2572_v11 = vsel %vm6832_vm5, %v5484_v40, %v2571_v55  ;;  %v2573_v62 = vrot.slane %v2571_v55, 4  ;;  %v2234_v18 = vor.u32 %v2233_v13, %v2230_v50  ;;  %v2244_v0 = vor.u32 %v2243_v10, %v2239_v46  ;;  %4781 = vmatprep.mubr.bf16.mxu1 %v6515_v61  ;;  %v5444_v21 = vld [vmem:[%s6655_s10 + $0x40] sm:$0xf]  ;;  %v7724_v50 = vpop.f32.mrf.mxu0 }
 0x16f   : > { %2703 = vst [vmem:[#allocation2 + $0xb0] sm:$0xf] %v2572_v11  ;;  %v5445_v15 = vld [vmem:[%s6655_s10 + $0x44] sm:$0x1]  ;;  %v5485_v56 = vrot.slane %v5443_v1, 9  ;;  %v7716_v40 = vadd.f32 %v7573_v57, %v7508_v41  ;;  %v7720_v36 = vadd.f32 %v7550_v25, %v7538_v58  ;;  %v5866_v17 = vadd.f32 %v7547_v33, %v7534_v47  ;;  %4782 = vmatmul.mubr.bf16.gmra.mxu1 %v6518_v44  ;;  %v7731_v13 = vpop.f32.mrf.mxu1 }
 0x170   : > { %v6522_v32 = vld [vmem:[#allocation2 + $0x20] ss:$36 sps:$4 sm:$0xff]   ;;  %v2235_v37 = vrot.slane %v2234_v18, 4  ;;  %v2245_v26 = vrot.slane %v2244_v0, 4  ;;  %v2575_v55 = vsel %vm6832_vm5, %v2573_v62, %v2574_v54  ;;  %v7729_v57 = vadd.f32 %v5863_v53, %v7590_v7  ;;  %v7740_v61 = vpop.f32.mrf.mxu0  ;;  %v6519_v44 = vld [vmem:[#allocation2 + $0x258] ss:$36 sps:$4 sm:$0xff]  }
 0x171   : > { %v6521_v58 = vld [vmem:[#allocation2 + $0x25c] ss:$36 sps:$4 sm:$0xff]   ;;  %2704 = vst [vmem:[#allocation2 + $0xd4] sm:$0xf] %v2575_v55  ;;  %v2578_v25 = vrot.slane %v5444_v21, 5  ;;  %v5769_v47 = vadd.f32 %v7456_v60, %v7446_v27  ;;  %v5775_v33 = vadd.f32 %v7515_v29, %v7500_v22  ;;  %v7738_v10 = vadd.f32 %v5866_v17, %v7629_v51  ;;  %6206 = vmatprep.mubr.bf16.mxu0 %v6522_v32  ;;  %v7749_v60 = vpop.f32.mrf.mxu1 }
 0x172   : > { %v2240_v7 = vsel %vm6687_vm2, %v2235_v37, %v2239_v46  ;;  %v2250_v11 = vsel %vm6687_vm2, %v2245_v26, %v2249_v34  ;;  %v2581_v62 = vrot.slane %v5445_v15, 5  ;;  %v5374_v27 = vld [vmem:[%s6655_s10 + $0x90] sm:$0xf]  ;;  %v5869_v29 = vadd.f32 %v7563_v4, %v7553_v52  ;;  %4789 = vmatprep.mubr.bf16.mxu1 %v6521_v58  ;;  %v7759_v52 = vpop.f32.mrf.mxu0  ;;  %v5375_v4 = vld [vmem:[%s6655_s10 + $0x94] sm:$0xf] }
 0x173   : > { %v6523_v22 = vld [vmem:[#allocation2 + $0x68] ss:$36 sps:$4 sm:$0xff]   ;;  %2445 = vst [vmem:[#allocation2 + $0x2a4] sm:$0xf] %v2240_v7  ;;  %2446 = vst [vmem:[#allocation2 + $0x2c8] sm:$0xf] %v2250_v11  ;;  %v2579_v51 = vsel %vm6832_vm5, %v5485_v56, %v2578_v25  ;;  %v7755_v34 = vadd.f32 %v7605_v16, %v7592_v45  ;;  %v5872_v18 = vadd.f32 %v7607_v5, %v7594_v3  ;;  %v7777_v16 = vpop.f32.mrf.mxu1 }
 0x174   : > { %v2580_v46 = vrot.slane %v2578_v25, 4  ;;  %1951 = vst [vmem:[#allocation2 + $0x2e8] sm:$0xf] %v5374_v27  ;;  %2705 = vst [vmem:[#allocation2 + $0xf8] sm:$0xf] %v2579_v51  ;;  %v7765_v1 = vadd.f32 %v5869_v29, %v7638_v19  ;;  %v7769_v53 = vadd.f32 %v7625_v12, %v7616_v20  ;;  %v5875_v45 = vadd.f32 %v7622_v14, %v7618_v49  ;;  %v7785_v49 = vpop.f32.mrf.mxu0 }
 0x175   : > { %v5416_v0 = vld [vmem:[%s6655_s10 + $0x90] sm:$0xf]  ;;  %v5417_v54 = vld [vmem:[%s6655_s10 + $0x94] sm:$0xf]  ;;  %v7775_v3 = vadd.f32 %v7666_v23, %v7651_v59  ;;  %6207 = vmatmul.mubr.bf16.vlgmr.msra.gmra.mxu0 %v6523_v22  ;;  %v7782_v19 = vadd.f32 %v5769_v47, %v7508_v41  ;;  %1952 = vst [vmem:[#allocation2 + $0x30c] sm:$0xf] %v5375_v4  ;;  %v7789_v56 = vadd.f32 %v5872_v18, %v7672_v8 }
 0x176   : > { %v2582_v5 = vsel %vm6832_vm5, %v2580_v46, %v2581_v62  ;;  %v5418_v12 = vld [vmem:[%s6655_s10 + $0x98] sm:$0x1]  ;;  %v2252_v20 = vshrl.u32 %v5416_v0, 16  ;;  %v2255_v21 = vshll.u32 %v5416_v0, 16  ;;  %v2261_v14 = vshll.u32 %v5417_v54, 16  ;;  %v7803_v62 = vpop.f32.mrf.mxu1  ;;  %v7806_v46 = vpop.f32.mrf.mxu0 }
 0x177   : > { %2706 = vst [vmem:[#allocation2 + $0x11c] sm:$0xf] %v2582_v5  ;;  %v2265_v59 = vshrl.u32 %v5417_v54, 16  ;;  %v2271_v23 = vshll.u32 %v5418_v12, 16  ;;  %v5446_v15 = vld [vmem:[%s6655_s10 + $0x48] sm:$0xe]  ;;  %v4293_v55 = vadd.f32 %v7659_v24, %v7508_v41  ;;  %v7796_v58 = vadd.f32 %v5875_v45, %v7700_v63  ;;  %4790 = vmatmul.mubr.bf16.gmra.mxu1 %v6519_v44 }
 0x178   : > { %v2254_v17 = vrot.slane %v2252_v20, 4  ;;  %v2257_v32 = vrot.slane %v2255_v21, 5  ;;  %v5447_v37 = vld [vmem:[%s6655_s10 + $0x4c] sm:$0xf]  ;;  %v5448_v26 = vld [vmem:[%s6655_s10 + $0x50] sm:$0x1]  ;;  %v7799_v11 = vadd.f32 %v5775_v33, %v7508_v41  ;;  %v5878_v8 = vadd.f32 %v7661_v31, %v7644_v9  ;;  %v7811_v9 = vpop.f32.mrf.mxu1  ;;  %v7819_v12 = vpop.f32.mrf.mxu0 }
 0x179   : > { %v6527_v25 = vld [vmem:[#allocation2 + $0xb0] ss:$36 sps:$4 sm:$0xff]   ;;  %v2263_v47 = vrot.slane %v2261_v14, 5  ;;  %v2267_v7 = vrot.slane %v2265_v59, 4  ;;  %v2273_v29 = vrot.slane %v2271_v23, 5  ;;  %v5486_v22 = vrot.slane %v5446_v15, 9 }
 0x17a   : > { %v2258_v27 = vor.u32 %v2257_v32, %v2254_v17  ;;  %v2585_v51 = vrot.slane %v5447_v37, 5  ;;  %v5449_v24 = vld [vmem:[%s6655_s10 + $0x54] sm:$0xe]  ;;  %v6524_v63 = vld [vmem:[#allocation2 + $0x2a0] ss:$36 sps:$4 sm:$0xff]   ;;  %6210 = vmatprep.mubr.bf16.mxu0 %v6527_v25  ;;  %v2588_v18 = vrot.slane %v5448_v26, 5  ;;  %v7809_v4 = vadd.f32 %v5878_v8, %v7716_v40 }
 0x17b   : > { %v2268_v44 = vor.u32 %v2267_v7, %v2263_v47  ;;  %v5487_v33 = vrot.slane %v5449_v24, 9  ;;  %v6526_v31 = vld [vmem:[#allocation2 + $0x2a4] ss:$36 sps:$4 sm:$0xff]   ;;  %v7817_v5 = vadd.f32 %v7697_v42, %v7689_v35  ;;  %v5450_v21 = vld [vmem:[%s6655_s10 + $0x58] sm:$0xf]  ;;  %v5881_v14 = vadd.f32 %v7692_v6, %v7681_v38  ;;  %v7831_v42 = vpop.f32.mrf.mxu1 }
 0x17c   : > { %v2259_v0 = vrot.slane %v2258_v27, 4  ;;  %v2586_v54 = vsel %vm6832_vm5, %v5486_v22, %v2585_v51  ;;  %v2587_v45 = vrot.slane %v2585_v51, 4  ;;  %v5451_v40 = vld [vmem:[%s6655_s10 + $0x5c] sm:$0x1]  ;;  %v7827_v59 = vadd.f32 %v7740_v61, %v7724_v50  ;;  %4797 = vmatprep.mubr.bf16.mxu1 %v6526_v31  ;;  %v8409_v61 = vld [vmem:[#allocation17_spill] sm:$0xff] }
 0x17d   : > { %v2269_v20 = vrot.slane %v2268_v44, 4  ;;  %2707 = vst [vmem:[#allocation2 + $0x140] sm:$0xf] %v2586_v54  ;;  %v5884_v35 = vadd.f32 %v7731_v13, %v7710_v30  ;;  %v2592_v32 = vrot.slane %v5450_v21, 5  ;;  %v2595_v37 = vrot.slane %v5451_v40, 5  ;;  %v7851_v7 = vpop.f32.mrf.mxu1 }
 0x17e   : > { %v6528_v23 = vld [vmem:[#allocation2 + $0xf8] ss:$36 sps:$4 sm:$0xff]   ;;  %v2264_v15 = vsel %vm6687_vm2, %v2259_v0, %v2263_v47  ;;  %v2589_v17 = vsel %vm6832_vm5, %v2587_v45, %v2588_v18  ;;  %v5377_v30 = vld [vmem:[%s6655_s10 + $0xa0] sm:$0xf]  ;;  %v7844_v13 = vadd.f32 %v7720_v36, %v7508_v41  ;;  %v5781_v26 = vadd.f32 %v8409_v61, %v7557_v48  ;;  %v5803_v47 = vpop.f32.mrf.mxu0  ;;  %v5453_v54 = vld [vmem:[%s6655_s10 + $0x64] sm:$0xf] }
 0x17f   : > { %v2274_v38 = vsel %vm6687_vm2, %v2269_v20, %v2273_v29  ;;  %2447 = vst [vmem:[#allocation2 + $0x2ec] sm:$0xf] %v2264_v15  ;;  %2708 = vst [vmem:[#allocation2 + $0x164] sm:$0xf] %v2589_v17  ;;  %v5376_v6 = vld [vmem:[%s6655_s10 + $0x9c] sm:$0xf]  ;;  %v7849_v25 = vadd.f32 %v5881_v14, %v7782_v19  ;;  %6211 = vmatmul.mubr.bf16.gmra.mxu0 %v6528_v23  ;;  %v2593_v8 = vsel %vm6832_vm5, %v5487_v33, %v2592_v32  ;;  %v7860_v31 = vpop.f32.mrf.mxu1 }
 0x180   : > { %v5419_v50 = vld [vmem:[%s6655_s10 + $0x9c] sm:$0xf]  ;;  %2448 = vst [vmem:[#allocation2 + $0x310] sm:$0xf] %v2274_v38  ;;  %v2594_v27 = vrot.slane %v2592_v32, 4  ;;  %v7857_v22 = vadd.f32 %v5884_v35, %v4293_v55  ;;  %4798 = vmatmul.mubr.bf16.gmra.mxu1 %v6524_v63  ;;  %v7868_v55 = vadd.f32 %v7785_v49, %v7759_v52  ;;  %v5804_v23 = vpop.f32.mrf.mxu0  ;;  %v2599_v17 = vrot.slane %v5453_v54, 5 }
 0x181   : > { %1953 = vst [vmem:[#allocation2 + $0x330] sm:$0xf] %v5376_v6  ;;  %1954 = vst [vmem:[#allocation2 + $0x354] sm:$0xf] %v5377_v30  ;;  %v5420_v36 = vld [vmem:[%s6655_s10 + $0xa0] sm:$0xf]  ;;  %v5895_v15 = vpop.f32.mrf.mxu1  ;;  %v4304_v38 = vadd.f32 %v5781_v26, %v7508_v41  ;;  %v5887_v6 = vadd.f32 %v7777_v16, %v7749_v60  ;;  %v7886_v60 = vadd.f32 %v7819_v12, %v7806_v46 }
 0x182   : > { %v5421_v29 = vld [vmem:[%s6655_s10 + $0xa4] sm:$0x1]  ;;  %v2276_v48 = vshrl.u32 %v5419_v50, 16  ;;  %2709 = vst [vmem:[#allocation2 + $0x188] sm:$0xf] %v2593_v8  ;;  %v2279_v19 = vshll.u32 %v5419_v50, 16  ;;  %v2596_v33 = vsel %vm6832_vm5, %v2594_v27, %v2595_v37 }
 0x183   : > { %v2285_v51 = vshll.u32 %v5420_v36, 16  ;;  %v2289_v24 = vshrl.u32 %v5420_v36, 16  ;;  %v2295_v44 = vshll.u32 %v5421_v29, 16  ;;  %v5452_v18 = vld [vmem:[%s6655_s10 + $0x60] sm:$0xe]  ;;  %v7877_v27 = vpop.f32.mrf.mxu1 }
 0x184   : > { %v2278_v0 = vrot.slane %v2276_v48, 4  ;;  %v5454_v45 = vld [vmem:[%s6655_s10 + $0x68] sm:$0x1]  ;;  %v5488_v20 = vrot.slane %v5452_v18, 9  ;;  %2710 = vst [vmem:[#allocation2 + $0x1ac] sm:$0xf] %v2596_v33  ;;  %v7892_v18 = vadd.f32 %v5804_v23, %v5803_v47  ;;  %v4309_v47 = vadd.f32 %v7755_v34, %v7508_v41 }
 0x185   : > { %v2281_v63 = vrot.slane %v2279_v19, 5  ;;  %v2287_v21 = vrot.slane %v2285_v51, 5  ;;  %v2291_v40 = vrot.slane %v2289_v24, 4  ;;  %v2297_v14 = vrot.slane %v2295_v44, 5  ;;  %v5455_v35 = vld [vmem:[%s6655_s10 + $0x6c] sm:$0xe]  ;;  %v5898_v54 = vpop.f32.mrf.mxu1 }
 0x186   : > { %v2602_v32 = vrot.slane %v5454_v45, 5  ;;  %v5456_v37 = vld [vmem:[%s6655_s10 + $0x70] sm:$0xf]  ;;  %v5457_v30 = vld [vmem:[%s6655_s10 + $0x74] sm:$0x1]  ;;  %v5489_v50 = vrot.slane %v5455_v35, 9  ;;  %v2600_v29 = vsel %vm6832_vm5, %v5488_v20, %v2599_v17  ;;  %v7882_v19 = vadd.f32 %v5887_v6, %v7799_v11  ;;  %v5958_v11 = vpop.f32.mrf.mxu0 }
 0x187   : > { %v2282_v52 = vor.u32 %v2281_v63, %v2278_v0  ;;  %v2292_v49 = vor.u32 %v2291_v40, %v2287_v21  ;;  %v2606_v61 = vrot.slane %v5456_v37, 5  ;;  %v5378_v8 = vld [vmem:[%s6655_s10 + $0xa8] sm:$0xf]  ;;  %v6532_v36 = vld [vmem:[#allocation2 + $0x140] ss:$36 sps:$4 sm:$0xff]   ;;  %v2601_v48 = vrot.slane %v2599_v17, 4 }
 0x188   : > { %1955 = vst [vmem:[#allocation2 + $0x378] sm:$0xf] %v5378_v8  ;;  %v6529_v16 = vld [vmem:[#allocation2 + $0x2e8] ss:$36 sps:$4 sm:$0xff]   ;;  %2711 = vst [vmem:[#allocation2 + $0x1d0] sm:$0xf] %v2600_v29  ;;  %v5890_v44 = vadd.f32 %v7811_v9, %v7803_v62  ;;  %6214 = vmatprep.mubr.bf16.mxu0 %v6532_v36  ;;  %v7905_v63 = vadd.f32 %v7769_v53, %v7508_v41  ;;  %v5959_v35 = vpop.f32.mrf.mxu0  ;;  %v5893_v41 = vadd.f32 %v7851_v7, %v7831_v42  ;;  %v5900_v7 = vpop.f32.mrf.mxu1 }
 0x189   : > { %v6531_v26 = vld [vmem:[#allocation2 + $0x2ec] ss:$36 sps:$4 sm:$0xff]   ;;  %v2283_v51 = vrot.slane %v2282_v52, 4  ;;  %v2607_v24 = vsel %vm6832_vm5, %v5489_v50, %v2606_v61  ;;  %v2293_v33 = vrot.slane %v2292_v49, 4  ;;  %v2603_v46 = vsel %vm6832_vm5, %v2601_v48, %v2602_v32  ;;  %v5422_v62 = vld [vmem:[%s6655_s10 + $0xa8] sm:$0xf] }
 0x18a   : > { %v2608_v12 = vrot.slane %v2606_v61, 4  ;;  %v2609_v0 = vrot.slane %v5457_v30, 5  ;;  %2713 = vst [vmem:[#allocation2 + $0x218] sm:$0xf] %v2607_v24  ;;  %4805 = vmatprep.mubr.bf16.mxu1 %v6531_v26  ;;  %2712 = vst [vmem:[#allocation2 + $0x1f4] sm:$0xf] %v2603_v46  ;;  %v7908_v40 = vadd.f32 %v5890_v44, %v7844_v13  ;;  %v5896_v53 = vadd.f32 %v5895_v15, %v7860_v31  ;;  %v5961_v52 = vpop.f32.mrf.mxu0 }
 0x18b   : > { %v2288_v45 = vsel %vm6687_vm2, %v2283_v51, %v2287_v21  ;;  %v5379_v20 = vld [vmem:[%s6655_s10 + $0xac] sm:$0xf]  ;;  %4806 = vmatmul.mubr.bf16.gmra.mxu1 %v6529_v16  ;;  %v2298_v21 = vsel %vm6687_vm2, %v2293_v33, %v2297_v14  ;;  %v5424_v34 = vld [vmem:[%s6655_s10 + $0xb0] sm:$0x1]  ;;  %v2300_v13 = vshrl.u32 %v5422_v62, 16  ;;  %v2303_v32 = vshll.u32 %v5422_v62, 16  ;;  %v5901_v33 = vpop.f32.mrf.mxu1 }
 0x18c   : > { %v5423_v9 = vld [vmem:[%s6655_s10 + $0xac] sm:$0xf]  ;;  %2449 = vst [vmem:[#allocation2 + $0x334] sm:$0xf] %v2288_v45  ;;  %v2610_v17 = vsel %vm6832_vm5, %v2608_v12, %v2609_v0  ;;  %1956 = vst [vmem:[#allocation2 + $0x39c] sm:$0xf] %v5379_v20  ;;  %v7921_v8 = vadd.f32 %v5893_v41, %v4304_v38  ;;  %v7923_v42 = vadd.f32 %v5896_v53, %v4309_v47  ;;  %v5962_v16 = vpop.f32.mrf.mxu0 }
 0x18d   : > { %v6533_v23 = vld [vmem:[#allocation2 + $0x188] ss:$36 sps:$4 sm:$0xff]   ;;  %2450 = vst [vmem:[#allocation2 + $0x358] sm:$0xf] %v2298_v21  ;;  %2714 = vst [vmem:[#allocation2 + $0x23c] sm:$0xf] %v2610_v17  ;;  %v5960_v45 = vadd.f32 %v5959_v35, %v5958_v11  ;;  %v5899_v20 = vadd.f32 %v5898_v54, %v7877_v27  ;;  %v5963_v21 = vadd.f32 %v5962_v16, %v5961_v52  ;;  %v5903_v17 = vpop.f32.mrf.mxu1 }
 0x18e   : > { %v2309_v37 = vshll.u32 %v5423_v9, 16  ;;  %v2313_v14 = vshrl.u32 %v5423_v9, 16  ;;  %v5458_v6 = vld [vmem:[%s6655_s10 + $0x78] sm:$0xe]  ;;  %6215 = vmatmul.mubr.bf16.gmra.mxu0 %v6533_v23  ;;  %v2319_v49 = vshll.u32 %v5424_v34, 16  ;;  %v2302_v31 = vrot.slane %v2300_v13, 4 }
 0x18f   : > { %v5459_v30 = vld [vmem:[%s6655_s10 + $0x7c] sm:$0xf]  ;;  %v5460_v50 = vld [vmem:[%s6655_s10 + $0x80] sm:$0x1]  ;;  %v5490_v61 = vrot.slane %v5458_v6, 9  ;;  %v2305_v15 = vrot.slane %v2303_v32, 5  ;;  %v7940_v6 = vadd.f32 %v5899_v20, %v7905_v63  ;;  %v5904_v52 = vpop.f32.mrf.mxu1  ;;  %v5902_v63 = vadd.f32 %v5901_v33, %v5900_v7 }
 0x190   : > { %v2311_v36 = vrot.slane %v2309_v37, 5  ;;  %v2315_v29 = vrot.slane %v2313_v14, 4  ;;  %v5461_v48 = vld [vmem:[%s6655_s10 + $0x84] sm:$0xe]  ;;  %v2321_v26 = vrot.slane %v2319_v49, 5  ;;  %v2613_v51 = vrot.slane %v5459_v30, 5 }
 0x191   : > { %v2616_v24 = vrot.slane %v5460_v50, 5  ;;  %v5491_v44 = vrot.slane %v5461_v48, 9  ;;  %v2306_v46 = vor.u32 %v2305_v15, %v2302_v31  ;;  %v5462_v12 = vld [vmem:[%s6655_s10 + $0x88] sm:$0xf]  ;;  %v5463_v0 = vld [vmem:[%s6655_s10 + $0x8c] sm:$0x1]  ;;  %v5906_v33 = vpop.f32.mrf.mxu1 }
 0x192   : > { %v2316_v38 = vor.u32 %v2315_v29, %v2311_v36  ;;  %v6537_v62 = vld [vmem:[#allocation2 + $0x1d0] ss:$36 sps:$4 sm:$0xff]   ;;  %v2614_v9 = vsel %vm6832_vm5, %v5490_v61, %v2613_v51  ;;  %v2615_v47 = vrot.slane %v2613_v51, 4  ;;  %v2620_v23 = vrot.slane %v5462_v12, 5  ;;  %v8410_v32 = vld [vmem:[#allocation15_spill] sm:$0xff]  ;;  %v8411_v31 = vld [vmem:[#allocation16_spill] sm:$0xff]  ;;  %v5964_v29 = vpop.f32.mrf.mxu0 }
 0x193   : > { %v2307_v34 = vrot.slane %v2306_v46, 4  ;;  %2715 = vst [vmem:[#allocation2 + $0x260] sm:$0xf] %v2614_v9  ;;  %v2623_v53 = vrot.slane %v5463_v0, 5  ;;  %v5380_v13 = vld [vmem:[%s6655_s10 + $0xb4] sm:$0xf]  ;;  %v7933_v37 = vadd.f32 %v5960_v45, %v8410_v32  ;;  %6218 = vmatprep.mubr.bf16.mxu0 %v6537_v62  ;;  %v7948_v15 = vadd.f32 %v5963_v21, %v8411_v31  ;;  %v5907_v21 = vpop.f32.mrf.mxu1 }
 0x194   : > { %v2317_v41 = vrot.slane %v2316_v38, 4  ;;  %v6534_v11 = vld [vmem:[#allocation2 + $0x330] ss:$36 sps:$4 sm:$0xff]   ;;  %v2617_v27 = vsel %vm6832_vm5, %v2615_v47, %v2616_v24  ;;  %v2621_v54 = vsel %vm6832_vm5, %v5491_v44, %v2620_v23  ;;  %v2622_v14 = vrot.slane %v2620_v23, 4  ;;  %1957 = vst [vmem:[#allocation2 + $0x3c0] sm:$0xf] %v5380_v13  ;;  %v5965_v20 = vpop.f32.mrf.mxu0 }
 0x195   : > { %v6536_v35 = vld [vmem:[#allocation2 + $0x334] ss:$36 sps:$4 sm:$0xff]   ;;  %v2312_v30 = vsel %vm6687_vm2, %v2307_v34, %v2311_v36  ;;  %2716 = vst [vmem:[#allocation2 + $0x284] sm:$0xf] %v2617_v27  ;;  %2717 = vst [vmem:[#allocation2 + $0x2a8] sm:$0xf] %v2621_v54  ;;  %v5905_v44 = vadd.f32 %v5904_v52, %v5903_v17 }
 0x196   : > { %v6538_v49 = vld [vmem:[#allocation2 + $0x218] ss:$36 sps:$4 sm:$0xff]   ;;  %v2322_v50 = vsel %vm6687_vm2, %v2317_v41, %v2321_v26  ;;  %4813 = vmatprep.mubr.bf16.mxu1 %v6536_v35  ;;  %2451 = vst [vmem:[#allocation2 + $0x37c] sm:$0xf] %v2312_v30  ;;  %v2624_v48 = vsel %vm6832_vm5, %v2622_v14, %v2623_v53  ;;  %v5425_v36 = vld [vmem:[%s6655_s10 + $0xb4] sm:$0xf]  ;;  %v5967_v32 = vpop.f32.mrf.mxu0  ;;  %v5909_v14 = vpop.f32.mrf.mxu1 }
 0x197   : > { %v5381_v61 = vld [vmem:[%s6655_s10 + $0xb8] sm:$0xf]  ;;  %2452 = vst [vmem:[#allocation2 + $0x3a0] sm:$0xf] %v2322_v50  ;;  %v5427_v51 = vld [vmem:[%s6655_s10 + $0xbc] sm:$0x1]  ;;  %4814 = vmatmul.mubr.bf16.gmra.mxu1 %v6534_v11  ;;  %6219 = vmatmul.mubr.bf16.gmra.mxu0 %v6538_v49 }
 0x198   : > { %1958 = vst [vmem:[#allocation2 + $0x3e4] sm:$0xf] %v5381_v61  ;;  %v5426_v16 = vld [vmem:[%s6655_s10 + $0xb8] sm:$0xf]  ;;  %v7958_v26 = vld [vmem:[%s8387_s2] ss:$0 sm:$0xff] }
 0x199   : > { %v4317_v7 = vadd.f32 %v7958_v26, %v7775_v3  ;;  %v4320_v24 = vadd.f32 %v7958_v26, %v7817_v5  ;;  %2718 = vst [vmem:[#allocation2 + $0x2cc] sm:$0xf] %v2624_v48  ;;  %v2324_v46 = vshrl.u32 %v5425_v36, 16  ;;  %v2327_v38 = vshll.u32 %v5425_v36, 16  ;;  %v5464_v45 = vld [vmem:[%s6655_s10 + $0x90] sm:$0xe]  ;;  %v5968_v48 = vpop.f32.mrf.mxu0 }
 0x19a   : > { %v2333_v12 = vshll.u32 %v5426_v16, 16  ;;  %v2337_v0 = vshrl.u32 %v5426_v16, 16  ;;  %v2343_v62 = vshll.u32 %v5427_v51, 16  ;;  %v5465_v9 = vld [vmem:[%s6655_s10 + $0x94] sm:$0xf]  ;;  %v5492_v3 = vrot.slane %v5464_v45, 9 }
 0x19b   : > { %v7967_v47 = vld [vmem:[%s6655_s10 + $0x98] sm:$0x1]  ;;  %v7969_v23 = vadd.f32 %v5902_v63, %v4317_v7  ;;  %v5966_v5 = vadd.f32 %v5965_v20, %v5964_v29  ;;  %v2326_v17 = vrot.slane %v2324_v46, 4  ;;  %v2329_v34 = vrot.slane %v2327_v38, 5  ;;  %v5467_v13 = vld [vmem:[%s6655_s10 + $0x9c] sm:$0xe]  ;;  %v5910_v38 = vpop.f32.mrf.mxu1 }
 0x19c   : > { %v2335_v41 = vrot.slane %v2333_v12, 5  ;;  %v2339_v53 = vrot.slane %v2337_v0, 4  ;;  %v2345_v11 = vrot.slane %v2343_v62, 5  ;;  %v2627_v35 = vrot.slane %v5465_v9, 5  ;;  %v5468_v30 = vld [vmem:[%s6655_s10 + $0xa0] sm:$0xf] }
 0x19d   : > { %v2630_v27 = vrot.slane %v7967_v47, 5  ;;  %v5493_v54 = vrot.slane %v5467_v13, 9  ;;  %v2330_v52 = vor.u32 %v2329_v34, %v2326_v17  ;;  %v5469_v50 = vld [vmem:[%s6655_s10 + $0xa4] sm:$0x1]  ;;  %v5382_v61 = vld [vmem:[%s6655_s10 + $0xc0] sm:$0xf]  ;;  %v7979_v63 = vadd.f32 %v5905_v44, %v4320_v24  ;;  %v5970_v34 = vpop.f32.mrf.mxu0 }
 0x19e   : > { %v2340_v49 = vor.u32 %v2339_v53, %v2335_v41  ;;  %v8412_v31 = vld [vmem:[#allocation18_spill] sm:$0xff]  ;;  %v6542_v36 = vld [vmem:[#allocation2 + $0x260] ss:$36 sps:$4 sm:$0xff]   ;;  %v2628_v16 = vsel %vm6832_vm5, %v5492_v3, %v2627_v35  ;;  %1959 = vst [vmem:[#allocation2 + $0x408] sm:$0xf] %v5382_v61  ;;  %v4325_v51 = vadd.f32 %v7958_v26, %v7827_v59  ;;  %v5969_v7 = vadd.f32 %v5968_v48, %v5967_v32 }
 0x19f   : > { %v7977_v29 = vadd.f32 %v5966_v5, %v8412_v31  ;;  %v5908_v46 = vadd.f32 %v5907_v21, %v5906_v33  ;;  %v6539_v12 = vld [vmem:[#allocation2 + $0x378] ss:$36 sps:$4 sm:$0xff]   ;;  %v2331_v0 = vrot.slane %v2330_v52, 4  ;;  %2719 = vst [vmem:[#allocation2 + $0x2f0] sm:$0xf] %v2628_v16  ;;  %v5911_v24 = vadd.f32 %v5910_v38, %v5909_v14  ;;  %6222 = vmatprep.mubr.bf16.mxu0 %v6542_v36 }
 0x1a0   : > { %v2341_v45 = vrot.slane %v2340_v49, 4  ;;  %v6541_v44 = vld [vmem:[#allocation2 + $0x37c] ss:$36 sps:$4 sm:$0xff]   ;;  %v6543_v20 = vld [vmem:[#allocation2 + $0x2a8] ss:$36 sps:$4 sm:$0xff]   ;;  %v4328_v62 = vadd.f32 %v7958_v26, %v7868_v55  ;;  %v7988_v9 = vadd.f32 %v5969_v7, %v7649_v28  ;;  %v2629_v3 = vrot.slane %v2627_v35, 4 }
 0x1a1   : > { %v7990_v59 = vadd.f32 %v5908_v46, %v4325_v51  ;;  %v2336_v33 = vsel %vm6687_vm2, %v2331_v0, %v2335_v41  ;;  %v2634_v5 = vrot.slane %v5468_v30, 5  ;;  %v5383_v21 = vld [vmem:[%s6655_s10 + $0xc4] sm:$0xf]  ;;  %v5428_v17 = vld [vmem:[%s6655_s10 + $0xc0] sm:$0xf]  ;;  %4821 = vmatprep.mubr.bf16.mxu1 %v6541_v44  ;;  %6223 = vmatmul.mubr.bf16.gmra.mxu0 %v6543_v20  ;;  %v2637_v28 = vrot.slane %v5469_v50, 5  ;;  %v5971_v50 = vpop.f32.mrf.mxu0 }
 0x1a2   : > { %v2346_v47 = vsel %vm6687_vm2, %v2341_v45, %v2345_v11  ;;  %2453 = vst [vmem:[#allocation2 + $0x3c4] sm:$0xf] %v2336_v33  ;;  %1960 = vst [vmem:[#allocation2 + $0x42c] sm:$0xf] %v5383_v21  ;;  %v5429_v55 = vld [vmem:[%s6655_s10 + $0xc4] sm:$0xf]  ;;  %v8002_v41 = vadd.f32 %v7958_v26, %v7886_v60  ;;  %v8004_v32 = vadd.f32 %v5911_v24, %v4328_v62  ;;  %4822 = vmatmul.mubr.bf16.gmra.mxu1 %v6539_v12  ;;  %v5912_v24 = vpop.f32.mrf.mxu1 }
 0x1a3   : > { %2454 = vst [vmem:[#allocation2 + $0x3e8] sm:$0xf] %v2346_v47  ;;  %v5430_v53 = vld [vmem:[%s6655_s10 + $0xc8] sm:$0x1]  ;;  %v2348_v13 = vshrl.u32 %v5428_v17, 16  ;;  %v2631_v11 = vsel %vm6832_vm5, %v2629_v3, %v2630_v27  ;;  %v2635_v35 = vsel %vm6832_vm5, %v5493_v54, %v2634_v5  ;;  %v2636_v14 = vrot.slane %v2634_v5, 4  ;;  %v5973_v46 = vpop.f32.mrf.mxu0 }
 0x1a4   : > { %v2351_v52 = vshll.u32 %v5428_v17, 16  ;;  %v5470_v49 = vld [vmem:[%s6655_s10 + $0xa8] sm:$0xe]  ;;  %v5471_v30 = vld [vmem:[%s6655_s10 + $0xac] sm:$0xf]  ;;  %v2357_v61 = vshll.u32 %v5429_v55, 16 }
 0x1a5   : > { %2720 = vst [vmem:[#allocation2 + $0x314] sm:$0xf] %v2631_v11  ;;  %2721 = vst [vmem:[#allocation2 + $0x338] sm:$0xf] %v2635_v35  ;;  %v2350_v60 = vrot.slane %v2348_v13, 4  ;;  %v2361_v31 = vshrl.u32 %v5429_v55, 16  ;;  %v2638_v27 = vsel %vm6832_vm5, %v2636_v14, %v2637_v28  ;;  %v5974_v5 = vpop.f32.mrf.mxu0  ;;  %v5972_v13 = vadd.f32 %v5971_v50, %v5970_v34  ;;  %v5913_v11 = vpop.f32.mrf.mxu1 }
 0x1a6   : > { %v2367_v48 = vshll.u32 %v5430_v53, 16  ;;  %v5472_v36 = vld [vmem:[%s6655_s10 + $0xb0] sm:$0x1]  ;;  %v2353_v16 = vrot.slane %v2351_v52, 5  ;;  %v5494_v54 = vrot.slane %v5470_v49, 9  ;;  %v2641_v51 = vrot.slane %v5471_v30, 5 }
 0x1a7   : > { %v5473_v7 = vld [vmem:[%s6655_s10 + $0xb4] sm:$0xe]  ;;  %2722 = vst [vmem:[#allocation2 + $0x35c] sm:$0xf] %v2638_v27  ;;  %v2359_v38 = vrot.slane %v2357_v61, 5  ;;  %v2363_v12 = vrot.slane %v2361_v31, 4  ;;  %v5975_v49 = vadd.f32 %v5974_v5, %v5973_v46  ;;  %v5914_v30 = vadd.f32 %v5913_v11, %v5912_v24 }
 0x1a8   : > { %v2369_v0 = vrot.slane %v2367_v48, 5  ;;  %v2644_v45 = vrot.slane %v5472_v36, 5  ;;  %v2354_v44 = vor.u32 %v2353_v16, %v2350_v60  ;;  %v2642_v20 = vsel %vm6832_vm5, %v5494_v54, %v2641_v51  ;;  %v5474_v33 = vld [vmem:[%s6655_s10 + $0xb8] sm:$0xf]  ;;  %v5475_v47 = vld [vmem:[%s6655_s10 + $0xbc] sm:$0x1]  ;;  %v5915_v36 = vpop.f32.mrf.mxu1 }
 0x1a9   : > { %v2643_v62 = vrot.slane %v2641_v51, 4  ;;  %v5495_v3 = vrot.slane %v5473_v7, 9  ;;  %v2364_v21 = vor.u32 %v2363_v12, %v2359_v38  ;;  %2723 = vst [vmem:[#allocation2 + $0x380] sm:$0xf] %v2642_v20  ;;  %v2648_v17 = vrot.slane %v5474_v33, 5  ;;  %v5976_v20 = vpop.f32.mrf.mxu0  ;;  %v8413_v33 = vld [vmem:[#allocation4_spill] sm:$0xff] }
 0x1aa   : > { %v2651_v28 = vrot.slane %v5475_v47, 5  ;;  %v5384_v55 = vld [vmem:[%s6655_s10 + $0xcc] sm:$0xf]  ;;  %v5385_v53 = vld [vmem:[%s6655_s10 + $0xd0] sm:$0xf]  ;;  %v2355_v14 = vrot.slane %v2354_v44, 4  ;;  %v8028_v50 = vadd.f32 %v5972_v13, %v7705_v2  ;;  %v8033_v54 = vadd.f32 %v5975_v49, %v7729_v57 }
 0x1ab   : > { %v6544_v35 = vld [vmem:[#allocation2 + $0x3c0] ss:$36 sps:$4 sm:$0xff]   ;;  %v2645_v52 = vsel %vm6832_vm5, %v2643_v62, %v2644_v45  ;;  %1961 = vst [vmem:[#allocation2 + $0x450] sm:$0xf] %v5384_v55  ;;  %1962 = vst [vmem:[#allocation2 + $0x474] sm:$0xf] %v5385_v53  ;;  %v2649_v31 = vsel %vm6832_vm5, %v5495_v3, %v2648_v17  ;;  %v8036_v51 = vadd.f32 %v5914_v30, %v8002_v41 }
 0x1ac   : > { %v6546_v60 = vld [vmem:[#allocation2 + $0x3c4] ss:$36 sps:$4 sm:$0xff]   ;;  %v2365_v61 = vrot.slane %v2364_v21, 4  ;;  %2724 = vst [vmem:[#allocation2 + $0x3a4] sm:$0xf] %v2645_v52  ;;  %v2650_v48 = vrot.slane %v2648_v17, 4  ;;  %v2360_v16 = vsel %vm6687_vm2, %v2355_v14, %v2359_v38  ;;  %v5916_v38 = vpop.f32.mrf.mxu1  ;;  %v5977_v52 = vpop.f32.mrf.mxu0 }
 0x1ad   : > { %v5431_v34 = vld [vmem:[%s6655_s10 + $0xcc] sm:$0xf]  ;;  %v6547_v27 = vld [vmem:[#allocation2 + $0x2f0] ss:$36 sps:$4 sm:$0xff]   ;;  %2725 = vst [vmem:[#allocation2 + $0x3c8] sm:$0xf] %v2649_v31  ;;  %4829 = vmatprep.mubr.bf16.mxu1 %v6546_v60  ;;  %v5917_v62 = vadd.f32 %v5916_v38, %v5915_v36 }
 0x1ae   : > { %v2370_v7 = vsel %vm6687_vm2, %v2365_v61, %v2369_v0  ;;  %2455 = vst [vmem:[#allocation2 + $0x40c] sm:$0xf] %v2360_v16  ;;  %v2652_v2 = vsel %vm6832_vm5, %v2650_v48, %v2651_v28  ;;  %v5432_v46 = vld [vmem:[%s6655_s10 + $0xd0] sm:$0xf]  ;;  %v5433_v12 = vld [vmem:[%s6655_s10 + $0xd4] sm:$0x1]  ;;  %6226 = vmatprep.mubr.bf16.mxu0 %v6547_v27  ;;  %4830 = vmatmul.mubr.bf16.gmra.mxu1 %v6544_v35  ;;  %v5918_v55 = vpop.f32.mrf.mxu1 }
 0x1af   : > { %v2372_v45 = vshrl.u32 %v5431_v34, 16  ;;  %v2375_v24 = vshll.u32 %v5431_v34, 16  ;;  %v6548_v57 = vld [vmem:[#allocation2 + $0x338] ss:$36 sps:$4 sm:$0xff]   ;;  %2456 = vst [vmem:[#allocation2 + $0x430] sm:$0xf] %v2370_v7  ;;  %v4336_v0 = vadd.f32 %v7958_v26, %v7892_v18  ;;  %v5978_v16 = vadd.f32 %v5977_v52, %v5976_v20  ;;  %v5979_v7 = vpop.f32.mrf.mxu0 }
 0x1b0   : > { %2726 = vst [vmem:[#allocation2 + $0x3ec] sm:$0xf] %v2652_v2  ;;  %v2381_v41 = vshll.u32 %v5432_v46, 16  ;;  %v2385_v44 = vshrl.u32 %v5432_v46, 16  ;;  %v8414_v47 = vld [vmem:[#allocation5_spill] sm:$0xff]  ;;  %v2391_v17 = vshll.u32 %v5433_v12, 16  ;;  %6227 = vmatmul.mubr.bf16.gmra.mxu0 %v6548_v57  ;;  %v5919_v48 = vpop.f32.mrf.mxu1 }
 0x1b1   : > { %v5811_v3 = vadd.f32 %v8414_v47, %v8413_v33  ;;  %v2374_v5 = vrot.slane %v2372_v45, 4  ;;  %v2377_v21 = vrot.slane %v2375_v24, 5  ;;  %v5476_v28 = vld [vmem:[%s6655_s10 + $0xc0] sm:$0xe]  ;;  %v5477_v14 = vld [vmem:[%s6655_s10 + $0xc4] sm:$0xf]  ;;  %v8052_v18 = vadd.f32 %v5917_v62, %v4336_v0  ;;  %v5980_v20 = vpop.f32.mrf.mxu0 }
 0x1b2   : > { %v8415_v53 = vld [vmem:[#allocation3_spill] sm:$0xff]  ;;  %v2383_v11 = vrot.slane %v2381_v41, 5  ;;  %v2387_v35 = vrot.slane %v2385_v44, 4  ;;  %v2393_v30 = vrot.slane %v2391_v17, 5  ;;  %v5478_v60 = vld [vmem:[%s6655_s10 + $0xc8] sm:$0x1]  ;;  %v5920_v2 = vadd.f32 %v5919_v48, %v5918_v55  ;;  %v5921_v38 = vpop.f32.mrf.mxu1 }
 0x1b3   : > { %v4341_v13 = vadd.f32 %v7958_v26, %v8415_v53  ;;  %v2378_v49 = vor.u32 %v2377_v21, %v2374_v5  ;;  %v5496_v61 = vrot.slane %v5476_v28, 9  ;;  %v2655_v31 = vrot.slane %v5477_v14, 5  ;;  %v6552_v34 = vld [vmem:[#allocation2 + $0x380] ss:$36 sps:$4 sm:$0xff]   ;;  %v5479_v24 = vld [vmem:[%s6655_s10 + $0xcc] sm:$0xe] }
 0x1b4   : > { %v2388_v36 = vor.u32 %v2387_v35, %v2383_v11  ;;  %v2658_v27 = vrot.slane %v5478_v60, 5  ;;  %v4344_v57 = vadd.f32 %v7958_v26, %v5811_v3  ;;  %6230 = vmatprep.mubr.bf16.mxu0 %v6552_v34  ;;  %v5480_v44 = vld [vmem:[%s6655_s10 + $0xd0] sm:$0xf]  ;;  %v5481_v0 = vld [vmem:[%s6655_s10 + $0xd4] sm:$0x1]  ;;  %v8062_v62 = vadd.f32 %v5978_v16, %v7738_v10  ;;  %v5922_v55 = vpop.f32.mrf.mxu1  ;;  %s5717_s10 = sshll.u32 %s8444_s12, 8 }
 0x1b5   : > { %v2379_v46 = vrot.slane %v2378_v49, 4  ;;  %v2656_v12 = vsel %vm6832_vm5, %v5496_v61, %v2655_v31  ;;  %v2657_v45 = vrot.slane %v2655_v31, 4  ;;  %v8064_v33 = vadd.f32 %v5920_v2, %v4341_v13  ;;  %v6549_v47 = vld [vmem:[#allocation2 + $0x408] ss:$36 sps:$4 sm:$0xff]   ;;  %v6554_v16 = vld [vmem:[#allocation2 + $0x450] ss:$36 sps:$4 sm:$0xff]   ;;  %s8258_s11 = scalar_lea.vmem %s8388_s3, %s5717_s10 }
 0x1b6   : > { %v2389_v41 = vrot.slane %v2388_v36, 4  ;;  %2727 = vst [vmem:[#allocation2 + $0x410] sm:$0xf] %v2656_v12  ;;  %v6551_v5 = vld [vmem:[#allocation2 + $0x40c] ss:$36 sps:$4 sm:$0xff]   ;;  %v5497_v3 = vrot.slane %v5479_v24, 9  ;;  %v5981_v28 = vadd.f32 %v5980_v20, %v5979_v7  ;;  %v5923_v14 = vadd.f32 %v5922_v55, %v5921_v38 }
 0x1b7   : > { %v2384_v21 = vsel %vm6687_vm2, %v2379_v46, %v2383_v11  ;;  %v2659_v17 = vsel %vm6832_vm5, %v2657_v45, %v2658_v27  ;;  %v6553_v53 = vld [vmem:[#allocation2 + $0x3c8] ss:$36 sps:$4 sm:$0xff]   ;;  %v2662_v10 = vrot.slane %v5480_v44, 5  ;;  %v2665_v13 = vrot.slane %v5481_v0, 5  ;;  %4837 = vmatprep.mubr.bf16.mxu1 %v6551_v5  ;;  %v5982_v11 = vpop.f32.mrf.mxu0  ;;  %v5924_v27 = vpop.f32.mrf.mxu1  ;;  %v8416_v12 = vld [vmem:[#allocation7_spill] sm:$0xff]  ;;  %v8417_v24 = vld [vmem:[#allocation6_spill] sm:$0xff] }
 0x1b8   : > { %v2394_v35 = vsel %vm6687_vm2, %v2389_v41, %v2393_v30  ;;  %2457 = vst [vmem:[#allocation2 + $0x454] sm:$0xf] %v2384_v21  ;;  %2728 = vst [vmem:[#allocation2 + $0x434] sm:$0xf] %v2659_v17  ;;  %v8073_v52 = vadd.f32 %v5981_v28, %v7765_v1  ;;  %4838 = vmatmul.mubr.bf16.gmra.mxu1 %v6549_v47  ;;  %6231 = vmatmul.mubr.bf16.gmra.mxu0 %v6553_v53 }
 0x1b9   : > { %2458 = vst [vmem:[#allocation2 + $0x478] sm:$0xf] %v2394_v35  ;;  %v2663_v49 = vsel %vm6832_vm5, %v5497_v3, %v2662_v10  ;;  %v2664_v60 = vrot.slane %v2662_v10, 4  ;;  %v8077_v61 = vadd.f32 %v5923_v14, %v4344_v57  ;;  %v5983_v39 = vpop.f32.mrf.mxu0  ;;  %v5925_v46 = vpop.f32.mrf.mxu1  ;;  %v4349_v45 = vadd.f32 %v7958_v26, %v8416_v12  ;;  %v8419_v35 = vld [vmem:[#allocation9_spill] sm:$0xff]  ;;  %v8421_v14 = vld [vmem:[#allocation11_spill] sm:$0xff] }
 0x1ba   : > { %2729 = vst [vmem:[#allocation2 + $0x458] sm:$0xf] %v2663_v49  ;;  %v5984_v31 = vadd.f32 %v5983_v39, %v5982_v11  ;;  %v5817_v38 = vadd.f32 %v8418_v43, %v8417_v24  ;;  %v4357_v10 = vadd.f32 %v7958_v26, %v8419_v35 }
 0x1bb   : > { %v2666_v30 = vsel %vm6832_vm5, %v2664_v60, %v2665_v13  ;;  %v5985_v48 = vpop.f32.mrf.mxu0  ;;  %v5927_v41 = vpop.f32.mrf.mxu1  ;;  %v8420_v13 = vld [vmem:[#allocation10_spill] sm:$0xff] }
 0x1bc   : > { %2730 = vst [vmem:[#allocation2 + $0x47c] sm:$0xf] %v2666_v30  ;;  %v8082_v1 = vadd.f32 %v5984_v31, %v7789_v56  ;;  %v5926_v56 = vadd.f32 %v5925_v46, %v5924_v27  ;;  %v4352_v5 = vadd.f32 %v7958_v26, %v5817_v38  ;;  %v5823_v11 = vadd.f32 %v8421_v14, %v8420_v13 }
 0x1bd   : > { %v5986_v36 = vpop.f32.mrf.mxu0  ;;  %v5928_v47 = vpop.f32.mrf.mxu1 }
 0x1be   : > { %v5987_v2 = vadd.f32 %v5986_v36, %v5985_v48  ;;  %v8091_v0 = vadd.f32 %v5926_v56, %v4349_v45  ;;  %v5929_v21 = vadd.f32 %v5928_v47, %v5927_v41  ;;  %v4360_v36 = vadd.f32 %v7958_v26, %v5823_v11  ;;  %v8422_v41 = vld [vmem:[#allocation12_spill] sm:$0xff] }
 0x1bf   : > { %v6557_v34 = vld [vmem:[#allocation2 + $0x410] ss:$36 sps:$4 sm:$0xff]   ;;  %v5988_v20 = vpop.f32.mrf.mxu0  ;;  %v5930_v3 = vpop.f32.mrf.mxu1 }
 0x1c0   : > { %v6556_v7 = vld [vmem:[#allocation2 + $0x454] ss:$36 sps:$4 sm:$0xff]   ;;  %6234 = vmatprep.mubr.bf16.mxu0 %v6557_v34  ;;  %v8089_v57 = vadd.f32 %v5987_v2, %v7796_v58  ;;  %v8094_v55 = vadd.f32 %v5929_v21, %v4352_v5 }
 0x1c1   : > { %4845 = vmatprep.mubr.bf16.mxu1 %v6556_v7  ;;  %v5989_v17 = vpop.f32.mrf.mxu0  ;;  %v5931_v58 = vpop.f32.mrf.mxu1 }
 0x1c2   : > { %4846 = vmatmul.mubr.bf16.gmra.mxu1 %v6554_v16  ;;  %v5990_v28 = vadd.f32 %v5989_v17, %v5988_v20  ;;  %v5932_v60 = vadd.f32 %v5931_v58, %v5930_v3  ;;  %v8423_v20 = vld [vmem:[#allocation13_spill] sm:$0xff] }
 0x1c3   : > { %v6558_v44 = vld [vmem:[#allocation2 + $0x458] ss:$36 sps:$4 sm:$0xff]   ;;  %v5991_v53 = vpop.f32.mrf.mxu0  ;;  %v5933_v30 = vpop.f32.mrf.mxu1 }
 0x1c4   : > { %6235 = vmatmul.mubr.bf16.gmra.mxu0 %v6558_v44  ;;  %v8101_v49 = vadd.f32 %v5990_v28, %v7809_v4  ;;  %v8103_v48 = vadd.f32 %v5932_v60, %v4357_v10  ;;  %v4365_v44 = vadd.f32 %v7958_v26, %v8422_v41 }
 0x1c5   : > { %v5992_v39 = vpop.f32.mrf.mxu0  ;;  %v5934_v34 = vpop.f32.mrf.mxu1 }
 0x1c6   : > { %v5993_v31 = vadd.f32 %v5992_v39, %v5991_v53  ;;  %v5935_v7 = vadd.f32 %v5934_v34, %v5933_v30 }
 0x1c7   : > { %v5994_v16 = vpop.f32.mrf.mxu0  ;;  %v5936_v43 = vpop.f32.mrf.mxu1 }
 0x1c8   : > { %v8107_v27 = vadd.f32 %v5993_v31, %v7849_v25  ;;  %v8109_v46 = vadd.f32 %v5935_v7, %v4360_v36  ;;  %v8424_v25 = vld [vmem:[#allocation14_spill] sm:$0xff] }
 0x1c9   : > { %v5995_v2 = vpop.f32.mrf.mxu0  ;;  %v5937_v56 = vpop.f32.mrf.mxu1  ;;  %v5829_v47 = vadd.f32 %v8424_v25, %v8423_v20 }
 0x1ca   : > { %v5996_v12 = vadd.f32 %v5995_v2, %v5994_v16  ;;  %v5938_v21 = vadd.f32 %v5937_v56, %v5936_v43 }
 0x1cb   : > { %v5997_v4 = vpop.f32.mrf.mxu0  ;;  %v5939_v17 = vpop.f32.mrf.mxu1 }
 0x1cc   : > { %v8112_v45 = vadd.f32 %v5996_v12, %v7857_v22  ;;  %v8121_v3 = vadd.f32 %v5938_v21, %v4365_v44  ;;  %v4368_v22 = vadd.f32 %v7958_v26, %v5829_v47 }
 0x1cd   : > { %v5998_v24 = vpop.f32.mrf.mxu0  ;;  %v5940_v28 = vpop.f32.mrf.mxu1 }
 0x1ce   : > { %v5999_v38 = vadd.f32 %v5998_v24, %v5997_v4  ;;  %v5941_v58 = vadd.f32 %v5940_v28, %v5939_v17 }
 0x1cf   : > { %v6000_v53 = vpop.f32.mrf.mxu0 }
 0x1d0   : > { %v8119_v5 = vadd.f32 %v5999_v38, %v7882_v19  ;;  %v8124_v10 = vadd.f32 %v5941_v58, %v4368_v22 }
 0x1d1   : > { %v6001_v35 = vpop.f32.mrf.mxu0  ;;  %v8132_v26 = vpop.f32.mrf.mxu1 }
 0x1d2   : > { %v6002_v13 = vadd.f32 %v6001_v35, %v6000_v53 }
 0x1d3   : > { %v6003_v14 = vpop.f32.mrf.mxu0  ;;  %v8137_v2 = vpop.f32.mrf.mxu1 }
 0x1d4   : > { %v8127_v11 = vadd.f32 %v6002_v13, %v7908_v40 }
 0x1d5   : > { %v6004_v60 = vpop.f32.mrf.mxu0  ;;  %v8139_v40 = vpop.f32.mrf.mxu1 }
 0x1d6   : > { %v6005_v19 = vadd.f32 %v6004_v60, %v6003_v14 }
 0x1d7   : > { %v6006_v39 = vpop.f32.mrf.mxu0  ;;  %v8144_v38 = vpop.f32.mrf.mxu1 }
 0x1d8   : > { %v8130_v30 = vadd.f32 %v6005_v19, %v7921_v8 }
 0x1d9   : > { %v6007_v31 = vpop.f32.mrf.mxu0 }
 0x1da   : > { %v6008_v34 = vadd.f32 %v6007_v31, %v6006_v39 }
 0x1db   : > { %v6009_v36 = vpop.f32.mrf.mxu0 }
 0x1dc   : > { %v8135_v16 = vadd.f32 %v6008_v34, %v7923_v42 }
 0x1dd   : > { %v6010_v7 = vpop.f32.mrf.mxu0 }
 0x1de   : > { %v6011_v12 = vadd.f32 %v6010_v7, %v6009_v36  ;;  %v8149_v20 = vpop.f32.mrf.mxu1 }
 0x1df   : > { %v6012_v24 = vpop.f32.mrf.mxu0 }
 0x1e0   : > { %v8142_v4 = vadd.f32 %v6011_v12, %v7940_v6  ;;  %v8154_v47 = vpop.f32.mrf.mxu1 }
 0x1e1   : > { %v6013_v8 = vpop.f32.mrf.mxu0 }
 0x1e2   : > { %v6014_v43 = vadd.f32 %v6013_v8, %v6012_v24  ;;  %v8156_v21 = vpop.f32.mrf.mxu1 }
 0x1e3   : > { %v6015_v56 = vpop.f32.mrf.mxu0 }
 0x1e4   : > { %v8147_v41 = vadd.f32 %v6014_v43, %v7969_v23  ;;  %v8158_v22 = vpop.f32.mrf.mxu1 }
 0x1e5   : > { %v6016_v42 = vpop.f32.mrf.mxu0 }
 0x1e6   : > { %v6017_v44 = vadd.f32 %v6016_v42, %v6015_v56 }
 0x1e7   : > { %v6018_v6 = vpop.f32.mrf.mxu0 }
 0x1e8   : > { %v8152_v25 = vadd.f32 %v6017_v44, %v7979_v63 }
 0x1e9   : > { %v6019_v17 = vpop.f32.mrf.mxu0 }
 0x1ea   : > { %v6020_v28 = vadd.f32 %v6019_v17, %v6018_v6 }
 0x1eb   : > { %v6021_v53 = vpop.f32.mrf.mxu0  ;;  %v8163_v13 = vpop.f32.mrf.mxu1 }
 0x1ec   : > { %v8161_v23 = vadd.f32 %v6020_v28, %v7990_v59 }
 0x1ed   : > { %v6022_v58 = vpop.f32.mrf.mxu0  ;;  %v8168_v14 = vpop.f32.mrf.mxu1 }
 0x1ee   : > { %v6023_v35 = vadd.f32 %v6022_v58, %v6021_v53 }
 0x1ef   : > { %v8170_v60 = vpop.f32.mrf.mxu1 }
 0x1f0   : > { %v8166_v63 = vadd.f32 %v6023_v35, %v8004_v32  ;;  %v6024_v19 = vpop.f32.mrf.mxu0 }
 0x1f1   : > { %v8172_v31 = vpop.f32.mrf.mxu1 }
 0x1f2   : > { %8425 = vst [vmem:[#allocation17_spill] sm:$0xff] %v8166_v63  ;;  %v6025_v39 = vpop.f32.mrf.mxu0 }
 0x1f3   : > { %v6026_v34 = vadd.f32 %v6025_v39, %v6024_v19 }
 0x1f4   : > { %v6027_v36 = vpop.f32.mrf.mxu0 }
 0x1f5   : > { %v8175_v59 = vadd.f32 %v6026_v34, %v8036_v51 }
 0x1f6   : > { %v6028_v7 = vpop.f32.mrf.mxu0 }
 0x1f7   : > { %v8177_v12 = vpop.f32.mrf.mxu1  ;;  %v6029_v24 = vadd.f32 %v6028_v7, %v6027_v36 }
 0x1f9   : > { %v8179_v8 = vpop.f32.mrf.mxu1  ;;  %v8182_v32 = vadd.f32 %v6029_v24, %v8052_v18 }
 0x1fb   : > { %8426 = vst [vmem:[#allocation15_spill] sm:$0xff] %v8182_v32  ;;  %v8184_v43 = vpop.f32.mrf.mxu1  ;;  %v6030_v56 = vpop.f32.mrf.mxu0 }
 0x1fd   : > { %v6031_v42 = vpop.f32.mrf.mxu0  ;;  %v8186_v44 = vpop.f32.mrf.mxu1 }
 0x1fe   : > { %v6032_v6 = vadd.f32 %v6031_v42, %v6030_v56 }
 0x1ff   : > { %v6033_v17 = vpop.f32.mrf.mxu0 }
 0x200   : > { %v8189_v51 = vadd.f32 %v6032_v6, %v8064_v33 }
 0x201   : > { %v6034_v28 = vpop.f32.mrf.mxu0 }
 0x202   : > { %8427 = vst [vmem:[#allocation16_spill] sm:$0xff] %v8189_v51  ;;  %v6035_v58 = vadd.f32 %v6034_v28, %v6033_v17 }
 0x204   : > { %v8191_v53 = vpop.f32.mrf.mxu1  ;;  %v8196_v18 = vadd.f32 %v6035_v58, %v8077_v61 }
 0x206   : > { %v8193_v35 = vpop.f32.mrf.mxu1  ;;  %8428 = vst [vmem:[#allocation18_spill] sm:$0xff] %v8196_v18 }
 0x208   : > { %v8198_v19 = vpop.f32.mrf.mxu1 }
 0x20a   : > { %v6036_v39 = vpop.f32.mrf.mxu0  ;;  %v8200_v7 = vpop.f32.mrf.mxu1 }
 0x20c   : > { %v6037_v34 = vpop.f32.mrf.mxu0 }
 0x20d   : > { %v6038_v36 = vadd.f32 %v6037_v34, %v6036_v39 }
 0x20e   : > { %v6039_v24 = vpop.f32.mrf.mxu0 }
 0x20f   : > { %v8203_v33 = vadd.f32 %v6038_v36, %v8091_v0 }
 0x210   : > { %v6040_v56 = vpop.f32.mrf.mxu0 }
 0x211   : > { %8429 = vst [vmem:[#allocation4_spill] sm:$0xff] %v8203_v33  ;;  %v6041_v42 = vadd.f32 %v6040_v56, %v6039_v24 }
 0x213   : > { %v8205_v6 = vpop.f32.mrf.mxu1  ;;  %v8208_v17 = vadd.f32 %v6041_v42, %v8094_v55 }
 0x215   : > { %8430 = vst [vmem:[#allocation5_spill] sm:$0xff] %v8208_v17  ;;  %v8210_v61 = vpop.f32.mrf.mxu1 }
 0x217   : > { %v6042_v28 = vpop.f32.mrf.mxu0  ;;  %v8212_v58 = vpop.f32.mrf.mxu1 }
 0x219   : > { %v6043_v18 = vpop.f32.mrf.mxu0  ;;  %v8214_v34 = vpop.f32.mrf.mxu1 }
 0x21a   : > { %v6044_v39 = vadd.f32 %v6043_v18, %v6042_v28 }
 0x21b   : > { %v6045_v51 = vpop.f32.mrf.mxu0 }
 0x21c   : > { %v8217_v0 = vadd.f32 %v6044_v39, %v8103_v48 }
 0x21d   : > { %v6046_v36 = vpop.f32.mrf.mxu0 }
 0x21e   : > { %v6047_v24 = vadd.f32 %v6046_v36, %v6045_v51 }
 0x220   : > { %v8222_v55 = vadd.f32 %v6047_v24, %v8109_v46  ;;  %v6078_v46 = vadd.f32 %v8154_v47, %v8149_v20  ;;  %v6075_v20 = vadd.f32 %v8144_v38, %v8139_v40 }
 0x221   : > { %v8219_v56 = vpop.f32.mrf.mxu1 }
 0x222   : > { %8431 = vst [vmem:[#allocation3_spill] sm:$0xff] %v8222_v55  ;;  %v6072_v55 = vadd.f32 %v8137_v2, %v8132_v26 }
 0x223   : > { %v8224_v42 = vpop.f32.mrf.mxu1 }
 0x224   : > { %v6048_v17 = vpop.f32.mrf.mxu0 }
 0x225   : > { %v8226_v33 = vpop.f32.mrf.mxu1 }
 0x226   : > { %v6049_v18 = vpop.f32.mrf.mxu0 }
 0x227   : > { %v6050_v28 = vadd.f32 %v6049_v18, %v6048_v17  ;;  %v8228_v63 = vpop.f32.mrf.mxu1  ;;  %v6081_v18 = vadd.f32 %v8158_v22, %v8156_v21  ;;  %v6090_v22 = vadd.f32 %v8179_v8, %v8177_v12  ;;  %v6093_v12 = vadd.f32 %v8186_v44, %v8184_v43 }
 0x228   : > { %v6051_v32 = vpop.f32.mrf.mxu0 }
 0x229   : > { %v8231_v48 = vadd.f32 %v6050_v28, %v8121_v3  ;;  %v4739_v40 = vadd.f32 %v6081_v18, %v7988_v9 }
 0x22a   : > { %v6052_v51 = vpop.f32.mrf.mxu0 }
 0x22b   : > { %v6053_v39 = vadd.f32 %v6052_v51, %v6051_v32  ;;  %v4736_v32 = vadd.f32 %v6078_v46, %v7977_v29  ;;  %v4728_v51 = vadd.f32 %v6072_v55, %v7933_v37  ;;  %v4731_v46 = vadd.f32 %v6075_v20, %v7948_v15 }
 0x22c   : > { %v6087_v20 = vadd.f32 %v8172_v31, %v8170_v60 }
 0x22d   : > { %v8238_v24 = vadd.f32 %v6053_v39, %v8124_v10 }
 0x22e   : > { %v4747_v31 = vadd.f32 %v6087_v20, %v8033_v54 }
 0x22f   : > { %v8235_v36 = vpop.f32.mrf.mxu1 }
 0x231   : > { %v8242_v17 = vpop.f32.mrf.mxu1 }
 0x233   : > { %v8246_v3 = vpop.f32.mrf.mxu1 }
 0x235   : > { %v6208_v28 = vpop.f32.mrf.mxu0  ;;  %v8252_v47 = vpop.f32.mrf.mxu1 }
 0x236   : > { %v4897_v10 = vadd.f32 %v6208_v28, %v4736_v32  ;;  %v6084_v28 = vadd.f32 %v8168_v14, %v8163_v13 }
 0x237   : > { %v4888_v26 = vpop.f32.mrf.mxu0  ;;  %v8260_v2 = vpop.f32.mrf.mxu1 }
 0x238   : > { %v5017_v29 = vmax.f32 %v4897_v10, 0.0  ;;  %v4889_v21 = vadd.f32 %v4888_v26, %v4728_v51  ;;  %v4752_v26 = vadd.f32 %v6090_v22, %v8062_v62 }
 0x239   : > { %v6209_v38 = vpop.f32.mrf.mxu0  ;;  %v8266_v37 = vpop.f32.mrf.mxu1 }
 0x23a   : > { %5049 = vst [vmem:[%s8258_s11 + $0x10] sm:$0xff] %v5017_v29  ;;  %v5015_v55 = vmax.f32 %v4889_v21, 0.0  ;;  %v4900_v39 = vadd.f32 %v6209_v38, %v4739_v40  ;;  %v4744_v29 = vadd.f32 %v6084_v28, %v8028_v50  ;;  %v4755_v38 = vadd.f32 %v6093_v12, %v8073_v52 }
 0x23b   : > { %v4891_v32 = vpop.f32.mrf.mxu0  ;;  %v8272_v10 = vpop.f32.mrf.mxu1  ;;  %v6102_v50 = vadd.f32 %v8210_v61, %v8205_v6  ;;  %v6096_v52 = vadd.f32 %v8193_v35, %v8191_v53  ;;  %v6105_v12 = vadd.f32 %v8214_v34, %v8212_v58  ;;  %v6099_v61 = vadd.f32 %v8200_v7, %v8198_v19 }
 0x23c   : > { %5047 = vst [vmem:[%s8258_s11] sm:$0xff] %v5015_v55  ;;  %v5018_v9 = vmax.f32 %v4900_v39, 0.0  ;;  %v4892_v18 = vadd.f32 %v4891_v32, %v4731_v46  ;;  %v6108_v7 = vadd.f32 %v8224_v42, %v8219_v56 }
 0x23d   : > { %v8277_v8 = vpop.f32.mrf.mxu1  ;;  %v4768_v54 = vadd.f32 %v6102_v50, %v8101_v49  ;;  %v4760_v53 = vadd.f32 %v6096_v52, %v8082_v1  ;;  %v4771_v58 = vadd.f32 %v6105_v12, %v8107_v27  ;;  %v6114_v49 = vadd.f32 %v8242_v17, %v8235_v36 }
 0x23e   : > { %5050 = vst [vmem:[%s8258_s11 + $0x18] sm:$0xff] %v5018_v9  ;;  %v5016_v51 = vmax.f32 %v4892_v18, 0.0  ;;  %v4763_v1 = vadd.f32 %v6099_v61, %v8089_v57  ;;  %v6117_v27 = vadd.f32 %v8252_v47, %v8246_v3  ;;  %v6111_v57 = vadd.f32 %v8228_v63, %v8226_v33 }
 0x23f   : > { %v6212_v15 = vpop.f32.mrf.mxu0  ;;  %v4784_v36 = vadd.f32 %v6114_v49, %v8127_v11  ;;  %v4776_v56 = vadd.f32 %v6108_v7, %v8112_v45  ;;  %v6120_v45 = vadd.f32 %v8266_v37, %v8260_v2 }
 0x240   : > { %5048 = vst [vmem:[%s8258_s11 + $0x8] sm:$0xff] %v5016_v51  ;;  %v8283_v13 = vpop.f32.mrf.mxu1  ;;  %v4913_v14 = vadd.f32 %v6212_v15, %v4752_v26  ;;  %v4787_v3 = vadd.f32 %v6117_v27, %v8130_v30  ;;  %v4779_v63 = vadd.f32 %v6111_v57, %v8119_v5  ;;  %v6123_v5 = vadd.f32 %v8277_v8, %v8272_v10 }
 0x241   : > { %v4904_v21 = vpop.f32.mrf.mxu0  ;;  %v4792_v2 = vadd.f32 %v6120_v45, %v8135_v16 }
 0x242   : > { %v5021_v43 = vmax.f32 %v4913_v14, 0.0  ;;  %v6125_v44 = vpop.f32.mrf.mxu1  ;;  %v4905_v40 = vadd.f32 %v4904_v21, %v4744_v29  ;;  %v4795_v10 = vadd.f32 %v6123_v5, %v8142_v4 }
 0x243   : > { %v6213_v55 = vpop.f32.mrf.mxu0  ;;  %v6126_v11 = vadd.f32 %v6125_v44, %v8283_v13 }
 0x244   : > { %5053 = vst [vmem:[%s8258_s11 + $0x30] sm:$0xff] %v5021_v43  ;;  %v5019_v62 = vmax.f32 %v4905_v40, 0.0  ;;  %v8288_v22 = vpop.f32.mrf.mxu1  ;;  %v4916_v60 = vadd.f32 %v6213_v55, %v4755_v38 }
 0x245   : > { %v4907_v39 = vpop.f32.mrf.mxu0  ;;  %v4800_v13 = vadd.f32 %v6126_v11, %v8147_v41 }
 0x246   : > { %5051 = vst [vmem:[%s8258_s11 + $0x20] sm:$0xff] %v5019_v62  ;;  %v5022_v46 = vmax.f32 %v4916_v60, 0.0  ;;  %v6128_v32 = vpop.f32.mrf.mxu1  ;;  %v4908_v28 = vadd.f32 %v4907_v39, %v4747_v31 }
 0x247   : > { %v6129_v30 = vadd.f32 %v6128_v32, %v8288_v22 }
 0x248   : > { %5054 = vst [vmem:[%s8258_s11 + $0x38] sm:$0xff] %v5022_v46  ;;  %v5020_v9 = vmax.f32 %v4908_v28, 0.0 }
 0x249   : > { %v4803_v32 = vadd.f32 %v6129_v30, %v8152_v25 }
 0x24a   : > { %5052 = vst [vmem:[%s8258_s11 + $0x28] sm:$0xff] %v5020_v9 }
 0x24b   : > { %v8297_v18 = vpop.f32.mrf.mxu1 }
 0x24d   : > { %v8303_v6 = vpop.f32.mrf.mxu1 }
 0x24e   : > { %v6216_v51 = vpop.f32.mrf.mxu0 }
 0x24f   : > { %v4929_v26 = vadd.f32 %v6216_v51, %v4768_v54  ;;  %v8308_v15 = vpop.f32.mrf.mxu1 }
 0x250   : > { %v4920_v35 = vpop.f32.mrf.mxu0 }
 0x251   : > { %v5025_v20 = vmax.f32 %v4929_v26, 0.0  ;;  %v4921_v14 = vadd.f32 %v4920_v35, %v4760_v53  ;;  %v8314_v19 = vpop.f32.mrf.mxu1 }
 0x252   : > { %v6217_v34 = vpop.f32.mrf.mxu0  ;;  %v6135_v4 = vadd.f32 %v8314_v19, %v8308_v15 }
 0x253   : > { %5057 = vst [vmem:[%s8258_s11 + $0x50] sm:$0xff] %v5025_v20  ;;  %v5023_v29 = vmax.f32 %v4921_v14, 0.0  ;;  %v4932_v21 = vadd.f32 %v6217_v34, %v4771_v58 }
 0x254   : > { %v4923_v43 = vpop.f32.mrf.mxu0 }
 0x255   : > { %5055 = vst [vmem:[%s8258_s11 + $0x40] sm:$0xff] %v5023_v29  ;;  %v5026_v40 = vmax.f32 %v4932_v21, 0.0  ;;  %v4924_v38 = vadd.f32 %v4923_v43, %v4763_v1  ;;  %v6132_v1 = vadd.f32 %v8303_v6, %v8297_v18  ;;  %v8432_v6 = vld [vmem:[#allocation15_spill] sm:$0xff] }
 0x257   : > { %5058 = vst [vmem:[%s8258_s11 + $0x58] sm:$0xff] %v5026_v40  ;;  %v5024_v17 = vmax.f32 %v4924_v38, 0.0  ;;  %v6136_v55 = vpop.f32.mrf.mxu1  ;;  %v6220_v62 = vpop.f32.mrf.mxu0 }
 0x258   : > { %v4945_v60 = vadd.f32 %v6220_v62, %v4784_v36  ;;  %v4808_v36 = vadd.f32 %v6132_v1, %v8161_v23 }
 0x259   : > { %5056 = vst [vmem:[%s8258_s11 + $0x48] sm:$0xff] %v5024_v17  ;;  %v6137_v42 = vpop.f32.mrf.mxu1  ;;  %v4936_v31 = vpop.f32.mrf.mxu0 }
 0x25a   : > { %v5029_v39 = vmax.f32 %v4945_v60, 0.0  ;;  %v4937_v50 = vadd.f32 %v4936_v31, %v4776_v56  ;;  %v6138_v29 = vadd.f32 %v6137_v42, %v6136_v55 }
 0x25b   : > { %v6139_v47 = vpop.f32.mrf.mxu1  ;;  %v6221_v46 = vpop.f32.mrf.mxu0 }
 0x25c   : > { %5061 = vst [vmem:[%s8258_s11 + $0x70] sm:$0xff] %v5029_v39  ;;  %v5027_v28 = vmax.f32 %v4937_v50, 0.0  ;;  %v4948_v52 = vadd.f32 %v6221_v46, %v4787_v3  ;;  %v4816_v43 = vadd.f32 %v6138_v29, %v8175_v59  ;;  %v8433_v50 = vld [vmem:[#allocation17_spill] sm:$0xff] }
 0x25d   : > { %v6140_v33 = vpop.f32.mrf.mxu1  ;;  %v4939_v9 = vpop.f32.mrf.mxu0  ;;  %v4811_v15 = vadd.f32 %v6135_v4, %v8433_v50 }
 0x25e   : > { %5059 = vst [vmem:[%s8258_s11 + $0x60] sm:$0xff] %v5027_v28  ;;  %v5030_v12 = vmax.f32 %v4948_v52, 0.0  ;;  %v4940_v54 = vadd.f32 %v4939_v9, %v4779_v63  ;;  %v6141_v7 = vadd.f32 %v6140_v33, %v6139_v47  ;;  %v8434_v47 = vld [vmem:[#allocation4_spill] sm:$0xff] }
 0x25f   : > { %v8435_v9 = vld [vmem:[#allocation16_spill] sm:$0xff] }
 0x260   : > { %5062 = vst [vmem:[%s8258_s11 + $0x78] sm:$0xff] %v5030_v12  ;;  %v5028_v44 = vmax.f32 %v4940_v54, 0.0  ;;  %v4819_v60 = vadd.f32 %v6141_v7, %v8432_v6 }
 0x261   : > { %v6224_v51 = vpop.f32.mrf.mxu0 }
 0x262   : > { %v6142_v61 = vpop.f32.mrf.mxu1  ;;  %v4961_v26 = vadd.f32 %v6224_v51, %v4800_v13  ;;  %5060 = vst [vmem:[%s8258_s11 + $0x68] sm:$0xff] %v5028_v44  ;;  %v8436_v51 = vld [vmem:[#allocation5_spill] sm:$0xff] }
 0x263   : > { %v4952_v37 = vpop.f32.mrf.mxu0 }
 0x264   : > { %v5033_v53 = vmax.f32 %v4961_v26, 0.0  ;;  %v6143_v35 = vpop.f32.mrf.mxu1  ;;  %v4953_v22 = vadd.f32 %v4952_v37, %v4792_v2 }
 0x265   : > { %v6225_v41 = vpop.f32.mrf.mxu0  ;;  %v6144_v59 = vadd.f32 %v6143_v35, %v6142_v61 }
 0x266   : > { %5065 = vst [vmem:[%s8258_s11 + $0x90] sm:$0xff] %v5033_v53  ;;  %v5031_v20 = vmax.f32 %v4953_v22, 0.0  ;;  %v6145_v14 = vpop.f32.mrf.mxu1  ;;  %v4964_v58 = vadd.f32 %v6225_v41, %v4803_v32  ;;  %v8437_v53 = vld [vmem:[#allocation18_spill] sm:$0xff] }
 0x267   : > { %v4955_v8 = vpop.f32.mrf.mxu0  ;;  %v4824_v12 = vadd.f32 %v6144_v59, %v8435_v9 }
 0x268   : > { %5063 = vst [vmem:[%s8258_s11 + $0x80] sm:$0xff] %v5031_v20  ;;  %v5034_v49 = vmax.f32 %v4964_v58, 0.0  ;;  %v6146_v16 = vpop.f32.mrf.mxu1  ;;  %v4956_v34 = vadd.f32 %v4955_v8, %v4795_v10 }
 0x269   : > { %v6147_v63 = vadd.f32 %v6146_v16, %v6145_v14 }
 0x26a   : > { %5066 = vst [vmem:[%s8258_s11 + $0x98] sm:$0xff] %v5034_v49  ;;  %v5032_v21 = vmax.f32 %v4956_v34, 0.0 }
 0x26b   : > { %v4827_v35 = vadd.f32 %v6147_v63, %v8437_v53 }
 0x26c   : > { %5064 = vst [vmem:[%s8258_s11 + $0x88] sm:$0xff] %v5032_v21 }
 0x26e   : > { %v6148_v25 = vpop.f32.mrf.mxu1 }
 0x270   : > { %v6228_v40 = vpop.f32.mrf.mxu0  ;;  %v6149_v38 = vpop.f32.mrf.mxu1 }
 0x271   : > { %v4977_v27 = vadd.f32 %v6228_v40, %v4816_v43  ;;  %v6150_v57 = vadd.f32 %v6149_v38, %v6148_v25 }
 0x272   : > { %v4968_v17 = vpop.f32.mrf.mxu0  ;;  %v6151_v55 = vpop.f32.mrf.mxu1 }
 0x273   : > { %v5037_v62 = vmax.f32 %v4977_v27, 0.0  ;;  %v4969_v18 = vadd.f32 %v4968_v17, %v4808_v36  ;;  %v4832_v46 = vadd.f32 %v6150_v57, %v8434_v47  ;;  %v8438_v36 = vld [vmem:[#allocation3_spill] sm:$0xff] }
 0x274   : > { %v6229_v56 = vpop.f32.mrf.mxu0  ;;  %v6152_v42 = vpop.f32.mrf.mxu1 }
 0x275   : > { %5069 = vst [vmem:[%s8258_s11 + $0xb0] sm:$0xff] %v5037_v62  ;;  %v5035_v31 = vmax.f32 %v4969_v18, 0.0  ;;  %v4980_v39 = vadd.f32 %v6229_v56, %v4819_v60  ;;  %v6153_v3 = vadd.f32 %v6152_v42, %v6151_v55 }
 0x276   : > { %v4971_v19 = vpop.f32.mrf.mxu0 }
 0x277   : > { %5067 = vst [vmem:[%s8258_s11 + $0xa0] sm:$0xff] %v5035_v31  ;;  %v5038_v23 = vmax.f32 %v4980_v39, 0.0  ;;  %v4972_v11 = vadd.f32 %v4971_v19, %v4811_v15  ;;  %v4835_v5 = vadd.f32 %v6153_v3, %v8436_v51 }
 0x278   : > { %v6154_v28 = vpop.f32.mrf.mxu1  ;;  %v6232_v52 = vpop.f32.mrf.mxu0 }
 0x279   : > { %5070 = vst [vmem:[%s8258_s11 + $0xb8] sm:$0xff] %v5038_v23  ;;  %v5036_v45 = vmax.f32 %v4972_v11, 0.0  ;;  %v4993_v33 = vadd.f32 %v6232_v52, %v4832_v46 }
 0x27a   : > { %v6155_v54 = vpop.f32.mrf.mxu1  ;;  %v4984_v30 = vpop.f32.mrf.mxu0 }
 0x27b   : > { %5068 = vst [vmem:[%s8258_s11 + $0xa8] sm:$0xff] %v5036_v45  ;;  %v5041_v13 = vmax.f32 %v4993_v33, 0.0  ;;  %v4985_v44 = vadd.f32 %v4984_v30, %v4824_v12  ;;  %v6156_v14 = vadd.f32 %v6155_v54, %v6154_v28 }
 0x27c   : > { %v6157_v61 = vpop.f32.mrf.mxu1  ;;  %v6233_v26 = vpop.f32.mrf.mxu0 }
 0x27d   : > { %5073 = vst [vmem:[%s8258_s11 + $0xd0] sm:$0xff] %v5041_v13  ;;  %v5039_v2 = vmax.f32 %v4985_v44, 0.0  ;;  %v4996_v37 = vadd.f32 %v6233_v26, %v4835_v5  ;;  %v4840_v29 = vadd.f32 %v6156_v14, %v8217_v0 }
 0x27e   : > { %v6158_v22 = vpop.f32.mrf.mxu1  ;;  %v4987_v32 = vpop.f32.mrf.mxu0 }
 0x27f   : > { %5071 = vst [vmem:[%s8258_s11 + $0xc0] sm:$0xff] %v5039_v2  ;;  %v5042_v41 = vmax.f32 %v4996_v37, 0.0  ;;  %v4988_v20 = vadd.f32 %v4987_v32, %v4827_v35  ;;  %v6159_v34 = vadd.f32 %v6158_v22, %v6157_v61 }
 0x281   : > { %5074 = vst [vmem:[%s8258_s11 + $0xd8] sm:$0xff] %v5042_v41  ;;  %v5040_v58 = vmax.f32 %v4988_v20, 0.0  ;;  %v4843_v17 = vadd.f32 %v6159_v34, %v8438_v36 }
 0x282   : > { %v6160_v10 = vpop.f32.mrf.mxu1 }
 0x283   : > { %5072 = vst [vmem:[%s8258_s11 + $0xc8] sm:$0xff] %v5040_v58 }
 0x284   : > { %v6161_v8 = vpop.f32.mrf.mxu1  ;;  %v6236_v49 = vpop.f32.mrf.mxu0 }
 0x285   : > { %v6162_v16 = vadd.f32 %v6161_v8, %v6160_v10 }
 0x286   : > { %v6163_v21 = vpop.f32.mrf.mxu1  ;;  %v5000_v25 = vpop.f32.mrf.mxu0 }
 0x287   : > { %v4848_v1 = vadd.f32 %v6162_v16, %v8231_v48  ;;  %v5001_v7 = vadd.f32 %v5000_v25, %v4840_v29 }
 0x288   : > { %v6164_v43 = vpop.f32.mrf.mxu1  ;;  %v6237_v38 = vpop.f32.mrf.mxu0 }
 0x289   : > { %v5009_v40 = vadd.f32 %v6236_v49, %v4848_v1  ;;  %v6165_v4 = vadd.f32 %v6164_v43, %v6163_v21  ;;  %v5043_v27 = vmax.f32 %v5001_v7, 0.0 }
 0x28a   : > { %v5003_v57 = vpop.f32.mrf.mxu0 }
 0x28b   : > { %v5045_v55 = vmax.f32 %v5009_v40, 0.0  ;;  %v4851_v62 = vadd.f32 %v6165_v4, %v8238_v24  ;;  %5075 = vst [vmem:[%s8258_s11 + $0xe0] sm:$0xff] %v5043_v27  ;;  %v5004_v0 = vadd.f32 %v5003_v57, %v4843_v17 }
 0x28d   : > { %5077 = vst [vmem:[%s8258_s11 + $0xf0] sm:$0xff] %v5045_v55  ;;  %v5012_v18 = vadd.f32 %v6237_v38, %v4851_v62  ;;  %v5044_v48 = vmax.f32 %v5004_v0, 0.0 }
 0x28f   : > { %v5046_v6 = vmax.f32 %v5012_v18, 0.0  ;;  %5076 = vst [vmem:[%s8258_s11 + $0xe8] sm:$0xff] %v5044_v48 }
 0x291   : > { %5078 = vst [vmem:[%s8258_s11 + $0xf8] sm:$0xff] %v5046_v6 }
 0x292 PF: > { %s13_s14 = sadd.s32 1, %s6582_s14   ;;  %s8439_s12 = smov %s6578_s13 }
 0x293   : > { %p10_p5 = scmp.ge.s32.totalorder %s13_s14, 4   ;;  %s8440_s13 = smov %s8442_s15 }
 0x295   :  { %12 = sbr.rel (!%p10_p5) target bundleno = 2 (0x2), region = 74 }

</bundles_post_ra>
